<compile_context>
chip_gen: v7x
topology: tpu7x:2x2x1
jax: 0.10.0
libtpu: 0.0.40
codegen_flags: <defaults>
</compile_context>

<pallas_src>
import functools

import jax
import jax.numpy as jnp
from jax.experimental import pallas as pl
from jax.experimental.pallas import tpu as pltpu

_PAD = 128  # per-sample halo width (lanes); must be >= W + 1


def _make_header_kernel(H, W, C, Nb):
    HW = H * W
    PAD = _PAD
    SEG = 2 * PAD + HW          # flat per-sample segment: halo | image | halo

    def kernel(x_ref, wb_ref, sb_ref, wh_ref, bh_ref, o_ref, buf_ref, col_ref):
        # ---- stage Nb input images into zero-halo'd per-sample segments ----
        zero_halo = jnp.zeros((C, PAD), jnp.float32)
        for b in range(Nb):
            base = b * SEG
            buf_ref[:, base:base + PAD] = zero_halo
            buf_ref[:, base + PAD + HW:base + SEG] = zero_halo
            buf_ref[:, base + PAD:base + PAD + HW] = x_ref[b]

        # Lane masks that kill row wrap-around for the x-1 / x+1 taps.
        # Hoisted: computed once, reused by all 5 convolutions.
        col_idx = jax.lax.broadcasted_iota(jnp.int32, (1, HW), 1) % W
        mask_l = (col_idx >= 1).astype(jnp.float32)       # tap at x-1 is valid
        mask_r = (col_idx <= W - 2).astype(jnp.float32)   # tap at x+1 is valid

        def conv3x3(w_bf16):
            """One K=9C im2col dot.  w_bf16: (Cout, 9C) -> (Cout, Nb*HW) f32."""
            # Refresh the persistent bf16 im2col scratch from the current
            # resident activation (plain slice stores, no concatenate temps).
            for tap in range(9):
                ky, kx = tap // 3, tap % 3
                for b in range(Nb):
                    start = b * SEG + PAD + (ky - 1) * W + (kx - 1)
                    t = buf_ref[:, start:start + HW]        # (C, HW) f32
                    if kx == 0:
                        t = t * mask_l
                    elif kx == 2:
                        t = t * mask_r
                    col_ref[tap * C:(tap + 1) * C,
                            b * HW:(b + 1) * HW] = t.astype(jnp.bfloat16)
            return jnp.dot(w_bf16, col_ref[...],
                           preferred_element_type=jnp.float32)

        # ---- 4x conv + folded-BN + ReLU, activation resident in VMEM -------
        for i in range(4):
            y = jnp.maximum(conv3x3(wb_ref[i]) + sb_ref[i], 0.0)  # (C, Nb*HW)
            for b in range(Nb):
                buf_ref[:, b * SEG + PAD:b * SEG + PAD + HW] = (
                    y[:, b * HW:(b + 1) * HW])

        # ---- merged cls/reg head; sigmoid only on row 0, two lane-dense stores
        yh = conv3x3(wh_ref[...]) + bh_ref[...]                   # (8, Nb*HW)
        for b in range(Nb):
            seg = yh[:, b * HW:(b + 1) * HW]
            o_ref[b, 0:1, :] = jax.nn.sigmoid(seg[0:1, :])
            o_ref[b, 1:8, :] = seg[1:8, :]

    return kernel


def _choose_nb(N):
    """Samples per grid step: amortize per-step overhead, keep >= 2 steps."""
    if N <= 2:
        return 1
    for nb in range(min(N // 2, 8), 0, -1):
        if N % nb == 0:
            return nb
    return 1


@jax.jit
def header_forward(x_nchw, kp):
    """Forward pass of Header: NCHW input -> (cls, reg) in NCHW."""
    N, C, H, W = x_nchw.shape
    HW = H * W
    assert _PAD >= W + 1, "halo pad must cover one row shift"
    Nb = _choose_nb(N)
    assert N % Nb == 0
    SEG = 2 * _PAD + HW
    x_flat = x_nchw.reshape(N, C, HW).astype(jnp.float32)

    out = pl.pallas_call(
        _make_header_kernel(H, W, C, Nb),
        out_shape=jax.ShapeDtypeStruct((N, 8, HW), jnp.float32),
        grid_spec=pltpu.PrefetchScalarGridSpec(
            num_scalar_prefetch=0,
            grid=(N // Nb,),
            in_specs=[
                pl.BlockSpec((Nb, C, HW), lambda n: (n, 0, 0)),
                # Constant-index weight/bias operands (negligible at C=32).
                pl.BlockSpec((4, C, 9 * C), lambda n: (0, 0, 0)),
                pl.BlockSpec((4, C, 1), lambda n: (0, 0, 0)),
                pl.BlockSpec((8, 9 * C), lambda n: (0, 0)),
                pl.BlockSpec((8, 1), lambda n: (0, 0)),
            ],
            out_specs=pl.BlockSpec((Nb, 8, HW), lambda n: (n, 0, 0)),
            scratch_shapes=[
                pltpu.VMEM((C, Nb * SEG), jnp.float32),      # halo'd activation
                pltpu.VMEM((9 * C, Nb * HW), jnp.bfloat16),  # im2col operand
            ],
        ),
        compiler_params=pltpu.CompilerParams(
            dimension_semantics=("parallel",)),
    )(x_flat, kp["w_blocks"], kp["shifts"], kp["w_head"], kp["b_head"])

    out = out.reshape(N, 8, H, W)
    return out[:, 0:1], out[:, 1:7]


def init_header_params(key, C):
    """Deterministic synthetic parameters matching Header(out_channels=C)."""
    params = {}
    keys = jax.random.split(key, 24)
    ki = iter(range(24))
    eps = 1e-5
    for i in range(1, 5):  # conv1..conv4 blocks
        w = 0.05 * jax.random.normal(keys[next(ki)], (3, 3, C, C), jnp.float32)
        gamma = 1.0 + 0.1 * jax.random.normal(keys[next(ki)], (C,), jnp.float32)
        beta = 0.1 * jax.random.normal(keys[next(ki)], (C,), jnp.float32)
        mean = 0.1 * jax.random.normal(keys[next(ki)], (C,), jnp.float32)
        var = 1.0 + 0.1 * jnp.abs(
            jax.random.normal(keys[next(ki)], (C,), jnp.float32))
        scale = gamma / jnp.sqrt(var + eps)   # inference-mode BN fold
        shift = beta - mean * scale
        params[f"block{i}"] = (w, scale, shift)

    w_cls = 0.05 * jax.random.normal(keys[next(ki)], (3, 3, C, 1), jnp.float32)
    b_cls = 0.05 * jax.random.normal(keys[next(ki)], (1,), jnp.float32)
    params["cls"] = (w_cls, b_cls)

    w_reg = 0.05 * jax.random.normal(keys[next(ki)], (3, 3, C, 6), jnp.float32)
    b_reg = 0.05 * jax.random.normal(keys[next(ki)], (6,), jnp.float32)
    params["reg"] = (w_reg, b_reg)
    return params


def prepare_kernel_params(params):
    """Fold BN into the conv weights and pack everything for the fused kernel."""
    C = params["block1"][0].shape[2]

    def pack(w_hwio):
        # (3,3,Cin,Cout) -> (Cout, 9*Cin) with K ordered tap-major (matches the
        # im2col scratch row layout: rows [tap*C:(tap+1)*C] hold that tap).
        cin, cout = w_hwio.shape[2], w_hwio.shape[3]
        return jnp.transpose(w_hwio, (3, 0, 1, 2)).reshape(cout, 9 * cin)

    w_blocks, shifts = [], []
    for i in range(1, 5):
        w, scale, shift = params[f"block{i}"]
        w_blocks.append(pack(w * scale[None, None, None, :]))   # BN scale folded
        shifts.append(shift.reshape(C, 1))

    w_cls, b_cls = params["cls"]
    w_reg, b_reg = params["reg"]
    w_head = jnp.concatenate([w_cls, w_reg], axis=3)                 # (3,3,C,7)
    w_head = jnp.pad(w_head, ((0, 0), (0, 0), (0, 0), (0, 1)))       # Cout -> 8
    b_head = jnp.pad(jnp.concatenate([b_cls, b_reg]), (0, 1))        # (8,)

    return {
        # bf16 MXU operands (f32 accumulation in-kernel); epilogue terms in f32.
        "w_blocks": jnp.stack(w_blocks).astype(jnp.bfloat16),        # (4, C, 9C)
        "shifts": jnp.stack(shifts).astype(jnp.float32),             # (4, C, 1)
        "w_head": pack(w_head).astype(jnp.bfloat16),                 # (8, 9C)
        "b_head": b_head.reshape(8, 1).astype(jnp.float32),          # (8, 1)
    }


def header_reference(x_nchw, params):
    """Pure-JAX/XLA reference (f32, highest precision)."""
    dn = ("NCHW", "HWIO", "NCHW")
    conv = functools.partial(jax.lax.conv_general_dilated,
                             window_strides=(1, 1), padding="SAME",
                             dimension_numbers=dn,
                             precision=jax.lax.Precision.HIGHEST)
    x = x_nchw.astype(jnp.float32)
    for i in range(1, 5):
        w, scale, shift = params[f"block{i}"]
        x = jnp.maximum(conv(x, w) * scale[None, :, None, None]
                        + shift[None, :, None, None], 0.0)
    w_cls, b_cls = params["cls"]
    w_reg, b_reg = params["reg"]
    cls = jax.nn.sigmoid(conv(x, w_cls) + b_cls[None, :, None, None])
    reg = conv(x, w_reg) + b_reg[None, :, None, None]
    return cls, reg


if __name__ == "__main__":
    key = jax.random.PRNGKey(0)
    k_x, k_p = jax.random.split(key)

    # N=4 exercises the Nb=2 multi-sample-per-step path with a 2-step grid.
    N, C, H, W = 4, 32, 16, 16
    x = jax.random.normal(k_x, (N, C, H, W), jnp.float32)
    params = init_header_params(k_p, C)
    kparams = prepare_kernel_params(params)

    cls, reg = header_forward(x, kparams)
    jax.block_until_ready((cls, reg))

    assert cls.shape == (N, 1, H, W)
    assert reg.shape == (N, 6, H, W)
    assert bool(jnp.all((cls >= 0.0) & (cls <= 1.0)))

    # Numerical check against the pure-XLA f32 reference (kernel uses bf16 MXU
    # operands with f32 accumulation -> slightly looser tolerance).
    cls_ref, reg_ref = header_reference(x, params)
    assert bool(jnp.allclose(cls, cls_ref, atol=5e-2, rtol=5e-2))
    assert bool(jnp.allclose(reg, reg_ref, atol=5e-2, rtol=5e-2))

    print("KERNEL_OK")
</pallas_src>

<mosaic_0001>
module attributes {stable_mosaic.version = 11 : i64} {
  func.func @kernel(%arg0: i32, %arg1: memref<2x32x256xf32, #tpu.memory_space<vmem>>, %arg2: memref<4x32x288xbf16, #tpu.memory_space<vmem>>, %arg3: memref<4x32x1xf32, #tpu.memory_space<vmem>>, %arg4: memref<8x288xbf16, #tpu.memory_space<vmem>>, %arg5: memref<8x1xf32, #tpu.memory_space<vmem>>, %arg6: memref<2x8x256xf32, #tpu.memory_space<vmem>>, %arg7: memref<32x1024xf32, #tpu.memory_space<vmem>>, %arg8: memref<288x512xbf16, #tpu.memory_space<vmem>>) attributes {dimension_semantics = [#tpu.dimension_semantics<parallel>], iteration_bounds = array<i64: 2>, scalar_prefetch = 0 : i64, scratch_operands = 2 : i64, tpu.core_type = #tpu.core_type<tc>, window_params = [{transform_indices = @transform_0, window_bounds = array<i64: 2, 32, 256>}, {pipeline_mode = #tpu.pipeline_mode<synchronous>, transform_indices = @transform_1, window_bounds = array<i64: 4, 32, 288>}, {pipeline_mode = #tpu.pipeline_mode<synchronous>, transform_indices = @transform_2, window_bounds = array<i64: 4, 32, 1>}, {pipeline_mode = #tpu.pipeline_mode<synchronous>, transform_indices = @transform_3, window_bounds = array<i64: 8, 288>}, {pipeline_mode = #tpu.pipeline_mode<synchronous>, transform_indices = @transform_4, window_bounds = array<i64: 8, 1>}, {transform_indices = @transform_5, window_bounds = array<i64: 2, 8, 256>}]} {
    %cst = arith.constant 0.000000e+00 : f32
    %0 = vector.broadcast %cst : f32 to vector<32x128xf32>
    %c0 = arith.constant 0 : index
    %c0_0 = arith.constant 0 : index
    %1 = vector.load %arg7[%c0, %c0_0] : memref<32x1024xf32, #tpu.memory_space<vmem>>, vector<32x128xf32>
    tpu.vector_store %arg7[%c0, %c0_0], %0 {strides = array<i32>} : memref<32x1024xf32, #tpu.memory_space<vmem>>, vector<32x128xf32>,
    %c0_1 = arith.constant 0 : index
    %c384 = arith.constant 384 : index
    %2 = vector.load %arg7[%c0_1, %c384] : memref<32x1024xf32, #tpu.memory_space<vmem>>, vector<32x128xf32>
    tpu.vector_store %arg7[%c0_1, %c384], %0 {strides = array<i32>} : memref<32x1024xf32, #tpu.memory_space<vmem>>, vector<32x128xf32>,
    %c0_2 = arith.constant 0 : index
    %c0_3 = arith.constant 0 : index
    %c0_4 = arith.constant 0 : index
    %3 = vector.load %arg1[%c0_2, %c0_3, %c0_4] : memref<2x32x256xf32, #tpu.memory_space<vmem>>, vector<1x32x256xf32>
    %4 = vector.shape_cast %3 : vector<1x32x256xf32> to vector<32x256xf32>
    %c0_5 = arith.constant 0 : index
    %c128 = arith.constant 128 : index
    %5 = vector.load %arg7[%c0_5, %c128] : memref<32x1024xf32, #tpu.memory_space<vmem>>, vector<32x256xf32>
    tpu.vector_store %arg7[%c0_5, %c128], %4 {strides = array<i32>} : memref<32x1024xf32, #tpu.memory_space<vmem>>, vector<32x256xf32>,
    %c0_6 = arith.constant 0 : index
    %c512 = arith.constant 512 : index
    %6 = vector.load %arg7[%c0_6, %c512] : memref<32x1024xf32, #tpu.memory_space<vmem>>, vector<32x128xf32>
    tpu.vector_store %arg7[%c0_6, %c512], %0 {strides = array<i32>} : memref<32x1024xf32, #tpu.memory_space<vmem>>, vector<32x128xf32>,
    %c0_7 = arith.constant 0 : index
    %c896 = arith.constant 896 : index
    %7 = vector.load %arg7[%c0_7, %c896] : memref<32x1024xf32, #tpu.memory_space<vmem>>, vector<32x128xf32>
    tpu.vector_store %arg7[%c0_7, %c896], %0 {strides = array<i32>} : memref<32x1024xf32, #tpu.memory_space<vmem>>, vector<32x128xf32>,
    %c1 = arith.constant 1 : index
    %c0_8 = arith.constant 0 : index
    %c0_9 = arith.constant 0 : index
    %8 = vector.load %arg1[%c1, %c0_8, %c0_9] : memref<2x32x256xf32, #tpu.memory_space<vmem>>, vector<1x32x256xf32>
    %9 = vector.shape_cast %8 : vector<1x32x256xf32> to vector<32x256xf32>
    %c0_10 = arith.constant 0 : index
    %c640 = arith.constant 640 : index
    %10 = vector.load %arg7[%c0_10, %c640] : memref<32x1024xf32, #tpu.memory_space<vmem>>, vector<32x256xf32>
    tpu.vector_store %arg7[%c0_10, %c640], %9 {strides = array<i32>} : memref<32x1024xf32, #tpu.memory_space<vmem>>, vector<32x256xf32>,
    %11 = tpu.iota {dimensions = array<i32: 1>} : vector<1x256xi32>
    %c16_i32 = arith.constant 16 : i32
    %c0_i32 = arith.constant 0 : i32
    %12 = arith.cmpi eq, %c16_i32, %c0_i32 : i32
    %c1_i32 = arith.constant 1 : i32
    %13 = arith.select %12, %c1_i32, %c16_i32 : i32
    %14 = vector.broadcast %13 : i32 to vector<1x256xi32>
    %15 = arith.remsi %11, %14 : vector<1x256xi32>
    %c0_i32_11 = arith.constant 0 : i32
    %16 = vector.broadcast %c0_i32_11 : i32 to vector<1x256xi32>
    %17 = arith.cmpi ne, %15, %16 : vector<1x256xi32>
    %c0_i32_12 = arith.constant 0 : i32
    %18 = vector.broadcast %c0_i32_12 : i32 to vector<1x256xi32>
    %19 = arith.cmpi slt, %15, %18 : vector<1x256xi32>
    %c0_i32_13 = arith.constant 0 : i32
    %20 = arith.cmpi slt, %13, %c0_i32_13 : i32
    %21 = vector.broadcast %20 : i1 to vector<1x256xi1>
    %22 = vector.broadcast %21 : vector<1x256xi1> to vector<1x256xi1>
    %23 = arith.xori %19, %22 : vector<1x256xi1>
    %24 = arith.andi %23, %17 : vector<1x256xi1>
    %25 = vector.broadcast %13 : i32 to vector<1x256xi32>
    %26 = arith.addi %15, %25 : vector<1x256xi32>
    %27 = arith.select %24, %26, %15 : vector<1x256xi1>, vector<1x256xi32>
    %c1_i32_14 = arith.constant 1 : i32
    %28 = vector.broadcast %c1_i32_14 : i32 to vector<1x256xi32>
    %29 = arith.cmpi sge, %27, %28 : vector<1x256xi32>
    %30 = arith.extui %29 : vector<1x256xi1> to vector<1x256xi32>
    %31 = arith.sitofp %30 : vector<1x256xi32> to vector<1x256xf32>
    %c14_i32 = arith.constant 14 : i32
    %32 = vector.broadcast %c14_i32 : i32 to vector<1x256xi32>
    %33 = arith.cmpi sle, %27, %32 : vector<1x256xi32>
    %34 = arith.extui %33 : vector<1x256xi1> to vector<1x256xi32>
    %35 = arith.sitofp %34 : vector<1x256xi32> to vector<1x256xf32>
    %c0_15 = arith.constant 0 : index
    %c0_16 = arith.constant 0 : index
    %c0_17 = arith.constant 0 : index
    %36 = vector.load %arg2[%c0_15, %c0_16, %c0_17] : memref<4x32x288xbf16, #tpu.memory_space<vmem>>, vector<1x32x288xbf16>
    %37 = vector.shape_cast %36 : vector<1x32x288xbf16> to vector<32x288xbf16>
    %c0_18 = arith.constant 0 : index
    %c111 = arith.constant 111 : index
    %38 = vector.load %arg7[%c0_18, %c111] : memref<32x1024xf32, #tpu.memory_space<vmem>>, vector<32x256xf32>
    %39 = vector.broadcast %31 : vector<1x256xf32> to vector<32x256xf32>
    %40 = arith.mulf %38, %39 : vector<32x256xf32>
    %41 = arith.truncf %40 : vector<32x256xf32> to vector<32x256xbf16>
    %c0_19 = arith.constant 0 : index
    %c0_20 = arith.constant 0 : index
    %42 = vector.load %arg8[%c0_19, %c0_20] : memref<288x512xbf16, #tpu.memory_space<vmem>>, vector<32x256xbf16>
    tpu.vector_store %arg8[%c0_19, %c0_20], %41 {strides = array<i32>} : memref<288x512xbf16, #tpu.memory_space<vmem>>, vector<32x256xbf16>,
    %c0_21 = arith.constant 0 : index
    %c623 = arith.constant 623 : index
    %43 = vector.load %arg7[%c0_21, %c623] : memref<32x1024xf32, #tpu.memory_space<vmem>>, vector<32x256xf32>
    %44 = vector.broadcast %31 : vector<1x256xf32> to vector<32x256xf32>
    %45 = arith.mulf %43, %44 : vector<32x256xf32>
    %46 = arith.truncf %45 : vector<32x256xf32> to vector<32x256xbf16>
    %c0_22 = arith.constant 0 : index
    %c256 = arith.constant 256 : index
    %47 = vector.load %arg8[%c0_22, %c256] : memref<288x512xbf16, #tpu.memory_space<vmem>>, vector<32x256xbf16>
    tpu.vector_store %arg8[%c0_22, %c256], %46 {strides = array<i32>} : memref<288x512xbf16, #tpu.memory_space<vmem>>, vector<32x256xbf16>,
    %c0_23 = arith.constant 0 : index
    %c112 = arith.constant 112 : index
    %48 = vector.load %arg7[%c0_23, %c112] : memref<32x1024xf32, #tpu.memory_space<vmem>>, vector<32x256xf32>
    %49 = arith.truncf %48 : vector<32x256xf32> to vector<32x256xbf16>
    %c32 = arith.constant 32 : index
    %c0_24 = arith.constant 0 : index
    %50 = vector.load %arg8[%c32, %c0_24] : memref<288x512xbf16, #tpu.memory_space<vmem>>, vector<32x256xbf16>
    tpu.vector_store %arg8[%c32, %c0_24], %49 {strides = array<i32>} : memref<288x512xbf16, #tpu.memory_space<vmem>>, vector<32x256xbf16>,
    %c0_25 = arith.constant 0 : index
    %c624 = arith.constant 624 : index
    %51 = vector.load %arg7[%c0_25, %c624] : memref<32x1024xf32, #tpu.memory_space<vmem>>, vector<32x256xf32>
    %52 = arith.truncf %51 : vector<32x256xf32> to vector<32x256xbf16>
    %c32_26 = arith.constant 32 : index
    %c256_27 = arith.constant 256 : index
    %53 = vector.load %arg8[%c32_26, %c256_27] : memref<288x512xbf16, #tpu.memory_space<vmem>>, vector<32x256xbf16>
    tpu.vector_store %arg8[%c32_26, %c256_27], %52 {strides = array<i32>} : memref<288x512xbf16, #tpu.memory_space<vmem>>, vector<32x256xbf16>,
    %c0_28 = arith.constant 0 : index
    %c113 = arith.constant 113 : index
    %54 = vector.load %arg7[%c0_28, %c113] : memref<32x1024xf32, #tpu.memory_space<vmem>>, vector<32x256xf32>
    %55 = vector.broadcast %35 : vector<1x256xf32> to vector<32x256xf32>
    %56 = arith.mulf %54, %55 : vector<32x256xf32>
    %57 = arith.truncf %56 : vector<32x256xf32> to vector<32x256xbf16>
    %c64 = arith.constant 64 : index
    %c0_29 = arith.constant 0 : index
    %58 = vector.load %arg8[%c64, %c0_29] : memref<288x512xbf16, #tpu.memory_space<vmem>>, vector<32x256xbf16>
    tpu.vector_store %arg8[%c64, %c0_29], %57 {strides = array<i32>} : memref<288x512xbf16, #tpu.memory_space<vmem>>, vector<32x256xbf16>,
    %c0_30 = arith.constant 0 : index
    %c625 = arith.constant 625 : index
    %59 = vector.load %arg7[%c0_30, %c625] : memref<32x1024xf32, #tpu.memory_space<vmem>>, vector<32x256xf32>
    %60 = vector.broadcast %35 : vector<1x256xf32> to vector<32x256xf32>
    %61 = arith.mulf %59, %60 : vector<32x256xf32>
    %62 = arith.truncf %61 : vector<32x256xf32> to vector<32x256xbf16>
    %c64_31 = arith.constant 64 : index
    %c256_32 = arith.constant 256 : index
    %63 = vector.load %arg8[%c64_31, %c256_32] : memref<288x512xbf16, #tpu.memory_space<vmem>>, vector<32x256xbf16>
    tpu.vector_store %arg8[%c64_31, %c256_32], %62 {strides = array<i32>} : memref<288x512xbf16, #tpu.memory_space<vmem>>, vector<32x256xbf16>,
    %c0_33 = arith.constant 0 : index
    %c127 = arith.constant 127 : index
    %64 = vector.load %arg7[%c0_33, %c127] : memref<32x1024xf32, #tpu.memory_space<vmem>>, vector<32x256xf32>
    %65 = vector.broadcast %31 : vector<1x256xf32> to vector<32x256xf32>
    %66 = arith.mulf %64, %65 : vector<32x256xf32>
    %67 = arith.truncf %66 : vector<32x256xf32> to vector<32x256xbf16>
    %c96 = arith.constant 96 : index
    %c0_34 = arith.constant 0 : index
    %68 = vector.load %arg8[%c96, %c0_34] : memref<288x512xbf16, #tpu.memory_space<vmem>>, vector<32x256xbf16>
    tpu.vector_store %arg8[%c96, %c0_34], %67 {strides = array<i32>} : memref<288x512xbf16, #tpu.memory_space<vmem>>, vector<32x256xbf16>,
    %c0_35 = arith.constant 0 : index
    %c639 = arith.constant 639 : index
    %69 = vector.load %arg7[%c0_35, %c639] : memref<32x1024xf32, #tpu.memory_space<vmem>>, vector<32x256xf32>
    %70 = vector.broadcast %31 : vector<1x256xf32> to vector<32x256xf32>
    %71 = arith.mulf %69, %70 : vector<32x256xf32>
    %72 = arith.truncf %71 : vector<32x256xf32> to vector<32x256xbf16>
    %c96_36 = arith.constant 96 : index
    %c256_37 = arith.constant 256 : index
    %73 = vector.load %arg8[%c96_36, %c256_37] : memref<288x512xbf16, #tpu.memory_space<vmem>>, vector<32x256xbf16>
    tpu.vector_store %arg8[%c96_36, %c256_37], %72 {strides = array<i32>} : memref<288x512xbf16, #tpu.memory_space<vmem>>, vector<32x256xbf16>,
    %c0_38 = arith.constant 0 : index
    %c128_39 = arith.constant 128 : index
    %74 = vector.load %arg7[%c0_38, %c128_39] : memref<32x1024xf32, #tpu.memory_space<vmem>>, vector<32x256xf32>
    %75 = arith.truncf %74 : vector<32x256xf32> to vector<32x256xbf16>
    %c128_40 = arith.constant 128 : index
    %c0_41 = arith.constant 0 : index
    %76 = vector.load %arg8[%c128_40, %c0_41] : memref<288x512xbf16, #tpu.memory_space<vmem>>, vector<32x256xbf16>
    tpu.vector_store %arg8[%c128_40, %c0_41], %75 {strides = array<i32>} : memref<288x512xbf16, #tpu.memory_space<vmem>>, vector<32x256xbf16>,
    %c0_42 = arith.constant 0 : index
    %c640_43 = arith.constant 640 : index
    %77 = vector.load %arg7[%c0_42, %c640_43] : memref<32x1024xf32, #tpu.memory_space<vmem>>, vector<32x256xf32>
    %78 = arith.truncf %77 : vector<32x256xf32> to vector<32x256xbf16>
    %c128_44 = arith.constant 128 : index
    %c256_45 = arith.constant 256 : index
    %79 = vector.load %arg8[%c128_44, %c256_45] : memref<288x512xbf16, #tpu.memory_space<vmem>>, vector<32x256xbf16>
    tpu.vector_store %arg8[%c128_44, %c256_45], %78 {strides = array<i32>} : memref<288x512xbf16, #tpu.memory_space<vmem>>, vector<32x256xbf16>,
    %c0_46 = arith.constant 0 : index
    %c129 = arith.constant 129 : index
    %80 = vector.load %arg7[%c0_46, %c129] : memref<32x1024xf32, #tpu.memory_space<vmem>>, vector<32x256xf32>
    %81 = vector.broadcast %35 : vector<1x256xf32> to vector<32x256xf32>
    %82 = arith.mulf %80, %81 : vector<32x256xf32>
    %83 = arith.truncf %82 : vector<32x256xf32> to vector<32x256xbf16>
    %c160 = arith.constant 160 : index
    %c0_47 = arith.constant 0 : index
    %84 = vector.load %arg8[%c160, %c0_47] : memref<288x512xbf16, #tpu.memory_space<vmem>>, vector<32x256xbf16>
    tpu.vector_store %arg8[%c160, %c0_47], %83 {strides = array<i32>} : memref<288x512xbf16, #tpu.memory_space<vmem>>, vector<32x256xbf16>,
    %c0_48 = arith.constant 0 : index
    %c641 = arith.constant 641 : index
    %85 = vector.load %arg7[%c0_48, %c641] : memref<32x1024xf32, #tpu.memory_space<vmem>>, vector<32x256xf32>
    %86 = vector.broadcast %35 : vector<1x256xf32> to vector<32x256xf32>
    %87 = arith.mulf %85, %86 : vector<32x256xf32>
    %88 = arith.truncf %87 : vector<32x256xf32> to vector<32x256xbf16>
    %c160_49 = arith.constant 160 : index
    %c256_50 = arith.constant 256 : index
    %89 = vector.load %arg8[%c160_49, %c256_50] : memref<288x512xbf16, #tpu.memory_space<vmem>>, vector<32x256xbf16>
    tpu.vector_store %arg8[%c160_49, %c256_50], %88 {strides = array<i32>} : memref<288x512xbf16, #tpu.memory_space<vmem>>, vector<32x256xbf16>,
    %c0_51 = arith.constant 0 : index
    %c143 = arith.constant 143 : index
    %90 = vector.load %arg7[%c0_51, %c143] : memref<32x1024xf32, #tpu.memory_space<vmem>>, vector<32x256xf32>
    %91 = vector.broadcast %31 : vector<1x256xf32> to vector<32x256xf32>
    %92 = arith.mulf %90, %91 : vector<32x256xf32>
    %93 = arith.truncf %92 : vector<32x256xf32> to vector<32x256xbf16>
    %c192 = arith.constant 192 : index
    %c0_52 = arith.constant 0 : index
    %94 = vector.load %arg8[%c192, %c0_52] : memref<288x512xbf16, #tpu.memory_space<vmem>>, vector<32x256xbf16>
    tpu.vector_store %arg8[%c192, %c0_52], %93 {strides = array<i32>} : memref<288x512xbf16, #tpu.memory_space<vmem>>, vector<32x256xbf16>,
    %c0_53 = arith.constant 0 : index
    %c655 = arith.constant 655 : index
    %95 = vector.load %arg7[%c0_53, %c655] : memref<32x1024xf32, #tpu.memory_space<vmem>>, vector<32x256xf32>
    %96 = vector.broadcast %31 : vector<1x256xf32> to vector<32x256xf32>
    %97 = arith.mulf %95, %96 : vector<32x256xf32>
    %98 = arith.truncf %97 : vector<32x256xf32> to vector<32x256xbf16>
    %c192_54 = arith.constant 192 : index
    %c256_55 = arith.constant 256 : index
    %99 = vector.load %arg8[%c192_54, %c256_55] : memref<288x512xbf16, #tpu.memory_space<vmem>>, vector<32x256xbf16>
    tpu.vector_store %arg8[%c192_54, %c256_55], %98 {strides = array<i32>} : memref<288x512xbf16, #tpu.memory_space<vmem>>, vector<32x256xbf16>,
    %c0_56 = arith.constant 0 : index
    %c144 = arith.constant 144 : index
    %100 = vector.load %arg7[%c0_56, %c144] : memref<32x1024xf32, #tpu.memory_space<vmem>>, vector<32x256xf32>
    %101 = arith.truncf %100 : vector<32x256xf32> to vector<32x256xbf16>
    %c224 = arith.constant 224 : index
    %c0_57 = arith.constant 0 : index
    %102 = vector.load %arg8[%c224, %c0_57] : memref<288x512xbf16, #tpu.memory_space<vmem>>, vector<32x256xbf16>
    tpu.vector_store %arg8[%c224, %c0_57], %101 {strides = array<i32>} : memref<288x512xbf16, #tpu.memory_space<vmem>>, vector<32x256xbf16>,
    %c0_58 = arith.constant 0 : index
    %c656 = arith.constant 656 : index
    %103 = vector.load %arg7[%c0_58, %c656] : memref<32x1024xf32, #tpu.memory_space<vmem>>, vector<32x256xf32>
    %104 = arith.truncf %103 : vector<32x256xf32> to vector<32x256xbf16>
    %c224_59 = arith.constant 224 : index
    %c256_60 = arith.constant 256 : index
    %105 = vector.load %arg8[%c224_59, %c256_60] : memref<288x512xbf16, #tpu.memory_space<vmem>>, vector<32x256xbf16>
    tpu.vector_store %arg8[%c224_59, %c256_60], %104 {strides = array<i32>} : memref<288x512xbf16, #tpu.memory_space<vmem>>, vector<32x256xbf16>,
    %c0_61 = arith.constant 0 : index
    %c145 = arith.constant 145 : index
    %106 = vector.load %arg7[%c0_61, %c145] : memref<32x1024xf32, #tpu.memory_space<vmem>>, vector<32x256xf32>
    %107 = vector.broadcast %35 : vector<1x256xf32> to vector<32x256xf32>
    %108 = arith.mulf %106, %107 : vector<32x256xf32>
    %109 = arith.truncf %108 : vector<32x256xf32> to vector<32x256xbf16>
    %c256_62 = arith.constant 256 : index
    %c0_63 = arith.constant 0 : index
    %110 = vector.load %arg8[%c256_62, %c0_63] : memref<288x512xbf16, #tpu.memory_space<vmem>>, vector<32x256xbf16>
    tpu.vector_store %arg8[%c256_62, %c0_63], %109 {strides = array<i32>} : memref<288x512xbf16, #tpu.memory_space<vmem>>, vector<32x256xbf16>,
    %c0_64 = arith.constant 0 : index
    %c657 = arith.constant 657 : index
    %111 = vector.load %arg7[%c0_64, %c657] : memref<32x1024xf32, #tpu.memory_space<vmem>>, vector<32x256xf32>
    %112 = vector.broadcast %35 : vector<1x256xf32> to vector<32x256xf32>
    %113 = arith.mulf %111, %112 : vector<32x256xf32>
    %114 = arith.truncf %113 : vector<32x256xf32> to vector<32x256xbf16>
    %c256_65 = arith.constant 256 : index
    %c256_66 = arith.constant 256 : index
    %115 = vector.load %arg8[%c256_65, %c256_66] : memref<288x512xbf16, #tpu.memory_space<vmem>>, vector<32x256xbf16>
    tpu.vector_store %arg8[%c256_65, %c256_66], %114 {strides = array<i32>} : memref<288x512xbf16, #tpu.memory_space<vmem>>, vector<32x256xbf16>,
    %c0_67 = arith.constant 0 : index
    %c0_68 = arith.constant 0 : index
    %116 = vector.load %arg8[%c0_67, %c0_68] : memref<288x512xbf16, #tpu.memory_space<vmem>>, vector<288x512xbf16>
    %cst_69 = arith.constant dense<0.000000e+00> : vector<32x512xf32>
    %117 = tpu.matmul %37, %116, %cst_69 {dimension_numbers = #tpu.dot_dimension_numbers<[1], [0], [0], [1], [0, 0, 1, 1], [], []>} : vector<32x288xbf16>, vector<288x512xbf16>, vector<32x512xf32> -> vector<32x512xf32>
    %c0_70 = arith.constant 0 : index
    %c0_71 = arith.constant 0 : index
    %c0_72 = arith.constant 0 : index
    %118 = vector.load %arg3[%c0_70, %c0_71, %c0_72] : memref<4x32x1xf32, #tpu.memory_space<vmem>>, vector<1x32x1xf32>
    %119 = vector.shape_cast %118 : vector<1x32x1xf32> to vector<32x1xf32>
    %120 = vector.broadcast %119 : vector<32x1xf32> to vector<32x512xf32>
    %121 = arith.addf %117, %120 : vector<32x512xf32>
    %cst_73 = arith.constant 0.000000e+00 : f32
    %122 = vector.broadcast %cst_73 : f32 to vector<32x512xf32>
    %123 = arith.maximumf %121, %122 : vector<32x512xf32>
    %124 = vector.extract_strided_slice %123 {offsets = [0, 0], sizes = [32, 256], strides = [1, 1]} : vector<32x512xf32> to vector<32x256xf32>
    %c0_74 = arith.constant 0 : index
    %c128_75 = arith.constant 128 : index
    %125 = vector.load %arg7[%c0_74, %c128_75] : memref<32x1024xf32, #tpu.memory_space<vmem>>, vector<32x256xf32>
    tpu.vector_store %arg7[%c0_74, %c128_75], %124 {strides = array<i32>} : memref<32x1024xf32, #tpu.memory_space<vmem>>, vector<32x256xf32>,
    %126 = vector.extract_strided_slice %123 {offsets = [0, 256], sizes = [32, 256], strides = [1, 1]} : vector<32x512xf32> to vector<32x256xf32>
    %c0_76 = arith.constant 0 : index
    %c640_77 = arith.constant 640 : index
    %127 = vector.load %arg7[%c0_76, %c640_77] : memref<32x1024xf32, #tpu.memory_space<vmem>>, vector<32x256xf32>
    tpu.vector_store %arg7[%c0_76, %c640_77], %126 {strides = array<i32>} : memref<32x1024xf32, #tpu.memory_space<vmem>>, vector<32x256xf32>,
    %c1_78 = arith.constant 1 : index
    %c0_79 = arith.constant 0 : index
    %c0_80 = arith.constant 0 : index
    %128 = vector.load %arg2[%c1_78, %c0_79, %c0_80] : memref<4x32x288xbf16, #tpu.memory_space<vmem>>, vector<1x32x288xbf16>
    %129 = vector.shape_cast %128 : vector<1x32x288xbf16> to vector<32x288xbf16>
    %c0_81 = arith.constant 0 : index
    %c111_82 = arith.constant 111 : index
    %130 = vector.load %arg7[%c0_81, %c111_82] : memref<32x1024xf32, #tpu.memory_space<vmem>>, vector<32x256xf32>
    %131 = vector.broadcast %31 : vector<1x256xf32> to vector<32x256xf32>
    %132 = arith.mulf %130, %131 : vector<32x256xf32>
    %133 = arith.truncf %132 : vector<32x256xf32> to vector<32x256xbf16>
    %c0_83 = arith.constant 0 : index
    %c0_84 = arith.constant 0 : index
    %134 = vector.load %arg8[%c0_83, %c0_84] : memref<288x512xbf16, #tpu.memory_space<vmem>>, vector<32x256xbf16>
    tpu.vector_store %arg8[%c0_83, %c0_84], %133 {strides = array<i32>} : memref<288x512xbf16, #tpu.memory_space<vmem>>, vector<32x256xbf16>,
    %c0_85 = arith.constant 0 : index
    %c623_86 = arith.constant 623 : index
    %135 = vector.load %arg7[%c0_85, %c623_86] : memref<32x1024xf32, #tpu.memory_space<vmem>>, vector<32x256xf32>
    %136 = vector.broadcast %31 : vector<1x256xf32> to vector<32x256xf32>
    %137 = arith.mulf %135, %136 : vector<32x256xf32>
    %138 = arith.truncf %137 : vector<32x256xf32> to vector<32x256xbf16>
    %c0_87 = arith.constant 0 : index
    %c256_88 = arith.constant 256 : index
    %139 = vector.load %arg8[%c0_87, %c256_88] : memref<288x512xbf16, #tpu.memory_space<vmem>>, vector<32x256xbf16>
    tpu.vector_store %arg8[%c0_87, %c256_88], %138 {strides = array<i32>} : memref<288x512xbf16, #tpu.memory_space<vmem>>, vector<32x256xbf16>,
    %c0_89 = arith.constant 0 : index
    %c112_90 = arith.constant 112 : index
    %140 = vector.load %arg7[%c0_89, %c112_90] : memref<32x1024xf32, #tpu.memory_space<vmem>>, vector<32x256xf32>
    %141 = arith.truncf %140 : vector<32x256xf32> to vector<32x256xbf16>
    %c32_91 = arith.constant 32 : index
    %c0_92 = arith.constant 0 : index
    %142 = vector.load %arg8[%c32_91, %c0_92] : memref<288x512xbf16, #tpu.memory_space<vmem>>, vector<32x256xbf16>
    tpu.vector_store %arg8[%c32_91, %c0_92], %141 {strides = array<i32>} : memref<288x512xbf16, #tpu.memory_space<vmem>>, vector<32x256xbf16>,
    %c0_93 = arith.constant 0 : index
    %c624_94 = arith.constant 624 : index
    %143 = vector.load %arg7[%c0_93, %c624_94] : memref<32x1024xf32, #tpu.memory_space<vmem>>, vector<32x256xf32>
    %144 = arith.truncf %143 : vector<32x256xf32> to vector<32x256xbf16>
    %c32_95 = arith.constant 32 : index
    %c256_96 = arith.constant 256 : index
    %145 = vector.load %arg8[%c32_95, %c256_96] : memref<288x512xbf16, #tpu.memory_space<vmem>>, vector<32x256xbf16>
    tpu.vector_store %arg8[%c32_95, %c256_96], %144 {strides = array<i32>} : memref<288x512xbf16, #tpu.memory_space<vmem>>, vector<32x256xbf16>,
    %c0_97 = arith.constant 0 : index
    %c113_98 = arith.constant 113 : index
    %146 = vector.load %arg7[%c0_97, %c113_98] : memref<32x1024xf32, #tpu.memory_space<vmem>>, vector<32x256xf32>
    %147 = vector.broadcast %35 : vector<1x256xf32> to vector<32x256xf32>
    %148 = arith.mulf %146, %147 : vector<32x256xf32>
    %149 = arith.truncf %148 : vector<32x256xf32> to vector<32x256xbf16>
    %c64_99 = arith.constant 64 : index
    %c0_100 = arith.constant 0 : index
    %150 = vector.load %arg8[%c64_99, %c0_100] : memref<288x512xbf16, #tpu.memory_space<vmem>>, vector<32x256xbf16>
    tpu.vector_store %arg8[%c64_99, %c0_100], %149 {strides = array<i32>} : memref<288x512xbf16, #tpu.memory_space<vmem>>, vector<32x256xbf16>,
    %c0_101 = arith.constant 0 : index
    %c625_102 = arith.constant 625 : index
    %151 = vector.load %arg7[%c0_101, %c625_102] : memref<32x1024xf32, #tpu.memory_space<vmem>>, vector<32x256xf32>
    %152 = vector.broadcast %35 : vector<1x256xf32> to vector<32x256xf32>
    %153 = arith.mulf %151, %152 : vector<32x256xf32>
    %154 = arith.truncf %153 : vector<32x256xf32> to vector<32x256xbf16>
    %c64_103 = arith.constant 64 : index
    %c256_104 = arith.constant 256 : index
    %155 = vector.load %arg8[%c64_103, %c256_104] : memref<288x512xbf16, #tpu.memory_space<vmem>>, vector<32x256xbf16>
    tpu.vector_store %arg8[%c64_103, %c256_104], %154 {strides = array<i32>} : memref<288x512xbf16, #tpu.memory_space<vmem>>, vector<32x256xbf16>,
    %c0_105 = arith.constant 0 : index
    %c127_106 = arith.constant 127 : index
    %156 = vector.load %arg7[%c0_105, %c127_106] : memref<32x1024xf32, #tpu.memory_space<vmem>>, vector<32x256xf32>
    %157 = vector.broadcast %31 : vector<1x256xf32> to vector<32x256xf32>
    %158 = arith.mulf %156, %157 : vector<32x256xf32>
    %159 = arith.truncf %158 : vector<32x256xf32> to vector<32x256xbf16>
    %c96_107 = arith.constant 96 : index
    %c0_108 = arith.constant 0 : index
    %160 = vector.load %arg8[%c96_107, %c0_108] : memref<288x512xbf16, #tpu.memory_space<vmem>>, vector<32x256xbf16>
    tpu.vector_store %arg8[%c96_107, %c0_108], %159 {strides = array<i32>} : memref<288x512xbf16, #tpu.memory_space<vmem>>, vector<32x256xbf16>,
    %c0_109 = arith.constant 0 : index
    %c639_110 = arith.constant 639 : index
    %161 = vector.load %arg7[%c0_109, %c639_110] : memref<32x1024xf32, #tpu.memory_space<vmem>>, vector<32x256xf32>
    %162 = vector.broadcast %31 : vector<1x256xf32> to vector<32x256xf32>
    %163 = arith.mulf %161, %162 : vector<32x256xf32>
    %164 = arith.truncf %163 : vector<32x256xf32> to vector<32x256xbf16>
    %c96_111 = arith.constant 96 : index
    %c256_112 = arith.constant 256 : index
    %165 = vector.load %arg8[%c96_111, %c256_112] : memref<288x512xbf16, #tpu.memory_space<vmem>>, vector<32x256xbf16>
    tpu.vector_store %arg8[%c96_111, %c256_112], %164 {strides = array<i32>} : memref<288x512xbf16, #tpu.memory_space<vmem>>, vector<32x256xbf16>,
    %c0_113 = arith.constant 0 : index
    %c128_114 = arith.constant 128 : index
    %166 = vector.load %arg7[%c0_113, %c128_114] : memref<32x1024xf32, #tpu.memory_space<vmem>>, vector<32x256xf32>
    %167 = arith.truncf %166 : vector<32x256xf32> to vector<32x256xbf16>
    %c128_115 = arith.constant 128 : index
    %c0_116 = arith.constant 0 : index
    %168 = vector.load %arg8[%c128_115, %c0_116] : memref<288x512xbf16, #tpu.memory_space<vmem>>, vector<32x256xbf16>
    tpu.vector_store %arg8[%c128_115, %c0_116], %167 {strides = array<i32>} : memref<288x512xbf16, #tpu.memory_space<vmem>>, vector<32x256xbf16>,
    %c0_117 = arith.constant 0 : index
    %c640_118 = arith.constant 640 : index
    %169 = vector.load %arg7[%c0_117, %c640_118] : memref<32x1024xf32, #tpu.memory_space<vmem>>, vector<32x256xf32>
    %170 = arith.truncf %169 : vector<32x256xf32> to vector<32x256xbf16>
    %c128_119 = arith.constant 128 : index
    %c256_120 = arith.constant 256 : index
    %171 = vector.load %arg8[%c128_119, %c256_120] : memref<288x512xbf16, #tpu.memory_space<vmem>>, vector<32x256xbf16>
    tpu.vector_store %arg8[%c128_119, %c256_120], %170 {strides = array<i32>} : memref<288x512xbf16, #tpu.memory_space<vmem>>, vector<32x256xbf16>,
    %c0_121 = arith.constant 0 : index
    %c129_122 = arith.constant 129 : index
    %172 = vector.load %arg7[%c0_121, %c129_122] : memref<32x1024xf32, #tpu.memory_space<vmem>>, vector<32x256xf32>
    %173 = vector.broadcast %35 : vector<1x256xf32> to vector<32x256xf32>
    %174 = arith.mulf %172, %173 : vector<32x256xf32>
    %175 = arith.truncf %174 : vector<32x256xf32> to vector<32x256xbf16>
    %c160_123 = arith.constant 160 : index
    %c0_124 = arith.constant 0 : index
    %176 = vector.load %arg8[%c160_123, %c0_124] : memref<288x512xbf16, #tpu.memory_space<vmem>>, vector<32x256xbf16>
    tpu.vector_store %arg8[%c160_123, %c0_124], %175 {strides = array<i32>} : memref<288x512xbf16, #tpu.memory_space<vmem>>, vector<32x256xbf16>,
    %c0_125 = arith.constant 0 : index
    %c641_126 = arith.constant 641 : index
    %177 = vector.load %arg7[%c0_125, %c641_126] : memref<32x1024xf32, #tpu.memory_space<vmem>>, vector<32x256xf32>
    %178 = vector.broadcast %35 : vector<1x256xf32> to vector<32x256xf32>
    %179 = arith.mulf %177, %178 : vector<32x256xf32>
    %180 = arith.truncf %179 : vector<32x256xf32> to vector<32x256xbf16>
    %c160_127 = arith.constant 160 : index
    %c256_128 = arith.constant 256 : index
    %181 = vector.load %arg8[%c160_127, %c256_128] : memref<288x512xbf16, #tpu.memory_space<vmem>>, vector<32x256xbf16>
    tpu.vector_store %arg8[%c160_127, %c256_128], %180 {strides = array<i32>} : memref<288x512xbf16, #tpu.memory_space<vmem>>, vector<32x256xbf16>,
    %c0_129 = arith.constant 0 : index
    %c143_130 = arith.constant 143 : index
    %182 = vector.load %arg7[%c0_129, %c143_130] : memref<32x1024xf32, #tpu.memory_space<vmem>>, vector<32x256xf32>
    %183 = vector.broadcast %31 : vector<1x256xf32> to vector<32x256xf32>
    %184 = arith.mulf %182, %183 : vector<32x256xf32>
    %185 = arith.truncf %184 : vector<32x256xf32> to vector<32x256xbf16>
    %c192_131 = arith.constant 192 : index
    %c0_132 = arith.constant 0 : index
    %186 = vector.load %arg8[%c192_131, %c0_132] : memref<288x512xbf16, #tpu.memory_space<vmem>>, vector<32x256xbf16>
    tpu.vector_store %arg8[%c192_131, %c0_132], %185 {strides = array<i32>} : memref<288x512xbf16, #tpu.memory_space<vmem>>, vector<32x256xbf16>,
    %c0_133 = arith.constant 0 : index
    %c655_134 = arith.constant 655 : index
    %187 = vector.load %arg7[%c0_133, %c655_134] : memref<32x1024xf32, #tpu.memory_space<vmem>>, vector<32x256xf32>
    %188 = vector.broadcast %31 : vector<1x256xf32> to vector<32x256xf32>
    %189 = arith.mulf %187, %188 : vector<32x256xf32>
    %190 = arith.truncf %189 : vector<32x256xf32> to vector<32x256xbf16>
    %c192_135 = arith.constant 192 : index
    %c256_136 = arith.constant 256 : index
    %191 = vector.load %arg8[%c192_135, %c256_136] : memref<288x512xbf16, #tpu.memory_space<vmem>>, vector<32x256xbf16>
    tpu.vector_store %arg8[%c192_135, %c256_136], %190 {strides = array<i32>} : memref<288x512xbf16, #tpu.memory_space<vmem>>, vector<32x256xbf16>,
    %c0_137 = arith.constant 0 : index
    %c144_138 = arith.constant 144 : index
    %192 = vector.load %arg7[%c0_137, %c144_138] : memref<32x1024xf32, #tpu.memory_space<vmem>>, vector<32x256xf32>
    %193 = arith.truncf %192 : vector<32x256xf32> to vector<32x256xbf16>
    %c224_139 = arith.constant 224 : index
    %c0_140 = arith.constant 0 : index
    %194 = vector.load %arg8[%c224_139, %c0_140] : memref<288x512xbf16, #tpu.memory_space<vmem>>, vector<32x256xbf16>
    tpu.vector_store %arg8[%c224_139, %c0_140], %193 {strides = array<i32>} : memref<288x512xbf16, #tpu.memory_space<vmem>>, vector<32x256xbf16>,
    %c0_141 = arith.constant 0 : index
    %c656_142 = arith.constant 656 : index
    %195 = vector.load %arg7[%c0_141, %c656_142] : memref<32x1024xf32, #tpu.memory_space<vmem>>, vector<32x256xf32>
    %196 = arith.truncf %195 : vector<32x256xf32> to vector<32x256xbf16>
    %c224_143 = arith.constant 224 : index
    %c256_144 = arith.constant 256 : index
    %197 = vector.load %arg8[%c224_143, %c256_144] : memref<288x512xbf16, #tpu.memory_space<vmem>>, vector<32x256xbf16>
    tpu.vector_store %arg8[%c224_143, %c256_144], %196 {strides = array<i32>} : memref<288x512xbf16, #tpu.memory_space<vmem>>, vector<32x256xbf16>,
    %c0_145 = arith.constant 0 : index
    %c145_146 = arith.constant 145 : index
    %198 = vector.load %arg7[%c0_145, %c145_146] : memref<32x1024xf32, #tpu.memory_space<vmem>>, vector<32x256xf32>
    %199 = vector.broadcast %35 : vector<1x256xf32> to vector<32x256xf32>
    %200 = arith.mulf %198, %199 : vector<32x256xf32>
    %201 = arith.truncf %200 : vector<32x256xf32> to vector<32x256xbf16>
    %c256_147 = arith.constant 256 : index
    %c0_148 = arith.constant 0 : index
    %202 = vector.load %arg8[%c256_147, %c0_148] : memref<288x512xbf16, #tpu.memory_space<vmem>>, vector<32x256xbf16>
    tpu.vector_store %arg8[%c256_147, %c0_148], %201 {strides = array<i32>} : memref<288x512xbf16, #tpu.memory_space<vmem>>, vector<32x256xbf16>,
    %c0_149 = arith.constant 0 : index
    %c657_150 = arith.constant 657 : index
    %203 = vector.load %arg7[%c0_149, %c657_150] : memref<32x1024xf32, #tpu.memory_space<vmem>>, vector<32x256xf32>
    %204 = vector.broadcast %35 : vector<1x256xf32> to vector<32x256xf32>
    %205 = arith.mulf %203, %204 : vector<32x256xf32>
    %206 = arith.truncf %205 : vector<32x256xf32> to vector<32x256xbf16>
    %c256_151 = arith.constant 256 : index
    %c256_152 = arith.constant 256 : index
    %207 = vector.load %arg8[%c256_151, %c256_152] : memref<288x512xbf16, #tpu.memory_space<vmem>>, vector<32x256xbf16>
    tpu.vector_store %arg8[%c256_151, %c256_152], %206 {strides = array<i32>} : memref<288x512xbf16, #tpu.memory_space<vmem>>, vector<32x256xbf16>,
    %c0_153 = arith.constant 0 : index
    %c0_154 = arith.constant 0 : index
    %208 = vector.load %arg8[%c0_153, %c0_154] : memref<288x512xbf16, #tpu.memory_space<vmem>>, vector<288x512xbf16>
    %cst_155 = arith.constant dense<0.000000e+00> : vector<32x512xf32>
    %209 = tpu.matmul %129, %208, %cst_155 {dimension_numbers = #tpu.dot_dimension_numbers<[1], [0], [0], [1], [0, 0, 1, 1], [], []>} : vector<32x288xbf16>, vector<288x512xbf16>, vector<32x512xf32> -> vector<32x512xf32>
    %c1_156 = arith.constant 1 : index
    %c0_157 = arith.constant 0 : index
    %c0_158 = arith.constant 0 : index
    %210 = vector.load %arg3[%c1_156, %c0_157, %c0_158] : memref<4x32x1xf32, #tpu.memory_space<vmem>>, vector<1x32x1xf32>
    %211 = vector.shape_cast %210 : vector<1x32x1xf32> to vector<32x1xf32>
    %212 = vector.broadcast %211 : vector<32x1xf32> to vector<32x512xf32>
    %213 = arith.addf %209, %212 : vector<32x512xf32>
    %cst_159 = arith.constant 0.000000e+00 : f32
    %214 = vector.broadcast %cst_159 : f32 to vector<32x512xf32>
    %215 = arith.maximumf %213, %214 : vector<32x512xf32>
    %216 = vector.extract_strided_slice %215 {offsets = [0, 0], sizes = [32, 256], strides = [1, 1]} : vector<32x512xf32> to vector<32x256xf32>
    %c0_160 = arith.constant 0 : index
    %c128_161 = arith.constant 128 : index
    %217 = vector.load %arg7[%c0_160, %c128_161] : memref<32x1024xf32, #tpu.memory_space<vmem>>, vector<32x256xf32>
    tpu.vector_store %arg7[%c0_160, %c128_161], %216 {strides = array<i32>} : memref<32x1024xf32, #tpu.memory_space<vmem>>, vector<32x256xf32>,
    %218 = vector.extract_strided_slice %215 {offsets = [0, 256], sizes = [32, 256], strides = [1, 1]} : vector<32x512xf32> to vector<32x256xf32>
    %c0_162 = arith.constant 0 : index
    %c640_163 = arith.constant 640 : index
    %219 = vector.load %arg7[%c0_162, %c640_163] : memref<32x1024xf32, #tpu.memory_space<vmem>>, vector<32x256xf32>
    tpu.vector_store %arg7[%c0_162, %c640_163], %218 {strides = array<i32>} : memref<32x1024xf32, #tpu.memory_space<vmem>>, vector<32x256xf32>,
    %c2 = arith.constant 2 : index
    %c0_164 = arith.constant 0 : index
    %c0_165 = arith.constant 0 : index
    %220 = vector.load %arg2[%c2, %c0_164, %c0_165] : memref<4x32x288xbf16, #tpu.memory_space<vmem>>, vector<1x32x288xbf16>
    %221 = vector.shape_cast %220 : vector<1x32x288xbf16> to vector<32x288xbf16>
    %c0_166 = arith.constant 0 : index
    %c111_167 = arith.constant 111 : index
    %222 = vector.load %arg7[%c0_166, %c111_167] : memref<32x1024xf32, #tpu.memory_space<vmem>>, vector<32x256xf32>
    %223 = vector.broadcast %31 : vector<1x256xf32> to vector<32x256xf32>
    %224 = arith.mulf %222, %223 : vector<32x256xf32>
    %225 = arith.truncf %224 : vector<32x256xf32> to vector<32x256xbf16>
    %c0_168 = arith.constant 0 : index
    %c0_169 = arith.constant 0 : index
    %226 = vector.load %arg8[%c0_168, %c0_169] : memref<288x512xbf16, #tpu.memory_space<vmem>>, vector<32x256xbf16>
    tpu.vector_store %arg8[%c0_168, %c0_169], %225 {strides = array<i32>} : memref<288x512xbf16, #tpu.memory_space<vmem>>, vector<32x256xbf16>,
    %c0_170 = arith.constant 0 : index
    %c623_171 = arith.constant 623 : index
    %227 = vector.load %arg7[%c0_170, %c623_171] : memref<32x1024xf32, #tpu.memory_space<vmem>>, vector<32x256xf32>
    %228 = vector.broadcast %31 : vector<1x256xf32> to vector<32x256xf32>
    %229 = arith.mulf %227, %228 : vector<32x256xf32>
    %230 = arith.truncf %229 : vector<32x256xf32> to vector<32x256xbf16>
    %c0_172 = arith.constant 0 : index
    %c256_173 = arith.constant 256 : index
    %231 = vector.load %arg8[%c0_172, %c256_173] : memref<288x512xbf16, #tpu.memory_space<vmem>>, vector<32x256xbf16>
    tpu.vector_store %arg8[%c0_172, %c256_173], %230 {strides = array<i32>} : memref<288x512xbf16, #tpu.memory_space<vmem>>, vector<32x256xbf16>,
    %c0_174 = arith.constant 0 : index
    %c112_175 = arith.constant 112 : index
    %232 = vector.load %arg7[%c0_174, %c112_175] : memref<32x1024xf32, #tpu.memory_space<vmem>>, vector<32x256xf32>
    %233 = arith.truncf %232 : vector<32x256xf32> to vector<32x256xbf16>
    %c32_176 = arith.constant 32 : index
    %c0_177 = arith.constant 0 : index
    %234 = vector.load %arg8[%c32_176, %c0_177] : memref<288x512xbf16, #tpu.memory_space<vmem>>, vector<32x256xbf16>
    tpu.vector_store %arg8[%c32_176, %c0_177], %233 {strides = array<i32>} : memref<288x512xbf16, #tpu.memory_space<vmem>>, vector<32x256xbf16>,
    %c0_178 = arith.constant 0 : index
    %c624_179 = arith.constant 624 : index
    %235 = vector.load %arg7[%c0_178, %c624_179] : memref<32x1024xf32, #tpu.memory_space<vmem>>, vector<32x256xf32>
    %236 = arith.truncf %235 : vector<32x256xf32> to vector<32x256xbf16>
    %c32_180 = arith.constant 32 : index
    %c256_181 = arith.constant 256 : index
    %237 = vector.load %arg8[%c32_180, %c256_181] : memref<288x512xbf16, #tpu.memory_space<vmem>>, vector<32x256xbf16>
    tpu.vector_store %arg8[%c32_180, %c256_181], %236 {strides = array<i32>} : memref<288x512xbf16, #tpu.memory_space<vmem>>, vector<32x256xbf16>,
    %c0_182 = arith.constant 0 : index
    %c113_183 = arith.constant 113 : index
    %238 = vector.load %arg7[%c0_182, %c113_183] : memref<32x1024xf32, #tpu.memory_space<vmem>>, vector<32x256xf32>
    %239 = vector.broadcast %35 : vector<1x256xf32> to vector<32x256xf32>
    %240 = arith.mulf %238, %239 : vector<32x256xf32>
    %241 = arith.truncf %240 : vector<32x256xf32> to vector<32x256xbf16>
    %c64_184 = arith.constant 64 : index
    %c0_185 = arith.constant 0 : index
    %242 = vector.load %arg8[%c64_184, %c0_185] : memref<288x512xbf16, #tpu.memory_space<vmem>>, vector<32x256xbf16>
    tpu.vector_store %arg8[%c64_184, %c0_185], %241 {strides = array<i32>} : memref<288x512xbf16, #tpu.memory_space<vmem>>, vector<32x256xbf16>,
    %c0_186 = arith.constant 0 : index
    %c625_187 = arith.constant 625 : index
    %243 = vector.load %arg7[%c0_186, %c625_187] : memref<32x1024xf32, #tpu.memory_space<vmem>>, vector<32x256xf32>
    %244 = vector.broadcast %35 : vector<1x256xf32> to vector<32x256xf32>
    %245 = arith.mulf %243, %244 : vector<32x256xf32>
    %246 = arith.truncf %245 : vector<32x256xf32> to vector<32x256xbf16>
    %c64_188 = arith.constant 64 : index
    %c256_189 = arith.constant 256 : index
    %247 = vector.load %arg8[%c64_188, %c256_189] : memref<288x512xbf16, #tpu.memory_space<vmem>>, vector<32x256xbf16>
    tpu.vector_store %arg8[%c64_188, %c256_189], %246 {strides = array<i32>} : memref<288x512xbf16, #tpu.memory_space<vmem>>, vector<32x256xbf16>,
    %c0_190 = arith.constant 0 : index
    %c127_191 = arith.constant 127 : index
    %248 = vector.load %arg7[%c0_190, %c127_191] : memref<32x1024xf32, #tpu.memory_space<vmem>>, vector<32x256xf32>
    %249 = vector.broadcast %31 : vector<1x256xf32> to vector<32x256xf32>
    %250 = arith.mulf %248, %249 : vector<32x256xf32>
    %251 = arith.truncf %250 : vector<32x256xf32> to vector<32x256xbf16>
    %c96_192 = arith.constant 96 : index
    %c0_193 = arith.constant 0 : index
    %252 = vector.load %arg8[%c96_192, %c0_193] : memref<288x512xbf16, #tpu.memory_space<vmem>>, vector<32x256xbf16>
    tpu.vector_store %arg8[%c96_192, %c0_193], %251 {strides = array<i32>} : memref<288x512xbf16, #tpu.memory_space<vmem>>, vector<32x256xbf16>,
    %c0_194 = arith.constant 0 : index
    %c639_195 = arith.constant 639 : index
    %253 = vector.load %arg7[%c0_194, %c639_195] : memref<32x1024xf32, #tpu.memory_space<vmem>>, vector<32x256xf32>
    %254 = vector.broadcast %31 : vector<1x256xf32> to vector<32x256xf32>
    %255 = arith.mulf %253, %254 : vector<32x256xf32>
    %256 = arith.truncf %255 : vector<32x256xf32> to vector<32x256xbf16>
    %c96_196 = arith.constant 96 : index
    %c256_197 = arith.constant 256 : index
    %257 = vector.load %arg8[%c96_196, %c256_197] : memref<288x512xbf16, #tpu.memory_space<vmem>>, vector<32x256xbf16>
    tpu.vector_store %arg8[%c96_196, %c256_197], %256 {strides = array<i32>} : memref<288x512xbf16, #tpu.memory_space<vmem>>, vector<32x256xbf16>,
    %c0_198 = arith.constant 0 : index
    %c128_199 = arith.constant 128 : index
    %258 = vector.load %arg7[%c0_198, %c128_199] : memref<32x1024xf32, #tpu.memory_space<vmem>>, vector<32x256xf32>
    %259 = arith.truncf %258 : vector<32x256xf32> to vector<32x256xbf16>
    %c128_200 = arith.constant 128 : index
    %c0_201 = arith.constant 0 : index
    %260 = vector.load %arg8[%c128_200, %c0_201] : memref<288x512xbf16, #tpu.memory_space<vmem>>, vector<32x256xbf16>
    tpu.vector_store %arg8[%c128_200, %c0_201], %259 {strides = array<i32>} : memref<288x512xbf16, #tpu.memory_space<vmem>>, vector<32x256xbf16>,
    %c0_202 = arith.constant 0 : index
    %c640_203 = arith.constant 640 : index
    %261 = vector.load %arg7[%c0_202, %c640_203] : memref<32x1024xf32, #tpu.memory_space<vmem>>, vector<32x256xf32>
    %262 = arith.truncf %261 : vector<32x256xf32> to vector<32x256xbf16>
    %c128_204 = arith.constant 128 : index
    %c256_205 = arith.constant 256 : index
    %263 = vector.load %arg8[%c128_204, %c256_205] : memref<288x512xbf16, #tpu.memory_space<vmem>>, vector<32x256xbf16>
    tpu.vector_store %arg8[%c128_204, %c256_205], %262 {strides = array<i32>} : memref<288x512xbf16, #tpu.memory_space<vmem>>, vector<32x256xbf16>,
    %c0_206 = arith.constant 0 : index
    %c129_207 = arith.constant 129 : index
    %264 = vector.load %arg7[%c0_206, %c129_207] : memref<32x1024xf32, #tpu.memory_space<vmem>>, vector<32x256xf32>
    %265 = vector.broadcast %35 : vector<1x256xf32> to vector<32x256xf32>
    %266 = arith.mulf %264, %265 : vector<32x256xf32>
    %267 = arith.truncf %266 : vector<32x256xf32> to vector<32x256xbf16>
    %c160_208 = arith.constant 160 : index
    %c0_209 = arith.constant 0 : index
    %268 = vector.load %arg8[%c160_208, %c0_209] : memref<288x512xbf16, #tpu.memory_space<vmem>>, vector<32x256xbf16>
    tpu.vector_store %arg8[%c160_208, %c0_209], %267 {strides = array<i32>} : memref<288x512xbf16, #tpu.memory_space<vmem>>, vector<32x256xbf16>,
    %c0_210 = arith.constant 0 : index
    %c641_211 = arith.constant 641 : index
    %269 = vector.load %arg7[%c0_210, %c641_211] : memref<32x1024xf32, #tpu.memory_space<vmem>>, vector<32x256xf32>
    %270 = vector.broadcast %35 : vector<1x256xf32> to vector<32x256xf32>
    %271 = arith.mulf %269, %270 : vector<32x256xf32>
    %272 = arith.truncf %271 : vector<32x256xf32> to vector<32x256xbf16>
    %c160_212 = arith.constant 160 : index
    %c256_213 = arith.constant 256 : index
    %273 = vector.load %arg8[%c160_212, %c256_213] : memref<288x512xbf16, #tpu.memory_space<vmem>>, vector<32x256xbf16>
    tpu.vector_store %arg8[%c160_212, %c256_213], %272 {strides = array<i32>} : memref<288x512xbf16, #tpu.memory_space<vmem>>, vector<32x256xbf16>,
    %c0_214 = arith.constant 0 : index
    %c143_215 = arith.constant 143 : index
    %274 = vector.load %arg7[%c0_214, %c143_215] : memref<32x1024xf32, #tpu.memory_space<vmem>>, vector<32x256xf32>
    %275 = vector.broadcast %31 : vector<1x256xf32> to vector<32x256xf32>
    %276 = arith.mulf %274, %275 : vector<32x256xf32>
    %277 = arith.truncf %276 : vector<32x256xf32> to vector<32x256xbf16>
    %c192_216 = arith.constant 192 : index
    %c0_217 = arith.constant 0 : index
    %278 = vector.load %arg8[%c192_216, %c0_217] : memref<288x512xbf16, #tpu.memory_space<vmem>>, vector<32x256xbf16>
    tpu.vector_store %arg8[%c192_216, %c0_217], %277 {strides = array<i32>} : memref<288x512xbf16, #tpu.memory_space<vmem>>, vector<32x256xbf16>,
    %c0_218 = arith.constant 0 : index
    %c655_219 = arith.constant 655 : index
    %279 = vector.load %arg7[%c0_218, %c655_219] : memref<32x1024xf32, #tpu.memory_space<vmem>>, vector<32x256xf32>
    %280 = vector.broadcast %31 : vector<1x256xf32> to vector<32x256xf32>
    %281 = arith.mulf %279, %280 : vector<32x256xf32>
    %282 = arith.truncf %281 : vector<32x256xf32> to vector<32x256xbf16>
    %c192_220 = arith.constant 192 : index
    %c256_221 = arith.constant 256 : index
    %283 = vector.load %arg8[%c192_220, %c256_221] : memref<288x512xbf16, #tpu.memory_space<vmem>>, vector<32x256xbf16>
    tpu.vector_store %arg8[%c192_220, %c256_221], %282 {strides = array<i32>} : memref<288x512xbf16, #tpu.memory_space<vmem>>, vector<32x256xbf16>,
    %c0_222 = arith.constant 0 : index
    %c144_223 = arith.constant 144 : index
    %284 = vector.load %arg7[%c0_222, %c144_223] : memref<32x1024xf32, #tpu.memory_space<vmem>>, vector<32x256xf32>
    %285 = arith.truncf %284 : vector<32x256xf32> to vector<32x256xbf16>
    %c224_224 = arith.constant 224 : index
    %c0_225 = arith.constant 0 : index
    %286 = vector.load %arg8[%c224_224, %c0_225] : memref<288x512xbf16, #tpu.memory_space<vmem>>, vector<32x256xbf16>
    tpu.vector_store %arg8[%c224_224, %c0_225], %285 {strides = array<i32>} : memref<288x512xbf16, #tpu.memory_space<vmem>>, vector<32x256xbf16>,
    %c0_226 = arith.constant 0 : index
    %c656_227 = arith.constant 656 : index
    %287 = vector.load %arg7[%c0_226, %c656_227] : memref<32x1024xf32, #tpu.memory_space<vmem>>, vector<32x256xf32>
    %288 = arith.truncf %287 : vector<32x256xf32> to vector<32x256xbf16>
    %c224_228 = arith.constant 224 : index
    %c256_229 = arith.constant 256 : index
    %289 = vector.load %arg8[%c224_228, %c256_229] : memref<288x512xbf16, #tpu.memory_space<vmem>>, vector<32x256xbf16>
    tpu.vector_store %arg8[%c224_228, %c256_229], %288 {strides = array<i32>} : memref<288x512xbf16, #tpu.memory_space<vmem>>, vector<32x256xbf16>,
    %c0_230 = arith.constant 0 : index
    %c145_231 = arith.constant 145 : index
    %290 = vector.load %arg7[%c0_230, %c145_231] : memref<32x1024xf32, #tpu.memory_space<vmem>>, vector<32x256xf32>
    %291 = vector.broadcast %35 : vector<1x256xf32> to vector<32x256xf32>
    %292 = arith.mulf %290, %291 : vector<32x256xf32>
    %293 = arith.truncf %292 : vector<32x256xf32> to vector<32x256xbf16>
    %c256_232 = arith.constant 256 : index
    %c0_233 = arith.constant 0 : index
    %294 = vector.load %arg8[%c256_232, %c0_233] : memref<288x512xbf16, #tpu.memory_space<vmem>>, vector<32x256xbf16>
    tpu.vector_store %arg8[%c256_232, %c0_233], %293 {strides = array<i32>} : memref<288x512xbf16, #tpu.memory_space<vmem>>, vector<32x256xbf16>,
    %c0_234 = arith.constant 0 : index
    %c657_235 = arith.constant 657 : index
    %295 = vector.load %arg7[%c0_234, %c657_235] : memref<32x1024xf32, #tpu.memory_space<vmem>>, vector<32x256xf32>
    %296 = vector.broadcast %35 : vector<1x256xf32> to vector<32x256xf32>
    %297 = arith.mulf %295, %296 : vector<32x256xf32>
    %298 = arith.truncf %297 : vector<32x256xf32> to vector<32x256xbf16>
    %c256_236 = arith.constant 256 : index
    %c256_237 = arith.constant 256 : index
    %299 = vector.load %arg8[%c256_236, %c256_237] : memref<288x512xbf16, #tpu.memory_space<vmem>>, vector<32x256xbf16>
    tpu.vector_store %arg8[%c256_236, %c256_237], %298 {strides = array<i32>} : memref<288x512xbf16, #tpu.memory_space<vmem>>, vector<32x256xbf16>,
    %c0_238 = arith.constant 0 : index
    %c0_239 = arith.constant 0 : index
    %300 = vector.load %arg8[%c0_238, %c0_239] : memref<288x512xbf16, #tpu.memory_space<vmem>>, vector<288x512xbf16>
    %cst_240 = arith.constant dense<0.000000e+00> : vector<32x512xf32>
    %301 = tpu.matmul %221, %300, %cst_240 {dimension_numbers = #tpu.dot_dimension_numbers<[1], [0], [0], [1], [0, 0, 1, 1], [], []>} : vector<32x288xbf16>, vector<288x512xbf16>, vector<32x512xf32> -> vector<32x512xf32>
    %c2_241 = arith.constant 2 : index
    %c0_242 = arith.constant 0 : index
    %c0_243 = arith.constant 0 : index
    %302 = vector.load %arg3[%c2_241, %c0_242, %c0_243] : memref<4x32x1xf32, #tpu.memory_space<vmem>>, vector<1x32x1xf32>
    %303 = vector.shape_cast %302 : vector<1x32x1xf32> to vector<32x1xf32>
    %304 = vector.broadcast %303 : vector<32x1xf32> to vector<32x512xf32>
    %305 = arith.addf %301, %304 : vector<32x512xf32>
    %cst_244 = arith.constant 0.000000e+00 : f32
    %306 = vector.broadcast %cst_244 : f32 to vector<32x512xf32>
    %307 = arith.maximumf %305, %306 : vector<32x512xf32>
    %308 = vector.extract_strided_slice %307 {offsets = [0, 0], sizes = [32, 256], strides = [1, 1]} : vector<32x512xf32> to vector<32x256xf32>
    %c0_245 = arith.constant 0 : index
    %c128_246 = arith.constant 128 : index
    %309 = vector.load %arg7[%c0_245, %c128_246] : memref<32x1024xf32, #tpu.memory_space<vmem>>, vector<32x256xf32>
    tpu.vector_store %arg7[%c0_245, %c128_246], %308 {strides = array<i32>} : memref<32x1024xf32, #tpu.memory_space<vmem>>, vector<32x256xf32>,
    %310 = vector.extract_strided_slice %307 {offsets = [0, 256], sizes = [32, 256], strides = [1, 1]} : vector<32x512xf32> to vector<32x256xf32>
    %c0_247 = arith.constant 0 : index
    %c640_248 = arith.constant 640 : index
    %311 = vector.load %arg7[%c0_247, %c640_248] : memref<32x1024xf32, #tpu.memory_space<vmem>>, vector<32x256xf32>
    tpu.vector_store %arg7[%c0_247, %c640_248], %310 {strides = array<i32>} : memref<32x1024xf32, #tpu.memory_space<vmem>>, vector<32x256xf32>,
    %c3 = arith.constant 3 : index
    %c0_249 = arith.constant 0 : index
    %c0_250 = arith.constant 0 : index
    %312 = vector.load %arg2[%c3, %c0_249, %c0_250] : memref<4x32x288xbf16, #tpu.memory_space<vmem>>, vector<1x32x288xbf16>
    %313 = vector.shape_cast %312 : vector<1x32x288xbf16> to vector<32x288xbf16>
    %c0_251 = arith.constant 0 : index
    %c111_252 = arith.constant 111 : index
    %314 = vector.load %arg7[%c0_251, %c111_252] : memref<32x1024xf32, #tpu.memory_space<vmem>>, vector<32x256xf32>
    %315 = vector.broadcast %31 : vector<1x256xf32> to vector<32x256xf32>
    %316 = arith.mulf %314, %315 : vector<32x256xf32>
    %317 = arith.truncf %316 : vector<32x256xf32> to vector<32x256xbf16>
    %c0_253 = arith.constant 0 : index
    %c0_254 = arith.constant 0 : index
    %318 = vector.load %arg8[%c0_253, %c0_254] : memref<288x512xbf16, #tpu.memory_space<vmem>>, vector<32x256xbf16>
    tpu.vector_store %arg8[%c0_253, %c0_254], %317 {strides = array<i32>} : memref<288x512xbf16, #tpu.memory_space<vmem>>, vector<32x256xbf16>,
    %c0_255 = arith.constant 0 : index
    %c623_256 = arith.constant 623 : index
    %319 = vector.load %arg7[%c0_255, %c623_256] : memref<32x1024xf32, #tpu.memory_space<vmem>>, vector<32x256xf32>
    %320 = vector.broadcast %31 : vector<1x256xf32> to vector<32x256xf32>
    %321 = arith.mulf %319, %320 : vector<32x256xf32>
    %322 = arith.truncf %321 : vector<32x256xf32> to vector<32x256xbf16>
    %c0_257 = arith.constant 0 : index
    %c256_258 = arith.constant 256 : index
    %323 = vector.load %arg8[%c0_257, %c256_258] : memref<288x512xbf16, #tpu.memory_space<vmem>>, vector<32x256xbf16>
    tpu.vector_store %arg8[%c0_257, %c256_258], %322 {strides = array<i32>} : memref<288x512xbf16, #tpu.memory_space<vmem>>, vector<32x256xbf16>,
    %c0_259 = arith.constant 0 : index
    %c112_260 = arith.constant 112 : index
    %324 = vector.load %arg7[%c0_259, %c112_260] : memref<32x1024xf32, #tpu.memory_space<vmem>>, vector<32x256xf32>
    %325 = arith.truncf %324 : vector<32x256xf32> to vector<32x256xbf16>
    %c32_261 = arith.constant 32 : index
    %c0_262 = arith.constant 0 : index
    %326 = vector.load %arg8[%c32_261, %c0_262] : memref<288x512xbf16, #tpu.memory_space<vmem>>, vector<32x256xbf16>
    tpu.vector_store %arg8[%c32_261, %c0_262], %325 {strides = array<i32>} : memref<288x512xbf16, #tpu.memory_space<vmem>>, vector<32x256xbf16>,
    %c0_263 = arith.constant 0 : index
    %c624_264 = arith.constant 624 : index
    %327 = vector.load %arg7[%c0_263, %c624_264] : memref<32x1024xf32, #tpu.memory_space<vmem>>, vector<32x256xf32>
    %328 = arith.truncf %327 : vector<32x256xf32> to vector<32x256xbf16>
    %c32_265 = arith.constant 32 : index
    %c256_266 = arith.constant 256 : index
    %329 = vector.load %arg8[%c32_265, %c256_266] : memref<288x512xbf16, #tpu.memory_space<vmem>>, vector<32x256xbf16>
    tpu.vector_store %arg8[%c32_265, %c256_266], %328 {strides = array<i32>} : memref<288x512xbf16, #tpu.memory_space<vmem>>, vector<32x256xbf16>,
    %c0_267 = arith.constant 0 : index
    %c113_268 = arith.constant 113 : index
    %330 = vector.load %arg7[%c0_267, %c113_268] : memref<32x1024xf32, #tpu.memory_space<vmem>>, vector<32x256xf32>
    %331 = vector.broadcast %35 : vector<1x256xf32> to vector<32x256xf32>
    %332 = arith.mulf %330, %331 : vector<32x256xf32>
    %333 = arith.truncf %332 : vector<32x256xf32> to vector<32x256xbf16>
    %c64_269 = arith.constant 64 : index
    %c0_270 = arith.constant 0 : index
    %334 = vector.load %arg8[%c64_269, %c0_270] : memref<288x512xbf16, #tpu.memory_space<vmem>>, vector<32x256xbf16>
    tpu.vector_store %arg8[%c64_269, %c0_270], %333 {strides = array<i32>} : memref<288x512xbf16, #tpu.memory_space<vmem>>, vector<32x256xbf16>,
    %c0_271 = arith.constant 0 : index
    %c625_272 = arith.constant 625 : index
    %335 = vector.load %arg7[%c0_271, %c625_272] : memref<32x1024xf32, #tpu.memory_space<vmem>>, vector<32x256xf32>
    %336 = vector.broadcast %35 : vector<1x256xf32> to vector<32x256xf32>
    %337 = arith.mulf %335, %336 : vector<32x256xf32>
    %338 = arith.truncf %337 : vector<32x256xf32> to vector<32x256xbf16>
    %c64_273 = arith.constant 64 : index
    %c256_274 = arith.constant 256 : index
    %339 = vector.load %arg8[%c64_273, %c256_274] : memref<288x512xbf16, #tpu.memory_space<vmem>>, vector<32x256xbf16>
    tpu.vector_store %arg8[%c64_273, %c256_274], %338 {strides = array<i32>} : memref<288x512xbf16, #tpu.memory_space<vmem>>, vector<32x256xbf16>,
    %c0_275 = arith.constant 0 : index
    %c127_276 = arith.constant 127 : index
    %340 = vector.load %arg7[%c0_275, %c127_276] : memref<32x1024xf32, #tpu.memory_space<vmem>>, vector<32x256xf32>
    %341 = vector.broadcast %31 : vector<1x256xf32> to vector<32x256xf32>
    %342 = arith.mulf %340, %341 : vector<32x256xf32>
    %343 = arith.truncf %342 : vector<32x256xf32> to vector<32x256xbf16>
    %c96_277 = arith.constant 96 : index
    %c0_278 = arith.constant 0 : index
    %344 = vector.load %arg8[%c96_277, %c0_278] : memref<288x512xbf16, #tpu.memory_space<vmem>>, vector<32x256xbf16>
    tpu.vector_store %arg8[%c96_277, %c0_278], %343 {strides = array<i32>} : memref<288x512xbf16, #tpu.memory_space<vmem>>, vector<32x256xbf16>,
    %c0_279 = arith.constant 0 : index
    %c639_280 = arith.constant 639 : index
    %345 = vector.load %arg7[%c0_279, %c639_280] : memref<32x1024xf32, #tpu.memory_space<vmem>>, vector<32x256xf32>
    %346 = vector.broadcast %31 : vector<1x256xf32> to vector<32x256xf32>
    %347 = arith.mulf %345, %346 : vector<32x256xf32>
    %348 = arith.truncf %347 : vector<32x256xf32> to vector<32x256xbf16>
    %c96_281 = arith.constant 96 : index
    %c256_282 = arith.constant 256 : index
    %349 = vector.load %arg8[%c96_281, %c256_282] : memref<288x512xbf16, #tpu.memory_space<vmem>>, vector<32x256xbf16>
    tpu.vector_store %arg8[%c96_281, %c256_282], %348 {strides = array<i32>} : memref<288x512xbf16, #tpu.memory_space<vmem>>, vector<32x256xbf16>,
    %c0_283 = arith.constant 0 : index
    %c128_284 = arith.constant 128 : index
    %350 = vector.load %arg7[%c0_283, %c128_284] : memref<32x1024xf32, #tpu.memory_space<vmem>>, vector<32x256xf32>
    %351 = arith.truncf %350 : vector<32x256xf32> to vector<32x256xbf16>
    %c128_285 = arith.constant 128 : index
    %c0_286 = arith.constant 0 : index
    %352 = vector.load %arg8[%c128_285, %c0_286] : memref<288x512xbf16, #tpu.memory_space<vmem>>, vector<32x256xbf16>
    tpu.vector_store %arg8[%c128_285, %c0_286], %351 {strides = array<i32>} : memref<288x512xbf16, #tpu.memory_space<vmem>>, vector<32x256xbf16>,
    %c0_287 = arith.constant 0 : index
    %c640_288 = arith.constant 640 : index
    %353 = vector.load %arg7[%c0_287, %c640_288] : memref<32x1024xf32, #tpu.memory_space<vmem>>, vector<32x256xf32>
    %354 = arith.truncf %353 : vector<32x256xf32> to vector<32x256xbf16>
    %c128_289 = arith.constant 128 : index
    %c256_290 = arith.constant 256 : index
    %355 = vector.load %arg8[%c128_289, %c256_290] : memref<288x512xbf16, #tpu.memory_space<vmem>>, vector<32x256xbf16>
    tpu.vector_store %arg8[%c128_289, %c256_290], %354 {strides = array<i32>} : memref<288x512xbf16, #tpu.memory_space<vmem>>, vector<32x256xbf16>,
    %c0_291 = arith.constant 0 : index
    %c129_292 = arith.constant 129 : index
    %356 = vector.load %arg7[%c0_291, %c129_292] : memref<32x1024xf32, #tpu.memory_space<vmem>>, vector<32x256xf32>
    %357 = vector.broadcast %35 : vector<1x256xf32> to vector<32x256xf32>
    %358 = arith.mulf %356, %357 : vector<32x256xf32>
    %359 = arith.truncf %358 : vector<32x256xf32> to vector<32x256xbf16>
    %c160_293 = arith.constant 160 : index
    %c0_294 = arith.constant 0 : index
    %360 = vector.load %arg8[%c160_293, %c0_294] : memref<288x512xbf16, #tpu.memory_space<vmem>>, vector<32x256xbf16>
    tpu.vector_store %arg8[%c160_293, %c0_294], %359 {strides = array<i32>} : memref<288x512xbf16, #tpu.memory_space<vmem>>, vector<32x256xbf16>,
    %c0_295 = arith.constant 0 : index
    %c641_296 = arith.constant 641 : index
    %361 = vector.load %arg7[%c0_295, %c641_296] : memref<32x1024xf32, #tpu.memory_space<vmem>>, vector<32x256xf32>
    %362 = vector.broadcast %35 : vector<1x256xf32> to vector<32x256xf32>
    %363 = arith.mulf %361, %362 : vector<32x256xf32>
    %364 = arith.truncf %363 : vector<32x256xf32> to vector<32x256xbf16>
    %c160_297 = arith.constant 160 : index
    %c256_298 = arith.constant 256 : index
    %365 = vector.load %arg8[%c160_297, %c256_298] : memref<288x512xbf16, #tpu.memory_space<vmem>>, vector<32x256xbf16>
    tpu.vector_store %arg8[%c160_297, %c256_298], %364 {strides = array<i32>} : memref<288x512xbf16, #tpu.memory_space<vmem>>, vector<32x256xbf16>,
    %c0_299 = arith.constant 0 : index
    %c143_300 = arith.constant 143 : index
    %366 = vector.load %arg7[%c0_299, %c143_300] : memref<32x1024xf32, #tpu.memory_space<vmem>>, vector<32x256xf32>
    %367 = vector.broadcast %31 : vector<1x256xf32> to vector<32x256xf32>
    %368 = arith.mulf %366, %367 : vector<32x256xf32>
    %369 = arith.truncf %368 : vector<32x256xf32> to vector<32x256xbf16>
    %c192_301 = arith.constant 192 : index
    %c0_302 = arith.constant 0 : index
    %370 = vector.load %arg8[%c192_301, %c0_302] : memref<288x512xbf16, #tpu.memory_space<vmem>>, vector<32x256xbf16>
    tpu.vector_store %arg8[%c192_301, %c0_302], %369 {strides = array<i32>} : memref<288x512xbf16, #tpu.memory_space<vmem>>, vector<32x256xbf16>,
    %c0_303 = arith.constant 0 : index
    %c655_304 = arith.constant 655 : index
    %371 = vector.load %arg7[%c0_303, %c655_304] : memref<32x1024xf32, #tpu.memory_space<vmem>>, vector<32x256xf32>
    %372 = vector.broadcast %31 : vector<1x256xf32> to vector<32x256xf32>
    %373 = arith.mulf %371, %372 : vector<32x256xf32>
    %374 = arith.truncf %373 : vector<32x256xf32> to vector<32x256xbf16>
    %c192_305 = arith.constant 192 : index
    %c256_306 = arith.constant 256 : index
    %375 = vector.load %arg8[%c192_305, %c256_306] : memref<288x512xbf16, #tpu.memory_space<vmem>>, vector<32x256xbf16>
    tpu.vector_store %arg8[%c192_305, %c256_306], %374 {strides = array<i32>} : memref<288x512xbf16, #tpu.memory_space<vmem>>, vector<32x256xbf16>,
    %c0_307 = arith.constant 0 : index
    %c144_308 = arith.constant 144 : index
    %376 = vector.load %arg7[%c0_307, %c144_308] : memref<32x1024xf32, #tpu.memory_space<vmem>>, vector<32x256xf32>
    %377 = arith.truncf %376 : vector<32x256xf32> to vector<32x256xbf16>
    %c224_309 = arith.constant 224 : index
    %c0_310 = arith.constant 0 : index
    %378 = vector.load %arg8[%c224_309, %c0_310] : memref<288x512xbf16, #tpu.memory_space<vmem>>, vector<32x256xbf16>
    tpu.vector_store %arg8[%c224_309, %c0_310], %377 {strides = array<i32>} : memref<288x512xbf16, #tpu.memory_space<vmem>>, vector<32x256xbf16>,
    %c0_311 = arith.constant 0 : index
    %c656_312 = arith.constant 656 : index
    %379 = vector.load %arg7[%c0_311, %c656_312] : memref<32x1024xf32, #tpu.memory_space<vmem>>, vector<32x256xf32>
    %380 = arith.truncf %379 : vector<32x256xf32> to vector<32x256xbf16>
    %c224_313 = arith.constant 224 : index
    %c256_314 = arith.constant 256 : index
    %381 = vector.load %arg8[%c224_313, %c256_314] : memref<288x512xbf16, #tpu.memory_space<vmem>>, vector<32x256xbf16>
    tpu.vector_store %arg8[%c224_313, %c256_314], %380 {strides = array<i32>} : memref<288x512xbf16, #tpu.memory_space<vmem>>, vector<32x256xbf16>,
    %c0_315 = arith.constant 0 : index
    %c145_316 = arith.constant 145 : index
    %382 = vector.load %arg7[%c0_315, %c145_316] : memref<32x1024xf32, #tpu.memory_space<vmem>>, vector<32x256xf32>
    %383 = vector.broadcast %35 : vector<1x256xf32> to vector<32x256xf32>
    %384 = arith.mulf %382, %383 : vector<32x256xf32>
    %385 = arith.truncf %384 : vector<32x256xf32> to vector<32x256xbf16>
    %c256_317 = arith.constant 256 : index
    %c0_318 = arith.constant 0 : index
    %386 = vector.load %arg8[%c256_317, %c0_318] : memref<288x512xbf16, #tpu.memory_space<vmem>>, vector<32x256xbf16>
    tpu.vector_store %arg8[%c256_317, %c0_318], %385 {strides = array<i32>} : memref<288x512xbf16, #tpu.memory_space<vmem>>, vector<32x256xbf16>,
    %c0_319 = arith.constant 0 : index
    %c657_320 = arith.constant 657 : index
    %387 = vector.load %arg7[%c0_319, %c657_320] : memref<32x1024xf32, #tpu.memory_space<vmem>>, vector<32x256xf32>
    %388 = vector.broadcast %35 : vector<1x256xf32> to vector<32x256xf32>
    %389 = arith.mulf %387, %388 : vector<32x256xf32>
    %390 = arith.truncf %389 : vector<32x256xf32> to vector<32x256xbf16>
    %c256_321 = arith.constant 256 : index
    %c256_322 = arith.constant 256 : index
    %391 = vector.load %arg8[%c256_321, %c256_322] : memref<288x512xbf16, #tpu.memory_space<vmem>>, vector<32x256xbf16>
    tpu.vector_store %arg8[%c256_321, %c256_322], %390 {strides = array<i32>} : memref<288x512xbf16, #tpu.memory_space<vmem>>, vector<32x256xbf16>,
    %c0_323 = arith.constant 0 : index
    %c0_324 = arith.constant 0 : index
    %392 = vector.load %arg8[%c0_323, %c0_324] : memref<288x512xbf16, #tpu.memory_space<vmem>>, vector<288x512xbf16>
    %cst_325 = arith.constant dense<0.000000e+00> : vector<32x512xf32>
    %393 = tpu.matmul %313, %392, %cst_325 {dimension_numbers = #tpu.dot_dimension_numbers<[1], [0], [0], [1], [0, 0, 1, 1], [], []>} : vector<32x288xbf16>, vector<288x512xbf16>, vector<32x512xf32> -> vector<32x512xf32>
    %c3_326 = arith.constant 3 : index
    %c0_327 = arith.constant 0 : index
    %c0_328 = arith.constant 0 : index
    %394 = vector.load %arg3[%c3_326, %c0_327, %c0_328] : memref<4x32x1xf32, #tpu.memory_space<vmem>>, vector<1x32x1xf32>
    %395 = vector.shape_cast %394 : vector<1x32x1xf32> to vector<32x1xf32>
    %396 = vector.broadcast %395 : vector<32x1xf32> to vector<32x512xf32>
    %397 = arith.addf %393, %396 : vector<32x512xf32>
    %cst_329 = arith.constant 0.000000e+00 : f32
    %398 = vector.broadcast %cst_329 : f32 to vector<32x512xf32>
    %399 = arith.maximumf %397, %398 : vector<32x512xf32>
    %400 = vector.extract_strided_slice %399 {offsets = [0, 0], sizes = [32, 256], strides = [1, 1]} : vector<32x512xf32> to vector<32x256xf32>
    %c0_330 = arith.constant 0 : index
    %c128_331 = arith.constant 128 : index
    %401 = vector.load %arg7[%c0_330, %c128_331] : memref<32x1024xf32, #tpu.memory_space<vmem>>, vector<32x256xf32>
    tpu.vector_store %arg7[%c0_330, %c128_331], %400 {strides = array<i32>} : memref<32x1024xf32, #tpu.memory_space<vmem>>, vector<32x256xf32>,
    %402 = vector.extract_strided_slice %399 {offsets = [0, 256], sizes = [32, 256], strides = [1, 1]} : vector<32x512xf32> to vector<32x256xf32>
    %c0_332 = arith.constant 0 : index
    %c640_333 = arith.constant 640 : index
    %403 = vector.load %arg7[%c0_332, %c640_333] : memref<32x1024xf32, #tpu.memory_space<vmem>>, vector<32x256xf32>
    tpu.vector_store %arg7[%c0_332, %c640_333], %402 {strides = array<i32>} : memref<32x1024xf32, #tpu.memory_space<vmem>>, vector<32x256xf32>,
    %c0_334 = arith.constant 0 : index
    %c0_335 = arith.constant 0 : index
    %404 = vector.load %arg4[%c0_334, %c0_335] : memref<8x288xbf16, #tpu.memory_space<vmem>>, vector<8x288xbf16>
    %c0_336 = arith.constant 0 : index
    %c111_337 = arith.constant 111 : index
    %405 = vector.load %arg7[%c0_336, %c111_337] : memref<32x1024xf32, #tpu.memory_space<vmem>>, vector<32x256xf32>
    %406 = vector.broadcast %31 : vector<1x256xf32> to vector<32x256xf32>
    %407 = arith.mulf %405, %406 : vector<32x256xf32>
    %408 = arith.truncf %407 : vector<32x256xf32> to vector<32x256xbf16>
    %c0_338 = arith.constant 0 : index
    %c0_339 = arith.constant 0 : index
    %409 = vector.load %arg8[%c0_338, %c0_339] : memref<288x512xbf16, #tpu.memory_space<vmem>>, vector<32x256xbf16>
    tpu.vector_store %arg8[%c0_338, %c0_339], %408 {strides = array<i32>} : memref<288x512xbf16, #tpu.memory_space<vmem>>, vector<32x256xbf16>,
    %c0_340 = arith.constant 0 : index
    %c623_341 = arith.constant 623 : index
    %410 = vector.load %arg7[%c0_340, %c623_341] : memref<32x1024xf32, #tpu.memory_space<vmem>>, vector<32x256xf32>
    %411 = vector.broadcast %31 : vector<1x256xf32> to vector<32x256xf32>
    %412 = arith.mulf %410, %411 : vector<32x256xf32>
    %413 = arith.truncf %412 : vector<32x256xf32> to vector<32x256xbf16>
    %c0_342 = arith.constant 0 : index
    %c256_343 = arith.constant 256 : index
    %414 = vector.load %arg8[%c0_342, %c256_343] : memref<288x512xbf16, #tpu.memory_space<vmem>>, vector<32x256xbf16>
    tpu.vector_store %arg8[%c0_342, %c256_343], %413 {strides = array<i32>} : memref<288x512xbf16, #tpu.memory_space<vmem>>, vector<32x256xbf16>,
    %c0_344 = arith.constant 0 : index
    %c112_345 = arith.constant 112 : index
    %415 = vector.load %arg7[%c0_344, %c112_345] : memref<32x1024xf32, #tpu.memory_space<vmem>>, vector<32x256xf32>
    %416 = arith.truncf %415 : vector<32x256xf32> to vector<32x256xbf16>
    %c32_346 = arith.constant 32 : index
    %c0_347 = arith.constant 0 : index
    %417 = vector.load %arg8[%c32_346, %c0_347] : memref<288x512xbf16, #tpu.memory_space<vmem>>, vector<32x256xbf16>
    tpu.vector_store %arg8[%c32_346, %c0_347], %416 {strides = array<i32>} : memref<288x512xbf16, #tpu.memory_space<vmem>>, vector<32x256xbf16>,
    %c0_348 = arith.constant 0 : index
    %c624_349 = arith.constant 624 : index
    %418 = vector.load %arg7[%c0_348, %c624_349] : memref<32x1024xf32, #tpu.memory_space<vmem>>, vector<32x256xf32>
    %419 = arith.truncf %418 : vector<32x256xf32> to vector<32x256xbf16>
    %c32_350 = arith.constant 32 : index
    %c256_351 = arith.constant 256 : index
    %420 = vector.load %arg8[%c32_350, %c256_351] : memref<288x512xbf16, #tpu.memory_space<vmem>>, vector<32x256xbf16>
    tpu.vector_store %arg8[%c32_350, %c256_351], %419 {strides = array<i32>} : memref<288x512xbf16, #tpu.memory_space<vmem>>, vector<32x256xbf16>,
    %c0_352 = arith.constant 0 : index
    %c113_353 = arith.constant 113 : index
    %421 = vector.load %arg7[%c0_352, %c113_353] : memref<32x1024xf32, #tpu.memory_space<vmem>>, vector<32x256xf32>
    %422 = vector.broadcast %35 : vector<1x256xf32> to vector<32x256xf32>
    %423 = arith.mulf %421, %422 : vector<32x256xf32>
    %424 = arith.truncf %423 : vector<32x256xf32> to vector<32x256xbf16>
    %c64_354 = arith.constant 64 : index
    %c0_355 = arith.constant 0 : index
    %425 = vector.load %arg8[%c64_354, %c0_355] : memref<288x512xbf16, #tpu.memory_space<vmem>>, vector<32x256xbf16>
    tpu.vector_store %arg8[%c64_354, %c0_355], %424 {strides = array<i32>} : memref<288x512xbf16, #tpu.memory_space<vmem>>, vector<32x256xbf16>,
    %c0_356 = arith.constant 0 : index
    %c625_357 = arith.constant 625 : index
    %426 = vector.load %arg7[%c0_356, %c625_357] : memref<32x1024xf32, #tpu.memory_space<vmem>>, vector<32x256xf32>
    %427 = vector.broadcast %35 : vector<1x256xf32> to vector<32x256xf32>
    %428 = arith.mulf %426, %427 : vector<32x256xf32>
    %429 = arith.truncf %428 : vector<32x256xf32> to vector<32x256xbf16>
    %c64_358 = arith.constant 64 : index
    %c256_359 = arith.constant 256 : index
    %430 = vector.load %arg8[%c64_358, %c256_359] : memref<288x512xbf16, #tpu.memory_space<vmem>>, vector<32x256xbf16>
    tpu.vector_store %arg8[%c64_358, %c256_359], %429 {strides = array<i32>} : memref<288x512xbf16, #tpu.memory_space<vmem>>, vector<32x256xbf16>,
    %c0_360 = arith.constant 0 : index
    %c127_361 = arith.constant 127 : index
    %431 = vector.load %arg7[%c0_360, %c127_361] : memref<32x1024xf32, #tpu.memory_space<vmem>>, vector<32x256xf32>
    %432 = vector.broadcast %31 : vector<1x256xf32> to vector<32x256xf32>
    %433 = arith.mulf %431, %432 : vector<32x256xf32>
    %434 = arith.truncf %433 : vector<32x256xf32> to vector<32x256xbf16>
    %c96_362 = arith.constant 96 : index
    %c0_363 = arith.constant 0 : index
    %435 = vector.load %arg8[%c96_362, %c0_363] : memref<288x512xbf16, #tpu.memory_space<vmem>>, vector<32x256xbf16>
    tpu.vector_store %arg8[%c96_362, %c0_363], %434 {strides = array<i32>} : memref<288x512xbf16, #tpu.memory_space<vmem>>, vector<32x256xbf16>,
    %c0_364 = arith.constant 0 : index
    %c639_365 = arith.constant 639 : index
    %436 = vector.load %arg7[%c0_364, %c639_365] : memref<32x1024xf32, #tpu.memory_space<vmem>>, vector<32x256xf32>
    %437 = vector.broadcast %31 : vector<1x256xf32> to vector<32x256xf32>
    %438 = arith.mulf %436, %437 : vector<32x256xf32>
    %439 = arith.truncf %438 : vector<32x256xf32> to vector<32x256xbf16>
    %c96_366 = arith.constant 96 : index
    %c256_367 = arith.constant 256 : index
    %440 = vector.load %arg8[%c96_366, %c256_367] : memref<288x512xbf16, #tpu.memory_space<vmem>>, vector<32x256xbf16>
    tpu.vector_store %arg8[%c96_366, %c256_367], %439 {strides = array<i32>} : memref<288x512xbf16, #tpu.memory_space<vmem>>, vector<32x256xbf16>,
    %c0_368 = arith.constant 0 : index
    %c128_369 = arith.constant 128 : index
    %441 = vector.load %arg7[%c0_368, %c128_369] : memref<32x1024xf32, #tpu.memory_space<vmem>>, vector<32x256xf32>
    %442 = arith.truncf %441 : vector<32x256xf32> to vector<32x256xbf16>
    %c128_370 = arith.constant 128 : index
    %c0_371 = arith.constant 0 : index
    %443 = vector.load %arg8[%c128_370, %c0_371] : memref<288x512xbf16, #tpu.memory_space<vmem>>, vector<32x256xbf16>
    tpu.vector_store %arg8[%c128_370, %c0_371], %442 {strides = array<i32>} : memref<288x512xbf16, #tpu.memory_space<vmem>>, vector<32x256xbf16>,
    %c0_372 = arith.constant 0 : index
    %c640_373 = arith.constant 640 : index
    %444 = vector.load %arg7[%c0_372, %c640_373] : memref<32x1024xf32, #tpu.memory_space<vmem>>, vector<32x256xf32>
    %445 = arith.truncf %444 : vector<32x256xf32> to vector<32x256xbf16>
    %c128_374 = arith.constant 128 : index
    %c256_375 = arith.constant 256 : index
    %446 = vector.load %arg8[%c128_374, %c256_375] : memref<288x512xbf16, #tpu.memory_space<vmem>>, vector<32x256xbf16>
    tpu.vector_store %arg8[%c128_374, %c256_375], %445 {strides = array<i32>} : memref<288x512xbf16, #tpu.memory_space<vmem>>, vector<32x256xbf16>,
    %c0_376 = arith.constant 0 : index
    %c129_377 = arith.constant 129 : index
    %447 = vector.load %arg7[%c0_376, %c129_377] : memref<32x1024xf32, #tpu.memory_space<vmem>>, vector<32x256xf32>
    %448 = vector.broadcast %35 : vector<1x256xf32> to vector<32x256xf32>
    %449 = arith.mulf %447, %448 : vector<32x256xf32>
    %450 = arith.truncf %449 : vector<32x256xf32> to vector<32x256xbf16>
    %c160_378 = arith.constant 160 : index
    %c0_379 = arith.constant 0 : index
    %451 = vector.load %arg8[%c160_378, %c0_379] : memref<288x512xbf16, #tpu.memory_space<vmem>>, vector<32x256xbf16>
    tpu.vector_store %arg8[%c160_378, %c0_379], %450 {strides = array<i32>} : memref<288x512xbf16, #tpu.memory_space<vmem>>, vector<32x256xbf16>,
    %c0_380 = arith.constant 0 : index
    %c641_381 = arith.constant 641 : index
    %452 = vector.load %arg7[%c0_380, %c641_381] : memref<32x1024xf32, #tpu.memory_space<vmem>>, vector<32x256xf32>
    %453 = vector.broadcast %35 : vector<1x256xf32> to vector<32x256xf32>
    %454 = arith.mulf %452, %453 : vector<32x256xf32>
    %455 = arith.truncf %454 : vector<32x256xf32> to vector<32x256xbf16>
    %c160_382 = arith.constant 160 : index
    %c256_383 = arith.constant 256 : index
    %456 = vector.load %arg8[%c160_382, %c256_383] : memref<288x512xbf16, #tpu.memory_space<vmem>>, vector<32x256xbf16>
    tpu.vector_store %arg8[%c160_382, %c256_383], %455 {strides = array<i32>} : memref<288x512xbf16, #tpu.memory_space<vmem>>, vector<32x256xbf16>,
    %c0_384 = arith.constant 0 : index
    %c143_385 = arith.constant 143 : index
    %457 = vector.load %arg7[%c0_384, %c143_385] : memref<32x1024xf32, #tpu.memory_space<vmem>>, vector<32x256xf32>
    %458 = vector.broadcast %31 : vector<1x256xf32> to vector<32x256xf32>
    %459 = arith.mulf %457, %458 : vector<32x256xf32>
    %460 = arith.truncf %459 : vector<32x256xf32> to vector<32x256xbf16>
    %c192_386 = arith.constant 192 : index
    %c0_387 = arith.constant 0 : index
    %461 = vector.load %arg8[%c192_386, %c0_387] : memref<288x512xbf16, #tpu.memory_space<vmem>>, vector<32x256xbf16>
    tpu.vector_store %arg8[%c192_386, %c0_387], %460 {strides = array<i32>} : memref<288x512xbf16, #tpu.memory_space<vmem>>, vector<32x256xbf16>,
    %c0_388 = arith.constant 0 : index
    %c655_389 = arith.constant 655 : index
    %462 = vector.load %arg7[%c0_388, %c655_389] : memref<32x1024xf32, #tpu.memory_space<vmem>>, vector<32x256xf32>
    %463 = vector.broadcast %31 : vector<1x256xf32> to vector<32x256xf32>
    %464 = arith.mulf %462, %463 : vector<32x256xf32>
    %465 = arith.truncf %464 : vector<32x256xf32> to vector<32x256xbf16>
    %c192_390 = arith.constant 192 : index
    %c256_391 = arith.constant 256 : index
    %466 = vector.load %arg8[%c192_390, %c256_391] : memref<288x512xbf16, #tpu.memory_space<vmem>>, vector<32x256xbf16>
    tpu.vector_store %arg8[%c192_390, %c256_391], %465 {strides = array<i32>} : memref<288x512xbf16, #tpu.memory_space<vmem>>, vector<32x256xbf16>,
    %c0_392 = arith.constant 0 : index
    %c144_393 = arith.constant 144 : index
    %467 = vector.load %arg7[%c0_392, %c144_393] : memref<32x1024xf32, #tpu.memory_space<vmem>>, vector<32x256xf32>
    %468 = arith.truncf %467 : vector<32x256xf32> to vector<32x256xbf16>
    %c224_394 = arith.constant 224 : index
    %c0_395 = arith.constant 0 : index
    %469 = vector.load %arg8[%c224_394, %c0_395] : memref<288x512xbf16, #tpu.memory_space<vmem>>, vector<32x256xbf16>
    tpu.vector_store %arg8[%c224_394, %c0_395], %468 {strides = array<i32>} : memref<288x512xbf16, #tpu.memory_space<vmem>>, vector<32x256xbf16>,
    %c0_396 = arith.constant 0 : index
    %c656_397 = arith.constant 656 : index
    %470 = vector.load %arg7[%c0_396, %c656_397] : memref<32x1024xf32, #tpu.memory_space<vmem>>, vector<32x256xf32>
    %471 = arith.truncf %470 : vector<32x256xf32> to vector<32x256xbf16>
    %c224_398 = arith.constant 224 : index
    %c256_399 = arith.constant 256 : index
    %472 = vector.load %arg8[%c224_398, %c256_399] : memref<288x512xbf16, #tpu.memory_space<vmem>>, vector<32x256xbf16>
    tpu.vector_store %arg8[%c224_398, %c256_399], %471 {strides = array<i32>} : memref<288x512xbf16, #tpu.memory_space<vmem>>, vector<32x256xbf16>,
    %c0_400 = arith.constant 0 : index
    %c145_401 = arith.constant 145 : index
    %473 = vector.load %arg7[%c0_400, %c145_401] : memref<32x1024xf32, #tpu.memory_space<vmem>>, vector<32x256xf32>
    %474 = vector.broadcast %35 : vector<1x256xf32> to vector<32x256xf32>
    %475 = arith.mulf %473, %474 : vector<32x256xf32>
    %476 = arith.truncf %475 : vector<32x256xf32> to vector<32x256xbf16>
    %c256_402 = arith.constant 256 : index
    %c0_403 = arith.constant 0 : index
    %477 = vector.load %arg8[%c256_402, %c0_403] : memref<288x512xbf16, #tpu.memory_space<vmem>>, vector<32x256xbf16>
    tpu.vector_store %arg8[%c256_402, %c0_403], %476 {strides = array<i32>} : memref<288x512xbf16, #tpu.memory_space<vmem>>, vector<32x256xbf16>,
    %c0_404 = arith.constant 0 : index
    %c657_405 = arith.constant 657 : index
    %478 = vector.load %arg7[%c0_404, %c657_405] : memref<32x1024xf32, #tpu.memory_space<vmem>>, vector<32x256xf32>
    %479 = vector.broadcast %35 : vector<1x256xf32> to vector<32x256xf32>
    %480 = arith.mulf %478, %479 : vector<32x256xf32>
    %481 = arith.truncf %480 : vector<32x256xf32> to vector<32x256xbf16>
    %c256_406 = arith.constant 256 : index
    %c256_407 = arith.constant 256 : index
    %482 = vector.load %arg8[%c256_406, %c256_407] : memref<288x512xbf16, #tpu.memory_space<vmem>>, vector<32x256xbf16>
    tpu.vector_store %arg8[%c256_406, %c256_407], %481 {strides = array<i32>} : memref<288x512xbf16, #tpu.memory_space<vmem>>, vector<32x256xbf16>,
    %c0_408 = arith.constant 0 : index
    %c0_409 = arith.constant 0 : index
    %483 = vector.load %arg8[%c0_408, %c0_409] : memref<288x512xbf16, #tpu.memory_space<vmem>>, vector<288x512xbf16>
    %cst_410 = arith.constant dense<0.000000e+00> : vector<8x512xf32>
    %484 = tpu.matmul %404, %483, %cst_410 {dimension_numbers = #tpu.dot_dimension_numbers<[1], [0], [0], [1], [0, 0, 1, 1], [], []>} : vector<8x288xbf16>, vector<288x512xbf16>, vector<8x512xf32> -> vector<8x512xf32>
    %c0_411 = arith.constant 0 : index
    %c0_412 = arith.constant 0 : index
    %485 = vector.load %arg5[%c0_411, %c0_412] : memref<8x1xf32, #tpu.memory_space<vmem>>, vector<8x1xf32>
    %486 = vector.broadcast %485 : vector<8x1xf32> to vector<8x512xf32>
    %487 = arith.addf %484, %486 : vector<8x512xf32>
    %488 = vector.extract_strided_slice %487 {offsets = [0, 0], sizes = [8, 256], strides = [1, 1]} : vector<8x512xf32> to vector<8x256xf32>
    %489 = vector.extract_strided_slice %488 {offsets = [0, 0], sizes = [1, 256], strides = [1, 1]} : vector<8x256xf32> to vector<1x256xf32>
    %490 = arith.negf %489 : vector<1x256xf32>
    %491 = math.exp %490 : vector<1x256xf32>
    %cst_413 = arith.constant 1.000000e+00 : f32
    %492 = vector.broadcast %cst_413 : f32 to vector<1x256xf32>
    %493 = arith.addf %492, %491 : vector<1x256xf32>
    %494 = arith.divf %492, %493 : vector<1x256xf32>
    %c0_414 = arith.constant 0 : index
    %c0_415 = arith.constant 0 : index
    %c0_416 = arith.constant 0 : index
    %495 = vector.load %arg6[%c0_414, %c0_415, %c0_416] : memref<2x8x256xf32, #tpu.memory_space<vmem>>, vector<1x1x256xf32>
    %496 = vector.shape_cast %495 : vector<1x1x256xf32> to vector<1x256xf32>
    %497 = vector.shape_cast %494 : vector<1x256xf32> to vector<1x1x256xf32>
    tpu.vector_store %arg6[%c0_414, %c0_415, %c0_416], %497 {strides = array<i32>} : memref<2x8x256xf32, #tpu.memory_space<vmem>>, vector<1x1x256xf32>,
    %498 = vector.extract_strided_slice %488 {offsets = [1, 0], sizes = [7, 256], strides = [1, 1]} : vector<8x256xf32> to vector<7x256xf32>
    %c0_417 = arith.constant 0 : index
    %c1_418 = arith.constant 1 : index
    %c0_419 = arith.constant 0 : index
    %499 = vector.load %arg6[%c0_417, %c1_418, %c0_419] : memref<2x8x256xf32, #tpu.memory_space<vmem>>, vector<1x7x256xf32>
    %500 = vector.shape_cast %499 : vector<1x7x256xf32> to vector<7x256xf32>
    %501 = vector.shape_cast %498 : vector<7x256xf32> to vector<1x7x256xf32>
    tpu.vector_store %arg6[%c0_417, %c1_418, %c0_419], %501 {strides = array<i32>} : memref<2x8x256xf32, #tpu.memory_space<vmem>>, vector<1x7x256xf32>,
    %502 = vector.extract_strided_slice %487 {offsets = [0, 256], sizes = [8, 256], strides = [1, 1]} : vector<8x512xf32> to vector<8x256xf32>
    %503 = vector.extract_strided_slice %502 {offsets = [0, 0], sizes = [1, 256], strides = [1, 1]} : vector<8x256xf32> to vector<1x256xf32>
    %504 = arith.negf %503 : vector<1x256xf32>
    %505 = math.exp %504 : vector<1x256xf32>
    %cst_420 = arith.constant 1.000000e+00 : f32
    %506 = vector.broadcast %cst_420 : f32 to vector<1x256xf32>
    %507 = arith.addf %506, %505 : vector<1x256xf32>
    %508 = arith.divf %506, %507 : vector<1x256xf32>
    %c1_421 = arith.constant 1 : index
    %c0_422 = arith.constant 0 : index
    %c0_423 = arith.constant 0 : index
    %509 = vector.load %arg6[%c1_421, %c0_422, %c0_423] : memref<2x8x256xf32, #tpu.memory_space<vmem>>, vector<1x1x256xf32>
    %510 = vector.shape_cast %509 : vector<1x1x256xf32> to vector<1x256xf32>
    %511 = vector.shape_cast %508 : vector<1x256xf32> to vector<1x1x256xf32>
    tpu.vector_store %arg6[%c1_421, %c0_422, %c0_423], %511 {strides = array<i32>} : memref<2x8x256xf32, #tpu.memory_space<vmem>>, vector<1x1x256xf32>,
    %512 = vector.extract_strided_slice %502 {offsets = [1, 0], sizes = [7, 256], strides = [1, 1]} : vector<8x256xf32> to vector<7x256xf32>
    %c1_424 = arith.constant 1 : index
    %c1_425 = arith.constant 1 : index
    %c0_426 = arith.constant 0 : index
    %513 = vector.load %arg6[%c1_424, %c1_425, %c0_426] : memref<2x8x256xf32, #tpu.memory_space<vmem>>, vector<1x7x256xf32>
    %514 = vector.shape_cast %513 : vector<1x7x256xf32> to vector<7x256xf32>
    %515 = vector.shape_cast %512 : vector<7x256xf32> to vector<1x7x256xf32>
    tpu.vector_store %arg6[%c1_424, %c1_425, %c0_426], %515 {strides = array<i32>} : memref<2x8x256xf32, #tpu.memory_space<vmem>>, vector<1x7x256xf32>,
    return
  }
  func.func @transform_0(%arg0: i32) -> (i32, i32, i32) {
    %c0_i32 = arith.constant 0 : i32
    %c0_i32_0 = arith.constant 0 : i32
    %c0_i32_1 = arith.constant 0 : i32
    return %arg0, %c0_i32, %c0_i32_0 : i32, i32, i32
  }
  func.func @transform_1(%arg0: i32) -> (i32, i32, i32) {
    %c0_i32 = arith.constant 0 : i32
    %c0_i32_0 = arith.constant 0 : i32
    %c0_i32_1 = arith.constant 0 : i32
    %c0_i32_2 = arith.constant 0 : i32
    return %c0_i32, %c0_i32_0, %c0_i32_1 : i32, i32, i32
  }
  func.func @transform_2(%arg0: i32) -> (i32, i32, i32) {
    %c0_i32 = arith.constant 0 : i32
    %c0_i32_0 = arith.constant 0 : i32
    %c0_i32_1 = arith.constant 0 : i32
    %c0_i32_2 = arith.constant 0 : i32
    return %c0_i32, %c0_i32_0, %c0_i32_1 : i32, i32, i32
  }
  func.func @transform_3(%arg0: i32) -> (i32, i32) {
    %c0_i32 = arith.constant 0 : i32
    %c0_i32_0 = arith.constant 0 : i32
    %c0_i32_1 = arith.constant 0 : i32
    return %c0_i32, %c0_i32_0 : i32, i32
  }
  func.func @transform_4(%arg0: i32) -> (i32, i32) {
    %c0_i32 = arith.constant 0 : i32
    %c0_i32_0 = arith.constant 0 : i32
    %c0_i32_1 = arith.constant 0 : i32
    return %c0_i32, %c0_i32_0 : i32, i32
  }
  func.func @transform_5(%arg0: i32) -> (i32, i32, i32) {
    %c0_i32 = arith.constant 0 : i32
    %c0_i32_0 = arith.constant 0 : i32
    %c0_i32_1 = arith.constant 0 : i32
    return %arg0, %c0_i32, %c0_i32_0 : i32, i32, i32
  }
}

</mosaic_0001>

<bundles_post_ra>
// kernel: header_forward.1
= control target key start
LH: loop header
LB: loop body
LE: loop exit
PB: predicated region body
PF: predicated region fallthrough
CT: control target
= control target key end

     0   :  { %s7447_s18 = smov 0   ;;  %s12494_s0 = inlined_call_operand.vmem [shape: f32[4,32,256], index: 0, kind: input, shape index: {}]   ;;  %s12495_s1 = inlined_call_operand.vmem [shape: bf16[4,32,288], index: 1, kind: input, shape index: {}]   ;;  %s12496_s2 = inlined_call_operand.vmem [shape: f32[4,32,1], index: 2, kind: input, shape index: {}]   ;;  %s12497_s3 = inlined_call_operand.vmem [shape: bf16[8,288], index: 3, kind: input, shape index: {}]   ;;  %s12498_s4 = inlined_call_operand.vmem [shape: f32[8,1], index: 4, kind: input, shape index: {}]   ;;  %s12499_s5 = inlined_call_operand.vmem [shape: f32[4,8,256], index: 5, kind: output, shape index: {}]  }
   0x1 LB: > { %s7039_s19 = sadd.s32 4294967295, %s7403_s18   ;;  %p7043_p0 = scmp.ge.s32.totalorder %s7403_s18, 1  ;;  %s7403_s18 = sphi %s7447_s18, %s15_s18  }
   0x2   : > { %p189_p1 = scmp.lt.s32.totalorder %s7403_s18, 3 }
   0x4   : > { %p190_p2 = pnand %p7043_p0, %p189_p1 }
   0x6   : > { %193 = sbr.rel (%p190_p2) target bundleno = 2610 (0xa32), region = 40 }
   0xd   : > { %v12500_v0 = vlaneseq  ;;  %s7044_s20 = sshll.u32 %s7039_s19, 1  ;;  %v7405_v5 = vmov 0.0   ;;  %s7406_s25 = smov 111   ;;  %v12512_v22 = vmov 0.0|0.0   ;;  %vm348_vm4 = vcmask 908288  }
   0xe   : > { %p220_p3 = scmp.lt.s32.totalorder %s7044_s20, 3  ;;  %s7407_s26 = smov 127   ;;  %vm577_vm5 = vcmask 924672   ;;  %vm707_vm6 = vcmask 1039360   ;;  %vm748_vm7 = vcmask 7168   ;;  %vm618_vm8 = vcmask 121856  }
   0xf   : > { %v284_v1 = vand.u32 127, %v12500_v0  ;;  %s7408_s27 = smov 113   ;;  %s7409_s28 = smov 1   ;;  %vm389_vm9 = vcmask 138240   ;;  %vm498_vm10 = vcmask 130048   ;;  %vm1149_vm11 = vcmask 916480  }
  0x10   : > { %s13187_s20 = smov (!%p220_p3, %s7044_s20), 3  ;;  %s7410_s29 = smov 15   ;;  %vm1466_vm12 = vcmask 261120  }
  0x11   : > { %v285_v2 = vadd.s32 128, %v284_v1  ;;  %v290_v3 = vand.u32 15, %v284_v1  ;;  %s7152_s21 = sshll.u32 %s13187_s20, 6  ;;  %s7411_s30 = smov 16  }
  0x12   : > { %s7462_s24 = scalar_lea.vmem %s12494_s0, %s7152_s21  ;;  %s7413_s6 = smov 17  }
  0x13   : > { %v297_v4 = vand.u32 15, %v285_v2  ;;  %vm310_vm0 = vcmp.ge.s32.totalorder %v290_v3, 1  ;;  %vm316_vm1 = vcmp.le.s32.totalorder %v290_v3, 14  ;;  %v7467_v12 = vld [vmem:[%s7462_s24] sm:$0xff]  ;;  %v7470_v13 = vld [vmem:[%s7462_s24 + $0x10] sm:$0xff]  ;;  %v7473_v14 = vld [vmem:[%s7462_s24 + $0x8] sm:$0xff] }
  0x14   : > { %v7058_v6 = vsel %vm310_vm0, 1.0, %v7405_v5  ;;  %v7060_v8 = vsel %vm316_vm1, 1.0, %v7405_v5  ;;  %v7476_v15 = vld [vmem:[%s7462_s24 + $0x18] sm:$0xff]  ;;  %v7482_v16 = vpack.c.bf16 %v7470_v13, %v7467_v12  ;;  %v7492_v18 = vld [vmem:[%s7462_s24 + $0x40] sm:$0xff]  ;;  %v7495_v19 = vld [vmem:[%s7462_s24 + $0x50] sm:$0xff]  ;;  %s7415_s7 = smov 112  }
  0x15   : > { %vm311_vm2 = vcmp.ge.s32.totalorder %v297_v4, 1  ;;  %vm317_vm3 = vcmp.le.s32.totalorder %v297_v4, 14  ;;  %v7489_v17 = vpack.c.bf16 %v7476_v15, %v7473_v14  ;;  %v7498_v20 = vld [vmem:[%s7462_s24 + $0x48] sm:$0xff]  ;;  %v7501_v21 = vld [vmem:[%s7462_s24 + $0x58] sm:$0xff]  ;;  %v7509_v23 = vpack.c.bf16 %v7495_v19, %v7492_v18  ;;  %v7520_v25 = vld [vmem:[%s7462_s24 + $0x20] sm:$0xff] }
  0x16   : > { %v7059_v7 = vsel %vm311_vm2, 1.0, %v7405_v5  ;;  %v7061_v9 = vsel %vm317_vm3, 1.0, %v7405_v5  ;;  %v7513_v24 = vpack.c.bf16 %v7501_v21, %v7498_v20  ;;  %v7523_v26 = vld [vmem:[%s7462_s24 + $0x30] sm:$0xff]  ;;  %v7526_v27 = vld [vmem:[%s7462_s24 + $0x28] sm:$0xff]  ;;  %v7529_v28 = vld [vmem:[%s7462_s24 + $0x38] sm:$0xff] }
  0x17   : > { %v7314_v10 = vpack.i.bf16 %v7059_v7, %v7058_v6  ;;  %v7319_v11 = vpack.i.bf16 %v7061_v9, %v7060_v8  ;;  %v7536_v29 = vpack.c.bf16 %v7523_v26, %v7520_v25  ;;  %v7540_v30 = vpack.c.bf16 %v7529_v28, %v7526_v27  ;;  %v7543_v31 = vld [vmem:[%s7462_s24 + $0x60] sm:$0xff]  ;;  %v7546_v32 = vld [vmem:[%s7462_s24 + $0x70] sm:$0xff]  ;;  %v7557_v34 = vld [vmem:[%s7462_s24 + $0x68] sm:$0xff] }
  0x18   : > { %v7554_v33 = vpack.c.bf16 %v7546_v32, %v7543_v31  ;;  %v7560_v35 = vld [vmem:[%s7462_s24 + $0x78] sm:$0xff] }
  0x19   : > { %7315 = vrot.lane.b32.xlu0 %v7314_v10, %s7406_s25  ;;  %7325 = vrot.lane.b32.xlu1 %v7314_v10, %s7407_s26  ;;  %12713 = vst [vmem:[#allocation4_spill] sm:$0xff] %v7536_v29  ;;  %v7568_v36 = vpack.c.bf16 %v7560_v35, %v7557_v34 }
  0x1a   : > { %12714 = vst [vmem:[#allocation5_spill] sm:$0xff] %v7554_v33 }
  0x1d   : > { %7320 = vrot.lane.b32.xlu0 %v7319_v11, %s7408_s27  ;;  %7330 = vrot.lane.b32.xlu1 %v7319_v11, %s7409_s28 }
  0x21   : > { %7335 = vrot.lane.b32.xlu0 %v7314_v10, %s7410_s29  ;;  %488 = vrot.lane.b32.xlu1 %v7482_v16, %s7411_s30 }
  0x25   : > { %490 = vrot.lane.b32.xlu0 %v7489_v17, %s7411_s30  ;;  %486 = vrot.lane.b32.xlu1 %v12512_v22, %s7411_s30 }
  0x29   : > { %537 = vrot.lane.b32.xlu0 %v7509_v23, %s7411_s30  ;;  %539 = vrot.lane.b32.xlu1 %v7513_v24, %s7411_s30 }
  0x2d   : > { %7340 = vrot.lane.b32.xlu0 %v7319_v11, %s7413_s6  ;;  %535 = vrot.lane.b32.xlu1 %v12512_v22, %s7411_s30 }
  0x31   : > { %494 = vrot.lane.b32.xlu0 %v7536_v29, %s7411_s30  ;;  %496 = vrot.lane.b32.xlu1 %v7540_v30, %s7411_s30 }
  0x35   : > { %492 = vrot.lane.b32.xlu0 %v12512_v22, %s7411_s30  ;;  %543 = vrot.lane.b32.xlu1 %v7554_v33, %s7411_s30 }
  0x39   : > { %545 = vrot.lane.b32.xlu0 %v7568_v36, %s7411_s30  ;;  %541 = vrot.lane.b32.xlu1 %v12512_v22, %s7411_s30 }
  0x8b   : > { %v7574_v37 = vpop.permute.xlu0 %7315  ;;  %v7590_v44 = vpop.permute.xlu1 %7325 }
  0x8c   : > { %v7317_v38 = vunpack.i.l.bf16 %v7574_v37  ;;  %v7327_v46 = vunpack.i.l.bf16 %v7590_v44  ;;  %v7633_v57 = vunpack.i.h.bf16 %v7574_v37 }
  0x8e   : > { %v353_v39 = vmul.f32 0.0, %v7317_v38  ;;  %v712_v47 = vmul.f32 0.0, %v7327_v46  ;;  %12719 = vst [vmem:[#allocation10_spill] sm:$0xff] %v7633_v57  ;;  %v355_v62 = vmul.f32 %v7633_v57, %v7473_v14  ;;  %v358_v63 = vmul.f32 %v7633_v57, %v7476_v15 }
  0x8f   : > { %v7579_v40 = vpop.permute.xlu0 %7320  ;;  %v7605_v48 = vpop.permute.xlu1 %7330  ;;  %v416_v3 = vmul.f32 %v7633_v57, %v7498_v20  ;;  %v419_v4 = vmul.f32 %v7633_v57, %v7501_v21  ;;  %v361_v6 = vmul.f32 %v7633_v57, %v7526_v27  ;;  %v364_v7 = vmul.f32 %v7633_v57, %v7529_v28 }
  0x90   : > { %v7581_v41 = vpack.c.bf16 %v353_v39, %v353_v39  ;;  %v7322_v42 = vunpack.i.l.bf16 %v7579_v40  ;;  %v7608_v49 = vunpack.i.l.bf16 %v7605_v48  ;;  %v7610_v50 = vpack.c.bf16 %v712_v47, %v712_v47 }
  0x91   : > { %v7656_v5 = vunpack.i.h.bf16 %v7579_v40  ;;  %v367_v8 = vpack.c.bf16 %v358_v63, %v355_v62  ;;  %v428_v9 = vpack.c.bf16 %v419_v4, %v416_v3  ;;  %v422_v10 = vmul.f32 %v7633_v57, %v7557_v34 }
  0x92   : > { %12715 = vst [vmem:[#allocation6_spill] sm:$0xff] %v7581_v41  ;;  %438 = vrot.lane.b32.xlu0 %v7581_v41, %s7413_s6  ;;  %377 = vrot.lane.b32.xlu1 %v7581_v41, %s7413_s6  ;;  %v582_v43 = vmul.f32 0.0, %v7322_v42  ;;  %12717 = vst [vmem:[#allocation8_spill] sm:$0xff] %v7608_v49  ;;  %v874_v51 = vmul.f32 %v7608_v49, %v7467_v12  ;;  %v877_v52 = vmul.f32 %v7608_v49, %v7470_v13  ;;  %v12502_v62 = vmov 0  }
  0x93   : > { %12718 = vst [vmem:[#allocation9_spill] sm:$0xff] %v7610_v50  ;;  %v935_v53 = vmul.f32 %v7608_v49, %v7492_v18  ;;  %v938_v54 = vmul.f32 %v7608_v49, %v7495_v19  ;;  %v880_v58 = vmul.f32 %v7608_v49, %v7520_v25  ;;  %v883_v59 = vmul.f32 %v7608_v49, %v7523_v26 }
  0x94   : > { %v7592_v45 = vpack.c.bf16 %v582_v43, %v582_v43  ;;  %v886_v55 = vpack.c.bf16 %v877_v52, %v874_v51  ;;  %v941_v60 = vmul.f32 %v7608_v49, %v7543_v31  ;;  %v944_v61 = vmul.f32 %v7608_v49, %v7546_v32  ;;  %12720 = vst [vmem:[#allocation11_spill] sm:$0xff] %v7656_v5 }
  0x95   : > { %v947_v56 = vpack.c.bf16 %v938_v54, %v935_v53  ;;  %v889_v1 = vpack.c.bf16 %v883_v59, %v880_v58  ;;  %v425_v11 = vmul.f32 %v7633_v57, %v7560_v35  ;;  %v370_v39 = vpack.c.bf16 %v364_v7, %v361_v6  ;;  %7345 = vset.pattern.permute.xlu1 %v12502_v62 }
  0x96   : > { %12716 = vst [vmem:[#allocation7_spill] sm:$0xff] %v7592_v45  ;;  %444 = vrot.lane.b32.xlu0 %v7581_v41, %s7413_s6  ;;  %383 = vrot.lane.b32.xlu1 %v7581_v41, %s7413_s6  ;;  %v950_v2 = vpack.c.bf16 %v944_v61, %v941_v60  ;;  %v645_v43 = vmul.f32 %v7656_v5, %v7498_v20  ;;  %v7679_v54 = vunpack.i.h.bf16 %v7590_v44  ;;  %v7333_v7 = vunpack.i.h.bf16 %v7605_v48 }
  0x97   : > { %v431_v47 = vpack.c.bf16 %v425_v11, %v422_v10  ;;  %v648_v51 = vmul.f32 %v7656_v5, %v7501_v21  ;;  %v584_v52 = vmul.f32 %v7656_v5, %v7473_v14  ;;  %v587_v53 = vmul.f32 %v7656_v5, %v7476_v15  ;;  %7344 = vset.pattern.permute.xlu0 %v12502_v62 }
  0x98   : > { %12721 = vst [vmem:[#allocation12_spill] sm:$0xff] %v7679_v54  ;;  %v590_v58 = vmul.f32 %v7656_v5, %v7526_v27  ;;  %v593_v61 = vmul.f32 %v7656_v5, %v7529_v28  ;;  %v778_v3 = vmul.f32 %v7679_v54, %v7501_v21  ;;  %v714_v4 = vmul.f32 %v7679_v54, %v7473_v14 }
  0x99   : > { %v657_v59 = vpack.c.bf16 %v648_v51, %v645_v43  ;;  %v596_v60 = vpack.c.bf16 %v587_v53, %v584_v52  ;;  %v717_v6 = vmul.f32 %v7679_v54, %v7476_v15  ;;  %v723_v43 = vmul.f32 %v7679_v54, %v7529_v28 }
  0x9a   : > { %606 = vrot.lane.b32.xlu0 %v7592_v45, %s7410_s29  ;;  %667 = vrot.lane.b32.xlu1 %v7592_v45, %s7410_s29  ;;  %v7722_v53 = vsel %vm348_vm4, %v7317_v38, %v7633_v57 }
  0x9b   : > { %v726_v11 = vpack.c.bf16 %v717_v6, %v714_v4  ;;  %12722 = vst [vmem:[#allocation13_spill] sm:$0xff] %v7722_v53  ;;  %v354_v37 = vmul.f32 %v7722_v53, %v7467_v12  ;;  %v357_v38 = vmul.f32 %v7722_v53, %v7470_v13 }
  0x9e   : > { %612 = vrot.lane.b32.xlu0 %v7592_v45, %s7410_s29  ;;  %673 = vrot.lane.b32.xlu1 %v7592_v45, %s7410_s29 }
  0xa2   : > { %736 = vrot.lane.b32.xlu0 %v7610_v50, %s7409_s28  ;;  %797 = vrot.lane.b32.xlu1 %v7610_v50, %s7409_s28 }
  0xa6   : > { %742 = vrot.lane.b32.xlu0 %v7610_v50, %s7409_s28  ;;  %803 = vrot.lane.b32.xlu1 %v7610_v50, %s7409_s28 }
  0xaa   : > { %898 = vrot.lane.b32.xlu0 %v886_v55, %s7407_s26  ;;  %959 = vrot.lane.b32.xlu1 %v947_v56, %s7407_s26  ;;  %v651_v55 = vmul.f32 %v7656_v5, %v7557_v34  ;;  %v654_v56 = vmul.f32 %v7656_v5, %v7560_v35 }
  0xac   : > { %v660_v63 = vpack.c.bf16 %v654_v56, %v651_v55  ;;  %v415_v56 = vmul.f32 %v7492_v18, %v7722_v53 }
  0xae   : > { %904 = vrot.lane.b32.xlu0 %v889_v1, %s7407_s26  ;;  %965 = vrot.lane.b32.xlu1 %v950_v2, %s7407_s26  ;;  %v775_v1 = vmul.f32 %v7679_v54, %v7498_v20  ;;  %v599_v2 = vpack.c.bf16 %v593_v61, %v590_v58  ;;  %v418_v58 = vmul.f32 %v7495_v19, %v7722_v53 }
  0xaf   : > { %v421_v61 = vmul.f32 %v7543_v31, %v7722_v53 }
  0xb0   : > { %v787_v10 = vpack.c.bf16 %v778_v3, %v775_v1  ;;  %v424_v1 = vmul.f32 %v7546_v32, %v7722_v53  ;;  %v363_v3 = vmul.f32 %v7722_v53, %v7523_v26 }
  0xb2   : > { %381 = vrot.lane.b32.xlu0 %v367_v8, %s7413_s6  ;;  %442 = vrot.lane.b32.xlu1 %v428_v9, %s7413_s6  ;;  %v781_v8 = vmul.f32 %v7679_v54, %v7557_v34  ;;  %v784_v9 = vmul.f32 %v7679_v54, %v7560_v35  ;;  %v430_v4 = vpack.c.bf16 %v424_v1, %v421_v61  ;;  %v7792_v61 = vpop.permute.xlu1 %488 }
  0xb4   : > { %v790_v51 = vpack.c.bf16 %v784_v9, %v781_v8 }
  0xb6   : > { %387 = vrot.lane.b32.xlu0 %v370_v39, %s7413_s6  ;;  %448 = vrot.lane.b32.xlu1 %v431_v47, %s7413_s6  ;;  %v720_v39 = vmul.f32 %v7679_v54, %v7526_v27  ;;  %v876_v47 = vmul.f32 0.0, %v7333_v7 }
  0xb8   : > { %v729_v52 = vpack.c.bf16 %v723_v43, %v720_v39  ;;  %v7724_v55 = vpack.c.bf16 %v876_v47, %v876_v47 }
  0xba   : > { %671 = vrot.lane.b32.xlu0 %v657_v59, %s7410_s29  ;;  %610 = vrot.lane.b32.xlu1 %v596_v60, %s7410_s29  ;;  %12723 = vst [vmem:[#allocation14_spill] sm:$0xff] %v7724_v55  ;;  %v7746_v59 = vsel %vm577_vm5, %v7322_v42, %v7656_v5  ;;  %v427_v60 = vpack.c.bf16 %v418_v58, %v415_v56 }
  0xbb   : > { %12724 = vst [vmem:[#allocation15_spill] sm:$0xff] %v7746_v59  ;;  %v583_v40 = vmul.f32 %v7746_v59, %v7467_v12  ;;  %v586_v42 = vmul.f32 %v7746_v59, %v7470_v13  ;;  %v644_v8 = vmul.f32 %v7492_v18, %v7746_v59  ;;  %v647_v9 = vmul.f32 %v7495_v19, %v7746_v59 }
  0xbc   : > { %v589_v39 = vmul.f32 %v7746_v59, %v7520_v25  ;;  %v592_v47 = vmul.f32 %v7746_v59, %v7523_v26 }
  0xbd   : > { %v656_v43 = vpack.c.bf16 %v647_v9, %v644_v8 }
  0xbe   : > { %677 = vrot.lane.b32.xlu0 %v660_v63, %s7410_s29  ;;  %616 = vrot.lane.b32.xlu1 %v599_v2, %s7410_s29  ;;  %v366_v63 = vpack.c.bf16 %v357_v38, %v354_v37  ;;  %v360_v2 = vmul.f32 %v7722_v53, %v7520_v25  ;;  %v598_v37 = vpack.c.bf16 %v592_v47, %v589_v39 }
  0xc0   : > { %v369_v6 = vpack.c.bf16 %v363_v3, %v360_v2 }
  0xc2   : > { %801 = vrot.lane.b32.xlu0 %v787_v10, %s7409_s28  ;;  %740 = vrot.lane.b32.xlu1 %v726_v11, %s7409_s28  ;;  %v7772_v10 = vsel %vm707_vm6, %v7327_v46, %v7679_v54  ;;  %v595_v11 = vpack.c.bf16 %v586_v42, %v583_v40 }
  0xc3   : > { %12725 = vst [vmem:[#allocation16_spill] sm:$0xff] %v7772_v10  ;;  %v713_v44 = vmul.f32 %v7772_v10, %v7467_v12  ;;  %v716_v46 = vmul.f32 %v7772_v10, %v7470_v13  ;;  %v774_v56 = vmul.f32 %v7492_v18, %v7772_v10  ;;  %v777_v58 = vmul.f32 %v7495_v19, %v7772_v10 }
  0xc4   : > { %v719_v3 = vmul.f32 %v7772_v10, %v7520_v25  ;;  %v722_v40 = vmul.f32 %v7772_v10, %v7523_v26  ;;  %v780_v42 = vmul.f32 %v7543_v31, %v7772_v10 }
  0xc5   : > { %v725_v1 = vpack.c.bf16 %v716_v46, %v713_v44  ;;  %v786_v2 = vpack.c.bf16 %v777_v58, %v774_v56 }
  0xc6   : > { %807 = vrot.lane.b32.xlu0 %v790_v51, %s7409_s28  ;;  %746 = vrot.lane.b32.xlu1 %v729_v52, %s7409_s28  ;;  %v650_v51 = vmul.f32 %v7543_v31, %v7746_v59  ;;  %v653_v52 = vmul.f32 %v7546_v32, %v7746_v59  ;;  %v728_v9 = vpack.c.bf16 %v722_v40, %v719_v3 }
  0xc8   : > { %v659_v38 = vpack.c.bf16 %v653_v52, %v650_v51 }
  0xca   : > { %963 = vrot.lane.b32.xlu0 %v7724_v55, %s7407_s26  ;;  %902 = vrot.lane.b32.xlu1 %v7724_v55, %s7407_s26 }
  0xce   : > { %969 = vrot.lane.b32.xlu0 %v7724_v55, %s7407_s26  ;;  %908 = vrot.lane.b32.xlu1 %v7724_v55, %s7407_s26 }
  0xd2   : > { %440 = vrot.lane.b32.xlu0 %v427_v60, %s7413_s6  ;;  %379 = vrot.lane.b32.xlu1 %v366_v63, %s7413_s6  ;;  %v7336_v60 = vpop.permute.xlu0 %7335  ;;  %v7800_v63 = vsel %vm748_vm7, %v7608_v49, %v7333_v7  ;;  %v7814_v7 = vpop.permute.xlu1 %486 }
  0xd3   : > { %12726 = vst [vmem:[#allocation17_spill] sm:$0xff] %v7800_v63  ;;  %v878_v8 = vmul.f32 %v7800_v63, %v7476_v15  ;;  %v936_v39 = vmul.f32 %v7498_v20, %v7800_v63  ;;  %v7338_v47 = vunpack.i.h.bf16 %v7336_v60  ;;  %v7824_v51 = vunpack.i.l.bf16 %v7336_v60 }
  0xd4   : > { %v881_v52 = vmul.f32 %v7800_v63, %v7526_v27  ;;  %v884_v44 = vmul.f32 %v7800_v63, %v7529_v28  ;;  %v945_v60 = vmul.f32 %v7560_v35, %v7800_v63 }
  0xd5   : > { %12727 = vst [vmem:[#allocation18_spill] sm:$0xff] %v7824_v51 }
  0xd6   : > { %446 = vrot.lane.b32.xlu0 %v430_v4, %s7413_s6  ;;  %385 = vrot.lane.b32.xlu1 %v369_v6, %s7413_s6  ;;  %v783_v4 = vmul.f32 %v7546_v32, %v7772_v10  ;;  %v7812_v48 = vpop.permute.xlu0 %490  ;;  %v875_v6 = vmul.f32 %v7800_v63, %v7473_v14  ;;  %v890_v3 = vpack.c.bf16 %v884_v44, %v881_v52  ;;  %v12734_v10 = vmov 0.0|0.0  }
  0xd8   : > { %v887_v46 = vpack.c.bf16 %v878_v8, %v875_v6 }
  0xda   : > { %608 = vrot.lane.b32.xlu0 %v595_v11, %s7410_s29  ;;  %669 = vrot.lane.b32.xlu1 %v656_v43, %s7410_s29  ;;  %v789_v11 = vpack.c.bf16 %v783_v4, %v780_v42  ;;  %v939_v43 = vmul.f32 %v7501_v21, %v7800_v63  ;;  %v7832_v58 = vpop.permute.xlu0 %537 }
  0xdc   : > { %v948_v56 = vpack.c.bf16 %v939_v43, %v936_v39  ;;  %v1007_v43 = vmul.f32 %v7824_v51, %v7470_v13 }
  0xde   : > { %614 = vrot.lane.b32.xlu0 %v598_v37, %s7410_s29  ;;  %675 = vrot.lane.b32.xlu1 %v659_v38, %s7410_s29  ;;  %v7834_v37 = vpop.permute.xlu1 %539  ;;  %v942_v38 = vmul.f32 %v7557_v34, %v7800_v63  ;;  %v7852_v6 = vpop.permute.xlu0 %7340  ;;  %v7348_v63 = vld [vmem:[%s12495_s1 + $0x4] ss:$12 sps:$4 sm:$0xff]  }
  0xdf   : > { %1505 = vmatprep.mubr.bf16.mxu0 %v7348_v63  ;;  %1611 = vmatprep.mubr.bf16.mxu1 %v7348_v63 }
  0xe0   : > { %v951_v40 = vpack.c.bf16 %v945_v60, %v942_v38  ;;  %v1065_v60 = vmul.f32 %v7824_v51, %v7492_v18 }
  0xe2   : > { %738 = vrot.lane.b32.xlu0 %v725_v1, %s7409_s28  ;;  %799 = vrot.lane.b32.xlu1 %v786_v2, %s7409_s28  ;;  %v7842_v1 = vsel %vm618_vm8, %v7824_v51, %v7338_v47  ;;  %v1006_v2 = vmul.f32 0.0, %v7338_v47  ;;  %v7854_v8 = vpop.permute.xlu1 %535  ;;  %v7869_v44 = vpop.permute.xlu0 %494 }
  0xe3   : > { %12728 = vst [vmem:[#allocation19_spill] sm:$0xff] %v7842_v1  ;;  %v1005_v42 = vmul.f32 %v7842_v1, %v7473_v14  ;;  %v1008_v4 = vmul.f32 %v7842_v1, %v7476_v15  ;;  %v1066_v47 = vmul.f32 %v7498_v20, %v7842_v1  ;;  %v1069_v52 = vmul.f32 %v7501_v21, %v7842_v1 }
  0xe5   : > { %v1017_v39 = vpack.c.bf16 %v1008_v4, %v1005_v42  ;;  %v1078_v38 = vpack.c.bf16 %v1069_v52, %v1066_v47  ;;  %v1014_v42 = vmul.f32 %v7842_v1, %v7529_v28  ;;  %v1013_v47 = vmul.f32 %v7824_v51, %v7523_v26 }
  0xe6   : > { %744 = vrot.lane.b32.xlu0 %v728_v9, %s7409_s28  ;;  %805 = vrot.lane.b32.xlu1 %v789_v11, %s7409_s28  ;;  %v7856_v9 = vpack.c.bf16 %v1006_v2, %v1006_v2  ;;  %v1004_v11 = vmul.f32 %v7824_v51, %v7467_v12  ;;  %v1068_v2 = vmul.f32 %v7824_v51, %v7495_v19  ;;  %v7883_v4 = vpop.permute.xlu0 %492 }
  0xe7   : > { %v1072_v52 = vmul.f32 %v7557_v34, %v7842_v1 }
  0xe8   : > { %12729 = vst [vmem:[#allocation20_spill] sm:$0xff] %v7856_v9 }
  0xea   : > { %900 = vrot.lane.b32.xlu0 %v887_v46, %s7407_s26  ;;  %961 = vrot.lane.b32.xlu1 %v948_v56, %s7407_s26  ;;  %v7871_v46 = vpop.permute.xlu1 %496  ;;  %v1016_v56 = vpack.c.bf16 %v1007_v43, %v1004_v11 }
  0xee   : > { %906 = vrot.lane.b32.xlu0 %v890_v3, %s7407_s26  ;;  %967 = vrot.lane.b32.xlu1 %v951_v40, %s7407_s26  ;;  %v1077_v3 = vpack.c.bf16 %v1068_v2, %v1065_v60  ;;  %v1011_v40 = vmul.f32 %v7842_v1, %v7526_v27  ;;  %v7885_v11 = vpop.permute.xlu1 %543 }
  0xf0   : > { %v1020_v43 = vpack.c.bf16 %v1014_v42, %v1011_v40  ;;  %v1071_v40 = vmul.f32 %v7824_v51, %v7543_v31  ;;  %v1074_v42 = vmul.f32 %v7824_v51, %v7546_v32 }
  0xf2   : > { %1030 = vrot.lane.b32.xlu0 %v1017_v39, %s7408_s27  ;;  %1032 = vrot.lane.b32.xlu1 %v7856_v9, %s7408_s27  ;;  %v1010_v39 = vmul.f32 %v7824_v51, %v7520_v25  ;;  %v7903_v60 = vpop.permute.xlu1 %541  ;;  %v1080_v62 = vpack.c.bf16 %v1074_v42, %v1071_v40  ;;  %v7343_v42 = vunpack.i.h.bf16 %v7852_v6 }
  0xf4   : > { %v1019_v2 = vpack.c.bf16 %v1013_v47, %v1010_v39 }
  0xf6   : > { %1028 = vrot.lane.b32.xlu0 %v1016_v56, %s7408_s27  ;;  %1091 = vrot.lane.b32.xlu1 %v1078_v38, %s7408_s27  ;;  %v1075_v56 = vmul.f32 %v7560_v35, %v7842_v1  ;;  %v7901_v38 = vpop.permute.xlu0 %545  ;;  %v7948_v1 = vunpack.i.l.bf16 %v7852_v6 }
  0xf8   : > { %12730 = vst [vmem:[#allocation21_spill] sm:$0xff] %v7948_v1  ;;  %v7963_v6 = vsel %vm389_vm9, %v7948_v1, %v7343_v42 }
  0xf9   : > { %12731 = vst [vmem:[#allocation22_spill] sm:$0xff] %v7963_v6  ;;  %v1232_v49 = vmul.f32 %v7963_v6, %v7473_v14  ;;  %v1235_v63 = vmul.f32 %v7963_v6, %v7476_v15  ;;  %v1234_v14 = vmul.f32 %v7948_v1, %v7470_v13  ;;  %v1293_v15 = vmul.f32 %v7498_v20, %v7963_v6 }
  0xfa   : > { %1093 = vrot.lane.b32.xlu0 %v7856_v9, %s7408_s27  ;;  %1089 = vrot.lane.b32.xlu1 %v1077_v3, %s7408_s27  ;;  %v1081_v3 = vpack.c.bf16 %v1075_v56, %v1072_v52  ;;  %v1295_v13 = vmul.f32 %v7948_v1, %v7495_v19 }
  0xfe   : > { %1036 = vrot.lane.b32.xlu0 %v1020_v43, %s7408_s27  ;;  %1038 = vrot.lane.b32.xlu1 %v7856_v9, %s7408_s27 }
 0x102   : > { %1034 = vrot.lane.b32.xlu0 %v1019_v2, %s7408_s27  ;;  %1097 = vrot.lane.b32.xlu1 %v1081_v3, %s7408_s27 }
 0x104   : > { %v7911_v43 = vpop.permute.xlu0 %438  ;;  %v7913_v0 = vpop.permute.xlu1 %377 }
 0x106   : > { %1099 = vrot.lane.b32.xlu0 %v7856_v9, %s7408_s27  ;;  %1095 = vrot.lane.b32.xlu1 %v1080_v62, %s7408_s27 }
 0x108   : > { %v7918_v39 = vpop.permute.xlu0 %444  ;;  %v7920_v47 = vpop.permute.xlu1 %383 }
 0x10a   : > { %1139 = vrot.lane.b32.xlu0 %v7489_v17, %s7415_s7  ;;  %1141 = vrot.lane.b32.xlu1 %v12512_v22, %s7415_s7 }
 0x10c   : > { %v7926_v52 = vpop.permute.xlu0 %606  ;;  %v7928_v56 = vpop.permute.xlu1 %667 }
 0x10e   : > { %1137 = vrot.lane.b32.xlu0 %v7482_v16, %s7415_s7  ;;  %1188 = vrot.lane.b32.xlu1 %v7513_v24, %s7415_s7 }
 0x110   : > { %v7934_v62 = vpop.permute.xlu0 %612  ;;  %v7936_v2 = vpop.permute.xlu1 %673 }
 0x112   : > { %1190 = vrot.lane.b32.xlu0 %v12512_v22, %s7415_s7  ;;  %1186 = vrot.lane.b32.xlu1 %v7509_v23, %s7415_s7 }
 0x114   : > { %v7942_v3 = vpop.permute.xlu0 %736  ;;  %v7944_v40 = vpop.permute.xlu1 %797 }
 0x116   : > { %1145 = vrot.lane.b32.xlu0 %v7540_v30, %s7415_s7  ;;  %1147 = vrot.lane.b32.xlu1 %v12512_v22, %s7415_s7  ;;  %v1233_v22 = vmul.f32 0.0, %v7343_v42  ;;  %v1231_v42 = vmul.f32 %v7948_v1, %v7467_v12 }
 0x118   : > { %v7957_v54 = vpop.permute.xlu0 %742  ;;  %v7959_v5 = vpop.permute.xlu1 %803  ;;  %v7981_v59 = vpack.c.bf16 %v1233_v22, %v1233_v22 }
 0x11a   : > { %1143 = vrot.lane.b32.xlu0 %v7536_v29, %s7415_s7  ;;  %1194 = vrot.lane.b32.xlu1 %v7568_v36, %s7415_s7  ;;  %12735 = vst [vmem:[#allocation25_spill] sm:$0xff] %v7981_v59  ;;  %v1296_v29 = vmul.f32 %v7501_v21, %v7963_v6 }
 0x11c   : > { %v7969_v57 = vpop.permute.xlu0 %898  ;;  %v7971_v51 = vpop.permute.xlu1 %959 }
 0x11d   : > { %12732 = vst [vmem:[#allocation23_spill] sm:$0xff] %v7969_v57  ;;  %12733 = vst [vmem:[#allocation24_spill] sm:$0xff] %v7971_v51  ;;  %v1244_v57 = vpack.c.bf16 %v1235_v63, %v1232_v49  ;;  %v1292_v49 = vmul.f32 %v7948_v1, %v7492_v18  ;;  %v1238_v63 = vmul.f32 %v7963_v6, %v7526_v27 }
 0x11e   : > { %1196 = vrot.lane.b32.xlu0 %v12734_v10, %s7415_s7  ;;  %1192 = vrot.lane.b32.xlu1 %v7554_v33, %s7415_s7  ;;  %v1305_v33 = vpack.c.bf16 %v1296_v29, %v1293_v15  ;;  %v1237_v18 = vmul.f32 %v7948_v1, %v7520_v25  ;;  %v1299_v27 = vmul.f32 %v7557_v34, %v7963_v6 }
 0x11f   : > { %v1301_v34 = vmul.f32 %v7948_v1, %v7546_v32  ;;  %v1413_v32 = vld [vmem:[%s12496_s2 + $0x8] sm:$0xff] }
 0x120   : > { %v7985_v53 = vpop.permute.xlu0 %904  ;;  %v7987_v51 = vpop.permute.xlu1 %965 }
 0x121   : > { %12736 = vst [vmem:[#allocation26_spill] sm:$0xff] %v7985_v53  ;;  %v1243_v53 = vpack.c.bf16 %v1234_v14, %v1231_v42  ;;  %v1241_v42 = vmul.f32 %v7963_v6, %v7529_v28  ;;  %v1302_v28 = vmul.f32 %v7560_v35, %v7963_v6 }
 0x122   : > { %1257 = vrot.lane.b32.xlu0 %v1244_v57, %s7406_s25  ;;  %1259 = vrot.lane.b32.xlu1 %v7981_v59, %s7406_s25  ;;  %v1304_v57 = vpack.c.bf16 %v1295_v13, %v1292_v49 }
 0x123   : > { %v1308_v49 = vpack.c.bf16 %v1302_v28, %v1299_v27 }
 0x124   : > { %v382_v12 = vpop.permute.xlu0 %381  ;;  %v443_v22 = vpop.permute.xlu1 %442 }
 0x126   : > { %1255 = vrot.lane.b32.xlu0 %v1243_v53, %s7406_s25  ;;  %1318 = vrot.lane.b32.xlu1 %v1305_v33, %s7406_s25  ;;  %v1247_v33 = vpack.c.bf16 %v1241_v42, %v1238_v63  ;;  %v1240_v53 = vmul.f32 %v7948_v1, %v7523_v26  ;;  %v1298_v26 = vmul.f32 %v7948_v1, %v7543_v31  ;;  %v1412_v31 = vld [vmem:[%s12496_s2] sm:$0xff] }
 0x128   : > { %v388_v20 = vpop.permute.xlu0 %387  ;;  %v449_v21 = vpop.permute.xlu1 %448  ;;  %v1246_v15 = vpack.c.bf16 %v1240_v53, %v1237_v18  ;;  %v1415_v18 = vld [vmem:[%s12496_s2 + $0x18] sm:$0xff] }
 0x12a   : > { %1320 = vrot.lane.b32.xlu0 %v7981_v59, %s7406_s25  ;;  %1316 = vrot.lane.b32.xlu1 %v1304_v57, %s7406_s25  ;;  %v1307_v57 = vpack.c.bf16 %v1301_v34, %v1298_v26 }
 0x12c   : > { %v8013_v19 = vpop.permute.xlu0 %671  ;;  %v8015_v29 = vpop.permute.xlu1 %610 }
 0x12e   : > { %1263 = vrot.lane.b32.xlu0 %v1247_v33, %s7406_s25  ;;  %1265 = vrot.lane.b32.xlu1 %v7981_v59, %s7406_s25  ;;  %v1414_v33 = vld [vmem:[%s12496_s2 + $0x10] sm:$0xff] }
 0x130   : > { %v8026_v25 = vpop.permute.xlu0 %677  ;;  %v8028_v14 = vpop.permute.xlu1 %616 }
 0x132   : > { %1261 = vrot.lane.b32.xlu0 %v1246_v15, %s7406_s25  ;;  %1324 = vrot.lane.b32.xlu1 %v1308_v49, %s7406_s25 }
 0x134   : > { %v8036_v35 = vpop.permute.xlu0 %801  ;;  %v8038_v13 = vpop.permute.xlu1 %740 }
 0x136   : > { %1326 = vrot.lane.b32.xlu0 %v7981_v59, %s7406_s25  ;;  %1322 = vrot.lane.b32.xlu1 %v1307_v57, %s7406_s25 }
 0x138   : > { %v8049_v63 = vpop.permute.xlu0 %807  ;;  %v8051_v42 = vpop.permute.xlu1 %746 }
 0x13a   : > { %1418 = vperm.xlu0 %7344, %v1412_v31   ;;  %1423 = vperm.xlu1 %7345, %v1413_v32  }
 0x13c   : > { %v8059_v53 = vpop.permute.xlu0 %963  ;;  %v8061_v27 = vpop.permute.xlu1 %902 }
 0x13e   : > { %1433 = vperm.xlu0 %7344, %v1415_v18   ;;  %1428 = vperm.xlu1 %7345, %v1414_v33  }
 0x140   : > { %v8063_v28 = vpop.permute.xlu0 %969  ;;  %v8065_v15 = vpop.permute.xlu1 %908 }
 0x142   : > { %1822 = vrot.lane.b32.xlu0 %v7581_v41, %s7413_s6  ;;  %1762 = vrot.lane.b32.xlu1 %v7581_v41, %s7413_s6 }
 0x144   : > { %v441_v49 = vpop.permute.xlu0 %440  ;;  %v380_v26 = vpop.permute.xlu1 %379 }
 0x145   : > { %v451_v34 = vsel %vm389_vm9, %v441_v49, %v443_v22  ;;  %v391_v57 = vsel %vm389_vm9, %v380_v26, %v382_v12  ;;  %v390_v31 = vsel %vm389_vm9, %v7913_v0, %v380_v26  ;;  %v450_v32 = vsel %vm389_vm9, %v7911_v43, %v441_v49 }
 0x146   : > { %1828 = vrot.lane.b32.xlu0 %v7581_v41, %s7413_s6  ;;  %1579 = vmatprep.subr.bf16.mxu1 %v451_v34  ;;  %v502_v26 = vsel %vm498_vm10, %v7869_v44, %v7871_v46  ;;  %v550_v34 = vsel %vm498_vm10, %v7885_v11, %v7901_v38 }
 0x147   : > { %1768 = vrot.lane.b32.xlu1 %v7581_v41, %s7413_s6  ;;  %1473 = vmatprep.subr.bf16.mxu0 %v391_v57 }
 0x148   : > { %1474 = vmatpush1.bf16.msra.mxu0 %v390_v31  ;;  %1580 = vmatpush1.bf16.msra.mxu1 %v450_v32  ;;  %v447_v18 = vpop.permute.xlu0 %446  ;;  %v386_v22 = vpop.permute.xlu1 %385 }
 0x149   : > { %v453_v12 = vsel %vm389_vm9, %v447_v18, %v449_v21  ;;  %v393_v0 = vsel %vm389_vm9, %v386_v22, %v388_v20  ;;  %v392_v43 = vsel %vm389_vm9, %v7920_v47, %v386_v22  ;;  %v452_v33 = vsel %vm389_vm9, %v7918_v39, %v447_v18 }
 0x14a   : > { %1918 = vrot.lane.b32.xlu0 %v12734_v10, %s7411_s30  ;;  %1581 = vmatprep.subr.bf16.mxu1 %v453_v12  ;;  %v500_v20 = vsel %vm498_vm10, %v7792_v61, %v7812_v48  ;;  %v548_v47 = vsel %vm498_vm10, %v7832_v58, %v7834_v37  ;;  %v499_v21 = vsel %vm498_vm10, %v7814_v7, %v7792_v61 }
 0x14b   : > { %1870 = vrot.lane.b32.xlu1 %v12734_v10, %s7411_s30  ;;  %1475 = vmatprep.subr.bf16.mxu0 %v393_v0  ;;  %v547_v48 = vsel %vm498_vm10, %v7854_v8, %v7832_v58  ;;  %v501_v61 = vsel %vm498_vm10, %v7883_v4, %v7869_v44  ;;  %v549_v7 = vsel %vm498_vm10, %v7903_v60, %v7885_v11 }
 0x14c   : > { %1476 = vmatpush1.bf16.msra.mxu0 %v392_v43  ;;  %1582 = vmatpush1.bf16.msra.mxu1 %v452_v33  ;;  %v609_v49 = vpop.permute.xlu0 %608  ;;  %v670_v39 = vpop.permute.xlu1 %669  ;;  %v12740_v43 = vld [vmem:[#allocation24_spill] sm:$0xff] }
 0x14d   : > { %1477 = vmatprep.subr.bf16.mxu0 %v500_v20  ;;  %1583 = vmatprep.subr.bf16.mxu1 %v548_v47  ;;  %v620_v8 = vsel %vm618_vm8, %v609_v49, %v8015_v29  ;;  %v680_v46 = vsel %vm618_vm8, %v670_v39, %v8013_v19  ;;  %v619_v44 = vsel %vm618_vm8, %v7926_v52, %v609_v49 }
 0x14e   : > { %1924 = vrot.lane.b32.xlu0 %v12734_v10, %s7411_s30  ;;  %v679_v4 = vsel %vm618_vm8, %v7928_v56, %v670_v39 }
 0x14f   : > { %1876 = vrot.lane.b32.xlu1 %v12734_v10, %s7411_s30 }
 0x150   : > { %1478 = vmatpush1.bf16.msra.mxu0 %v499_v21  ;;  %1584 = vmatpush1.bf16.msra.mxu1 %v547_v48  ;;  %v615_v37 = vpop.permute.xlu0 %614  ;;  %v676_v57 = vpop.permute.xlu1 %675 }
 0x151   : > { %1479 = vmatprep.subr.bf16.mxu0 %v502_v26  ;;  %1585 = vmatprep.subr.bf16.mxu1 %v550_v34  ;;  %v622_v60 = vsel %vm618_vm8, %v615_v37, %v8028_v14  ;;  %v682_v19 = vsel %vm618_vm8, %v676_v57, %v8026_v25  ;;  %v621_v52 = vsel %vm618_vm8, %v7934_v62, %v615_v37 }
 0x152   : > { %2038 = vrot.lane.b32.xlu0 %v7592_v45, %s7410_s29  ;;  %v681_v56 = vsel %vm618_vm8, %v7936_v2, %v676_v57 }
 0x153   : > { %1978 = vrot.lane.b32.xlu1 %v7592_v45, %s7410_s29 }
 0x154   : > { %1480 = vmatpush1.bf16.msra.mxu0 %v501_v61  ;;  %1586 = vmatpush1.bf16.msra.mxu1 %v549_v7  ;;  %v739_v58 = vpop.permute.xlu0 %738  ;;  %v800_v38 = vpop.permute.xlu1 %799 }
 0x155   : > { %1481 = vmatprep.subr.bf16.mxu0 %v620_v8  ;;  %1587 = vmatprep.subr.bf16.mxu1 %v680_v46  ;;  %v750_v25 = vsel %vm748_vm7, %v739_v58, %v8038_v13  ;;  %v810_v31 = vsel %vm748_vm7, %v800_v38, %v8036_v35  ;;  %v749_v62 = vsel %vm748_vm7, %v7942_v3, %v739_v58 }
 0x156   : > { %2044 = vrot.lane.b32.xlu0 %v7592_v45, %s7410_s29  ;;  %v809_v2 = vsel %vm748_vm7, %v7944_v40, %v800_v38 }
 0x157   : > { %1984 = vrot.lane.b32.xlu1 %v7592_v45, %s7410_s29 }
 0x158   : > { %1482 = vmatpush1.bf16.msra.mxu0 %v619_v44  ;;  %1588 = vmatpush1.bf16.msra.mxu1 %v679_v4  ;;  %v745_v11 = vpop.permute.xlu0 %744  ;;  %v806_v29 = vpop.permute.xlu1 %805 }
 0x159   : > { %1483 = vmatprep.subr.bf16.mxu0 %v622_v60  ;;  %1589 = vmatprep.subr.bf16.mxu1 %v682_v19  ;;  %v752_v35 = vsel %vm748_vm7, %v745_v11, %v8051_v42  ;;  %v812_v18 = vsel %vm748_vm7, %v806_v29, %v8049_v63  ;;  %v751_v3 = vsel %vm748_vm7, %v7957_v54, %v745_v11 }
 0x15a   : > { %2158 = vrot.lane.b32.xlu0 %v7610_v50, %s7409_s28  ;;  %v811_v40 = vsel %vm748_vm7, %v7959_v5, %v806_v29 }
 0x15b   : > { %2098 = vrot.lane.b32.xlu1 %v7610_v50, %s7409_s28 }
 0x15c   : > { %1484 = vmatpush1.bf16.msra.mxu0 %v621_v52  ;;  %1590 = vmatpush1.bf16.msra.mxu1 %v681_v56  ;;  %v901_v14 = vpop.permute.xlu0 %900  ;;  %v962_v32 = vpop.permute.xlu1 %961 }
 0x15d   : > { %1485 = vmatprep.subr.bf16.mxu0 %v750_v25  ;;  %1591 = vmatprep.subr.bf16.mxu1 %v810_v31  ;;  %v971_v33 = vsel %vm707_vm6, %v12740_v43, %v962_v32 }
 0x15e   : > { %2164 = vrot.lane.b32.xlu0 %v7610_v50, %s7409_s28 }
 0x15f   : > { %2104 = vrot.lane.b32.xlu1 %v7610_v50, %s7409_s28  ;;  %v12756_v50 = vld [vmem:[#allocation19_spill] sm:$0xff] }
 0x160   : > { %1486 = vmatpush1.bf16.msra.mxu0 %v749_v62  ;;  %1592 = vmatpush1.bf16.msra.mxu1 %v809_v2  ;;  %v907_v13 = vpop.permute.xlu0 %906  ;;  %v968_v22 = vpop.permute.xlu1 %967 }
 0x161   : > { %1487 = vmatprep.subr.bf16.mxu0 %v752_v35  ;;  %1593 = vmatprep.subr.bf16.mxu1 %v812_v18  ;;  %v914_v20 = vsel %vm707_vm6, %v907_v13, %v8065_v15  ;;  %v973_v21 = vsel %vm707_vm6, %v7987_v51, %v968_v22  ;;  %v7349_v35 = vld [vmem:[%s12495_s1 + $0x1c] ss:$12 sps:$4 sm:$0xff]  }
 0x162   : > { %2254 = vrot.lane.b32.xlu0 %v7724_v55, %s7407_s26 }
 0x163   : > { %2314 = vrot.lane.b32.xlu1 %v7724_v55, %s7407_s26 }
 0x164   : > { %1488 = vmatpush1.bf16.msra.mxu0 %v751_v3  ;;  %1594 = vmatpush1.bf16.msra.mxu1 %v811_v40  ;;  %v1031_v42 = vpop.permute.xlu0 %1030  ;;  %v1033_v12 = vpop.permute.xlu1 %1032 }
 0x165   : > { %1489 = vmatprep.subr.bf16.mxu0 %v7489_v17  ;;  %1595 = vmatprep.subr.bf16.mxu1 %v7513_v24  ;;  %v12737_v17 = vld [vmem:[#allocation4_spill] sm:$0xff]  ;;  %v12738_v24 = vld [vmem:[#allocation5_spill] sm:$0xff]  ;;  %v1042_v37 = vsel %vm577_vm5, %v1031_v42, %v1033_v12 }
 0x166   : > { %2260 = vrot.lane.b32.xlu0 %v7724_v55, %s7407_s26 }
 0x167   : > { %2320 = vrot.lane.b32.xlu1 %v7724_v55, %s7407_s26 }
 0x168   : > { %1490 = vmatpush1.bf16.msra.mxu0 %v7482_v16  ;;  %1596 = vmatpush1.bf16.msra.mxu1 %v7509_v23  ;;  %v1029_v54 = vpop.permute.xlu0 %1028  ;;  %v1092_v5 = vpop.permute.xlu1 %1091  ;;  %v912_v16 = vsel %vm707_vm6, %v901_v14, %v8061_v27  ;;  %v972_v23 = vsel %vm707_vm6, %v962_v32, %v8059_v53  ;;  %v974_v27 = vsel %vm707_vm6, %v968_v22, %v8063_v28  ;;  %v12741_v53 = vld [vmem:[#allocation26_spill] sm:$0xff] }
 0x169   : > { %1491 = vmatprep.subr.bf16.mxu0 %v7540_v30  ;;  %1597 = vmatprep.subr.bf16.mxu1 %v7568_v36  ;;  %v12739_v36 = vld [vmem:[#allocation23_spill] sm:$0xff]  ;;  %v913_v39 = vsel %vm707_vm6, %v12741_v53, %v907_v13  ;;  %v1041_v28 = vsel %vm577_vm5, %v1029_v54, %v1031_v42  ;;  %v7346_v13 = vld [vmem:[%s12495_s1] ss:$12 sps:$4 sm:$0xff]   ;;  %v7352_v53 = vld [vmem:[%s12495_s1 + $0x8] ss:$12 sps:$4 sm:$0xff]  }
 0x16a   : > { %2374 = vrot.lane.b32.xlu0 %v7856_v9, %s7408_s27  ;;  %v911_v0 = vsel %vm707_vm6, %v12739_v36, %v901_v14 }
 0x16b   : > { %2434 = vrot.lane.b32.xlu1 %v7856_v9, %s7408_s27 }
 0x16c   : > { %1492 = vmatpush1.bf16.msra.mxu0 %v12737_v17  ;;  %1598 = vmatpush1.bf16.msra.mxu1 %v12738_v24  ;;  %v1094_v63 = vpop.permute.xlu0 %1093  ;;  %v1090_v30 = vpop.permute.xlu1 %1089 }
 0x16d   : > { %1493 = vmatprep.subr.bf16.mxu0 %v912_v16  ;;  %1599 = vmatprep.subr.bf16.mxu1 %v972_v23  ;;  %v1102_v26 = vsel %vm577_vm5, %v1092_v5, %v1094_v63  ;;  %v1101_v34 = vsel %vm577_vm5, %v1090_v30, %v1092_v5  ;;  %v7351_v5 = vld [vmem:[%s12495_s1 + $0x18] ss:$12 sps:$4 sm:$0xff]   ;;  %v12742_v16 = vmov 0  }
 0x170   : > { %1494 = vmatpush1.bf16.msra.mxu0 %v911_v0  ;;  %1600 = vmatpush1.bf16.msra.mxu1 %v971_v33  ;;  %v1037_v49 = vpop.permute.xlu0 %1036  ;;  %v1039_v47 = vpop.permute.xlu1 %1038 }
 0x171   : > { %1495 = vmatprep.subr.bf16.mxu0 %v914_v20  ;;  %1601 = vmatprep.subr.bf16.mxu1 %v974_v27  ;;  %v1044_v61 = vsel %vm577_vm5, %v1037_v49, %v1039_v47 }
 0x174   : > { %1496 = vmatpush1.bf16.msra.mxu0 %v913_v39  ;;  %1602 = vmatpush1.bf16.msra.mxu1 %v973_v21  ;;  %v1035_v48 = vpop.permute.xlu0 %1034  ;;  %v1098_v15 = vpop.permute.xlu1 %1097 }
 0x175   : > { %1497 = vmatprep.subr.bf16.mxu0 %v1042_v37  ;;  %1603 = vmatprep.subr.bf16.mxu1 %v1102_v26  ;;  %v1043_v8 = vsel %vm577_vm5, %v1035_v48, %v1037_v49  ;;  %v7353_v26 = vld [vmem:[%s12495_s1 + $0x20] ss:$12 sps:$4 sm:$0xff]  }
 0x178   : > { %1498 = vmatpush1.bf16.msra.mxu0 %v1041_v28  ;;  %1604 = vmatpush1.bf16.msra.mxu1 %v1101_v34  ;;  %v1100_v57 = vpop.permute.xlu0 %1099  ;;  %v1096_v51 = vpop.permute.xlu1 %1095 }
 0x179   : > { %1499 = vmatprep.subr.bf16.mxu0 %v1044_v61  ;;  %v1104_v7 = vsel %vm577_vm5, %v1098_v15, %v1100_v57  ;;  %v1103_v58 = vsel %vm577_vm5, %v1096_v51, %v1098_v15 }
 0x17a   : > { %1605 = vmatprep.subr.bf16.mxu1 %v1104_v7 }
 0x17c   : > { %1500 = vmatpush1.bf16.msra.mxu0 %v1043_v8  ;;  %1606 = vmatpush1.bf16.msra.mxu1 %v1103_v58  ;;  %v1140_v46 = vpop.permute.xlu0 %1139  ;;  %v1142_v38 = vpop.permute.xlu1 %1141 }
 0x17d   : > { %v1151_v44 = vsel %vm1149_vm11, %v1140_v46, %v1142_v38 }
 0x17e   : > { %1501 = vmatprep.subr.bf16.mxu0 %v1151_v44 }
 0x180   : > { %v1138_v4 = vpop.permute.xlu0 %1137  ;;  %v1189_v11 = vpop.permute.xlu1 %1188 }
 0x181   : > { %v1150_v60 = vsel %vm1149_vm11, %v1138_v4, %v1140_v46 }
 0x182   : > { %1502 = vmatpush1.bf16.msra.mxu0 %v1150_v60  ;;  %v12743_v60 = vld [vmem:[#allocation13_spill] sm:$0xff] }
 0x184   : > { %v1191_v19 = vpop.permute.xlu0 %1190  ;;  %v1187_v29 = vpop.permute.xlu1 %1186 }
 0x185   : > { %v1199_v52 = vsel %vm1149_vm11, %v1189_v11, %v1191_v19  ;;  %v1198_v56 = vsel %vm1149_vm11, %v1187_v29, %v1189_v11  ;;  %v12744_v29 = vld [vmem:[#allocation15_spill] sm:$0xff] }
 0x186   : > { %1607 = vmatprep.subr.bf16.mxu1 %v1199_v52 }
 0x187   : > { %1608 = vmatpush1.bf16.msra.mxu1 %v1198_v56  ;;  %v12745_v56 = vld [vmem:[#allocation16_spill] sm:$0xff] }
 0x188   : > { %v1146_v14 = vpop.permute.xlu0 %1145  ;;  %v1148_v25 = vpop.permute.xlu1 %1147 }
 0x189   : > { %v1153_v31 = vsel %vm1149_vm11, %v1146_v14, %v1148_v25 }
 0x18a   : > { %1503 = vmatprep.subr.bf16.mxu0 %v1153_v31 }
 0x18c   : > { %v1144_v32 = vpop.permute.xlu0 %1143  ;;  %v1195_v62 = vpop.permute.xlu1 %1194 }
 0x18d   : > { %v1152_v2 = vsel %vm1149_vm11, %v1144_v32, %v1146_v14 }
 0x18e   : > { %1504 = vmatpush1.bf16.msra.mxu0 %v1152_v2 }
 0x190   : > { %v1197_v18 = vpop.permute.xlu0 %1196  ;;  %v1193_v22 = vpop.permute.xlu1 %1192 }
 0x191   : > { %v1201_v3 = vsel %vm1149_vm11, %v1195_v62, %v1197_v18  ;;  %v1200_v40 = vsel %vm1149_vm11, %v1193_v22, %v1195_v62  ;;  %1506 = vmatmul.mubr.bf16.vlgmr.msra.gmra.mrb[0].mxu0 %v7346_v13  ;;  %v12746_v62 = vld [vmem:[#allocation8_spill] sm:$0xff] }
 0x192   : > { %1609 = vmatprep.subr.bf16.mxu1 %v1201_v3  ;;  %1515 = vmatprep.mubr.bf16.mxu0 %v7349_v35 }
 0x193   : > { %1610 = vmatpush1.bf16.msra.mxu1 %v1200_v40 }
 0x194   : > { %v1258_v42 = vpop.permute.xlu0 %1257  ;;  %v1260_v12 = vpop.permute.xlu1 %1259 }
 0x195   : > { %v1269_v54 = vsel %vm348_vm4, %v1258_v42, %v1260_v12 }
 0x196   : > { %1526 = vmatprep.subr.bf16.mxu0 %v1269_v54  ;;  %1612 = vmatmul.mubr.bf16.vlgmr.msra.gmra.mrb[0].mxu1 %v7346_v13  ;;  %v12747_v13 = vld [vmem:[#allocation18_spill] sm:$0xff] }
 0x197   : > { %1621 = vmatprep.mubr.bf16.mxu1 %v7349_v35 }
 0x198   : > { %v1256_v17 = vpop.permute.xlu0 %1255  ;;  %v1319_v24 = vpop.permute.xlu1 %1318 }
 0x199   : > { %v1268_v63 = vsel %vm348_vm4, %v1256_v17, %v1258_v42  ;;  %1516 = vmatmul.mubr.bf16.gmra.mrb[4].mxu0 %v7351_v5 }
 0x19a   : > { %1527 = vmatpush1.bf16.msra.mxu0 %v1268_v63  ;;  %1558 = vmatprep.mubr.bf16.mxu0 %v12742_v16 }
 0x19c   : > { %v1321_v23 = vpop.permute.xlu0 %1320  ;;  %v1317_v30 = vpop.permute.xlu1 %1316 }
 0x19d   : > { %v1328_v36 = vsel %vm348_vm4, %v1317_v30, %v1319_v24  ;;  %v1329_v0 = vsel %vm348_vm4, %v1319_v24, %v1321_v23 }
 0x19e   : > { %1632 = vmatprep.subr.bf16.mxu1 %v1329_v0  ;;  %1622 = vmatmul.mubr.bf16.gmra.mrb[4].mxu1 %v7351_v5 }
 0x19f   : > { %1633 = vmatpush1.bf16.msra.mxu1 %v1328_v36  ;;  %1664 = vmatprep.mubr.bf16.mxu1 %v12742_v16 }
 0x1a0   : > { %v1264_v43 = vpop.permute.xlu0 %1263  ;;  %v1266_v33 = vpop.permute.xlu1 %1265 }
 0x1a1   : > { %v1271_v49 = vsel %vm348_vm4, %v1264_v43, %v1266_v33 }
 0x1a2   : > { %1528 = vmatprep.subr.bf16.mxu0 %v1271_v49 }
 0x1a4   : > { %v1262_v20 = vpop.permute.xlu0 %1261  ;;  %v1325_v27 = vpop.permute.xlu1 %1324 }
 0x1a5   : > { %v1270_v47 = vsel %vm348_vm4, %v1262_v20, %v1264_v43 }
 0x1a6   : > { %1529 = vmatpush1.bf16.msra.mxu0 %v1270_v47 }
 0x1a8   : > { %v1327_v39 = vpop.permute.xlu0 %1326  ;;  %v1323_v21 = vpop.permute.xlu1 %1322 }
 0x1a9   : > { %v1330_v48 = vsel %vm348_vm4, %v1323_v21, %v1325_v27  ;;  %7068 = vmatmul.mubr.msk.bf16.vlgmr.msra.gmra.mrb[0].mxu0 %vm1466_vm12, %v7352_v53  ;;  %v1331_v37 = vsel %vm348_vm4, %v1325_v27, %v1327_v39 }
 0x1aa   : > { %1634 = vmatprep.subr.bf16.mxu1 %v1331_v37  ;;  %1568 = vmatprep.mubr.bf16.mxu0 %v12742_v16 }
 0x1ab   : > { %1635 = vmatpush1.bf16.msra.mxu1 %v1330_v48 }
 0x1ae   : > { %7070 = vmatmul.mubr.msk.bf16.vlgmr.msra.gmra.mrb[0].mxu1 %vm1466_vm12, %v7352_v53 }
 0x1af   : > { %1674 = vmatprep.mubr.bf16.mxu1 %v12742_v16 }
 0x1b1   : > { %7069 = vmatmul.mubr.msk.bf16.gmra.mrb[4].mxu0 %vm1466_vm12, %v7353_v26 }
 0x1b6   : > { %7071 = vmatmul.mubr.msk.bf16.gmra.mrb[4].mxu1 %vm1466_vm12, %v7353_v26 }
 0x1b9   : > { %v1419_v15 = vpop.permute.xlu0 %1418  ;;  %v1424_v34 = vpop.permute.xlu1 %1423 }
 0x1bd   : > { %v1429_v18 = vpop.permute.xlu1 %1428  ;;  %v1434_v49 = vpop.permute.xlu0 %1433 }
 0x27c   : > { %v1560_v28 = vpop.f32.mrb[0].mxu0 }
 0x27d   : > { %v7154_v57 = vadd.f32 %v1560_v28, %v1419_v15  ;;  %v1562_v61 = vpop.f32.mrb[1].mxu0 }
 0x27e   : > { %v7155_v51 = vadd.f32 %v1562_v61, %v1419_v15  ;;  %v1564_v7 = vpop.f32.mrb[2].mxu0 }
 0x27f   : > { %v8250_v58 = vmax.f32 %v7154_v57, 0.0  ;;  %v7156_v8 = vadd.f32 %v1564_v7, %v1424_v34  ;;  %v1566_v46 = vpop.f32.mrb[3].mxu0 }
 0x280   : > { %v8252_v38 = vmax.f32 %v7155_v51, 0.0  ;;  %v7157_v44 = vadd.f32 %v1566_v46, %v1424_v34 }
 0x281   : > { %v8254_v4 = vmax.f32 %v7156_v8, 0.0  ;;  %v1666_v11 = vpop.f32.mrb[0].mxu1  ;;  %v8258_v19 = vmul.f32 %v8250_v58, %v12743_v60  ;;  %v8262_v52 = vmul.f32 %v8250_v58, %v12744_v29  ;;  %v8266_v14 = vmul.f32 %v8250_v58, %v12745_v56 }
 0x282   : > { %v8268_v25 = vmax.f32 %v7157_v44, 0.0  ;;  %v7162_v31 = vadd.f32 %v1666_v11, %v1419_v15  ;;  %v1668_v32 = vpop.f32.mrb[1].mxu1  ;;  %v8272_v2 = vmul.f32 %v12746_v62, %v8250_v58  ;;  %v8276_v35 = vmul.f32 %v12747_v13, %v8250_v58 }
 0x283   : > { %v7163_v22 = vadd.f32 %v1668_v32, %v1419_v15  ;;  %v1670_v3 = vpop.f32.mrb[2].mxu1  ;;  %v8280_v40 = vpack.c.bf16 %v8254_v4, %v8250_v58  ;;  %v1742_v42 = vmul.f32 %v8254_v4, %v12743_v60  ;;  %v8286_v12 = vmul.f32 %v8254_v4, %v12744_v29 }
 0x284   : > { %v8288_v54 = vmax.f32 %v7162_v31, 0.0  ;;  %v7164_v5 = vadd.f32 %v1670_v3, %v1424_v34  ;;  %v1570_v17 = vpop.f32.mrb[4].mxu0  ;;  %v1672_v24 = vpop.f32.mrb[3].mxu1  ;;  %v8292_v63 = vpack.c.bf16 %v8268_v25, %v8252_v38  ;;  %v8296_v23 = vmul.f32 %v8254_v4, %v12745_v56 }
 0x285   : > { %12748 = vst [vmem:[#allocation4_spill] sm:$0xff] %v8280_v40  ;;  %v8298_v30 = vmax.f32 %v7163_v22, 0.0  ;;  %v7158_v36 = vadd.f32 %v1570_v17, %v1429_v18  ;;  %v7165_v0 = vadd.f32 %v1672_v24, %v1424_v34  ;;  %v1572_v43 = vpop.f32.mrb[5].mxu0  ;;  %1872 = vrot.lane.b32.xlu1 %v8280_v40, %s7411_s30  ;;  %v1751_v33 = vpack.c.bf16 %v1742_v42, %v8258_v19 }
 0x286   : > { %12749 = vst [vmem:[#allocation5_spill] sm:$0xff] %v8292_v63  ;;  %v8303_v20 = vmax.f32 %v7164_v5, 0.0  ;;  %v7159_v27 = vadd.f32 %v1572_v43, %v1429_v18  ;;  %v1574_v47 = vpop.f32.mrb[6].mxu0  ;;  %v1799_v53 = vmul.f32 %v8288_v54, %v12743_v60  ;;  %v1967_v39 = vpack.c.bf16 %v8286_v12, %v8262_v52 }
 0x287   : > { %v8309_v21 = vmax.f32 %v7158_v36, 0.0  ;;  %v8311_v48 = vmax.f32 %v7165_v0, 0.0  ;;  %v7160_v37 = vadd.f32 %v1574_v47, %v1434_v49  ;;  %v1576_v26 = vpop.f32.mrb[7].mxu0  ;;  %v8315_v15 = vmul.f32 %v8288_v54, %v12744_v29 }
 0x288   : > { %v8317_v28 = vmax.f32 %v7159_v27, 0.0  ;;  %v7161_v34 = vadd.f32 %v1576_v26, %v1434_v49  ;;  %v8321_v57 = vpack.c.bf16 %v8303_v20, %v8288_v54  ;;  %v1802_v61 = vmul.f32 %v8303_v20, %v12743_v60  ;;  %v12755_v26 = vld [vmem:[#allocation17_spill] sm:$0xff] }
 0x289   : > { %v8325_v51 = vmax.f32 %v7160_v37, 0.0  ;;  %v1676_v7 = vpop.f32.mrb[4].mxu1  ;;  %v8329_v8 = vpack.c.bf16 %v8311_v48, %v8298_v30  ;;  %v2018_v46 = vmul.f32 %v8303_v20, %v12744_v29  ;;  %v8341_v32 = vmul.f32 %v8288_v54, %v12745_v56 }
 0x28a   : > { %12750 = vst [vmem:[#allocation23_spill] sm:$0xff] %v8321_v57  ;;  %v8335_v11 = vmax.f32 %v7161_v34, 0.0  ;;  %v7166_v19 = vadd.f32 %v1676_v7, %v1429_v18  ;;  %v1678_v52 = vpop.f32.mrb[5].mxu1  ;;  %1920 = vrot.lane.b32.xlu0 %v8321_v57, %s7411_s30  ;;  %v1811_v31 = vpack.c.bf16 %v1802_v61, %v1799_v53  ;;  %v8348_v12 = vmul.f32 %v8303_v20, %v12745_v56 }
 0x28b   : > { %12751 = vst [vmem:[#allocation24_spill] sm:$0xff] %v8329_v8  ;;  %v7167_v22 = vadd.f32 %v1678_v52, %v1429_v18  ;;  %v1680_v3 = vpop.f32.mrb[6].mxu1  ;;  %1922 = vrot.lane.b32.xlu1 %v8329_v8, %s7411_s30  ;;  %v2027_v42 = vpack.c.bf16 %v2018_v46, %v8315_v15  ;;  %v8352_v5 = vmul.f32 %v12746_v62, %v8254_v4  ;;  %v12753_v52 = vld [vmem:[#allocation11_spill] sm:$0xff] }
 0x28c   : > { %v8354_v17 = vmax.f32 %v7166_v19, 0.0  ;;  %v7168_v24 = vadd.f32 %v1680_v3, %v1434_v49  ;;  %v1682_v36 = vpop.f32.mrb[7].mxu1  ;;  %v8358_v18 = vmul.f32 %v12746_v62, %v8288_v54  ;;  %v8362_v0 = vmul.f32 %v12746_v62, %v8303_v20 }
 0x28d   : > { %v8364_v43 = vmax.f32 %v7167_v22, 0.0  ;;  %v7169_v27 = vadd.f32 %v1682_v36, %v1434_v49  ;;  %v2147_v47 = vpack.c.bf16 %v8348_v12, %v8341_v32  ;;  %v2238_v53 = vpack.c.bf16 %v8352_v5, %v8272_v2  ;;  %v12752_v49 = vld [vmem:[#allocation10_spill] sm:$0xff] }
 0x28e   : > { %v8370_v37 = vmax.f32 %v7168_v24, 0.0  ;;  %1874 = vrot.lane.b32.xlu0 %v8292_v63, %s7411_s30  ;;  %v8378_v15 = vmul.f32 %v12747_v13, %v8254_v4  ;;  %v8382_v34 = vmul.f32 %v12752_v49, %v8252_v38  ;;  %v8389_v2 = vmul.f32 %v12752_v49, %v8268_v25  ;;  %v12754_v24 = vld [vmem:[#allocation12_spill] sm:$0xff] }
 0x28f   : > { %v8384_v61 = vmax.f32 %v7169_v27, 0.0  ;;  %1764 = vrot.lane.b32.xlu1 %v1751_v33, %s7413_s6  ;;  %v8393_v7 = vmul.f32 %v12752_v49, %v8298_v30  ;;  %v8397_v46 = vmul.f32 %v12752_v49, %v8311_v48  ;;  %v8403_v32 = vmul.f32 %v12753_v52, %v8252_v38 }
 0x290   : > { %v8407_v33 = vmul.f32 %v12753_v52, %v8268_v25  ;;  %v8411_v22 = vmul.f32 %v12753_v52, %v8298_v30  ;;  %v8419_v5 = vmul.f32 %v12753_v52, %v8311_v48  ;;  %v8423_v36 = vmul.f32 %v12754_v24, %v8252_v38 }
 0x291   : > { %v8430_v19 = vmul.f32 %v12754_v24, %v8268_v25  ;;  %v8434_v12 = vmul.f32 %v12754_v24, %v8298_v30  ;;  %v8438_v3 = vmul.f32 %v12754_v24, %v8311_v48  ;;  %v8445_v27 = vmul.f32 %v8298_v30, %v12755_v26 }
 0x292   : > { %1824 = vrot.lane.b32.xlu0 %v1811_v31, %s7413_s6  ;;  %v8449_v44 = vmul.f32 %v8311_v48, %v12755_v26  ;;  %v8453_v16 = vmul.f32 %v8252_v38, %v12755_v26  ;;  %v8461_v31 = vmul.f32 %v8268_v25, %v12755_v26  ;;  %v8465_v45 = vmul.f32 %v8298_v30, %v12756_v50 }
 0x293   : > { %1980 = vrot.lane.b32.xlu1 %v1967_v39, %s7410_s29  ;;  %v8471_v59 = vmul.f32 %v8311_v48, %v12756_v50  ;;  %v8475_v55 = vmul.f32 %v8252_v38, %v12756_v50  ;;  %v8479_v39 = vmul.f32 %v8268_v25, %v12756_v50  ;;  %v8486_v41 = vpack.c.bf16 %v8370_v37, %v8354_v17 }
 0x294   : > { %v8490_v8 = vpack.c.bf16 %v8325_v51, %v8309_v21  ;;  %v8494_v40 = vpack.c.bf16 %v8335_v11, %v8317_v28  ;;  %v12762_v10 = vpack.c.bf16 %v8296_v23, %v8266_v14  ;;  %v8506_v63 = vpack.c.bf16 %v8384_v61, %v8364_v43 }
 0x295   : > { %12757 = vst [vmem:[#allocation26_spill] sm:$0xff] %v8475_v55  ;;  %12758 = vst [vmem:[#allocation27_spill] sm:$0xff] %v8479_v39  ;;  %v8510_v9 = vmul.f32 %v8354_v17, %v12743_v60  ;;  %v8522_v14 = vmul.f32 %v8325_v51, %v12743_v60  ;;  %v8526_v23 = vmul.f32 %v8354_v17, %v12744_v29 }
 0x296   : > { %2040 = vrot.lane.b32.xlu0 %v2027_v42, %s7410_s29  ;;  %12759 = vst [vmem:[#allocation28_spill] sm:$0xff] %v8486_v41  ;;  %12760 = vst [vmem:[#allocation29_spill] sm:$0xff] %v8490_v8  ;;  %v8530_v57 = vmul.f32 %v8370_v37, %v12744_v29  ;;  %v8534_v42 = vmul.f32 %v8309_v21, %v12744_v29  ;;  %v8551_v55 = vmul.f32 %v8370_v37, %v12745_v56 }
 0x297   : > { %12761 = vst [vmem:[#allocation30_spill] sm:$0xff] %v8494_v40  ;;  %2100 = vrot.lane.b32.xlu1 %v12762_v10, %s7409_s28  ;;  %12763 = vst [vmem:[#allocation31_spill] sm:$0xff] %v8506_v63  ;;  %v8514_v40 = vmul.f32 %v8370_v37, %v12743_v60  ;;  %v8518_v10 = vmul.f32 %v8309_v21, %v12743_v60  ;;  %v8538_v63 = vmul.f32 %v8325_v51, %v12744_v29 }
 0x298   : > { %12765 = vst [vmem:[#allocation33_spill] sm:$0xff] %v8534_v42  ;;  %v8542_v60 = vmul.f32 %v8354_v17, %v12745_v56  ;;  %12768 = vst [vmem:[#allocation36_spill] sm:$0xff] %v8551_v55  ;;  %v8555_v29 = vmul.f32 %v8309_v21, %v12745_v56  ;;  %v8564_v8 = vmul.f32 %v8325_v51, %v12745_v56 }
 0x299   : > { %12764 = vst [vmem:[#allocation32_spill] sm:$0xff] %v8518_v10  ;;  %12766 = vst [vmem:[#allocation34_spill] sm:$0xff] %v8538_v63  ;;  %v8568_v41 = vmul.f32 %v12746_v62, %v8354_v17  ;;  %v8578_v39 = vmul.f32 %v12746_v62, %v8309_v21  ;;  %v8588_v42 = vmul.f32 %v12752_v49, %v8317_v28 }
 0x29a   : > { %12767 = vst [vmem:[#allocation35_spill] sm:$0xff] %v8542_v60  ;;  %2160 = vrot.lane.b32.xlu0 %v2147_v47, %s7409_s28  ;;  %12769 = vst [vmem:[#allocation37_spill] sm:$0xff] %v8555_v29  ;;  %v8582_v47 = vmul.f32 %v12746_v62, %v8325_v51  ;;  %v8592_v10 = vmul.f32 %v12752_v49, %v8335_v11  ;;  %v8596_v60 = vmul.f32 %v12752_v49, %v8364_v43 }
 0x29b   : > { %2250 = vrot.lane.b32.xlu1 %v2238_v53, %s7407_s26  ;;  %12770 = vst [vmem:[#allocation38_spill] sm:$0xff] %v8564_v8  ;;  %v8574_v53 = vmul.f32 %v12746_v62, %v8370_v37  ;;  %v12772_v62 = vpack.c.bf16 %v8362_v0, %v8358_v18  ;;  %v8608_v8 = vmul.f32 %v12752_v49, %v8384_v61 }
 0x29c   : > { %12771 = vst [vmem:[#allocation39_spill] sm:$0xff] %v8596_v60  ;;  %v8612_v55 = vmul.f32 %v12747_v13, %v8288_v54  ;;  %v12774_v63 = vpack.c.bf16 %v8378_v15, %v8276_v35  ;;  %v8622_v18 = vmul.f32 %v12747_v13, %v8303_v20  ;;  %v8626_v0 = vmul.f32 %v12747_v13, %v8309_v21 }
 0x29d   : > { %12773 = vst [vmem:[#allocation40_spill] sm:$0xff] %v8608_v8  ;;  %v8630_v29 = vmul.f32 %v12747_v13, %v8325_v51  ;;  %v8636_v35 = vmul.f32 %v12747_v13, %v8354_v17  ;;  %v8644_v15 = vmul.f32 %v12753_v52, %v8317_v28  ;;  %v8652_v56 = vmul.f32 %v12753_v52, %v8335_v11 }
 0x29e   : > { %2310 = vrot.lane.b32.xlu0 %v12772_v62, %s7407_s26  ;;  %12775 = vst [vmem:[#allocation41_spill] sm:$0xff] %v8626_v0  ;;  %v8656_v60 = vmul.f32 %v12753_v52, %v8364_v43  ;;  %v8666_v62 = vmul.f32 %v12753_v52, %v8384_v61  ;;  %v8670_v49 = vmul.f32 %v12754_v24, %v8317_v28 }
 0x29f   : > { %2370 = vrot.lane.b32.xlu1 %v12774_v63, %s7408_s27  ;;  %12776 = vst [vmem:[#allocation42_spill] sm:$0xff] %v8636_v35  ;;  %v8640_v63 = vmul.f32 %v12747_v13, %v8370_v37  ;;  %v12777_v13 = vpack.c.bf16 %v8389_v2, %v8382_v34  ;;  %v8674_v0 = vmul.f32 %v12754_v24, %v8335_v11 }
 0x2a0   : > { %12778 = vst [vmem:[#allocation43_spill] sm:$0xff] %v8670_v49  ;;  %v12779_v34 = vpack.c.bf16 %v8397_v46, %v8393_v7  ;;  %v8684_v2 = vmul.f32 %v12754_v24, %v8364_v43  ;;  %v8688_v8 = vmul.f32 %v12754_v24, %v8384_v61  ;;  %v8692_v52 = vmul.f32 %v8317_v28, %v12755_v26 }
 0x2a1   : > { %v8700_v46 = vmul.f32 %v8335_v11, %v12755_v26  ;;  %v8710_v24 = vmul.f32 %v8384_v61, %v12755_v26  ;;  %v8714_v35 = vmul.f32 %v8317_v28, %v12756_v50  ;;  %v8718_v7 = vmul.f32 %v8335_v11, %v12756_v50 }
 0x2a2   : > { %1766 = vrot.lane.b32.xlu0 %v12777_v13, %s7413_s6  ;;  %12780 = vst [vmem:[#allocation44_spill] sm:$0xff] %v8684_v2  ;;  %12781 = vst [vmem:[#allocation45_spill] sm:$0xff] %v8688_v8  ;;  %v12782_v49 = vpack.c.bf16 %v8407_v33, %v8403_v32  ;;  %v8732_v2 = vmul.f32 %v8384_v61, %v12756_v50  ;;  %v8736_v8 = vmul.f32 %v8252_v38, %v7963_v6 }
 0x2a3   : > { %1826 = vrot.lane.b32.xlu1 %v12779_v34, %s7413_s6  ;;  %v8704_v34 = vmul.f32 %v8364_v43, %v12755_v26  ;;  %v8728_v26 = vmul.f32 %v8364_v43, %v12756_v50  ;;  %v12783_v32 = vpack.c.bf16 %v8419_v5, %v8411_v22  ;;  %v8748_v13 = vmul.f32 %v8268_v25, %v7963_v6 }
 0x2a4   : > { %v8752_v50 = vmul.f32 %v7948_v1, %v8250_v58  ;;  %v8758_v22 = vmul.f32 %v7948_v1, %v8254_v4  ;;  %v8762_v5 = vmul.f32 %v8298_v30, %v7963_v6  ;;  %v8772_v58 = vmul.f32 %v7948_v1, %v8288_v54 }
 0x2a5   : > { %v8776_v38 = vmul.f32 %v7948_v1, %v8303_v20  ;;  %v8780_v4 = vmul.f32 %v7948_v1, %v8309_v21  ;;  %v12784_v30 = vpack.c.bf16 %v8430_v19, %v8423_v36  ;;  %v8792_v25 = vmul.f32 %v7948_v1, %v8325_v51  ;;  %v12801_v19 = vld [vmem:[#allocation33_spill] sm:$0xff] }
 0x2a6   : > { %1982 = vrot.lane.b32.xlu0 %v12782_v49, %s7410_s29  ;;  %v2302_v49 = vpack.c.bf16 %v8710_v24, %v8704_v34  ;;  %v8796_v20 = vmul.f32 %v8317_v28, %v7963_v6  ;;  %v12785_v21 = vpack.c.bf16 %v8438_v3, %v8434_v12  ;;  %v8806_v36 = vmul.f32 %v8335_v11, %v7963_v6  ;;  %v12790_v11 = vld [vmem:[#allocation26_spill] sm:$0xff] }
 0x2a7   : > { %2042 = vrot.lane.b32.xlu1 %v12783_v32, %s7410_s29  ;;  %v8766_v32 = vmul.f32 %v8311_v48, %v7963_v6  ;;  %v8810_v51 = vmul.f32 %v8364_v43, %v7963_v6  ;;  %v8814_v28 = vmul.f32 %v8384_v61, %v7963_v6  ;;  %v8820_v3 = vmul.f32 %v7948_v1, %v8354_v17  ;;  %v12789_v43 = vld [vmem:[#allocation27_spill] sm:$0xff]  ;;  %v7356_v24 = vld [vmem:[%s12495_s1 + $0x34] ss:$12 sps:$4 sm:$0xff]  }
 0x2a8   : > { %v8824_v12 = vmul.f32 %v7948_v1, %v8370_v37  ;;  %v12786_v61 = vpack.c.bf16 %v8449_v44, %v8445_v27  ;;  %v12787_v17 = vpack.c.bf16 %v8461_v31, %v8453_v16  ;;  %v12788_v37 = vpack.c.bf16 %v8471_v59, %v8465_v45  ;;  %v12792_v44 = vld [vmem:[#allocation28_spill] sm:$0xff]  ;;  %v12793_v27 = vld [vmem:[#allocation29_spill] sm:$0xff]  ;;  %v12794_v16 = vld [vmem:[#allocation30_spill] sm:$0xff]  ;;  %v8858_v45 = vpop.permute.xlu0 %1822  ;;  %2835 = vmatprep.mubr.bf16.mxu0 %v7356_v24 }
 0x2a9   : > { %v12795_v31 = vld [vmem:[#allocation31_spill] sm:$0xff]  ;;  %v12796_v59 = vpack.c.bf16 %v8514_v40, %v8510_v9  ;;  %v12803_v40 = vld [vmem:[#allocation36_spill] sm:$0xff]  ;;  %v12836_v34 = vpack.c.bf16 %v8732_v2, %v8728_v26  ;;  %2941 = vmatprep.mubr.bf16.mxu1 %v7356_v24  ;;  %v12838_v26 = vld [vmem:[#allocation25_spill] sm:$0xff]  ;;  %v12839_v2 = vpack.c.bf16 %v8758_v22, %v8752_v50  ;;  %v12841_v50 = vpack.c.bf16 %v8776_v38, %v8772_v58 }
 0x2aa   : > { %2102 = vrot.lane.b32.xlu0 %v12784_v30, %s7409_s28  ;;  %v12791_v30 = vpack.c.bf16 %v12789_v43, %v12790_v11  ;;  %v12797_v11 = vld [vmem:[#allocation32_spill] sm:$0xff]  ;;  %v12842_v22 = vpack.c.bf16 %v8792_v25, %v8780_v4  ;;  %v12845_v25 = vpack.c.bf16 %v8814_v28, %v8810_v51 }
 0x2ab   : > { %2162 = vrot.lane.b32.xlu1 %v12785_v21, %s7409_s28  ;;  %v12798_v43 = vpack.c.bf16 %v8522_v14, %v12797_v11  ;;  %v12800_v21 = vld [vmem:[#allocation34_spill] sm:$0xff]  ;;  %v12807_v11 = vld [vmem:[#allocation37_spill] sm:$0xff]  ;;  %v7080_v51 = vld [vmem:[%s12496_s2 + $0x20] sm:$0xff] }
 0x2ac   : > { %v12802_v54 = vpack.c.bf16 %v12800_v21, %v12801_v19  ;;  %v12806_v14 = vld [vmem:[#allocation38_spill] sm:$0xff]  ;;  %v12811_v19 = vpack.c.bf16 %v8592_v10, %v8588_v42  ;;  %v12812_v21 = vld [vmem:[#allocation40_spill] sm:$0xff] }
 0x2ad   : > { %v12818_v42 = vld [vmem:[#allocation20_spill] sm:$0xff] }
 0x2ae   : > { %2312 = vrot.lane.b32.xlu0 %v12786_v61, %s7407_s26  ;;  %v8852_v61 = vpop.permute.xlu1 %1762 }
 0x2af   : > { %2252 = vrot.lane.b32.xlu1 %v12787_v17, %s7407_s26  ;;  %v8870_v17 = vpop.permute.xlu0 %1828 }
 0x2b2   : > { %2432 = vrot.lane.b32.xlu0 %v12788_v37, %s7408_s27  ;;  %v12799_v37 = vpack.c.bf16 %v8530_v57, %v8526_v23  ;;  %v12809_v57 = vpack.c.bf16 %v8574_v53, %v8568_v41  ;;  %v12815_v53 = vpack.c.bf16 %v8622_v18, %v8612_v55  ;;  %v12819_v55 = vld [vmem:[#allocation42_spill] sm:$0xff] }
 0x2b3   : > { %2372 = vrot.lane.b32.xlu1 %v12791_v30, %s7408_s27  ;;  %v8864_v30 = vpop.permute.xlu1 %1768  ;;  %v8890_v33 = vpop.permute.xlu0 %1918  ;;  %v12820_v18 = vpack.c.bf16 %v8640_v63, %v12819_v55  ;;  %v12824_v63 = vmov 0.0|0.0   ;;  %v12832_v55 = vld [vmem:[#allocation23_spill] sm:$0xff] }
 0x2b6   : > { %1926 = vrot.lane.b32.xlu0 %v12792_v44, %s7411_s30 }
 0x2b7   : > { %1878 = vrot.lane.b32.xlu1 %v12793_v27, %s7411_s30  ;;  %v8880_v9 = vpop.permute.xlu1 %1870 }
 0x2ba   : > { %1880 = vrot.lane.b32.xlu0 %v12794_v16, %s7411_s30 }
 0x2bb   : > { %1928 = vrot.lane.b32.xlu1 %v12795_v31, %s7411_s30  ;;  %v8896_v23 = vpop.permute.xlu1 %1876 }
 0x2be   : > { %1830 = vrot.lane.b32.xlu0 %v12796_v59, %s7413_s6  ;;  %v12804_v59 = vld [vmem:[#allocation35_spill] sm:$0xff] }
 0x2bf   : > { %1770 = vrot.lane.b32.xlu1 %v12798_v43, %s7413_s6  ;;  %v12805_v48 = vpack.c.bf16 %v12803_v40, %v12804_v59  ;;  %v12808_v43 = vpack.c.bf16 %v12806_v14, %v12807_v11  ;;  %v8912_v41 = vpop.permute.xlu1 %1978 }
 0x2c2   : > { %2046 = vrot.lane.b32.xlu0 %v12799_v37, %s7410_s29  ;;  %v12813_v37 = vld [vmem:[#allocation39_spill] sm:$0xff] }
 0x2c3   : > { %1986 = vrot.lane.b32.xlu1 %v12802_v54, %s7410_s29  ;;  %v12810_v54 = vpack.c.bf16 %v8582_v47, %v8578_v39  ;;  %v12814_v40 = vpack.c.bf16 %v12812_v21, %v12813_v37  ;;  %v12816_v39 = vld [vmem:[#allocation41_spill] sm:$0xff]  ;;  %v8926_v10 = vpop.permute.xlu1 %1984  ;;  %v12825_v21 = vld [vmem:[#allocation4_spill] sm:$0xff] }
 0x2c4   : > { %v12817_v47 = vpack.c.bf16 %v8630_v29, %v12816_v39  ;;  %v12821_v29 = vld [vmem:[#allocation5_spill] sm:$0xff]  ;;  %v12831_v39 = vld [vmem:[#allocation24_spill] sm:$0xff] }
 0x2c6   : > { %2166 = vrot.lane.b32.xlu0 %v12805_v48, %s7409_s28  ;;  %v8902_v48 = vpop.permute.xlu0 %1924 }
 0x2c7   : > { %2106 = vrot.lane.b32.xlu1 %v12808_v43, %s7409_s28  ;;  %v8938_v11 = vpop.permute.xlu1 %2098  ;;  %v12822_v43 = vpack.c.bf16 %v8652_v56, %v8644_v15  ;;  %v12826_v56 = vld [vmem:[#allocation43_spill] sm:$0xff] }
 0x2c8   : > { %v12827_v15 = vpack.c.bf16 %v8674_v0, %v12826_v56 }
 0x2ca   : > { %2316 = vrot.lane.b32.xlu0 %v12809_v57, %s7407_s26  ;;  %v8922_v59 = vpop.permute.xlu0 %2038  ;;  %v12823_v57 = vpack.c.bf16 %v8666_v62, %v8656_v60  ;;  %v12828_v60 = vld [vmem:[#allocation45_spill] sm:$0xff]  ;;  %v12829_v62 = vld [vmem:[#allocation44_spill] sm:$0xff] }
 0x2cb   : > { %2256 = vrot.lane.b32.xlu1 %v12810_v54, %s7407_s26 }
 0x2ce   : > { %1772 = vrot.lane.b32.xlu0 %v12811_v19, %s7413_s6  ;;  %v8930_v14 = vpop.permute.xlu0 %2044  ;;  %v8952_v19 = vpop.permute.xlu1 %2104 }
 0x2cf   : > { %1832 = vrot.lane.b32.xlu1 %v12814_v40, %s7413_s6  ;;  %v12830_v40 = vpack.c.bf16 %v12828_v60, %v12829_v62 }
 0x2d2   : > { %2430 = vrot.lane.b32.xlu0 %v12815_v53, %s7408_s27  ;;  %v8948_v54 = vpop.permute.xlu0 %2158  ;;  %v8966_v53 = vpop.permute.xlu1 %2314 }
 0x2d3   : > { %2376 = vrot.lane.b32.xlu1 %v12817_v47, %s7408_s27 }
 0x2d6   : > { %2380 = vrot.lane.b32.xlu0 %v12818_v42, %s7408_s27  ;;  %v8956_v37 = vpop.permute.xlu0 %2164  ;;  %v8976_v0 = vpop.permute.xlu1 %2320 }
 0x2d7   : > { %2440 = vrot.lane.b32.xlu1 %v12818_v42, %s7408_s27 }
 0x2da   : > { %2436 = vrot.lane.b32.xlu0 %v12820_v18, %s7408_s27  ;;  %v8972_v47 = vpop.permute.xlu0 %2254 }
 0x2db   : > { %2480 = vrot.lane.b32.xlu1 %v12821_v29, %s7415_s7 }
 0x2de   : > { %1988 = vrot.lane.b32.xlu0 %v12822_v43, %s7410_s29  ;;  %v8980_v18 = vpop.permute.xlu0 %2260  ;;  %v12833_v43 = vpack.c.bf16 %v8700_v46, %v8692_v52  ;;  %v12835_v52 = vpack.c.bf16 %v8718_v7, %v8714_v35  ;;  %v12837_v7 = vpack.c.bf16 %v8748_v13, %v8736_v8  ;;  %v12840_v8 = vpack.c.bf16 %v8766_v32, %v8762_v5 }
 0x2df   : > { %2048 = vrot.lane.b32.xlu1 %v12823_v57, %s7410_s29  ;;  %v8988_v57 = vpop.permute.xlu1 %2434  ;;  %v12844_v32 = vpack.c.bf16 %v8806_v36, %v8796_v20 }
 0x2e0   : > { %12834 = vst [vmem:[#allocation27_spill] sm:$0xff] %v8988_v57  ;;  %v12853_v57 = vld [vmem:[#allocation14_spill] sm:$0xff] }
 0x2e2   : > { %2482 = vrot.lane.b32.xlu0 %v12824_v63, %s7415_s7  ;;  %v8996_v56 = vpop.permute.xlu0 %2374 }
 0x2e3   : > { %2478 = vrot.lane.b32.xlu1 %v12825_v21, %s7415_s7 }
 0x2e6   : > { %2108 = vrot.lane.b32.xlu0 %v12827_v15, %s7409_s28 }
 0x2e7   : > { %2168 = vrot.lane.b32.xlu1 %v12830_v40, %s7409_s28 }
 0x2ea   : > { %2528 = vrot.lane.b32.xlu0 %v12831_v39, %s7415_s7 }
 0x2eb   : > { %2530 = vrot.lane.b32.xlu1 %v12824_v63, %s7415_s7 }
 0x2ee   : > { %2526 = vrot.lane.b32.xlu0 %v12832_v55, %s7415_s7 }
 0x2ef   : > { %2486 = vrot.lane.b32.xlu1 %v12794_v16, %s7415_s7 }
 0x2f2   : > { %2488 = vrot.lane.b32.xlu0 %v12824_v63, %s7415_s7 }
 0x2f3   : > { %2258 = vrot.lane.b32.xlu1 %v12833_v43, %s7407_s26 }
 0x2f6   : > { %2318 = vrot.lane.b32.xlu0 %v2302_v49, %s7407_s26 }
 0x2f7   : > { %2484 = vrot.lane.b32.xlu1 %v12793_v27, %s7415_s7  ;;  %v8998_v15 = vpop.permute.xlu1 %1872 }
 0x2fa   : > { %2534 = vrot.lane.b32.xlu0 %v12795_v31, %s7415_s7 }
 0x2fb   : > { %2378 = vrot.lane.b32.xlu1 %v12835_v52, %s7408_s27 }
 0x2fc   : > { %v9006_v46 = vpop.permute.xlu0 %1920 }
 0x2fd   : > { %v9008_v60 = vpop.permute.xlu1 %1922 }
 0x2fe   : > { %2438 = vrot.lane.b32.xlu0 %v12836_v34, %s7408_s27 }
 0x2ff   : > { %2536 = vrot.lane.b32.xlu1 %v12824_v63, %s7415_s7 }
 0x300   : > { %v9019_v49 = vpop.permute.xlu0 %1874 }
 0x301   : > { %v1765_v35 = vpop.permute.xlu1 %1764 }
 0x302   : > { %2532 = vrot.lane.b32.xlu0 %v12792_v44, %s7415_s7  ;;  %v1774_v4 = vsel %vm389_vm9, %v8852_v61, %v1765_v35  ;;  %v12846_v61 = vpack.c.bf16 %v8824_v12, %v8820_v3  ;;  %v7083_v3 = vld [vmem:[%s12496_s2 + $0x38] sm:$0xff] }
 0x303   : > { %2588 = vrot.lane.b32.xlu1 %v12837_v7, %s7406_s25 }
 0x304   : > { %v1825_v62 = vpop.permute.xlu0 %1824 }
 0x305   : > { %v9027_v40 = vpop.permute.xlu1 %1980  ;;  %v1834_v36 = vsel %vm389_vm9, %v8858_v45, %v1825_v62  ;;  %v7082_v45 = vld [vmem:[%s12496_s2 + $0x30] sm:$0xff] }
 0x306   : > { %2590 = vrot.lane.b32.xlu0 %v12838_v26, %s7406_s25 }
 0x307   : > { %2586 = vrot.lane.b32.xlu1 %v12839_v2, %s7406_s25 }
 0x308   : > { %v9035_v43 = vpop.permute.xlu0 %2040 }
 0x309   : > { %v9037_v52 = vpop.permute.xlu1 %2100 }
 0x30a   : > { %2648 = vrot.lane.b32.xlu0 %v12840_v8, %s7406_s25 }
 0x30b   : > { %2650 = vrot.lane.b32.xlu1 %v12838_v26, %s7406_s25 }
 0x30c   : > { %v9045_v13 = vpop.permute.xlu0 %2160 }
 0x30d   : > { %v9047_v24 = vpop.permute.xlu1 %2250 }
 0x30e   : > { %2646 = vrot.lane.b32.xlu0 %v12841_v50, %s7406_s25 }
 0x30f   : > { %2592 = vrot.lane.b32.xlu1 %v12842_v22, %s7406_s25  ;;  %v12847_v22 = vld [vmem:[#allocation6_spill] sm:$0xff] }
 0x310   : > { %v9057_v34 = vpop.permute.xlu0 %2310 }
 0x311   : > { %v9059_v5 = vpop.permute.xlu1 %2370 }
 0x312   : > { %12843 = vst [vmem:[#allocation26_spill] sm:$0xff] %v9059_v5  ;;  %2596 = vrot.lane.b32.xlu0 %v12838_v26, %s7406_s25 }
 0x313   : > { %2594 = vrot.lane.b32.xlu1 %v12844_v32, %s7406_s25 }
 0x314   : > { %v1767_v7 = vpop.permute.xlu0 %1766 }
 0x315   : > { %v1827_v38 = vpop.permute.xlu1 %1826  ;;  %v1775_v58 = vsel %vm389_vm9, %v1765_v35, %v1767_v7  ;;  %v7081_v35 = vld [vmem:[%s12496_s2 + $0x28] sm:$0xff] }
 0x316   : > { %2654 = vrot.lane.b32.xlu0 %v12845_v25, %s7406_s25  ;;  %2803 = vmatprep.subr.bf16.mxu0 %v1775_v58  ;;  %v1835_v2 = vsel %vm389_vm9, %v1825_v62, %v1827_v38 }
 0x317   : > { %2656 = vrot.lane.b32.xlu1 %v12838_v26, %s7406_s25  ;;  %2804 = vmatpush1.bf16.msra.mxu0 %v1774_v4 }
 0x318   : > { %2909 = vmatprep.subr.bf16.mxu1 %v1835_v2  ;;  %v9077_v20 = vpop.permute.xlu0 %1982 }
 0x319   : > { %2910 = vmatpush1.bf16.msra.mxu1 %v1834_v36  ;;  %v9084_v28 = vpop.permute.xlu1 %2042 }
 0x31a   : > { %2652 = vrot.lane.b32.xlu0 %v12846_v61, %s7406_s25 }
 0x31b   : > { %2749 = vperm.xlu1 %7345, %v7080_v51   ;;  %v12850_v51 = vld [vmem:[#allocation7_spill] sm:$0xff] }
 0x31c   : > { %v9093_v8 = vpop.permute.xlu0 %2102 }
 0x31d   : > { %v9098_v62 = vpop.permute.xlu1 %2162 }
 0x31e   : > { %2754 = vperm.xlu0 %7344, %v7081_v35  }
 0x31f   : > { %2759 = vperm.xlu1 %7345, %v7082_v45  }
 0x320   : > { %v9103_v12 = vpop.permute.xlu0 %2312 }
 0x321   : > { %v9105_v50 = vpop.permute.xlu1 %2252 }
 0x322   : > { %2764 = vperm.xlu0 %7344, %v7083_v3  }
 0x323   : > { %3092 = vrot.lane.b32.xlu1 %v12847_v22, %s7413_s6 }
 0x324   : > { %v9109_v32 = vpop.permute.xlu0 %2432 }
 0x325   : > { %12848 = vst [vmem:[#allocation28_spill] sm:$0xff] %v9109_v32  ;;  %v9111_v7 = vpop.permute.xlu1 %2372 }
 0x326   : > { %12849 = vst [vmem:[#allocation29_spill] sm:$0xff] %v9111_v7  ;;  %3152 = vrot.lane.b32.xlu0 %v12847_v22, %s7413_s6 }
 0x327   : > { %3098 = vrot.lane.b32.xlu1 %v12847_v22, %s7413_s6 }
 0x328   : > { %v1927_v38 = vpop.permute.xlu0 %1926 }
 0x329   : > { %v1879_v58 = vpop.permute.xlu1 %1878 }
 0x32a   : > { %3158 = vrot.lane.b32.xlu0 %v12847_v22, %s7413_s6  ;;  %v12851_v22 = vld [vmem:[#allocation9_spill] sm:$0xff] }
 0x32b   : > { %3200 = vrot.lane.b32.xlu1 %v12824_v63, %s7411_s30 }
 0x32c   : > { %v1881_v25 = vpop.permute.xlu0 %1880 }
 0x32d   : > { %v1929_v4 = vpop.permute.xlu1 %1928 }
 0x32e   : > { %3248 = vrot.lane.b32.xlu0 %v12824_v63, %s7411_s30 }
 0x32f   : > { %3206 = vrot.lane.b32.xlu1 %v12824_v63, %s7411_s30 }
 0x330   : > { %v1831_v2 = vpop.permute.xlu0 %1830 }
 0x331   : > { %v1771_v36 = vpop.permute.xlu1 %1770 }
 0x332   : > { %3254 = vrot.lane.b32.xlu0 %v12824_v63, %s7411_s30 }
 0x333   : > { %3308 = vrot.lane.b32.xlu1 %v12850_v51, %s7410_s29 }
 0x334   : > { %v9129_v61 = vpop.permute.xlu0 %2046 }
 0x335   : > { %v9131_v35 = vpop.permute.xlu1 %1986 }
 0x336   : > { %3368 = vrot.lane.b32.xlu0 %v12850_v51, %s7410_s29 }
 0x337   : > { %3314 = vrot.lane.b32.xlu1 %v12850_v51, %s7410_s29 }
 0x338   : > { %v9137_v45 = vpop.permute.xlu0 %2166 }
 0x339   : > { %v9139_v3 = vpop.permute.xlu1 %2106 }
 0x33a   : > { %3374 = vrot.lane.b32.xlu0 %v12850_v51, %s7410_s29  ;;  %v1776_v51 = vsel %vm389_vm9, %v8864_v30, %v1771_v36 }
 0x33b   : > { %3428 = vrot.lane.b32.xlu1 %v12851_v22, %s7409_s28 }
 0x33c   : > { %v9145_v26 = vpop.permute.xlu0 %2316 }
 0x33d   : > { %12852 = vst [vmem:[#allocation30_spill] sm:$0xff] %v9145_v26  ;;  %v9147_v63 = vpop.permute.xlu1 %2256  ;;  %v1883_v26 = vsel %vm498_vm10, %v8998_v15, %v9019_v49  ;;  %v1882_v49 = vsel %vm498_vm10, %v8880_v9, %v8998_v15  ;;  %v1884_v9 = vsel %vm498_vm10, %v8896_v23, %v1879_v58 }
 0x33e   : > { %3488 = vrot.lane.b32.xlu0 %v12851_v22, %s7409_s28 }
 0x33f   : > { %3434 = vrot.lane.b32.xlu1 %v12851_v22, %s7409_s28 }
 0x340   : > { %v1773_v1 = vpop.permute.xlu0 %1772 }
 0x341   : > { %v1833_v6 = vpop.permute.xlu1 %1832  ;;  %v1777_v5 = vsel %vm389_vm9, %v1771_v36, %v1773_v1  ;;  %v1836_v1 = vsel %vm389_vm9, %v8870_v17, %v1831_v2  ;;  %v1885_v17 = vsel %vm498_vm10, %v1879_v58, %v1881_v25  ;;  %v2051_v25 = vsel %vm618_vm8, %v9035_v43, %v9084_v28 }
 0x342   : > { %3494 = vrot.lane.b32.xlu0 %v12851_v22, %s7409_s28  ;;  %2805 = vmatprep.subr.bf16.mxu0 %v1777_v5  ;;  %v1837_v32 = vsel %vm389_vm9, %v1831_v2, %v1833_v6  ;;  %v1931_v6 = vsel %vm498_vm10, %v9006_v46, %v9008_v60  ;;  %v1930_v60 = vsel %vm498_vm10, %v8890_v33, %v9006_v46 }
 0x343   : > { %3644 = vrot.lane.b32.xlu1 %v12853_v57, %s7407_s26  ;;  %2806 = vmatpush1.bf16.msra.mxu0 %v1776_v51  ;;  %v1933_v5 = vsel %vm498_vm10, %v1927_v38, %v1929_v4  ;;  %v1991_v33 = vsel %vm618_vm8, %v9027_v40, %v9077_v20  ;;  %v1932_v46 = vsel %vm498_vm10, %v8902_v48, %v1927_v38 }
 0x344   : > { %2911 = vmatprep.subr.bf16.mxu1 %v1837_v32  ;;  %v9164_v7 = vpop.permute.xlu0 %2430  ;;  %2807 = vmatprep.subr.bf16.mxu0 %v1883_v26  ;;  %v1990_v20 = vsel %vm618_vm8, %v8912_v41, %v9027_v40  ;;  %v2050_v48 = vsel %vm618_vm8, %v8922_v59, %v9035_v43  ;;  %v1992_v4 = vsel %vm618_vm8, %v8926_v10, %v9131_v35 }
 0x345   : > { %2912 = vmatpush1.bf16.msra.mxu1 %v1836_v1  ;;  %v9171_v30 = vpop.permute.xlu1 %2376  ;;  %v2111_v41 = vsel %vm748_vm7, %v9037_v52, %v9093_v8  ;;  %v2052_v40 = vsel %vm618_vm8, %v8930_v14, %v9129_v61  ;;  %v2171_v10 = vsel %vm748_vm7, %v9045_v13, %v9098_v62  ;;  %v2110_v36 = vsel %vm748_vm7, %v8938_v11, %v9037_v52 }
 0x346   : > { %2913 = vmatprep.subr.bf16.mxu1 %v1931_v6  ;;  %3584 = vrot.lane.b32.xlu0 %v12853_v57, %s7407_s26  ;;  %v2170_v51 = vsel %vm748_vm7, %v8948_v54, %v9045_v13  ;;  %v2112_v62 = vsel %vm748_vm7, %v8952_v19, %v9139_v3  ;;  %v2172_v54 = vsel %vm748_vm7, %v8956_v37, %v9137_v45  ;;  %v12858_v6 = vld [vmem:[#allocation26_spill] sm:$0xff] }
 0x347   : > { %3650 = vrot.lane.b32.xlu1 %v12853_v57, %s7407_s26  ;;  %2808 = vmatpush1.bf16.msra.mxu0 %v1882_v49 }
 0x348   : > { %v9181_v26 = vpop.permute.xlu0 %2380  ;;  %2809 = vmatprep.subr.bf16.mxu0 %v1885_v17 }
 0x349   : > { %2914 = vmatpush1.bf16.msra.mxu1 %v1930_v60  ;;  %v9187_v32 = vpop.permute.xlu1 %2440 }
 0x34a   : > { %2915 = vmatprep.subr.bf16.mxu1 %v1933_v5  ;;  %3590 = vrot.lane.b32.xlu0 %v12853_v57, %s7407_s26 }
 0x34b   : > { %3764 = vrot.lane.b32.xlu1 %v12818_v42, %s7408_s27  ;;  %2810 = vmatpush1.bf16.msra.mxu0 %v1884_v9 }
 0x34c   : > { %v9198_v15 = vpop.permute.xlu0 %2436  ;;  %2811 = vmatprep.subr.bf16.mxu0 %v1991_v33 }
 0x34d   : > { %2916 = vmatpush1.bf16.msra.mxu1 %v1932_v46  ;;  %v9205_v23 = vpop.permute.xlu1 %2480 }
 0x34e   : > { %2917 = vmatprep.subr.bf16.mxu1 %v2051_v25  ;;  %3704 = vrot.lane.b32.xlu0 %v12818_v42, %s7408_s27 }
 0x34f   : > { %2812 = vmatpush1.bf16.msra.mxu0 %v1990_v20 }
 0x350   : > { %v1989_v58 = vpop.permute.xlu0 %1988 }
 0x351   : > { %2918 = vmatpush1.bf16.msra.mxu1 %v2050_v48  ;;  %v2049_v38 = vpop.permute.xlu1 %2048  ;;  %v1993_v28 = vsel %vm618_vm8, %v9131_v35, %v1989_v58 }
 0x352   : > { %2813 = vmatprep.subr.bf16.mxu0 %v1993_v28  ;;  %v2053_v2 = vsel %vm618_vm8, %v9129_v61, %v2049_v38 }
 0x353   : > { %2814 = vmatpush1.bf16.msra.mxu0 %v1992_v4  ;;  %2919 = vmatprep.subr.bf16.mxu1 %v2053_v2 }
 0x354   : > { %v9225_v59 = vpop.permute.xlu0 %2482  ;;  %2815 = vmatprep.subr.bf16.mxu0 %v2111_v41  ;;  %v7357_v41 = vld [vmem:[%s12495_s1 + $0x4c] ss:$12 sps:$4 sm:$0xff]  }
 0x355   : > { %2920 = vmatpush1.bf16.msra.mxu1 %v2052_v40  ;;  %v9233_v43 = vpop.permute.xlu1 %2478 }
 0x356   : > { %2921 = vmatprep.subr.bf16.mxu1 %v2171_v10 }
 0x357   : > { %2816 = vmatpush1.bf16.msra.mxu0 %v2110_v36 }
 0x358   : > { %v2109_v8 = vpop.permute.xlu0 %2108 }
 0x359   : > { %2922 = vmatpush1.bf16.msra.mxu1 %v2170_v51  ;;  %v2169_v14 = vpop.permute.xlu1 %2168  ;;  %v2113_v61 = vsel %vm748_vm7, %v9139_v3, %v2109_v8  ;;  %v7359_v51 = vld [vmem:[%s12495_s1 + $0x48] ss:$12 sps:$4 sm:$0xff]  }
 0x35a   : > { %2817 = vmatprep.subr.bf16.mxu0 %v2113_v61  ;;  %v2173_v35 = vsel %vm748_vm7, %v9137_v45, %v2169_v14  ;;  %v12855_v45 = vld [vmem:[#allocation30_spill] sm:$0xff] }
 0x35b   : > { %2818 = vmatpush1.bf16.msra.mxu0 %v2112_v62  ;;  %2923 = vmatprep.subr.bf16.mxu1 %v2173_v35 }
 0x35c   : > { %v9248_v11 = vpop.permute.xlu0 %2528  ;;  %2819 = vmatprep.subr.bf16.mxu0 %v12821_v29  ;;  %v2263_v29 = vsel %vm707_vm6, %v9105_v50, %v8972_v47 }
 0x35d   : > { %2924 = vmatpush1.bf16.msra.mxu1 %v2172_v54  ;;  %v2531_v52 = vpop.permute.xlu1 %2530 }
 0x35e   : > { %2925 = vmatprep.subr.bf16.mxu1 %v12831_v39  ;;  %v2539_v46 = vsel %vm1149_vm11, %v9248_v11, %v2531_v52 }
 0x35f   : > { %2820 = vmatpush1.bf16.msra.mxu0 %v12825_v21  ;;  %v2323_v21 = vsel %vm707_vm6, %v9103_v12, %v8966_v53 }
 0x360   : > { %v2527_v19 = vpop.permute.xlu0 %2526  ;;  %2821 = vmatprep.subr.bf16.mxu0 %v12794_v16 }
 0x361   : > { %2926 = vmatpush1.bf16.msra.mxu1 %v12832_v55  ;;  %v2487_v13 = vpop.permute.xlu1 %2486  ;;  %v2538_v20 = vsel %vm1149_vm11, %v2527_v19, %v9248_v11  ;;  %v12859_v11 = vmov 0  }
 0x362   : > { %2927 = vmatprep.subr.bf16.mxu1 %v12795_v31  ;;  %v2262_v31 = vsel %vm707_vm6, %v9047_v24, %v9105_v50  ;;  %v12854_v24 = vld [vmem:[#allocation29_spill] sm:$0xff] }
 0x363   : > { %2822 = vmatpush1.bf16.msra.mxu0 %v12793_v27 }
 0x364   : > { %v2489_v37 = vpop.permute.xlu0 %2488  ;;  %2823 = vmatprep.subr.bf16.mxu0 %v2263_v29 }
 0x365   : > { %2928 = vmatpush1.bf16.msra.mxu1 %v12792_v44  ;;  %v2259_v16 = vpop.permute.xlu1 %2258  ;;  %v2322_v44 = vsel %vm707_vm6, %v9057_v34, %v9103_v12  ;;  %v12856_v34 = vld [vmem:[#allocation27_spill] sm:$0xff]  ;;  %v12857_v12 = vld [vmem:[#allocation28_spill] sm:$0xff] }
 0x366   : > { %2929 = vmatprep.subr.bf16.mxu1 %v2323_v21  ;;  %v2265_v27 = vsel %vm707_vm6, %v2259_v16, %v8980_v18  ;;  %v2264_v55 = vsel %vm707_vm6, %v9147_v63, %v2259_v16  ;;  %v2383_v18 = vsel %vm577_vm5, %v12854_v24, %v8996_v56  ;;  %v2443_v1 = vsel %vm577_vm5, %v12857_v12, %v12856_v34  ;;  %v7361_v21 = vld [vmem:[%s12495_s1 + $0x50] ss:$12 sps:$4 sm:$0xff]  }
 0x367   : > { %2824 = vmatpush1.bf16.msra.mxu0 %v2262_v31  ;;  %v2382_v63 = vsel %vm577_vm5, %v12858_v6, %v12854_v24  ;;  %v2442_v56 = vsel %vm577_vm5, %v9164_v7, %v12857_v12 }
 0x368   : > { %v2319_v39 = vpop.permute.xlu0 %2318  ;;  %2825 = vmatprep.subr.bf16.mxu0 %v2265_v27 }
 0x369   : > { %2930 = vmatpush1.bf16.msra.mxu1 %v2322_v44  ;;  %v2485_v47 = vpop.permute.xlu1 %2484  ;;  %v2325_v53 = vsel %vm707_vm6, %v2319_v39, %v8976_v0  ;;  %v2324_v3 = vsel %vm707_vm6, %v12855_v45, %v2319_v39 }
 0x36a   : > { %2931 = vmatprep.subr.bf16.mxu1 %v2325_v53  ;;  %v2492_v38 = vsel %vm1149_vm11, %v2485_v47, %v2487_v13 }
 0x36b   : > { %2826 = vmatpush1.bf16.msra.mxu0 %v2264_v55 }
 0x36c   : > { %v2535_v50 = vpop.permute.xlu0 %2534  ;;  %2827 = vmatprep.subr.bf16.mxu0 %v2383_v18 }
 0x36d   : > { %2932 = vmatpush1.bf16.msra.mxu1 %v2324_v3  ;;  %v2379_v0 = vpop.permute.xlu1 %2378 }
 0x36e   : > { %2933 = vmatprep.subr.bf16.mxu1 %v2443_v1  ;;  %v2385_v49 = vsel %vm577_vm5, %v2379_v0, %v9181_v26  ;;  %v2384_v9 = vsel %vm577_vm5, %v9171_v30, %v2379_v0  ;;  %v2491_v26 = vsel %vm1149_vm11, %v9205_v23, %v9225_v59  ;;  %v2493_v30 = vsel %vm1149_vm11, %v2487_v13, %v2489_v37  ;;  %v7360_v13 = vld [vmem:[%s12495_s1 + $0x38] ss:$12 sps:$4 sm:$0xff]  }
 0x36f   : > { %2828 = vmatpush1.bf16.msra.mxu0 %v2382_v63  ;;  %v12860_v63 = vld [vmem:[#allocation13_spill] sm:$0xff] }
 0x370   : > { %v2439_v17 = vpop.permute.xlu0 %2438  ;;  %2829 = vmatprep.subr.bf16.mxu0 %v2385_v49 }
 0x371   : > { %2934 = vmatpush1.bf16.msra.mxu1 %v2442_v56  ;;  %v2537_v60 = vpop.permute.xlu1 %2536  ;;  %v2445_v5 = vsel %vm577_vm5, %v2439_v17, %v9187_v32  ;;  %v2444_v7 = vsel %vm577_vm5, %v9198_v15, %v2439_v17  ;;  %v2490_v32 = vsel %vm1149_vm11, %v9233_v43, %v9205_v23  ;;  %v7354_v23 = vld [vmem:[%s12495_s1 + $0x30] ss:$12 sps:$4 sm:$0xff]  }
 0x372   : > { %2935 = vmatprep.subr.bf16.mxu1 %v2445_v5  ;;  %v2541_v15 = vsel %vm1149_vm11, %v2535_v50, %v2537_v60  ;;  %v12861_v56 = vld [vmem:[#allocation15_spill] sm:$0xff] }
 0x373   : > { %2830 = vmatpush1.bf16.msra.mxu0 %v2384_v9 }
 0x374   : > { %v2533_v33 = vpop.permute.xlu0 %2532  ;;  %2831 = vmatprep.subr.bf16.mxu0 %v2491_v26 }
 0x375   : > { %2936 = vmatpush1.bf16.msra.mxu1 %v2444_v7  ;;  %v2589_v25 = vpop.permute.xlu1 %2588  ;;  %v2540_v4 = vsel %vm1149_vm11, %v2533_v33, %v2535_v50  ;;  %v12862_v33 = vld [vmem:[#allocation16_spill] sm:$0xff] }
 0x376   : > { %2937 = vmatprep.subr.bf16.mxu1 %v2539_v46 }
 0x377   : > { %2832 = vmatpush1.bf16.msra.mxu0 %v2490_v32 }
 0x378   : > { %v2591_v58 = vpop.permute.xlu0 %2590  ;;  %2833 = vmatprep.subr.bf16.mxu0 %v2493_v30 }
 0x379   : > { %2938 = vmatpush1.bf16.msra.mxu1 %v2538_v20  ;;  %v2587_v48 = vpop.permute.xlu1 %2586  ;;  %v2599_v28 = vsel %vm348_vm4, %v2589_v25, %v2591_v58 }
 0x37a   : > { %2939 = vmatprep.subr.bf16.mxu1 %v2541_v15  ;;  %v2598_v40 = vsel %vm348_vm4, %v2587_v48, %v2589_v25 }
 0x37b   : > { %2834 = vmatpush1.bf16.msra.mxu0 %v2492_v38 }
 0x37c   : > { %v2649_v2 = vpop.permute.xlu0 %2648  ;;  %2856 = vmatprep.subr.bf16.mxu0 %v2599_v28 }
 0x37d   : > { %2940 = vmatpush1.bf16.msra.mxu1 %v2540_v4  ;;  %v2651_v59 = vpop.permute.xlu1 %2650 }
 0x37e   : > { %2836 = vmatmul.mubr.bf16.vlgmr.msra.gmra.mrb[8].mxu0 %v7354_v23  ;;  %v2659_v10 = vsel %vm348_vm4, %v2649_v2, %v2651_v59 }
 0x37f   : > { %2857 = vmatpush1.bf16.msra.mxu0 %v2598_v40  ;;  %2962 = vmatprep.subr.bf16.mxu1 %v2659_v10 }
 0x380   : > { %v2647_v43 = vpop.permute.xlu0 %2646  ;;  %2942 = vmatmul.mubr.bf16.vlgmr.msra.gmra.mrb[8].mxu1 %v7354_v23  ;;  %2845 = vmatprep.mubr.bf16.mxu0 %v7357_v41 }
 0x381   : > { %v2658_v36 = vsel %vm348_vm4, %v2647_v43, %v2649_v2  ;;  %v2593_v8 = vpop.permute.xlu1 %2592  ;;  %2951 = vmatprep.mubr.bf16.mxu1 %v7357_v41 }
 0x382   : > { %2963 = vmatpush1.bf16.msra.mxu1 %v2658_v36 }
 0x384   : > { %v2597_v14 = vpop.permute.xlu0 %2596 }
 0x385   : > { %v2595_v61 = vpop.permute.xlu1 %2594 }
 0x386   : > { %2846 = vmatmul.mubr.bf16.gmra.mrb[12].mxu0 %v7359_v51  ;;  %v2601_v62 = vsel %vm348_vm4, %v2595_v61, %v2597_v14  ;;  %v2600_v35 = vsel %vm348_vm4, %v2593_v8, %v2595_v61 }
 0x387   : > { %2858 = vmatprep.subr.bf16.mxu0 %v2601_v62  ;;  %2888 = vmatprep.mubr.bf16.mxu0 %v12859_v11 }
 0x388   : > { %v2655_v54 = vpop.permute.xlu0 %2654  ;;  %2859 = vmatpush1.bf16.msra.mxu0 %v2600_v35  ;;  %2952 = vmatmul.mubr.bf16.gmra.mrb[12].mxu1 %v7359_v51 }
 0x389   : > { %v2657_v52 = vpop.permute.xlu1 %2656  ;;  %2994 = vmatprep.mubr.bf16.mxu1 %v12859_v11 }
 0x38a   : > { %v2661_v19 = vsel %vm348_vm4, %v2655_v54, %v2657_v52 }
 0x38b   : > { %2964 = vmatprep.subr.bf16.mxu1 %v2661_v19 }
 0x38c   : > { %v2653_v29 = vpop.permute.xlu0 %2652 }
 0x38d   : > { %v2660_v37 = vsel %vm348_vm4, %v2653_v29, %v2655_v54 }
 0x38e   : > { %7090 = vmatmul.mubr.msk.bf16.vlgmr.msra.gmra.mrb[8].mxu0 %vm1466_vm12, %v7360_v13  ;;  %2965 = vmatpush1.bf16.msra.mxu1 %v2660_v37 }
 0x38f   : > { %2898 = vmatprep.mubr.bf16.mxu0 %v12859_v11 }
 0x391   : > { %7092 = vmatmul.mubr.msk.bf16.vlgmr.msra.gmra.mrb[8].mxu1 %vm1466_vm12, %v7360_v13 }
 0x392   : > { %3004 = vmatprep.mubr.bf16.mxu1 %v12859_v11 }
 0x396   : > { %7091 = vmatmul.mubr.msk.bf16.gmra.mrb[12].mxu0 %vm1466_vm12, %v7361_v21 }
 0x399   : > { %7093 = vmatmul.mubr.msk.bf16.gmra.mrb[12].mxu1 %vm1466_vm12, %v7361_v21 }
 0x39a   : > { %v2750_v16 = vpop.permute.xlu1 %2749 }
 0x39d   : > { %v2755_v44 = vpop.permute.xlu0 %2754 }
 0x39e   : > { %v2760_v20 = vpop.permute.xlu1 %2759 }
 0x3a1   : > { %v2765_v40 = vpop.permute.xlu0 %2764 }
 0x461   : > { %v2890_v31 = vpop.f32.mrb[8].mxu0 }
 0x462   : > { %v7170_v27 = vadd.f32 %v2890_v31, %v2750_v16  ;;  %v2892_v39 = vpop.f32.mrb[9].mxu0 }
 0x463   : > { %v7171_v47 = vadd.f32 %v2892_v39, %v2750_v16  ;;  %v2894_v53 = vpop.f32.mrb[10].mxu0 }
 0x464   : > { %v9346_v55 = vmax.f32 %v7170_v27, 0.0  ;;  %v7172_v24 = vadd.f32 %v2894_v53, %v2755_v44  ;;  %v2896_v18 = vpop.f32.mrb[11].mxu0  ;;  %v2996_v50 = vpop.f32.mrb[8].mxu1 }
 0x465   : > { %v9348_v45 = vmax.f32 %v7171_v47, 0.0  ;;  %v7173_v3 = vadd.f32 %v2896_v18, %v2755_v44  ;;  %v7178_v34 = vadd.f32 %v2996_v50, %v2750_v16  ;;  %v2998_v12 = vpop.f32.mrb[9].mxu1 }
 0x466   : > { %v9350_v1 = vmax.f32 %v7172_v24, 0.0  ;;  %v7179_v0 = vadd.f32 %v2998_v12, %v2750_v16  ;;  %v3000_v6 = vpop.f32.mrb[10].mxu1  ;;  %v3069_v49 = vmul.f32 %v9346_v55, %v12860_v63  ;;  %v9356_v17 = vmul.f32 %v9346_v55, %v12861_v56 }
 0x467   : > { %v9358_v60 = vmax.f32 %v7173_v3, 0.0  ;;  %v9360_v5 = vmax.f32 %v7178_v34, 0.0  ;;  %v7180_v9 = vadd.f32 %v3000_v6, %v2755_v44  ;;  %v3002_v26 = vpop.f32.mrb[11].mxu1  ;;  %v9364_v7 = vmul.f32 %v9346_v55, %v12862_v33 }
 0x468   : > { %v9366_v46 = vmax.f32 %v7179_v0, 0.0  ;;  %v7181_v25 = vadd.f32 %v3002_v26, %v2755_v44  ;;  %v9370_v32 = vpack.c.bf16 %v9350_v1, %v9346_v55  ;;  %v3072_v30 = vmul.f32 %v9350_v1, %v12860_v63 }
 0x469   : > { %v9374_v58 = vmax.f32 %v7180_v9, 0.0  ;;  %v2900_v15 = vpop.f32.mrb[12].mxu0  ;;  %v9378_v48 = vpack.c.bf16 %v9358_v60, %v9348_v45  ;;  %v3129_v38 = vmul.f32 %v9360_v5, %v12860_v63  ;;  %v9384_v23 = vmul.f32 %v9350_v1, %v12861_v56 }
 0x46a   : > { %12863 = vst [vmem:[#allocation31_spill] sm:$0xff] %v9370_v32  ;;  %v9386_v28 = vmax.f32 %v7181_v25, 0.0  ;;  %v7174_v4 = vadd.f32 %v2900_v15, %v2760_v20  ;;  %v2902_v2 = vpop.f32.mrb[13].mxu0  ;;  %3202 = vrot.lane.b32.xlu1 %v9370_v32, %s7411_s30  ;;  %v3081_v41 = vpack.c.bf16 %v3072_v30, %v3069_v49  ;;  %v9392_v59 = vmul.f32 %v9360_v5, %v12861_v56  ;;  %v12867_v49 = vld [vmem:[#allocation8_spill] sm:$0xff] }
 0x46b   : > { %12864 = vst [vmem:[#allocation32_spill] sm:$0xff] %v9378_v48  ;;  %v7175_v10 = vadd.f32 %v2902_v2, %v2760_v20  ;;  %v2904_v43 = vpop.f32.mrb[14].mxu0  ;;  %v9396_v36 = vpack.c.bf16 %v9374_v58, %v9360_v5  ;;  %v3132_v8 = vmul.f32 %v9374_v58, %v12860_v63  ;;  %v3297_v51 = vpack.c.bf16 %v9384_v23, %v9356_v17 }
 0x46c   : > { %v9402_v14 = vmax.f32 %v7174_v4, 0.0  ;;  %v7176_v61 = vadd.f32 %v2904_v43, %v2765_v40  ;;  %v2906_v62 = vpop.f32.mrb[15].mxu0  ;;  %v3006_v35 = vpop.f32.mrb[12].mxu1  ;;  %v9406_v54 = vpack.c.bf16 %v9386_v28, %v9366_v46  ;;  %v3348_v52 = vmul.f32 %v9374_v58, %v12861_v56  ;;  %v12869_v4 = vld [vmem:[#allocation10_spill] sm:$0xff]  ;;  %v12870_v43 = vld [vmem:[#allocation11_spill] sm:$0xff] }
 0x46d   : > { %12865 = vst [vmem:[#allocation34_spill] sm:$0xff] %v9396_v36  ;;  %v9410_v19 = vmax.f32 %v7175_v10, 0.0  ;;  %v7177_v13 = vadd.f32 %v2906_v62, %v2765_v40  ;;  %v7182_v29 = vadd.f32 %v3006_v35, %v2760_v20  ;;  %v3008_v37 = vpop.f32.mrb[13].mxu1  ;;  %3250 = vrot.lane.b32.xlu0 %v9396_v36, %s7411_s30  ;;  %v3141_v21 = vpack.c.bf16 %v3132_v8, %v3129_v38 }
 0x46e   : > { %12866 = vst [vmem:[#allocation33_spill] sm:$0xff] %v9406_v54  ;;  %v9414_v16 = vmax.f32 %v7176_v61, 0.0  ;;  %v7183_v31 = vadd.f32 %v3008_v37, %v2760_v20  ;;  %v3010_v27 = vpop.f32.mrb[14].mxu1  ;;  %3252 = vrot.lane.b32.xlu1 %v9406_v54, %s7411_s30  ;;  %v3357_v39 = vpack.c.bf16 %v3348_v52, %v9392_v59  ;;  %v3408_v44 = vmul.f32 %v9350_v1, %v12862_v33  ;;  %v12868_v20 = vld [vmem:[#allocation18_spill] sm:$0xff]  ;;  %v12871_v37 = vld [vmem:[#allocation12_spill] sm:$0xff] }
 0x46f   : > { %v9421_v47 = vmax.f32 %v7177_v13, 0.0  ;;  %v9423_v53 = vmax.f32 %v7182_v29, 0.0  ;;  %v7184_v24 = vadd.f32 %v3010_v27, %v2765_v40  ;;  %v3012_v18 = vpop.f32.mrb[15].mxu1  ;;  %v3465_v50 = vmul.f32 %v9360_v5, %v12862_v33 }
 0x470   : > { %v9427_v3 = vmax.f32 %v7183_v31, 0.0  ;;  %v7185_v34 = vadd.f32 %v3012_v18, %v2765_v40  ;;  %v3417_v12 = vpack.c.bf16 %v3408_v44, %v9364_v7  ;;  %v3468_v0 = vmul.f32 %v9374_v58, %v12862_v33 }
 0x471   : > { %v9432_v6 = vmax.f32 %v7184_v24, 0.0  ;;  %3204 = vrot.lane.b32.xlu0 %v9378_v48, %s7411_s30  ;;  %v3556_v17 = vmul.f32 %v12867_v49, %v9346_v55  ;;  %v3559_v9 = vmul.f32 %v12867_v49, %v9350_v1  ;;  %v9442_v26 = vmul.f32 %v12867_v49, %v9360_v5  ;;  %v12872_v24 = vld [vmem:[#allocation17_spill] sm:$0xff] }
 0x472   : > { %v9444_v25 = vmax.f32 %v7185_v34, 0.0  ;;  %3094 = vrot.lane.b32.xlu1 %v3081_v41, %s7413_s6  ;;  %v3477_v7 = vpack.c.bf16 %v3468_v0, %v3465_v50  ;;  %v9449_v30 = vmul.f32 %v12867_v49, %v9374_v58  ;;  %v9453_v15 = vmul.f32 %v12868_v20, %v9346_v55 }
 0x473   : > { %v3568_v38 = vpack.c.bf16 %v3559_v9, %v3556_v17  ;;  %v9457_v23 = vmul.f32 %v12868_v20, %v9350_v1  ;;  %v9461_v2 = vmul.f32 %v12869_v4, %v9348_v45  ;;  %v9465_v41 = vmul.f32 %v12869_v4, %v9358_v60 }
 0x474   : > { %v3628_v59 = vpack.c.bf16 %v9449_v30, %v9442_v26  ;;  %v9471_v40 = vmul.f32 %v12869_v4, %v9366_v46  ;;  %v9475_v10 = vmul.f32 %v12869_v4, %v9386_v28  ;;  %v9479_v8 = vmul.f32 %v12870_v43, %v9348_v45  ;;  %v12873_v30 = vld [vmem:[#allocation19_spill] sm:$0xff] }
 0x475   : > { %3154 = vrot.lane.b32.xlu0 %v3141_v21, %s7413_s6  ;;  %v3688_v61 = vpack.c.bf16 %v9457_v23, %v9453_v15  ;;  %v9488_v35 = vmul.f32 %v12870_v43, %v9358_v60  ;;  %v9492_v52 = vmul.f32 %v12870_v43, %v9366_v46  ;;  %v9499_v29 = vmul.f32 %v12870_v43, %v9386_v28 }
 0x476   : > { %3310 = vrot.lane.b32.xlu1 %v3297_v51, %s7410_s29  ;;  %v9503_v21 = vmul.f32 %v12871_v37, %v9348_v45  ;;  %v9507_v31 = vmul.f32 %v12871_v37, %v9358_v60  ;;  %v9513_v51 = vmul.f32 %v12871_v37, %v9366_v46  ;;  %v9517_v44 = vmul.f32 %v12871_v37, %v9386_v28 }
 0x477   : > { %v9521_v18 = vmul.f32 %v9366_v46, %v12872_v24  ;;  %v9529_v0 = vmul.f32 %v9386_v28, %v12872_v24  ;;  %v9533_v17 = vmul.f32 %v9348_v45, %v12872_v24  ;;  %v9540_v26 = vmul.f32 %v9358_v60, %v12872_v24 }
 0x478   : > { %v9544_v15 = vmul.f32 %v9366_v46, %v12873_v30  ;;  %v9548_v23 = vmul.f32 %v9386_v28, %v12873_v30  ;;  %v9555_v9 = vmul.f32 %v9348_v45, %v12873_v30  ;;  %v9559_v34 = vmul.f32 %v9358_v60, %v12873_v30 }
 0x479   : > { %3370 = vrot.lane.b32.xlu0 %v3357_v39, %s7410_s29  ;;  %v9563_v50 = vpack.c.bf16 %v9432_v6, %v9423_v53  ;;  %v9571_v39 = vpack.c.bf16 %v9414_v16, %v9402_v14  ;;  %v9575_v13 = vpack.c.bf16 %v9421_v47, %v9410_v19  ;;  %v9581_v11 = vpack.c.bf16 %v9444_v25, %v9427_v3 }
 0x47a   : > { %3430 = vrot.lane.b32.xlu1 %v3417_v12, %s7409_s28  ;;  %v9585_v27 = vmul.f32 %v9423_v53, %v12860_v63  ;;  %v9589_v12 = vmul.f32 %v9432_v6, %v12860_v63  ;;  %v9594_v57 = vmul.f32 %v9402_v14, %v12860_v63  ;;  %v9598_v62 = vmul.f32 %v9414_v16, %v12860_v63 }
 0x47b   : > { %v9602_v22 = vmul.f32 %v9423_v53, %v12861_v56  ;;  %v9606_v36 = vmul.f32 %v9432_v6, %v12861_v56  ;;  %v9613_v54 = vmul.f32 %v9402_v14, %v12861_v56  ;;  %v9617_v63 = vmul.f32 %v9414_v16, %v12861_v56 }
 0x47c   : > { %12874 = vst [vmem:[#allocation36_spill] sm:$0xff] %v9585_v27  ;;  %v9621_v32 = vmul.f32 %v9423_v53, %v12862_v33  ;;  %v9633_v42 = vmul.f32 %v9402_v14, %v12862_v33  ;;  %v9639_v27 = vmul.f32 %v9414_v16, %v12862_v33  ;;  %v9643_v48 = vmul.f32 %v12867_v49, %v9423_v53 }
 0x47d   : > { %3490 = vrot.lane.b32.xlu0 %v3477_v7, %s7409_s28  ;;  %12875 = vst [vmem:[#allocation35_spill] sm:$0xff] %v9602_v22  ;;  %12876 = vst [vmem:[#allocation38_spill] sm:$0xff] %v9613_v54  ;;  %v9629_v7 = vmul.f32 %v9432_v6, %v12862_v33  ;;  %v9654_v56 = vmul.f32 %v12867_v49, %v9402_v14  ;;  %v9658_v33 = vmul.f32 %v12867_v49, %v9414_v16 }
 0x47e   : > { %3580 = vrot.lane.b32.xlu1 %v3568_v38, %s7407_s26  ;;  %12877 = vst [vmem:[#allocation37_spill] sm:$0xff] %v9621_v32  ;;  %12879 = vst [vmem:[#allocation39_spill] sm:$0xff] %v9633_v42  ;;  %v9647_v38 = vmul.f32 %v12867_v49, %v9432_v6  ;;  %v9662_v54 = vmul.f32 %v12869_v4, %v9410_v19  ;;  %v9671_v32 = vmul.f32 %v12869_v4, %v9421_v47 }
 0x47f   : > { %12878 = vst [vmem:[#allocation40_spill] sm:$0xff] %v9629_v7  ;;  %12880 = vst [vmem:[#allocation41_spill] sm:$0xff] %v9643_v48  ;;  %v9675_v49 = vmul.f32 %v12869_v4, %v9427_v3  ;;  %v9689_v22 = vmul.f32 %v12868_v20, %v9374_v58  ;;  %v9699_v7 = vmul.f32 %v12868_v20, %v9414_v16 }
 0x480   : > { %12881 = vst [vmem:[#allocation42_spill] sm:$0xff] %v9647_v38  ;;  %12882 = vst [vmem:[#allocation5_spill] sm:$0xff] %v9654_v56  ;;  %v9695_v38 = vmul.f32 %v12868_v20, %v9402_v14  ;;  %v12887_v56 = vpack.c.bf16 %v9465_v41, %v9461_v2  ;;  %v12889_v42 = vpack.c.bf16 %v9475_v10, %v9471_v40 }
 0x481   : > { %3640 = vrot.lane.b32.xlu0 %v3628_v59, %s7407_s26  ;;  %12883 = vst [vmem:[#allocation4_spill] sm:$0xff] %v9658_v33  ;;  %12884 = vst [vmem:[#allocation43_spill] sm:$0xff] %v9662_v54  ;;  %v9685_v59 = vmul.f32 %v12868_v20, %v9360_v5  ;;  %v9719_v33 = vmul.f32 %v12870_v43, %v9410_v19  ;;  %v9729_v2 = vmul.f32 %v12870_v43, %v9421_v47 }
 0x482   : > { %3700 = vrot.lane.b32.xlu1 %v3688_v61, %s7408_s27  ;;  %12885 = vst [vmem:[#allocation45_spill] sm:$0xff] %v9671_v32  ;;  %v9681_v61 = vmul.f32 %v12869_v4, %v9444_v25  ;;  %v9703_v4 = vmul.f32 %v12868_v20, %v9423_v53  ;;  %v9715_v32 = vmul.f32 %v12868_v20, %v9432_v6 }
 0x483   : > { %v9733_v41 = vmul.f32 %v12870_v43, %v9427_v3  ;;  %v9737_v54 = vmul.f32 %v12870_v43, %v9444_v25  ;;  %v9747_v40 = vmul.f32 %v12871_v37, %v9421_v47  ;;  %v9751_v10 = vmul.f32 %v12871_v37, %v9427_v3 }
 0x484   : > { %12886 = vst [vmem:[#allocation44_spill] sm:$0xff] %v9703_v4  ;;  %12888 = vst [vmem:[#allocation24_spill] sm:$0xff] %v9715_v32  ;;  %v9759_v48 = vmul.f32 %v12871_v37, %v9444_v25  ;;  %v9763_v20 = vmul.f32 %v9410_v19, %v12872_v24  ;;  %v12894_v4 = vpack.c.bf16 %v9488_v35, %v9479_v8 }
 0x485   : > { %3096 = vrot.lane.b32.xlu0 %v12887_v56, %s7413_s6  ;;  %12891 = vst [vmem:[#allocation29_spill] sm:$0xff] %v9751_v10  ;;  %v9773_v56 = vmul.f32 %v9421_v47, %v12872_v24  ;;  %v9777_v43 = vmul.f32 %v9427_v3, %v12872_v24  ;;  %v12895_v8 = vpack.c.bf16 %v9499_v29, %v9492_v52 }
 0x486   : > { %3156 = vrot.lane.b32.xlu1 %v12889_v42, %s7413_s6  ;;  %v9743_v42 = vmul.f32 %v12871_v37, %v9410_v19  ;;  %12892 = vst [vmem:[#allocation30_spill] sm:$0xff] %v9759_v48  ;;  %12893 = vst [vmem:[#allocation27_spill] sm:$0xff] %v9763_v20  ;;  %v9781_v37 = vmul.f32 %v9444_v25, %v12872_v24  ;;  %v9791_v35 = vmul.f32 %v9410_v19, %v12873_v30 }
 0x487   : > { %v9795_v32 = vmul.f32 %v9421_v47, %v12873_v30  ;;  %v9799_v24 = vmul.f32 %v9427_v3, %v12873_v30  ;;  %v9807_v29 = vmul.f32 %v9444_v25, %v12873_v30 }
 0x488   : > { %12890 = vst [vmem:[#allocation23_spill] sm:$0xff] %v9743_v42  ;;  %v12897_v42 = vld [vmem:[#allocation21_spill] sm:$0xff] }
 0x489   : > { %3312 = vrot.lane.b32.xlu0 %v12894_v4, %s7410_s29  ;;  %v9821_v20 = vmul.f32 %v12897_v42, %v9346_v55  ;;  %v9825_v52 = vmul.f32 %v12897_v42, %v9350_v1  ;;  %v3752_v10 = vpack.c.bf16 %v9807_v29, %v9799_v24  ;;  %v9843_v1 = vmul.f32 %v12897_v42, %v9360_v5  ;;  %v12949_v24 = vld [vmem:[#allocation25_spill] sm:$0xff] }
 0x48a   : > { %3372 = vrot.lane.b32.xlu1 %v12895_v8, %s7410_s29  ;;  %v12896_v8 = vld [vmem:[#allocation22_spill] sm:$0xff] }
 0x48b   : > { %v9811_v4 = vmul.f32 %v9348_v45, %v12896_v8  ;;  %v9817_v48 = vmul.f32 %v9358_v60, %v12896_v8  ;;  %v12898_v45 = vpack.c.bf16 %v9507_v31, %v9503_v21  ;;  %v9835_v60 = vmul.f32 %v9366_v46, %v12896_v8 }
 0x48c   : > { %v9839_v55 = vmul.f32 %v9386_v28, %v12896_v8  ;;  %v12899_v21 = vpack.c.bf16 %v9517_v44, %v9513_v51  ;;  %v9859_v28 = vmul.f32 %v12897_v42, %v9402_v14  ;;  %v9865_v51 = vmul.f32 %v12897_v42, %v9414_v16 }
 0x48d   : > { %3432 = vrot.lane.b32.xlu0 %v12898_v45, %s7409_s28  ;;  %v3905_v31 = vpack.c.bf16 %v9817_v48, %v9811_v4  ;;  %v9855_v45 = vmul.f32 %v12897_v42, %v9374_v58  ;;  %v9869_v44 = vmul.f32 %v9410_v19, %v12896_v8  ;;  %v9879_v14 = vmul.f32 %v9427_v3, %v12896_v8 }
 0x48e   : > { %3492 = vrot.lane.b32.xlu1 %v12899_v21, %s7409_s28  ;;  %v9873_v21 = vmul.f32 %v9421_v47, %v12896_v8  ;;  %v9883_v5 = vmul.f32 %v9444_v25, %v12896_v8  ;;  %v12900_v19 = vpack.c.bf16 %v9529_v0, %v9521_v18  ;;  %v9895_v58 = vmul.f32 %v12897_v42, %v9423_v53 }
 0x48f   : > { %v9899_v3 = vmul.f32 %v12897_v42, %v9432_v6  ;;  %v12901_v25 = vpack.c.bf16 %v9540_v26, %v9533_v17  ;;  %v12902_v53 = vpack.c.bf16 %v9548_v23, %v9544_v15  ;;  %v12903_v6 = vpack.c.bf16 %v9559_v34, %v9555_v9  ;;  %v9921_v17 = vpop.permute.xlu1 %3092  ;;  %v9927_v26 = vpop.permute.xlu0 %3152  ;;  %v12904_v34 = vld [vmem:[#allocation36_spill] sm:$0xff] }
 0x490   : > { %v12905_v9 = vpack.c.bf16 %v9589_v12, %v12904_v34  ;;  %v12906_v23 = vpack.c.bf16 %v9598_v62, %v9594_v57  ;;  %v12911_v34 = vld [vmem:[#allocation40_spill] sm:$0xff]  ;;  %v12914_v57 = vld [vmem:[#allocation39_spill] sm:$0xff]  ;;  %v12951_v48 = vpack.c.bf16 %v9839_v55, %v9835_v60  ;;  %v12955_v55 = vpack.c.bf16 %v9873_v21, %v9869_v44 }
 0x491   : > { %3642 = vrot.lane.b32.xlu0 %v12900_v19, %s7407_s26  ;;  %v12915_v62 = vpack.c.bf16 %v9639_v27, %v12914_v57  ;;  %v12923_v27 = vld [vmem:[#allocation43_spill] sm:$0xff]  ;;  %v12925_v57 = vpack.c.bf16 %v9681_v61, %v9675_v49 }
 0x492   : > { %3582 = vrot.lane.b32.xlu1 %v12901_v25, %s7407_s26  ;;  %v12907_v25 = vld [vmem:[#allocation35_spill] sm:$0xff] }
 0x493   : > { %v9933_v15 = vpop.permute.xlu1 %3098  ;;  %v9939_v19 = vpop.permute.xlu0 %3158 }
 0x495   : > { %3762 = vrot.lane.b32.xlu0 %v12902_v53, %s7408_s27  ;;  %v12908_v53 = vpack.c.bf16 %v9606_v36, %v12907_v25  ;;  %v12916_v36 = vld [vmem:[#allocation42_spill] sm:$0xff]  ;;  %v12917_v25 = vld [vmem:[#allocation41_spill] sm:$0xff] }
 0x496   : > { %3702 = vrot.lane.b32.xlu1 %v12903_v6, %s7408_s27  ;;  %v12909_v6 = vld [vmem:[#allocation38_spill] sm:$0xff] }
 0x497   : > { %v12910_v0 = vpack.c.bf16 %v9617_v63, %v12909_v6  ;;  %v9949_v12 = vpop.permute.xlu1 %3200  ;;  %v12920_v6 = vld [vmem:[#allocation5_spill] sm:$0xff] }
 0x499   : > { %3256 = vrot.lane.b32.xlu0 %v9563_v50, %s7411_s30 }
 0x49a   : > { %3208 = vrot.lane.b32.xlu1 %v9571_v39, %s7411_s30 }
 0x49b   : > { %v9965_v63 = vpop.permute.xlu1 %3206 }
 0x49d   : > { %3210 = vrot.lane.b32.xlu0 %v9575_v13, %s7411_s30 }
 0x49e   : > { %3258 = vrot.lane.b32.xlu1 %v9581_v11, %s7411_s30 }
 0x4a1   : > { %3160 = vrot.lane.b32.xlu0 %v12905_v9, %s7413_s6  ;;  %v12912_v9 = vld [vmem:[#allocation37_spill] sm:$0xff] }
 0x4a2   : > { %3100 = vrot.lane.b32.xlu1 %v12906_v23, %s7413_s6  ;;  %v12913_v18 = vpack.c.bf16 %v12911_v34, %v12912_v9  ;;  %v9959_v23 = vpop.permute.xlu0 %3248  ;;  %v12922_v34 = vld [vmem:[#allocation45_spill] sm:$0xff] }
 0x4a3   : > { %v12924_v9 = vpack.c.bf16 %v12922_v34, %v12923_v27  ;;  %v12934_v34 = vpack.c.bf16 %v9737_v54, %v9733_v41  ;;  %v12939_v54 = vld [vmem:[#allocation30_spill] sm:$0xff]  ;;  %v12940_v41 = vld [vmem:[#allocation29_spill] sm:$0xff] }
 0x4a5   : > { %3376 = vrot.lane.b32.xlu0 %v12908_v53, %s7410_s29  ;;  %v12918_v53 = vpack.c.bf16 %v12916_v36, %v12917_v25  ;;  %v12926_v36 = vpack.c.bf16 %v9689_v22, %v9685_v59  ;;  %v12929_v22 = vld [vmem:[#allocation24_spill] sm:$0xff] }
 0x4a6   : > { %3316 = vrot.lane.b32.xlu1 %v12910_v0, %s7410_s29  ;;  %v12919_v0 = vld [vmem:[#allocation4_spill] sm:$0xff] }
 0x4a7   : > { %v12921_v47 = vpack.c.bf16 %v12919_v0, %v12920_v6  ;;  %v12930_v59 = vld [vmem:[#allocation44_spill] sm:$0xff]  ;;  %v12933_v6 = vpack.c.bf16 %v9729_v2, %v9719_v33  ;;  %v12937_v33 = vld [vmem:[#allocation23_spill] sm:$0xff] }
 0x4a8   : > { %v12931_v61 = vpack.c.bf16 %v12929_v22, %v12930_v59  ;;  %v12938_v2 = vpack.c.bf16 %v9747_v40, %v12937_v33  ;;  %v12941_v22 = vpack.c.bf16 %v12939_v54, %v12940_v41 }
 0x4a9   : > { %3496 = vrot.lane.b32.xlu0 %v12913_v18, %s7409_s28  ;;  %v9971_v18 = vpop.permute.xlu0 %3254 }
 0x4aa   : > { %3436 = vrot.lane.b32.xlu1 %v12915_v62, %s7409_s28  ;;  %v9981_v62 = vpop.permute.xlu1 %3308 }
 0x4ad   : > { %3646 = vrot.lane.b32.xlu0 %v12918_v53, %s7407_s26  ;;  %v9991_v25 = vpop.permute.xlu0 %3368  ;;  %v12928_v53 = vld [vmem:[#allocation20_spill] sm:$0xff] }
 0x4ae   : > { %3586 = vrot.lane.b32.xlu1 %v12921_v47, %s7407_s26  ;;  %v12927_v47 = vpack.c.bf16 %v9699_v7, %v9695_v38  ;;  %v9995_v0 = vpop.permute.xlu1 %3314  ;;  %v12932_v7 = vld [vmem:[#allocation32_spill] sm:$0xff] }
 0x4b1   : > { %3102 = vrot.lane.b32.xlu0 %v12924_v9, %s7413_s6  ;;  %v9999_v49 = vpop.permute.xlu0 %3374  ;;  %v12935_v9 = vmov 0.0|0.0  }
 0x4b2   : > { %3162 = vrot.lane.b32.xlu1 %v12925_v57, %s7413_s6  ;;  %v10007_v38 = vpop.permute.xlu1 %3428 }
 0x4b5   : > { %3760 = vrot.lane.b32.xlu0 %v12926_v36, %s7408_s27  ;;  %v10017_v27 = vpop.permute.xlu0 %3488  ;;  %v12936_v36 = vld [vmem:[#allocation31_spill] sm:$0xff] }
 0x4b6   : > { %3706 = vrot.lane.b32.xlu1 %v12927_v47, %s7408_s27  ;;  %v10021_v57 = vpop.permute.xlu1 %3434 }
 0x4b9   : > { %3710 = vrot.lane.b32.xlu0 %v12928_v53, %s7408_s27  ;;  %v10025_v47 = vpop.permute.xlu0 %3494 }
 0x4ba   : > { %3770 = vrot.lane.b32.xlu1 %v12928_v53, %s7408_s27  ;;  %v10035_v59 = vpop.permute.xlu1 %3644 }
 0x4bd   : > { %3766 = vrot.lane.b32.xlu0 %v12931_v61, %s7408_s27  ;;  %v12942_v61 = vld [vmem:[#allocation33_spill] sm:$0xff] }
 0x4be   : > { %3810 = vrot.lane.b32.xlu1 %v12932_v7, %s7415_s7  ;;  %v10045_v40 = vpop.permute.xlu1 %3650 }
 0x4c1   : > { %3318 = vrot.lane.b32.xlu0 %v12933_v6, %s7410_s29  ;;  %v10041_v6 = vpop.permute.xlu0 %3584 }
 0x4c2   : > { %3378 = vrot.lane.b32.xlu1 %v12934_v34, %s7410_s29  ;;  %v12943_v34 = vld [vmem:[#allocation34_spill] sm:$0xff]  ;;  %v10057_v41 = vpop.permute.xlu1 %3764 }
 0x4c3   : > { %12946 = vst [vmem:[#allocation28_spill] sm:$0xff] %v10057_v41  ;;  %v12964_v41 = vld [vmem:[#allocation14_spill] sm:$0xff] }
 0x4c5   : > { %3812 = vrot.lane.b32.xlu0 %v12935_v9, %s7415_s7  ;;  %v10049_v33 = vpop.permute.xlu0 %3590 }
 0x4c6   : > { %3808 = vrot.lane.b32.xlu1 %v12936_v36, %s7415_s7 }
 0x4c9   : > { %3438 = vrot.lane.b32.xlu0 %v12938_v2, %s7409_s28  ;;  %v12944_v2 = vld [vmem:[#allocation27_spill] sm:$0xff]  ;;  %v10065_v16 = vpop.permute.xlu0 %3704 }
 0x4ca   : > { %3498 = vrot.lane.b32.xlu1 %v12941_v22, %s7409_s28  ;;  %v12945_v54 = vpack.c.bf16 %v9773_v56, %v12944_v2  ;;  %v12947_v22 = vpack.c.bf16 %v9781_v37, %v9777_v43  ;;  %v12948_v56 = vpack.c.bf16 %v9795_v32, %v9791_v35  ;;  %v7364_v43 = vld [vmem:[%s12495_s1 + $0x64] ss:$12 sps:$4 sm:$0xff]  }
 0x4cb   : > { %4165 = vmatprep.mubr.bf16.mxu0 %v7364_v43  ;;  %4271 = vmatprep.mubr.bf16.mxu1 %v7364_v43 }
 0x4cd   : > { %3858 = vrot.lane.b32.xlu0 %v12942_v61, %s7415_s7 }
 0x4ce   : > { %3860 = vrot.lane.b32.xlu1 %v12935_v9, %s7415_s7 }
 0x4d1   : > { %3856 = vrot.lane.b32.xlu0 %v12943_v34, %s7415_s7 }
 0x4d2   : > { %3816 = vrot.lane.b32.xlu1 %v9575_v13, %s7415_s7 }
 0x4d5   : > { %3818 = vrot.lane.b32.xlu0 %v12935_v9, %s7415_s7 }
 0x4d6   : > { %3588 = vrot.lane.b32.xlu1 %v12945_v54, %s7407_s26 }
 0x4d9   : > { %3648 = vrot.lane.b32.xlu0 %v12947_v22, %s7407_s26 }
 0x4da   : > { %3814 = vrot.lane.b32.xlu1 %v9571_v39, %s7415_s7 }
 0x4dc   : > { %v10067_v46 = vpop.permute.xlu1 %3202 }
 0x4dd   : > { %3864 = vrot.lane.b32.xlu0 %v9581_v11, %s7415_s7 }
 0x4de   : > { %3708 = vrot.lane.b32.xlu1 %v12948_v56, %s7408_s27 }
 0x4df   : > { %v10075_v2 = vpop.permute.xlu0 %3250 }
 0x4e0   : > { %v10077_v54 = vpop.permute.xlu1 %3252 }
 0x4e1   : > { %3768 = vrot.lane.b32.xlu0 %v3752_v10, %s7408_s27  ;;  %v12950_v10 = vpack.c.bf16 %v9825_v52, %v9821_v20  ;;  %v12952_v20 = vpack.c.bf16 %v9855_v45, %v9843_v1  ;;  %v12953_v52 = vpack.c.bf16 %v9865_v51, %v9859_v28  ;;  %v12956_v28 = vpack.c.bf16 %v9883_v5, %v9879_v14  ;;  %v7102_v5 = vld [vmem:[%s12496_s2 + $0x40] sm:$0xff] }
 0x4e2   : > { %3866 = vrot.lane.b32.xlu1 %v12935_v9, %s7415_s7 }
 0x4e3   : > { %v10088_v37 = vpop.permute.xlu0 %3204 }
 0x4e4   : > { %v3095_v32 = vpop.permute.xlu1 %3094 }
 0x4e5   : > { %3862 = vrot.lane.b32.xlu0 %v9563_v50, %s7415_s7  ;;  %v3104_v51 = vsel %vm389_vm9, %v9921_v17, %v3095_v32  ;;  %v12957_v17 = vpack.c.bf16 %v9899_v3, %v9895_v58  ;;  %v7105_v58 = vld [vmem:[%s12496_s2 + $0x58] sm:$0xff] }
 0x4e6   : > { %3918 = vrot.lane.b32.xlu1 %v3905_v31, %s7406_s25 }
 0x4e7   : > { %v3155_v35 = vpop.permute.xlu0 %3154 }
 0x4e8   : > { %v10096_v22 = vpop.permute.xlu1 %3310  ;;  %v3164_v21 = vsel %vm389_vm9, %v9927_v26, %v3155_v35  ;;  %v7104_v26 = vld [vmem:[%s12496_s2 + $0x50] sm:$0xff] }
 0x4e9   : > { %3920 = vrot.lane.b32.xlu0 %v12949_v24, %s7406_s25 }
 0x4ea   : > { %3916 = vrot.lane.b32.xlu1 %v12950_v10, %s7406_s25 }
 0x4eb   : > { %v10104_v29 = vpop.permute.xlu0 %3370 }
 0x4ec   : > { %v10106_v56 = vpop.permute.xlu1 %3430 }
 0x4ed   : > { %3978 = vrot.lane.b32.xlu0 %v12951_v48, %s7406_s25 }
 0x4ee   : > { %3980 = vrot.lane.b32.xlu1 %v12949_v24, %s7406_s25 }
 0x4ef   : > { %v10114_v4 = vpop.permute.xlu0 %3490 }
 0x4f0   : > { %v10116_v31 = vpop.permute.xlu1 %3580 }
 0x4f1   : > { %3976 = vrot.lane.b32.xlu0 %v12952_v20, %s7406_s25 }
 0x4f2   : > { %3922 = vrot.lane.b32.xlu1 %v12953_v52, %s7406_s25 }
 0x4f3   : > { %v10126_v43 = vpop.permute.xlu0 %3640 }
 0x4f4   : > { %v10128_v60 = vpop.permute.xlu1 %3700 }
 0x4f5   : > { %12954 = vst [vmem:[#allocation26_spill] sm:$0xff] %v10128_v60  ;;  %3926 = vrot.lane.b32.xlu0 %v12949_v24, %s7406_s25 }
 0x4f6   : > { %3924 = vrot.lane.b32.xlu1 %v12955_v55, %s7406_s25  ;;  %v12958_v55 = vld [vmem:[#allocation6_spill] sm:$0xff] }
 0x4f7   : > { %v3097_v10 = vpop.permute.xlu0 %3096 }
 0x4f8   : > { %v3157_v1 = vpop.permute.xlu1 %3156  ;;  %v3105_v45 = vsel %vm389_vm9, %v3095_v32, %v3097_v10  ;;  %v7103_v32 = vld [vmem:[%s12496_s2 + $0x48] sm:$0xff] }
 0x4f9   : > { %3984 = vrot.lane.b32.xlu0 %v12956_v28, %s7406_s25  ;;  %4133 = vmatprep.subr.bf16.mxu0 %v3105_v45  ;;  %v3165_v48 = vsel %vm389_vm9, %v3155_v35, %v3157_v1 }
 0x4fa   : > { %3986 = vrot.lane.b32.xlu1 %v12949_v24, %s7406_s25  ;;  %4134 = vmatpush1.bf16.msra.mxu0 %v3104_v51  ;;  %v12962_v24 = vld [vmem:[#allocation9_spill] sm:$0xff] }
 0x4fb   : > { %4239 = vmatprep.subr.bf16.mxu1 %v3165_v48  ;;  %v10146_v44 = vpop.permute.xlu0 %3312 }
 0x4fc   : > { %4240 = vmatpush1.bf16.msra.mxu1 %v3164_v21  ;;  %v10153_v14 = vpop.permute.xlu1 %3372 }
 0x4fd   : > { %3982 = vrot.lane.b32.xlu0 %v12957_v17, %s7406_s25  ;;  %v12961_v17 = vld [vmem:[#allocation7_spill] sm:$0xff] }
 0x4fe   : > { %4079 = vperm.xlu1 %7345, %v7102_v5  }
 0x4ff   : > { %v10162_v20 = vpop.permute.xlu0 %3432 }
 0x500   : > { %v10167_v35 = vpop.permute.xlu1 %3492 }
 0x501   : > { %4084 = vperm.xlu0 %7344, %v7103_v32  }
 0x502   : > { %4089 = vperm.xlu1 %7345, %v7104_v26  }
 0x503   : > { %v10172_v3 = vpop.permute.xlu0 %3642 }
 0x504   : > { %v10174_v52 = vpop.permute.xlu1 %3582 }
 0x505   : > { %4094 = vperm.xlu0 %7344, %v7105_v58  }
 0x506   : > { %4422 = vrot.lane.b32.xlu1 %v12958_v55, %s7413_s6 }
 0x507   : > { %v10178_v10 = vpop.permute.xlu0 %3762 }
 0x508   : > { %12959 = vst [vmem:[#allocation36_spill] sm:$0xff] %v10178_v10  ;;  %v10180_v1 = vpop.permute.xlu1 %3702 }
 0x509   : > { %12960 = vst [vmem:[#allocation35_spill] sm:$0xff] %v10180_v1  ;;  %4482 = vrot.lane.b32.xlu0 %v12958_v55, %s7413_s6 }
 0x50a   : > { %4428 = vrot.lane.b32.xlu1 %v12958_v55, %s7413_s6 }
 0x50b   : > { %v3257_v45 = vpop.permute.xlu0 %3256 }
 0x50c   : > { %v3209_v28 = vpop.permute.xlu1 %3208 }
 0x50d   : > { %4488 = vrot.lane.b32.xlu0 %v12958_v55, %s7413_s6 }
 0x50e   : > { %4530 = vrot.lane.b32.xlu1 %v12935_v9, %s7411_s30 }
 0x50f   : > { %v3211_v51 = vpop.permute.xlu0 %3210 }
 0x510   : > { %v3259_v48 = vpop.permute.xlu1 %3258 }
 0x511   : > { %4578 = vrot.lane.b32.xlu0 %v12935_v9, %s7411_s30 }
 0x512   : > { %4536 = vrot.lane.b32.xlu1 %v12935_v9, %s7411_s30 }
 0x513   : > { %v3161_v21 = vpop.permute.xlu0 %3160 }
 0x514   : > { %v3101_v5 = vpop.permute.xlu1 %3100 }
 0x515   : > { %4584 = vrot.lane.b32.xlu0 %v12935_v9, %s7411_s30 }
 0x516   : > { %4638 = vrot.lane.b32.xlu1 %v12961_v17, %s7410_s29 }
 0x517   : > { %v10198_v32 = vpop.permute.xlu0 %3376 }
 0x518   : > { %v10200_v26 = vpop.permute.xlu1 %3316 }
 0x519   : > { %4698 = vrot.lane.b32.xlu0 %v12961_v17, %s7410_s29 }
 0x51a   : > { %4644 = vrot.lane.b32.xlu1 %v12961_v17, %s7410_s29 }
 0x51b   : > { %v10206_v58 = vpop.permute.xlu0 %3496 }
 0x51c   : > { %v10208_v55 = vpop.permute.xlu1 %3436 }
 0x51d   : > { %4704 = vrot.lane.b32.xlu0 %v12961_v17, %s7410_s29  ;;  %v3106_v17 = vsel %vm389_vm9, %v9933_v15, %v3101_v5 }
 0x51e   : > { %4758 = vrot.lane.b32.xlu1 %v12962_v24, %s7409_s28 }
 0x51f   : > { %v10214_v9 = vpop.permute.xlu0 %3646 }
 0x520   : > { %12963 = vst [vmem:[#allocation38_spill] sm:$0xff] %v10214_v9  ;;  %v10216_v42 = vpop.permute.xlu1 %3586  ;;  %v3213_v9 = vsel %vm498_vm10, %v10067_v46, %v10088_v37  ;;  %v3212_v37 = vsel %vm498_vm10, %v9949_v12, %v10067_v46  ;;  %v3214_v46 = vsel %vm498_vm10, %v9965_v63, %v3209_v28  ;;  %v3321_v12 = vsel %vm618_vm8, %v10096_v22, %v10146_v44 }
 0x521   : > { %4818 = vrot.lane.b32.xlu0 %v12962_v24, %s7409_s28  ;;  %v3320_v44 = vsel %vm618_vm8, %v9981_v62, %v10096_v22  ;;  %v3441_v62 = vsel %vm748_vm7, %v10106_v56, %v10162_v20  ;;  %v3382_v22 = vsel %vm618_vm8, %v9999_v49, %v10198_v32 }
 0x522   : > { %4764 = vrot.lane.b32.xlu1 %v12962_v24, %s7409_s28 }
 0x523   : > { %v3103_v8 = vpop.permute.xlu0 %3102 }
 0x524   : > { %v3163_v30 = vpop.permute.xlu1 %3162  ;;  %v3107_v60 = vsel %vm389_vm9, %v3101_v5, %v3103_v8  ;;  %v3166_v8 = vsel %vm389_vm9, %v9939_v19, %v3161_v21  ;;  %v3215_v19 = vsel %vm498_vm10, %v3209_v28, %v3211_v51  ;;  %v3381_v51 = vsel %vm618_vm8, %v10104_v29, %v10153_v14 }
 0x525   : > { %4824 = vrot.lane.b32.xlu0 %v12962_v24, %s7409_s28  ;;  %4135 = vmatprep.subr.bf16.mxu0 %v3107_v60  ;;  %v3167_v10 = vsel %vm389_vm9, %v3161_v21, %v3163_v30  ;;  %v3261_v30 = vsel %vm498_vm10, %v10075_v2, %v10077_v54  ;;  %v3260_v54 = vsel %vm498_vm10, %v9959_v23, %v10075_v2 }
 0x526   : > { %4974 = vrot.lane.b32.xlu1 %v12964_v41, %s7407_s26  ;;  %4136 = vmatpush1.bf16.msra.mxu0 %v3106_v17  ;;  %v3263_v60 = vsel %vm498_vm10, %v3257_v45, %v3259_v48  ;;  %v3262_v2 = vsel %vm498_vm10, %v9971_v18, %v3257_v45  ;;  %v3380_v18 = vsel %vm618_vm8, %v9991_v25, %v10104_v29 }
 0x527   : > { %4241 = vmatprep.subr.bf16.mxu1 %v3167_v10  ;;  %v10233_v1 = vpop.permute.xlu0 %3760  ;;  %4137 = vmatprep.subr.bf16.mxu0 %v3213_v9  ;;  %v3322_v48 = vsel %vm618_vm8, %v9995_v0, %v10200_v26  ;;  %v3501_v0 = vsel %vm748_vm7, %v10114_v4, %v10167_v35  ;;  %v3440_v5 = vsel %vm748_vm7, %v10007_v38, %v10106_v56 }
 0x528   : > { %4242 = vmatpush1.bf16.msra.mxu1 %v3166_v8  ;;  %v10240_v15 = vpop.permute.xlu1 %3706  ;;  %v3500_v17 = vsel %vm748_vm7, %v10017_v27, %v10114_v4  ;;  %v3442_v35 = vsel %vm748_vm7, %v10021_v57, %v10208_v55  ;;  %v3502_v27 = vsel %vm748_vm7, %v10025_v47, %v10206_v58 }
 0x529   : > { %4243 = vmatprep.subr.bf16.mxu1 %v3261_v30  ;;  %4914 = vrot.lane.b32.xlu0 %v12964_v41, %s7407_s26  ;;  %v12969_v30 = vld [vmem:[#allocation26_spill] sm:$0xff] }
 0x52a   : > { %4980 = vrot.lane.b32.xlu1 %v12964_v41, %s7407_s26  ;;  %4138 = vmatpush1.bf16.msra.mxu0 %v3212_v37 }
 0x52b   : > { %v10250_v9 = vpop.permute.xlu0 %3710  ;;  %4139 = vmatprep.subr.bf16.mxu0 %v3215_v19 }
 0x52c   : > { %4244 = vmatpush1.bf16.msra.mxu1 %v3260_v54  ;;  %v10256_v10 = vpop.permute.xlu1 %3770 }
 0x52d   : > { %4245 = vmatprep.subr.bf16.mxu1 %v3263_v60  ;;  %4920 = vrot.lane.b32.xlu0 %v12964_v41, %s7407_s26 }
 0x52e   : > { %5094 = vrot.lane.b32.xlu1 %v12928_v53, %s7408_s27  ;;  %4140 = vmatpush1.bf16.msra.mxu0 %v3214_v46 }
 0x52f   : > { %v10267_v23 = vpop.permute.xlu0 %3766  ;;  %4141 = vmatprep.subr.bf16.mxu0 %v3321_v12 }
 0x530   : > { %4246 = vmatpush1.bf16.msra.mxu1 %v3262_v2  ;;  %v10274_v63 = vpop.permute.xlu1 %3810 }
 0x531   : > { %4247 = vmatprep.subr.bf16.mxu1 %v3381_v51  ;;  %5034 = vrot.lane.b32.xlu0 %v12928_v53, %s7408_s27 }
 0x532   : > { %4142 = vmatpush1.bf16.msra.mxu0 %v3320_v44 }
 0x533   : > { %v3319_v28 = vpop.permute.xlu0 %3318 }
 0x534   : > { %4248 = vmatpush1.bf16.msra.mxu1 %v3380_v18  ;;  %v3379_v45 = vpop.permute.xlu1 %3378  ;;  %v3323_v14 = vsel %vm618_vm8, %v10200_v26, %v3319_v28 }
 0x535   : > { %4143 = vmatprep.subr.bf16.mxu0 %v3323_v14  ;;  %v3383_v21 = vsel %vm618_vm8, %v10198_v32, %v3379_v45 }
 0x536   : > { %4144 = vmatpush1.bf16.msra.mxu0 %v3322_v48  ;;  %4249 = vmatprep.subr.bf16.mxu1 %v3383_v21 }
 0x537   : > { %v10294_v25 = vpop.permute.xlu0 %3812  ;;  %4145 = vmatprep.subr.bf16.mxu0 %v3441_v62  ;;  %v7365_v62 = vld [vmem:[%s12495_s1 + $0x7c] ss:$12 sps:$4 sm:$0xff]  }
 0x538   : > { %4250 = vmatpush1.bf16.msra.mxu1 %v3382_v22  ;;  %v10302_v29 = vpop.permute.xlu1 %3808 }
 0x539   : > { %4251 = vmatprep.subr.bf16.mxu1 %v3501_v0 }
 0x53a   : > { %4146 = vmatpush1.bf16.msra.mxu0 %v3440_v5 }
 0x53b   : > { %v3439_v20 = vpop.permute.xlu0 %3438 }
 0x53c   : > { %4252 = vmatpush1.bf16.msra.mxu1 %v3500_v17  ;;  %v3499_v49 = vpop.permute.xlu1 %3498  ;;  %v3443_v32 = vsel %vm748_vm7, %v10208_v55, %v3439_v20  ;;  %v12966_v55 = vld [vmem:[#allocation38_spill] sm:$0xff]  ;;  %v7367_v17 = vld [vmem:[%s12495_s1 + $0x78] ss:$12 sps:$4 sm:$0xff]  }
 0x53d   : > { %4147 = vmatprep.subr.bf16.mxu0 %v3443_v32  ;;  %v3503_v26 = vsel %vm748_vm7, %v10206_v58, %v3499_v49 }
 0x53e   : > { %4148 = vmatpush1.bf16.msra.mxu0 %v3442_v35  ;;  %4253 = vmatprep.subr.bf16.mxu1 %v3503_v26 }
 0x53f   : > { %v10317_v38 = vpop.permute.xlu0 %3858  ;;  %4149 = vmatprep.subr.bf16.mxu0 %v12932_v7  ;;  %v3593_v7 = vsel %vm707_vm6, %v10174_v52, %v10041_v6 }
 0x540   : > { %4254 = vmatpush1.bf16.msra.mxu1 %v3502_v27  ;;  %v3861_v56 = vpop.permute.xlu1 %3860 }
 0x541   : > { %4255 = vmatprep.subr.bf16.mxu1 %v12942_v61  ;;  %v3869_v2 = vsel %vm1149_vm11, %v10317_v38, %v3861_v56 }
 0x542   : > { %4150 = vmatpush1.bf16.msra.mxu0 %v12936_v36  ;;  %v3653_v36 = vsel %vm707_vm6, %v10172_v3, %v10035_v59 }
 0x543   : > { %v3857_v57 = vpop.permute.xlu0 %3856  ;;  %4151 = vmatprep.subr.bf16.mxu0 %v9575_v13 }
 0x544   : > { %4256 = vmatpush1.bf16.msra.mxu1 %v12943_v34  ;;  %v3817_v4 = vpop.permute.xlu1 %3816  ;;  %v3868_v44 = vsel %vm1149_vm11, %v3857_v57, %v10317_v38  ;;  %v12970_v38 = vmov 0  }
 0x545   : > { %4257 = vmatprep.subr.bf16.mxu1 %v9581_v11  ;;  %v3592_v11 = vsel %vm707_vm6, %v10116_v31, %v10174_v52  ;;  %v12965_v31 = vld [vmem:[#allocation35_spill] sm:$0xff] }
 0x546   : > { %4152 = vmatpush1.bf16.msra.mxu0 %v9571_v39 }
 0x547   : > { %v3819_v47 = vpop.permute.xlu0 %3818  ;;  %4153 = vmatprep.subr.bf16.mxu0 %v3593_v7 }
 0x548   : > { %4258 = vmatpush1.bf16.msra.mxu1 %v9563_v50  ;;  %v3589_v13 = vpop.permute.xlu1 %3588  ;;  %v3652_v50 = vsel %vm707_vm6, %v10126_v43, %v10172_v3  ;;  %v12967_v43 = vld [vmem:[#allocation28_spill] sm:$0xff] }
 0x549   : > { %4259 = vmatprep.subr.bf16.mxu1 %v3653_v36  ;;  %v3595_v39 = vsel %vm707_vm6, %v3589_v13, %v10049_v33  ;;  %v3594_v34 = vsel %vm707_vm6, %v10216_v42, %v3589_v13  ;;  %v3713_v33 = vsel %vm577_vm5, %v12965_v31, %v10065_v16  ;;  %v12968_v3 = vld [vmem:[#allocation36_spill] sm:$0xff]  ;;  %v3712_v42 = vsel %vm577_vm5, %v12969_v30, %v12965_v31 }
 0x54a   : > { %4154 = vmatpush1.bf16.msra.mxu0 %v3592_v11  ;;  %v3773_v8 = vsel %vm577_vm5, %v12968_v3, %v12967_v43  ;;  %v3772_v16 = vsel %vm577_vm5, %v10233_v1, %v12968_v3  ;;  %v7369_v36 = vld [vmem:[%s12495_s1 + $0x80] ss:$12 sps:$4 sm:$0xff]  }
 0x54b   : > { %v3649_v61 = vpop.permute.xlu0 %3648  ;;  %4155 = vmatprep.subr.bf16.mxu0 %v3595_v39 }
 0x54c   : > { %4260 = vmatpush1.bf16.msra.mxu1 %v3652_v50  ;;  %v3815_v6 = vpop.permute.xlu1 %3814  ;;  %v3655_v59 = vsel %vm707_vm6, %v3649_v61, %v10045_v40  ;;  %v3654_v58 = vsel %vm707_vm6, %v12966_v55, %v3649_v61 }
 0x54d   : > { %4261 = vmatprep.subr.bf16.mxu1 %v3655_v59  ;;  %v3822_v45 = vsel %vm1149_vm11, %v3815_v6, %v3817_v4 }
 0x54e   : > { %4156 = vmatpush1.bf16.msra.mxu0 %v3594_v34 }
 0x54f   : > { %v3865_v52 = vpop.permute.xlu0 %3864  ;;  %4157 = vmatprep.subr.bf16.mxu0 %v3713_v33 }
 0x550   : > { %4262 = vmatpush1.bf16.msra.mxu1 %v3654_v58  ;;  %v3709_v40 = vpop.permute.xlu1 %3708 }
 0x551   : > { %4263 = vmatprep.subr.bf16.mxu1 %v3773_v8  ;;  %v3715_v37 = vsel %vm577_vm5, %v3709_v40, %v10250_v9  ;;  %v3714_v46 = vsel %vm577_vm5, %v10240_v15, %v3709_v40  ;;  %v3821_v9 = vsel %vm1149_vm11, %v10274_v63, %v10294_v25  ;;  %v3823_v15 = vsel %vm1149_vm11, %v3817_v4, %v3819_v47  ;;  %v7368_v4 = vld [vmem:[%s12495_s1 + $0x68] ss:$12 sps:$4 sm:$0xff]  }
 0x552   : > { %4158 = vmatpush1.bf16.msra.mxu0 %v3712_v42  ;;  %v12971_v42 = vld [vmem:[#allocation13_spill] sm:$0xff] }
 0x553   : > { %v3769_v19 = vpop.permute.xlu0 %3768  ;;  %4159 = vmatprep.subr.bf16.mxu0 %v3715_v37 }
 0x554   : > { %4264 = vmatpush1.bf16.msra.mxu1 %v3772_v16  ;;  %v3867_v54 = vpop.permute.xlu1 %3866  ;;  %v3775_v60 = vsel %vm577_vm5, %v3769_v19, %v10256_v10  ;;  %v3774_v1 = vsel %vm577_vm5, %v10267_v23, %v3769_v19  ;;  %v3820_v10 = vsel %vm1149_vm11, %v10302_v29, %v10274_v63  ;;  %v7362_v63 = vld [vmem:[%s12495_s1 + $0x60] ss:$12 sps:$4 sm:$0xff]   ;;  %v12972_v16 = vld [vmem:[#allocation15_spill] sm:$0xff] }
 0x555   : > { %4265 = vmatprep.subr.bf16.mxu1 %v3775_v60  ;;  %v3871_v23 = vsel %vm1149_vm11, %v3865_v52, %v3867_v54 }
 0x556   : > { %4160 = vmatpush1.bf16.msra.mxu0 %v3714_v46 }
 0x557   : > { %v3863_v12 = vpop.permute.xlu0 %3862  ;;  %4161 = vmatprep.subr.bf16.mxu0 %v3821_v9 }
 0x558   : > { %4266 = vmatpush1.bf16.msra.mxu1 %v3774_v1  ;;  %v3919_v51 = vpop.permute.xlu1 %3918  ;;  %v3870_v48 = vsel %vm1149_vm11, %v3863_v12, %v3865_v52  ;;  %v12973_v12 = vld [vmem:[#allocation16_spill] sm:$0xff] }
 0x559   : > { %4267 = vmatprep.subr.bf16.mxu1 %v3869_v2 }
 0x55a   : > { %4162 = vmatpush1.bf16.msra.mxu0 %v3820_v10 }
 0x55b   : > { %v3921_v28 = vpop.permute.xlu0 %3920  ;;  %4163 = vmatprep.subr.bf16.mxu0 %v3823_v15 }
 0x55c   : > { %4268 = vmatpush1.bf16.msra.mxu1 %v3868_v44  ;;  %v3917_v18 = vpop.permute.xlu1 %3916  ;;  %v3929_v14 = vsel %vm348_vm4, %v3919_v51, %v3921_v28 }
 0x55d   : > { %4269 = vmatprep.subr.bf16.mxu1 %v3871_v23  ;;  %v3928_v22 = vsel %vm348_vm4, %v3917_v18, %v3919_v51 }
 0x55e   : > { %4164 = vmatpush1.bf16.msra.mxu0 %v3822_v45 }
 0x55f   : > { %v3979_v21 = vpop.permute.xlu0 %3978  ;;  %4186 = vmatprep.subr.bf16.mxu0 %v3929_v14 }
 0x560   : > { %4270 = vmatpush1.bf16.msra.mxu1 %v3870_v48  ;;  %v3981_v25 = vpop.permute.xlu1 %3980 }
 0x561   : > { %4166 = vmatmul.mubr.bf16.vlgmr.msra.gmra.mrb[16].mxu0 %v7362_v63  ;;  %v3989_v0 = vsel %vm348_vm4, %v3979_v21, %v3981_v25 }
 0x562   : > { %4187 = vmatpush1.bf16.msra.mxu0 %v3928_v22  ;;  %4292 = vmatprep.subr.bf16.mxu1 %v3989_v0 }
 0x563   : > { %v3977_v29 = vpop.permute.xlu0 %3976  ;;  %4272 = vmatmul.mubr.bf16.vlgmr.msra.gmra.mrb[16].mxu1 %v7362_v63  ;;  %4175 = vmatprep.mubr.bf16.mxu0 %v7365_v62 }
 0x564   : > { %v3988_v5 = vsel %vm348_vm4, %v3977_v29, %v3979_v21  ;;  %v3923_v20 = vpop.permute.xlu1 %3922  ;;  %4281 = vmatprep.mubr.bf16.mxu1 %v7365_v62 }
 0x565   : > { %4293 = vmatpush1.bf16.msra.mxu1 %v3988_v5 }
 0x567   : > { %v3927_v49 = vpop.permute.xlu0 %3926 }
 0x568   : > { %v3925_v32 = vpop.permute.xlu1 %3924 }
 0x569   : > { %4176 = vmatmul.mubr.bf16.gmra.mrb[20].mxu0 %v7367_v17  ;;  %v3931_v35 = vsel %vm348_vm4, %v3925_v32, %v3927_v49  ;;  %v3930_v26 = vsel %vm348_vm4, %v3923_v20, %v3925_v32 }
 0x56a   : > { %4188 = vmatprep.subr.bf16.mxu0 %v3931_v35  ;;  %4218 = vmatprep.mubr.bf16.mxu0 %v12970_v38 }
 0x56b   : > { %v3985_v27 = vpop.permute.xlu0 %3984  ;;  %4189 = vmatpush1.bf16.msra.mxu0 %v3930_v26  ;;  %4282 = vmatmul.mubr.bf16.gmra.mrb[20].mxu1 %v7367_v17 }
 0x56c   : > { %v3987_v56 = vpop.permute.xlu1 %3986  ;;  %4324 = vmatprep.mubr.bf16.mxu1 %v12970_v38 }
 0x56d   : > { %v3991_v57 = vsel %vm348_vm4, %v3985_v27, %v3987_v56 }
 0x56e   : > { %4294 = vmatprep.subr.bf16.mxu1 %v3991_v57 }
 0x56f   : > { %v3983_v7 = vpop.permute.xlu0 %3982 }
 0x570   : > { %v3990_v47 = vsel %vm348_vm4, %v3983_v7, %v3985_v27 }
 0x571   : > { %7112 = vmatmul.mubr.msk.bf16.vlgmr.msra.gmra.mrb[16].mxu0 %vm1466_vm12, %v7368_v4  ;;  %4295 = vmatpush1.bf16.msra.mxu1 %v3990_v47 }
 0x572   : > { %4228 = vmatprep.mubr.bf16.mxu0 %v12970_v38 }
 0x574   : > { %7114 = vmatmul.mubr.msk.bf16.vlgmr.msra.gmra.mrb[16].mxu1 %vm1466_vm12, %v7368_v4 }
 0x575   : > { %4334 = vmatprep.mubr.bf16.mxu1 %v12970_v38 }
 0x579   : > { %7113 = vmatmul.mubr.msk.bf16.gmra.mrb[20].mxu0 %vm1466_vm12, %v7369_v36 }
 0x57c   : > { %7115 = vmatmul.mubr.msk.bf16.gmra.mrb[20].mxu1 %vm1466_vm12, %v7369_v36 }
 0x57d   : > { %v4080_v13 = vpop.permute.xlu1 %4079 }
 0x580   : > { %v4085_v50 = vpop.permute.xlu0 %4084 }
 0x581   : > { %v4090_v44 = vpop.permute.xlu1 %4089 }
 0x584   : > { %v4095_v22 = vpop.permute.xlu0 %4094 }
 0x644   : > { %v4220_v11 = vpop.f32.mrb[16].mxu0 }
 0x645   : > { %v7186_v39 = vadd.f32 %v4220_v11, %v4080_v13  ;;  %v4222_v61 = vpop.f32.mrb[17].mxu0 }
 0x646   : > { %v7187_v6 = vadd.f32 %v4222_v61, %v4080_v13  ;;  %v4224_v59 = vpop.f32.mrb[18].mxu0 }
 0x647   : > { %v10415_v34 = vmax.f32 %v7186_v39, 0.0  ;;  %v7188_v31 = vadd.f32 %v4224_v59, %v4085_v50  ;;  %v4226_v33 = vpop.f32.mrb[19].mxu0  ;;  %v4326_v52 = vpop.f32.mrb[16].mxu1 }
 0x648   : > { %v10417_v55 = vmax.f32 %v7187_v6, 0.0  ;;  %v7189_v58 = vadd.f32 %v4226_v33, %v4085_v50  ;;  %v7194_v43 = vadd.f32 %v4326_v52, %v4080_v13  ;;  %v4328_v3 = vpop.f32.mrb[17].mxu1 }
 0x649   : > { %v10419_v8 = vmax.f32 %v7188_v31, 0.0  ;;  %v7195_v40 = vadd.f32 %v4328_v3, %v4080_v13  ;;  %v4330_v30 = vpop.f32.mrb[18].mxu1  ;;  %v4399_v37 = vmul.f32 %v10415_v34, %v12971_v42  ;;  %v10425_v19 = vmul.f32 %v10415_v34, %v12972_v16 }
 0x64a   : > { %v10427_v54 = vmax.f32 %v7189_v58, 0.0  ;;  %v10429_v60 = vmax.f32 %v7194_v43, 0.0  ;;  %v7196_v46 = vadd.f32 %v4330_v30, %v4085_v50  ;;  %v4332_v9 = vpop.f32.mrb[19].mxu1  ;;  %v10433_v1 = vmul.f32 %v10415_v34, %v12973_v12 }
 0x64b   : > { %v10435_v2 = vmax.f32 %v7195_v40, 0.0  ;;  %v7197_v51 = vadd.f32 %v4332_v9, %v4085_v50  ;;  %v10439_v10 = vpack.c.bf16 %v10419_v8, %v10415_v34  ;;  %v4402_v15 = vmul.f32 %v10419_v8, %v12971_v42 }
 0x64c   : > { %v10443_v28 = vmax.f32 %v7196_v46, 0.0  ;;  %v4230_v23 = vpop.f32.mrb[20].mxu0  ;;  %v10447_v18 = vpack.c.bf16 %v10427_v54, %v10417_v55  ;;  %v4459_v45 = vmul.f32 %v10429_v60, %v12971_v42  ;;  %v10453_v63 = vmul.f32 %v10419_v8, %v12972_v16 }
 0x64d   : > { %12974 = vst [vmem:[#allocation40_spill] sm:$0xff] %v10439_v10  ;;  %v10455_v14 = vmax.f32 %v7197_v51, 0.0  ;;  %v7190_v48 = vadd.f32 %v4230_v23, %v4090_v44  ;;  %v4232_v21 = vpop.f32.mrb[21].mxu0  ;;  %4532 = vrot.lane.b32.xlu1 %v10439_v10, %s7411_s30  ;;  %v4411_v62 = vpack.c.bf16 %v4402_v15, %v4399_v37  ;;  %v10461_v25 = vmul.f32 %v10429_v60, %v12972_v16  ;;  %v12978_v37 = vld [vmem:[#allocation8_spill] sm:$0xff] }
 0x64e   : > { %12975 = vst [vmem:[#allocation37_spill] sm:$0xff] %v10447_v18  ;;  %v7191_v0 = vadd.f32 %v4232_v21, %v4090_v44  ;;  %v4234_v29 = vpop.f32.mrb[22].mxu0  ;;  %v10465_v5 = vpack.c.bf16 %v10443_v28, %v10429_v60  ;;  %v4462_v20 = vmul.f32 %v10443_v28, %v12971_v42  ;;  %v4627_v17 = vpack.c.bf16 %v10453_v63, %v10425_v19 }
 0x64f   : > { %v10471_v49 = vmax.f32 %v7190_v48, 0.0  ;;  %v7192_v32 = vadd.f32 %v4234_v29, %v4095_v22  ;;  %v4236_v35 = vpop.f32.mrb[23].mxu0  ;;  %v4336_v26 = vpop.f32.mrb[20].mxu1  ;;  %v10475_v27 = vpack.c.bf16 %v10455_v14, %v10435_v2  ;;  %v4678_v56 = vmul.f32 %v10443_v28, %v12972_v16  ;;  %v12980_v48 = vld [vmem:[#allocation10_spill] sm:$0xff]  ;;  %v12981_v29 = vld [vmem:[#allocation11_spill] sm:$0xff] }
 0x650   : > { %12976 = vst [vmem:[#allocation39_spill] sm:$0xff] %v10465_v5  ;;  %v10479_v57 = vmax.f32 %v7191_v0, 0.0  ;;  %v7193_v4 = vadd.f32 %v4236_v35, %v4095_v22  ;;  %v7198_v7 = vadd.f32 %v4336_v26, %v4090_v44  ;;  %v4338_v47 = vpop.f32.mrb[21].mxu1  ;;  %4580 = vrot.lane.b32.xlu0 %v10465_v5, %s7411_s30  ;;  %v4471_v36 = vpack.c.bf16 %v4462_v20, %v4459_v45 }
 0x651   : > { %12977 = vst [vmem:[#allocation42_spill] sm:$0xff] %v10475_v27  ;;  %v10483_v13 = vmax.f32 %v7192_v32, 0.0  ;;  %v7199_v11 = vadd.f32 %v4338_v47, %v4090_v44  ;;  %v4340_v39 = vpop.f32.mrb[22].mxu1  ;;  %4582 = vrot.lane.b32.xlu1 %v10475_v27, %s7411_s30  ;;  %v4687_v61 = vpack.c.bf16 %v4678_v56, %v10461_v25  ;;  %v4738_v50 = vmul.f32 %v10419_v8, %v12973_v12  ;;  %v12979_v44 = vld [vmem:[#allocation18_spill] sm:$0xff]  ;;  %v12982_v47 = vld [vmem:[#allocation12_spill] sm:$0xff] }
 0x652   : > { %v10490_v6 = vmax.f32 %v7193_v4, 0.0  ;;  %v10492_v59 = vmax.f32 %v7198_v7, 0.0  ;;  %v7200_v31 = vadd.f32 %v4340_v39, %v4095_v22  ;;  %v4342_v33 = vpop.f32.mrb[23].mxu1  ;;  %v4795_v52 = vmul.f32 %v10429_v60, %v12973_v12 }
 0x653   : > { %v10496_v58 = vmax.f32 %v7199_v11, 0.0  ;;  %v7201_v43 = vadd.f32 %v4342_v33, %v4095_v22  ;;  %v4747_v3 = vpack.c.bf16 %v4738_v50, %v10433_v1  ;;  %v4798_v40 = vmul.f32 %v10443_v28, %v12973_v12 }
 0x654   : > { %v10501_v30 = vmax.f32 %v7200_v31, 0.0  ;;  %4534 = vrot.lane.b32.xlu0 %v10447_v18, %s7411_s30  ;;  %v4886_v19 = vmul.f32 %v12978_v37, %v10415_v34  ;;  %v4889_v46 = vmul.f32 %v12978_v37, %v10419_v8  ;;  %v10511_v9 = vmul.f32 %v12978_v37, %v10429_v60  ;;  %v12983_v31 = vld [vmem:[#allocation17_spill] sm:$0xff] }
 0x655   : > { %v10513_v51 = vmax.f32 %v7201_v43, 0.0  ;;  %4424 = vrot.lane.b32.xlu1 %v4411_v62, %s7413_s6  ;;  %v4807_v1 = vpack.c.bf16 %v4798_v40, %v4795_v52  ;;  %v10518_v15 = vmul.f32 %v12978_v37, %v10443_v28  ;;  %v10522_v23 = vmul.f32 %v12979_v44, %v10415_v34 }
 0x656   : > { %v4898_v45 = vpack.c.bf16 %v4889_v46, %v4886_v19  ;;  %v10526_v63 = vmul.f32 %v12979_v44, %v10419_v8  ;;  %v10530_v21 = vmul.f32 %v12980_v48, %v10417_v55  ;;  %v10534_v62 = vmul.f32 %v12980_v48, %v10427_v54 }
 0x657   : > { %v4958_v25 = vpack.c.bf16 %v10518_v15, %v10511_v9  ;;  %v10540_v22 = vmul.f32 %v12980_v48, %v10435_v2  ;;  %v10544_v0 = vmul.f32 %v12980_v48, %v10455_v14  ;;  %v10548_v20 = vmul.f32 %v12981_v29, %v10417_v55  ;;  %v12984_v15 = vld [vmem:[#allocation19_spill] sm:$0xff] }
 0x658   : > { %4484 = vrot.lane.b32.xlu0 %v4471_v36, %s7413_s6  ;;  %v5018_v32 = vpack.c.bf16 %v10526_v63, %v10522_v23  ;;  %v10557_v26 = vmul.f32 %v12981_v29, %v10427_v54  ;;  %v10561_v56 = vmul.f32 %v12981_v29, %v10435_v2  ;;  %v10568_v7 = vmul.f32 %v12981_v29, %v10455_v14 }
 0x659   : > { %4640 = vrot.lane.b32.xlu1 %v4627_v17, %s7410_s29  ;;  %v10572_v36 = vmul.f32 %v12982_v47, %v10417_v55  ;;  %v10576_v11 = vmul.f32 %v12982_v47, %v10427_v54  ;;  %v10582_v17 = vmul.f32 %v12982_v47, %v10435_v2  ;;  %v10586_v50 = vmul.f32 %v12982_v47, %v10455_v14 }
 0x65a   : > { %v10590_v33 = vmul.f32 %v10435_v2, %v12983_v31  ;;  %v10598_v40 = vmul.f32 %v10455_v14, %v12983_v31  ;;  %v10602_v19 = vmul.f32 %v10417_v55, %v12983_v31  ;;  %v10609_v9 = vmul.f32 %v10427_v54, %v12983_v31 }
 0x65b   : > { %v10613_v23 = vmul.f32 %v10435_v2, %v12984_v15  ;;  %v10617_v63 = vmul.f32 %v10455_v14, %v12984_v15  ;;  %v10624_v46 = vmul.f32 %v10417_v55, %v12984_v15  ;;  %v10628_v43 = vmul.f32 %v10427_v54, %v12984_v15 }
 0x65c   : > { %4700 = vrot.lane.b32.xlu0 %v4687_v61, %s7410_s29  ;;  %v10632_v52 = vpack.c.bf16 %v10501_v30, %v10492_v59  ;;  %v10640_v61 = vpack.c.bf16 %v10483_v13, %v10471_v49  ;;  %v10644_v4 = vpack.c.bf16 %v10490_v6, %v10479_v57  ;;  %v10650_v38 = vpack.c.bf16 %v10513_v51, %v10496_v58 }
 0x65d   : > { %4760 = vrot.lane.b32.xlu1 %v4747_v3, %s7409_s28  ;;  %v10654_v39 = vmul.f32 %v10492_v59, %v12971_v42  ;;  %v10658_v3 = vmul.f32 %v10501_v30, %v12971_v42  ;;  %v10663_v41 = vmul.f32 %v10471_v49, %v12971_v42  ;;  %v10667_v35 = vmul.f32 %v10483_v13, %v12971_v42 }
 0x65e   : > { %v10671_v24 = vmul.f32 %v10492_v59, %v12972_v16  ;;  %v10675_v5 = vmul.f32 %v10501_v30, %v12972_v16  ;;  %v10682_v27 = vmul.f32 %v10471_v49, %v12972_v16  ;;  %v10686_v42 = vmul.f32 %v10483_v13, %v12972_v16 }
 0x65f   : > { %12985 = vst [vmem:[#allocation41_spill] sm:$0xff] %v10654_v39  ;;  %v10690_v10 = vmul.f32 %v10492_v59, %v12973_v12  ;;  %v10702_v53 = vmul.f32 %v10471_v49, %v12973_v12  ;;  %v10708_v39 = vmul.f32 %v10483_v13, %v12973_v12  ;;  %v10712_v18 = vmul.f32 %v12978_v37, %v10492_v59 }
 0x660   : > { %4820 = vrot.lane.b32.xlu0 %v4807_v1, %s7409_s28  ;;  %12986 = vst [vmem:[#allocation4_spill] sm:$0xff] %v10671_v24  ;;  %12987 = vst [vmem:[#allocation5_spill] sm:$0xff] %v10682_v27  ;;  %v10698_v1 = vmul.f32 %v10501_v30, %v12973_v12  ;;  %v10723_v16 = vmul.f32 %v12978_v37, %v10471_v49  ;;  %v10727_v12 = vmul.f32 %v12978_v37, %v10483_v13 }
 0x661   : > { %4910 = vrot.lane.b32.xlu1 %v4898_v45, %s7407_s26  ;;  %12988 = vst [vmem:[#allocation45_spill] sm:$0xff] %v10690_v10  ;;  %12990 = vst [vmem:[#allocation24_spill] sm:$0xff] %v10702_v53  ;;  %v10716_v45 = vmul.f32 %v12978_v37, %v10501_v30  ;;  %v10731_v27 = vmul.f32 %v12980_v48, %v10479_v57  ;;  %v10740_v10 = vmul.f32 %v12980_v48, %v10490_v6 }
 0x662   : > { %12989 = vst [vmem:[#allocation43_spill] sm:$0xff] %v10698_v1  ;;  %12991 = vst [vmem:[#allocation44_spill] sm:$0xff] %v10712_v18  ;;  %v10744_v37 = vmul.f32 %v12980_v48, %v10496_v58  ;;  %v10758_v24 = vmul.f32 %v12979_v44, %v10443_v28  ;;  %v10768_v1 = vmul.f32 %v12979_v44, %v10483_v13 }
 0x663   : > { %12992 = vst [vmem:[#allocation32_spill] sm:$0xff] %v10716_v45  ;;  %12993 = vst [vmem:[#allocation31_spill] sm:$0xff] %v10723_v16  ;;  %v10764_v45 = vmul.f32 %v12979_v44, %v10471_v49  ;;  %v12998_v16 = vpack.c.bf16 %v10534_v62, %v10530_v21  ;;  %v13000_v53 = vpack.c.bf16 %v10544_v0, %v10540_v22 }
 0x664   : > { %4970 = vrot.lane.b32.xlu0 %v4958_v25, %s7407_s26  ;;  %12994 = vst [vmem:[#allocation23_spill] sm:$0xff] %v10727_v12  ;;  %12995 = vst [vmem:[#allocation30_spill] sm:$0xff] %v10731_v27  ;;  %v10754_v25 = vmul.f32 %v12979_v44, %v10429_v60  ;;  %v10788_v12 = vmul.f32 %v12981_v29, %v10479_v57  ;;  %v10798_v21 = vmul.f32 %v12981_v29, %v10490_v6 }
 0x665   : > { %5030 = vrot.lane.b32.xlu1 %v5018_v32, %s7408_s27  ;;  %12996 = vst [vmem:[#allocation29_spill] sm:$0xff] %v10740_v10  ;;  %v10750_v32 = vmul.f32 %v12980_v48, %v10513_v51  ;;  %v10772_v48 = vmul.f32 %v12979_v44, %v10492_v59  ;;  %v10784_v10 = vmul.f32 %v12979_v44, %v10501_v30 }
 0x666   : > { %v10802_v62 = vmul.f32 %v12981_v29, %v10496_v58  ;;  %v10806_v27 = vmul.f32 %v12981_v29, %v10513_v51  ;;  %v10816_v22 = vmul.f32 %v12982_v47, %v10490_v6  ;;  %v10820_v0 = vmul.f32 %v12982_v47, %v10496_v58 }
 0x667   : > { %12997 = vst [vmem:[#allocation33_spill] sm:$0xff] %v10772_v48  ;;  %12999 = vst [vmem:[#allocation34_spill] sm:$0xff] %v10784_v10  ;;  %v10828_v18 = vmul.f32 %v12982_v47, %v10513_v51  ;;  %v10832_v44 = vmul.f32 %v10479_v57, %v12983_v31  ;;  %v13005_v48 = vpack.c.bf16 %v10557_v26, %v10548_v20 }
 0x668   : > { %4426 = vrot.lane.b32.xlu0 %v12998_v16, %s7413_s6  ;;  %13002 = vst [vmem:[#allocation35_spill] sm:$0xff] %v10820_v0  ;;  %v10842_v16 = vmul.f32 %v10490_v6, %v12983_v31  ;;  %v10846_v29 = vmul.f32 %v10496_v58, %v12983_v31  ;;  %v13006_v20 = vpack.c.bf16 %v10568_v7, %v10561_v56 }
 0x669   : > { %4486 = vrot.lane.b32.xlu1 %v13000_v53, %s7413_s6  ;;  %v10812_v53 = vmul.f32 %v12982_v47, %v10479_v57  ;;  %13003 = vst [vmem:[#allocation38_spill] sm:$0xff] %v10828_v18  ;;  %13004 = vst [vmem:[#allocation28_spill] sm:$0xff] %v10832_v44  ;;  %v10850_v47 = vmul.f32 %v10513_v51, %v12983_v31  ;;  %v10860_v26 = vmul.f32 %v10479_v57, %v12984_v15 }
 0x66a   : > { %v10864_v10 = vmul.f32 %v10490_v6, %v12984_v15  ;;  %v10868_v31 = vmul.f32 %v10496_v58, %v12984_v15  ;;  %v10876_v7 = vmul.f32 %v10513_v51, %v12984_v15 }
 0x66b   : > { %13001 = vst [vmem:[#allocation27_spill] sm:$0xff] %v10812_v53  ;;  %v13008_v53 = vld [vmem:[#allocation21_spill] sm:$0xff] }
 0x66c   : > { %4642 = vrot.lane.b32.xlu0 %v13005_v48, %s7410_s29  ;;  %v10890_v44 = vmul.f32 %v13008_v53, %v10415_v34  ;;  %v10894_v56 = vmul.f32 %v13008_v53, %v10419_v8  ;;  %v5082_v0 = vpack.c.bf16 %v10876_v7, %v10868_v31  ;;  %v10912_v8 = vmul.f32 %v13008_v53, %v10429_v60  ;;  %v13060_v31 = vld [vmem:[#allocation25_spill] sm:$0xff] }
 0x66d   : > { %4702 = vrot.lane.b32.xlu1 %v13006_v20, %s7410_s29  ;;  %v13007_v20 = vld [vmem:[#allocation22_spill] sm:$0xff] }
 0x66e   : > { %v10880_v48 = vmul.f32 %v10417_v55, %v13007_v20  ;;  %v10886_v18 = vmul.f32 %v10427_v54, %v13007_v20  ;;  %v13009_v55 = vpack.c.bf16 %v10576_v11, %v10572_v36  ;;  %v10904_v54 = vmul.f32 %v10435_v2, %v13007_v20 }
 0x66f   : > { %v10908_v34 = vmul.f32 %v10455_v14, %v13007_v20  ;;  %v13010_v36 = vpack.c.bf16 %v10586_v50, %v10582_v17  ;;  %v10928_v14 = vmul.f32 %v13008_v53, %v10471_v49  ;;  %v10934_v17 = vmul.f32 %v13008_v53, %v10483_v13 }
 0x670   : > { %4762 = vrot.lane.b32.xlu0 %v13009_v55, %s7409_s28  ;;  %v5235_v11 = vpack.c.bf16 %v10886_v18, %v10880_v48  ;;  %v10924_v55 = vmul.f32 %v13008_v53, %v10443_v28  ;;  %v10938_v50 = vmul.f32 %v10479_v57, %v13007_v20  ;;  %v10948_v49 = vmul.f32 %v10496_v58, %v13007_v20 }
 0x671   : > { %4822 = vrot.lane.b32.xlu1 %v13010_v36, %s7409_s28  ;;  %v10942_v36 = vmul.f32 %v10490_v6, %v13007_v20  ;;  %v10952_v60 = vmul.f32 %v10513_v51, %v13007_v20  ;;  %v13011_v57 = vpack.c.bf16 %v10598_v40, %v10590_v33  ;;  %v10964_v28 = vmul.f32 %v13008_v53, %v10492_v59 }
 0x672   : > { %v10968_v58 = vmul.f32 %v13008_v53, %v10501_v30  ;;  %v13012_v51 = vpack.c.bf16 %v10609_v9, %v10602_v19  ;;  %v13013_v59 = vpack.c.bf16 %v10617_v63, %v10613_v23  ;;  %v13014_v30 = vpack.c.bf16 %v10628_v43, %v10624_v46  ;;  %v10990_v19 = vpop.permute.xlu1 %4422  ;;  %v10996_v9 = vpop.permute.xlu0 %4482  ;;  %v13015_v43 = vld [vmem:[#allocation41_spill] sm:$0xff] }
 0x673   : > { %v13016_v46 = vpack.c.bf16 %v10658_v3, %v13015_v43  ;;  %v13017_v63 = vpack.c.bf16 %v10667_v35, %v10663_v41  ;;  %v13022_v43 = vld [vmem:[#allocation43_spill] sm:$0xff]  ;;  %v13025_v41 = vld [vmem:[#allocation24_spill] sm:$0xff]  ;;  %v13062_v18 = vpack.c.bf16 %v10908_v34, %v10904_v54  ;;  %v13066_v34 = vpack.c.bf16 %v10942_v36, %v10938_v50 }
 0x674   : > { %4972 = vrot.lane.b32.xlu0 %v13011_v57, %s7407_s26  ;;  %v13026_v35 = vpack.c.bf16 %v10708_v39, %v13025_v41  ;;  %v13034_v39 = vld [vmem:[#allocation30_spill] sm:$0xff]  ;;  %v13036_v41 = vpack.c.bf16 %v10750_v32, %v10744_v37 }
 0x675   : > { %4912 = vrot.lane.b32.xlu1 %v13012_v51, %s7407_s26  ;;  %v13018_v51 = vld [vmem:[#allocation4_spill] sm:$0xff] }
 0x676   : > { %v11002_v23 = vpop.permute.xlu1 %4428  ;;  %v11008_v57 = vpop.permute.xlu0 %4488 }
 0x678   : > { %5092 = vrot.lane.b32.xlu0 %v13013_v59, %s7408_s27  ;;  %v13019_v59 = vpack.c.bf16 %v10675_v5, %v13018_v51  ;;  %v13027_v5 = vld [vmem:[#allocation32_spill] sm:$0xff] }
 0x679   : > { %5032 = vrot.lane.b32.xlu1 %v13014_v30, %s7408_s27  ;;  %v13020_v30 = vld [vmem:[#allocation5_spill] sm:$0xff]  ;;  %v13028_v51 = vld [vmem:[#allocation44_spill] sm:$0xff] }
 0x67a   : > { %v13021_v40 = vpack.c.bf16 %v10686_v42, %v13020_v30  ;;  %v11018_v3 = vpop.permute.xlu1 %4530  ;;  %v13031_v30 = vld [vmem:[#allocation31_spill] sm:$0xff] }
 0x67c   : > { %4586 = vrot.lane.b32.xlu0 %v10632_v52, %s7411_s30 }
 0x67d   : > { %4538 = vrot.lane.b32.xlu1 %v10640_v61, %s7411_s30 }
 0x67e   : > { %v11034_v42 = vpop.permute.xlu1 %4536 }
 0x680   : > { %4540 = vrot.lane.b32.xlu0 %v10644_v4, %s7411_s30 }
 0x681   : > { %4588 = vrot.lane.b32.xlu1 %v10650_v38, %s7411_s30 }
 0x684   : > { %4490 = vrot.lane.b32.xlu0 %v13016_v46, %s7413_s6  ;;  %v13023_v46 = vld [vmem:[#allocation45_spill] sm:$0xff] }
 0x685   : > { %4430 = vrot.lane.b32.xlu1 %v13017_v63, %s7413_s6  ;;  %v13024_v33 = vpack.c.bf16 %v13022_v43, %v13023_v46  ;;  %v11028_v63 = vpop.permute.xlu0 %4578  ;;  %v13033_v43 = vld [vmem:[#allocation29_spill] sm:$0xff] }
 0x686   : > { %v13035_v46 = vpack.c.bf16 %v13033_v43, %v13034_v39  ;;  %v13045_v43 = vpack.c.bf16 %v10806_v27, %v10802_v62  ;;  %v13050_v27 = vld [vmem:[#allocation38_spill] sm:$0xff]  ;;  %v13051_v62 = vld [vmem:[#allocation35_spill] sm:$0xff] }
 0x688   : > { %4706 = vrot.lane.b32.xlu0 %v13019_v59, %s7410_s29  ;;  %v13029_v59 = vpack.c.bf16 %v13027_v5, %v13028_v51  ;;  %v13037_v5 = vpack.c.bf16 %v10758_v24, %v10754_v25  ;;  %v13040_v24 = vld [vmem:[#allocation34_spill] sm:$0xff]  ;;  %v13041_v25 = vld [vmem:[#allocation33_spill] sm:$0xff] }
 0x689   : > { %4646 = vrot.lane.b32.xlu1 %v13021_v40, %s7410_s29  ;;  %v13030_v40 = vld [vmem:[#allocation23_spill] sm:$0xff]  ;;  %v13042_v32 = vpack.c.bf16 %v13040_v24, %v13041_v25  ;;  %v13052_v24 = vpack.c.bf16 %v13050_v27, %v13051_v62 }
 0x68a   : > { %v13032_v6 = vpack.c.bf16 %v13030_v40, %v13031_v30  ;;  %v13044_v30 = vpack.c.bf16 %v10798_v21, %v10788_v12  ;;  %v13048_v12 = vld [vmem:[#allocation27_spill] sm:$0xff] }
 0x68b   : > { %v13049_v21 = vpack.c.bf16 %v10816_v22, %v13048_v12 }
 0x68c   : > { %4826 = vrot.lane.b32.xlu0 %v13024_v33, %s7409_s28  ;;  %v11040_v33 = vpop.permute.xlu0 %4584 }
 0x68d   : > { %4766 = vrot.lane.b32.xlu1 %v13026_v35, %s7409_s28  ;;  %v11050_v35 = vpop.permute.xlu1 %4638 }
 0x690   : > { %4976 = vrot.lane.b32.xlu0 %v13029_v59, %s7407_s26  ;;  %v11060_v51 = vpop.permute.xlu0 %4698  ;;  %v13039_v59 = vld [vmem:[#allocation20_spill] sm:$0xff] }
 0x691   : > { %4916 = vrot.lane.b32.xlu1 %v13032_v6, %s7407_s26  ;;  %v13038_v6 = vpack.c.bf16 %v10768_v1, %v10764_v45  ;;  %v11064_v40 = vpop.permute.xlu1 %4644  ;;  %v13043_v1 = vld [vmem:[#allocation37_spill] sm:$0xff] }
 0x694   : > { %4432 = vrot.lane.b32.xlu0 %v13035_v46, %s7413_s6  ;;  %v11068_v37 = vpop.permute.xlu0 %4704  ;;  %v13046_v46 = vmov 0.0|0.0  }
 0x695   : > { %4492 = vrot.lane.b32.xlu1 %v13036_v41, %s7413_s6  ;;  %v11076_v45 = vpop.permute.xlu1 %4758 }
 0x698   : > { %5090 = vrot.lane.b32.xlu0 %v13037_v5, %s7408_s27  ;;  %v11086_v39 = vpop.permute.xlu0 %4818  ;;  %v13047_v5 = vld [vmem:[#allocation40_spill] sm:$0xff] }
 0x699   : > { %5036 = vrot.lane.b32.xlu1 %v13038_v6, %s7408_s27  ;;  %v11090_v41 = vpop.permute.xlu1 %4764 }
 0x69c   : > { %5040 = vrot.lane.b32.xlu0 %v13039_v59, %s7408_s27  ;;  %v11094_v6 = vpop.permute.xlu0 %4824 }
 0x69d   : > { %5100 = vrot.lane.b32.xlu1 %v13039_v59, %s7408_s27  ;;  %v11104_v25 = vpop.permute.xlu1 %4974 }
 0x6a0   : > { %5096 = vrot.lane.b32.xlu0 %v13042_v32, %s7408_s27  ;;  %v13053_v32 = vld [vmem:[#allocation42_spill] sm:$0xff] }
 0x6a1   : > { %5140 = vrot.lane.b32.xlu1 %v13043_v1, %s7415_s7  ;;  %v11114_v22 = vpop.permute.xlu1 %4980 }
 0x6a4   : > { %4648 = vrot.lane.b32.xlu0 %v13044_v30, %s7410_s29  ;;  %v11110_v30 = vpop.permute.xlu0 %4914 }
 0x6a5   : > { %4708 = vrot.lane.b32.xlu1 %v13045_v43, %s7410_s29  ;;  %v13054_v43 = vld [vmem:[#allocation39_spill] sm:$0xff]  ;;  %v11126_v62 = vpop.permute.xlu1 %5094 }
 0x6a6   : > { %13057 = vst [vmem:[#allocation36_spill] sm:$0xff] %v11126_v62  ;;  %v13075_v62 = vld [vmem:[#allocation14_spill] sm:$0xff] }
 0x6a8   : > { %5142 = vrot.lane.b32.xlu0 %v13046_v46, %s7415_s7  ;;  %v11118_v12 = vpop.permute.xlu0 %4920 }
 0x6a9   : > { %5138 = vrot.lane.b32.xlu1 %v13047_v5, %s7415_s7 }
 0x6ac   : > { %4768 = vrot.lane.b32.xlu0 %v13049_v21, %s7409_s28  ;;  %v13055_v21 = vld [vmem:[#allocation28_spill] sm:$0xff]  ;;  %v11134_v13 = vpop.permute.xlu0 %5034 }
 0x6ad   : > { %4828 = vrot.lane.b32.xlu1 %v13052_v24, %s7409_s28  ;;  %v13056_v27 = vpack.c.bf16 %v10842_v16, %v13055_v21  ;;  %v13058_v24 = vpack.c.bf16 %v10850_v47, %v10846_v29  ;;  %v13059_v16 = vpack.c.bf16 %v10864_v10, %v10860_v26  ;;  %v7372_v29 = vld [vmem:[%s12495_s1 + $0x94] ss:$12 sps:$4 sm:$0xff]  }
 0x6ae   : > { %5495 = vmatprep.mubr.bf16.mxu0 %v7372_v29  ;;  %5601 = vmatprep.mubr.bf16.mxu1 %v7372_v29 }
 0x6b0   : > { %5188 = vrot.lane.b32.xlu0 %v13053_v32, %s7415_s7 }
 0x6b1   : > { %5190 = vrot.lane.b32.xlu1 %v13046_v46, %s7415_s7 }
 0x6b4   : > { %5186 = vrot.lane.b32.xlu0 %v13054_v43, %s7415_s7 }
 0x6b5   : > { %5146 = vrot.lane.b32.xlu1 %v10644_v4, %s7415_s7 }
 0x6b8   : > { %5148 = vrot.lane.b32.xlu0 %v13046_v46, %s7415_s7 }
 0x6b9   : > { %4918 = vrot.lane.b32.xlu1 %v13056_v27, %s7407_s26 }
 0x6bc   : > { %4978 = vrot.lane.b32.xlu0 %v13058_v24, %s7407_s26 }
 0x6bd   : > { %5144 = vrot.lane.b32.xlu1 %v10640_v61, %s7415_s7 }
 0x6bf   : > { %v11136_v2 = vpop.permute.xlu1 %4532 }
 0x6c0   : > { %5194 = vrot.lane.b32.xlu0 %v10650_v38, %s7415_s7 }
 0x6c1   : > { %5038 = vrot.lane.b32.xlu1 %v13059_v16, %s7408_s27 }
 0x6c2   : > { %v11144_v21 = vpop.permute.xlu0 %4580 }
 0x6c3   : > { %v11146_v27 = vpop.permute.xlu1 %4582 }
 0x6c4   : > { %5098 = vrot.lane.b32.xlu0 %v5082_v0, %s7408_s27  ;;  %v13061_v0 = vpack.c.bf16 %v10894_v56, %v10890_v44  ;;  %v13063_v44 = vpack.c.bf16 %v10924_v55, %v10912_v8  ;;  %v13064_v56 = vpack.c.bf16 %v10934_v17, %v10928_v14  ;;  %v13067_v14 = vpack.c.bf16 %v10952_v60, %v10948_v49  ;;  %v7124_v60 = vld [vmem:[%s12496_s2 + $0x60] sm:$0xff] }
 0x6c5   : > { %5196 = vrot.lane.b32.xlu1 %v13046_v46, %s7415_s7 }
 0x6c6   : > { %v11157_v47 = vpop.permute.xlu0 %4534 }
 0x6c7   : > { %v4425_v10 = vpop.permute.xlu1 %4424 }
 0x6c8   : > { %5192 = vrot.lane.b32.xlu0 %v10632_v52, %s7415_s7  ;;  %v4434_v17 = vsel %vm389_vm9, %v10990_v19, %v4425_v10  ;;  %v13068_v19 = vpack.c.bf16 %v10968_v58, %v10964_v28  ;;  %v7127_v28 = vld [vmem:[%s12496_s2 + $0x78] sm:$0xff] }
 0x6c9   : > { %5248 = vrot.lane.b32.xlu1 %v5235_v11, %s7406_s25 }
 0x6ca   : > { %v4485_v26 = vpop.permute.xlu0 %4484 }
 0x6cb   : > { %v11165_v24 = vpop.permute.xlu1 %4640  ;;  %v4494_v36 = vsel %vm389_vm9, %v10996_v9, %v4485_v26  ;;  %v7126_v9 = vld [vmem:[%s12496_s2 + $0x70] sm:$0xff] }
 0x6cc   : > { %5250 = vrot.lane.b32.xlu0 %v13060_v31, %s7406_s25 }
 0x6cd   : > { %5246 = vrot.lane.b32.xlu1 %v13061_v0, %s7406_s25 }
 0x6ce   : > { %v11173_v7 = vpop.permute.xlu0 %4700 }
 0x6cf   : > { %v11175_v16 = vpop.permute.xlu1 %4760 }
 0x6d0   : > { %5308 = vrot.lane.b32.xlu0 %v13062_v18, %s7406_s25 }
 0x6d1   : > { %5310 = vrot.lane.b32.xlu1 %v13060_v31, %s7406_s25 }
 0x6d2   : > { %v11183_v48 = vpop.permute.xlu0 %4820 }
 0x6d3   : > { %v11185_v11 = vpop.permute.xlu1 %4910 }
 0x6d4   : > { %5306 = vrot.lane.b32.xlu0 %v13063_v44, %s7406_s25 }
 0x6d5   : > { %5252 = vrot.lane.b32.xlu1 %v13064_v56, %s7406_s25 }
 0x6d6   : > { %v11195_v29 = vpop.permute.xlu0 %4970 }
 0x6d7   : > { %v11197_v54 = vpop.permute.xlu1 %5030 }
 0x6d8   : > { %13065 = vst [vmem:[#allocation26_spill] sm:$0xff] %v11197_v54  ;;  %5256 = vrot.lane.b32.xlu0 %v13060_v31, %s7406_s25 }
 0x6d9   : > { %5254 = vrot.lane.b32.xlu1 %v13066_v34, %s7406_s25  ;;  %v13069_v34 = vld [vmem:[#allocation6_spill] sm:$0xff] }
 0x6da   : > { %v4427_v0 = vpop.permute.xlu0 %4426 }
 0x6db   : > { %v4487_v8 = vpop.permute.xlu1 %4486  ;;  %v4435_v55 = vsel %vm389_vm9, %v4425_v10, %v4427_v0  ;;  %v7125_v10 = vld [vmem:[%s12496_s2 + $0x68] sm:$0xff] }
 0x6dc   : > { %5314 = vrot.lane.b32.xlu0 %v13067_v14, %s7406_s25  ;;  %5463 = vmatprep.subr.bf16.mxu0 %v4435_v55  ;;  %v4495_v18 = vsel %vm389_vm9, %v4485_v26, %v4487_v8 }
 0x6dd   : > { %5316 = vrot.lane.b32.xlu1 %v13060_v31, %s7406_s25  ;;  %5464 = vmatpush1.bf16.msra.mxu0 %v4434_v17  ;;  %v13073_v31 = vld [vmem:[#allocation9_spill] sm:$0xff] }
 0x6de   : > { %5569 = vmatprep.subr.bf16.mxu1 %v4495_v18  ;;  %v11215_v50 = vpop.permute.xlu0 %4642 }
 0x6df   : > { %5570 = vmatpush1.bf16.msra.mxu1 %v4494_v36  ;;  %v11222_v49 = vpop.permute.xlu1 %4702 }
 0x6e0   : > { %5312 = vrot.lane.b32.xlu0 %v13068_v19, %s7406_s25  ;;  %v13072_v19 = vld [vmem:[#allocation7_spill] sm:$0xff] }
 0x6e1   : > { %5409 = vperm.xlu1 %7345, %v7124_v60  }
 0x6e2   : > { %v11231_v44 = vpop.permute.xlu0 %4762 }
 0x6e3   : > { %v11236_v26 = vpop.permute.xlu1 %4822 }
 0x6e4   : > { %5414 = vperm.xlu0 %7344, %v7125_v10  }
 0x6e5   : > { %5419 = vperm.xlu1 %7345, %v7126_v9  }
 0x6e6   : > { %v11241_v58 = vpop.permute.xlu0 %4972 }
 0x6e7   : > { %v11243_v56 = vpop.permute.xlu1 %4912 }
 0x6e8   : > { %5424 = vperm.xlu0 %7344, %v7127_v28  }
 0x6e9   : > { %5745 = vrot.lane.b32.xlu1 %v13069_v34, %s7413_s6 }
 0x6ea   : > { %v11247_v0 = vpop.permute.xlu0 %5092 }
 0x6eb   : > { %13070 = vst [vmem:[#allocation41_spill] sm:$0xff] %v11247_v0  ;;  %v11249_v8 = vpop.permute.xlu1 %5032 }
 0x6ec   : > { %13071 = vst [vmem:[#allocation4_spill] sm:$0xff] %v11249_v8  ;;  %5805 = vrot.lane.b32.xlu0 %v13069_v34, %s7413_s6 }
 0x6ed   : > { %5751 = vrot.lane.b32.xlu1 %v13069_v34, %s7413_s6 }
 0x6ee   : > { %v4587_v55 = vpop.permute.xlu0 %4586 }
 0x6ef   : > { %v4539_v14 = vpop.permute.xlu1 %4538 }
 0x6f0   : > { %5811 = vrot.lane.b32.xlu0 %v13069_v34, %s7413_s6 }
 0x6f1   : > { %5853 = vrot.lane.b32.xlu1 %v13046_v46, %s7411_s30 }
 0x6f2   : > { %v4541_v17 = vpop.permute.xlu0 %4540 }
 0x6f3   : > { %v4589_v18 = vpop.permute.xlu1 %4588 }
 0x6f4   : > { %5901 = vrot.lane.b32.xlu0 %v13046_v46, %s7411_s30 }
 0x6f5   : > { %5859 = vrot.lane.b32.xlu1 %v13046_v46, %s7411_s30 }
 0x6f6   : > { %v4491_v36 = vpop.permute.xlu0 %4490 }
 0x6f7   : > { %v4431_v60 = vpop.permute.xlu1 %4430 }
 0x6f8   : > { %5907 = vrot.lane.b32.xlu0 %v13046_v46, %s7411_s30 }
 0x6f9   : > { %5961 = vrot.lane.b32.xlu1 %v13072_v19, %s7410_s29 }
 0x6fa   : > { %v11267_v10 = vpop.permute.xlu0 %4706 }
 0x6fb   : > { %v11269_v9 = vpop.permute.xlu1 %4646 }
 0x6fc   : > { %6021 = vrot.lane.b32.xlu0 %v13072_v19, %s7410_s29 }
 0x6fd   : > { %5967 = vrot.lane.b32.xlu1 %v13072_v19, %s7410_s29 }
 0x6fe   : > { %v11275_v28 = vpop.permute.xlu0 %4826 }
 0x6ff   : > { %v11277_v34 = vpop.permute.xlu1 %4766 }
 0x700   : > { %6027 = vrot.lane.b32.xlu0 %v13072_v19, %s7410_s29  ;;  %v4436_v19 = vsel %vm389_vm9, %v11002_v23, %v4431_v60 }
 0x701   : > { %6081 = vrot.lane.b32.xlu1 %v13073_v31, %s7409_s28 }
 0x702   : > { %v11283_v46 = vpop.permute.xlu0 %4976 }
 0x703   : > { %13074 = vst [vmem:[#allocation5_spill] sm:$0xff] %v11283_v46  ;;  %v11285_v53 = vpop.permute.xlu1 %4916  ;;  %v4543_v46 = vsel %vm498_vm10, %v11136_v2, %v11157_v47  ;;  %v4542_v47 = vsel %vm498_vm10, %v11018_v3, %v11136_v2  ;;  %v4544_v2 = vsel %vm498_vm10, %v11034_v42, %v4539_v14  ;;  %v4651_v3 = vsel %vm618_vm8, %v11165_v24, %v11215_v50 }
 0x704   : > { %6141 = vrot.lane.b32.xlu0 %v13073_v31, %s7409_s28  ;;  %v4650_v50 = vsel %vm618_vm8, %v11050_v35, %v11165_v24  ;;  %v4771_v35 = vsel %vm748_vm7, %v11175_v16, %v11231_v44  ;;  %v4712_v24 = vsel %vm618_vm8, %v11068_v37, %v11267_v10 }
 0x705   : > { %6087 = vrot.lane.b32.xlu1 %v13073_v31, %s7409_s28 }
 0x706   : > { %v4433_v20 = vpop.permute.xlu0 %4432 }
 0x707   : > { %v4493_v15 = vpop.permute.xlu1 %4492  ;;  %v4437_v54 = vsel %vm389_vm9, %v4431_v60, %v4433_v20  ;;  %v4496_v20 = vsel %vm389_vm9, %v11008_v57, %v4491_v36  ;;  %v4545_v57 = vsel %vm498_vm10, %v4539_v14, %v4541_v17  ;;  %v4652_v14 = vsel %vm618_vm8, %v11064_v40, %v11269_v9 }
 0x708   : > { %6147 = vrot.lane.b32.xlu0 %v13073_v31, %s7409_s28  ;;  %5465 = vmatprep.subr.bf16.mxu0 %v4437_v54  ;;  %v4497_v0 = vsel %vm389_vm9, %v4491_v36, %v4493_v15  ;;  %v4591_v15 = vsel %vm498_vm10, %v11144_v21, %v11146_v27  ;;  %v4590_v27 = vsel %vm498_vm10, %v11028_v63, %v11144_v21 }
 0x709   : > { %6297 = vrot.lane.b32.xlu1 %v13075_v62, %s7407_s26  ;;  %5466 = vmatpush1.bf16.msra.mxu0 %v4436_v19  ;;  %v4593_v31 = vsel %vm498_vm10, %v4587_v55, %v4589_v18  ;;  %v4592_v21 = vsel %vm498_vm10, %v11040_v33, %v4587_v55  ;;  %v4710_v33 = vsel %vm618_vm8, %v11060_v51, %v11173_v7  ;;  %v13080_v19 = vld [vmem:[#allocation26_spill] sm:$0xff] }
 0x70a   : > { %5571 = vmatprep.subr.bf16.mxu1 %v4497_v0  ;;  %v11302_v8 = vpop.permute.xlu0 %5090  ;;  %5467 = vmatprep.subr.bf16.mxu0 %v4543_v46  ;;  %v4831_v40 = vsel %vm748_vm7, %v11183_v48, %v11236_v26  ;;  %v4770_v18 = vsel %vm748_vm7, %v11076_v45, %v11175_v16  ;;  %v4830_v36 = vsel %vm748_vm7, %v11086_v39, %v11183_v48 }
 0x70b   : > { %5572 = vmatpush1.bf16.msra.mxu1 %v4496_v20  ;;  %v11309_v23 = vpop.permute.xlu1 %5036  ;;  %v4772_v26 = vsel %vm748_vm7, %v11090_v41, %v11277_v34  ;;  %v4832_v39 = vsel %vm748_vm7, %v11094_v6, %v11275_v28 }
 0x70c   : > { %5573 = vmatprep.subr.bf16.mxu1 %v4591_v15  ;;  %6237 = vrot.lane.b32.xlu0 %v13075_v62, %s7407_s26 }
 0x70d   : > { %6303 = vrot.lane.b32.xlu1 %v13075_v62, %s7407_s26  ;;  %5468 = vmatpush1.bf16.msra.mxu0 %v4542_v47 }
 0x70e   : > { %v11319_v46 = vpop.permute.xlu0 %5040  ;;  %5469 = vmatprep.subr.bf16.mxu0 %v4545_v57 }
 0x70f   : > { %5574 = vmatpush1.bf16.msra.mxu1 %v4590_v27  ;;  %v11325_v54 = vpop.permute.xlu1 %5100 }
 0x710   : > { %5575 = vmatprep.subr.bf16.mxu1 %v4593_v31  ;;  %6243 = vrot.lane.b32.xlu0 %v13075_v62, %s7407_s26  ;;  %v4711_v62 = vsel %vm618_vm8, %v11173_v7, %v11222_v49 }
 0x711   : > { %6417 = vrot.lane.b32.xlu1 %v13039_v59, %s7408_s27  ;;  %5470 = vmatpush1.bf16.msra.mxu0 %v4544_v2 }
 0x712   : > { %v11336_v63 = vpop.permute.xlu0 %5096  ;;  %5471 = vmatprep.subr.bf16.mxu0 %v4651_v3 }
 0x713   : > { %5576 = vmatpush1.bf16.msra.mxu1 %v4592_v21  ;;  %v11343_v42 = vpop.permute.xlu1 %5140 }
 0x714   : > { %5577 = vmatprep.subr.bf16.mxu1 %v4711_v62  ;;  %6357 = vrot.lane.b32.xlu0 %v13039_v59, %s7408_s27 }
 0x715   : > { %5472 = vmatpush1.bf16.msra.mxu0 %v4650_v50 }
 0x716   : > { %v4649_v0 = vpop.permute.xlu0 %4648 }
 0x717   : > { %5578 = vmatpush1.bf16.msra.mxu1 %v4710_v33  ;;  %v4709_v55 = vpop.permute.xlu1 %4708  ;;  %v4653_v49 = vsel %vm618_vm8, %v11269_v9, %v4649_v0  ;;  %v13077_v9 = vld [vmem:[#allocation5_spill] sm:$0xff] }
 0x718   : > { %5473 = vmatprep.subr.bf16.mxu0 %v4653_v49  ;;  %v4713_v17 = vsel %vm618_vm8, %v11267_v10, %v4709_v55 }
 0x719   : > { %5474 = vmatpush1.bf16.msra.mxu0 %v4652_v14  ;;  %5579 = vmatprep.subr.bf16.mxu1 %v4713_v17  ;;  %v7373_v14 = vld [vmem:[%s12495_s1 + $0xac] ss:$12 sps:$4 sm:$0xff]  }
 0x71a   : > { %v11363_v51 = vpop.permute.xlu0 %5142  ;;  %5475 = vmatprep.subr.bf16.mxu0 %v4771_v35 }
 0x71b   : > { %5580 = vmatpush1.bf16.msra.mxu1 %v4712_v24  ;;  %v11371_v7 = vpop.permute.xlu1 %5138 }
 0x71c   : > { %5581 = vmatprep.subr.bf16.mxu1 %v4831_v40 }
 0x71d   : > { %5476 = vmatpush1.bf16.msra.mxu0 %v4770_v18  ;;  %v7375_v18 = vld [vmem:[%s12495_s1 + $0xa8] ss:$12 sps:$4 sm:$0xff]  }
 0x71e   : > { %v4769_v44 = vpop.permute.xlu0 %4768 }
 0x71f   : > { %5582 = vmatpush1.bf16.msra.mxu1 %v4830_v36  ;;  %v4829_v37 = vpop.permute.xlu1 %4828  ;;  %v4773_v60 = vsel %vm748_vm7, %v11277_v34, %v4769_v44 }
 0x720   : > { %5477 = vmatprep.subr.bf16.mxu0 %v4773_v60  ;;  %v4833_v10 = vsel %vm748_vm7, %v11275_v28, %v4829_v37 }
 0x721   : > { %5478 = vmatpush1.bf16.msra.mxu0 %v4772_v26  ;;  %5583 = vmatprep.subr.bf16.mxu1 %v4833_v10  ;;  %v13081_v26 = vmov 0  }
 0x722   : > { %v11386_v45 = vpop.permute.xlu0 %5188  ;;  %5479 = vmatprep.subr.bf16.mxu0 %v13043_v1  ;;  %v4923_v1 = vsel %vm707_vm6, %v11243_v56, %v11110_v30 }
 0x723   : > { %5584 = vmatpush1.bf16.msra.mxu1 %v4832_v39  ;;  %v5191_v16 = vpop.permute.xlu1 %5190 }
 0x724   : > { %5585 = vmatprep.subr.bf16.mxu1 %v13053_v32  ;;  %v5199_v2 = vsel %vm1149_vm11, %v11386_v45, %v5191_v16  ;;  %v7376_v16 = vld [vmem:[%s12495_s1 + $0x98] ss:$12 sps:$4 sm:$0xff]  }
 0x725   : > { %5480 = vmatpush1.bf16.msra.mxu0 %v13047_v5  ;;  %v4983_v5 = vsel %vm707_vm6, %v11241_v58, %v11104_v25 }
 0x726   : > { %v5187_v41 = vpop.permute.xlu0 %5186  ;;  %5481 = vmatprep.subr.bf16.mxu0 %v10644_v4 }
 0x727   : > { %5586 = vmatpush1.bf16.msra.mxu1 %v13054_v43  ;;  %v5147_v48 = vpop.permute.xlu1 %5146  ;;  %v5198_v21 = vsel %vm1149_vm11, %v5187_v41, %v11386_v45 }
 0x728   : > { %5587 = vmatprep.subr.bf16.mxu1 %v10650_v38  ;;  %v4922_v38 = vsel %vm707_vm6, %v11185_v11, %v11243_v56  ;;  %v13076_v11 = vld [vmem:[#allocation4_spill] sm:$0xff] }
 0x729   : > { %5482 = vmatpush1.bf16.msra.mxu0 %v10640_v61 }
 0x72a   : > { %v5149_v6 = vpop.permute.xlu0 %5148  ;;  %5483 = vmatprep.subr.bf16.mxu0 %v4923_v1  ;;  %v7377_v1 = vld [vmem:[%s12495_s1 + $0xb0] ss:$12 sps:$4 sm:$0xff]  }
 0x72b   : > { %5588 = vmatpush1.bf16.msra.mxu1 %v10632_v52  ;;  %v4919_v4 = vpop.permute.xlu1 %4918  ;;  %v4982_v52 = vsel %vm707_vm6, %v11195_v29, %v11241_v58  ;;  %v13078_v29 = vld [vmem:[#allocation36_spill] sm:$0xff]  ;;  %v13079_v58 = vld [vmem:[#allocation41_spill] sm:$0xff] }
 0x72c   : > { %5589 = vmatprep.subr.bf16.mxu1 %v4983_v5  ;;  %v4925_v61 = vsel %vm707_vm6, %v4919_v4, %v11118_v12  ;;  %v4924_v43 = vsel %vm707_vm6, %v11285_v53, %v4919_v4  ;;  %v5043_v12 = vsel %vm577_vm5, %v13076_v11, %v11134_v13  ;;  %v5103_v34 = vsel %vm577_vm5, %v13079_v58, %v13078_v29 }
 0x72d   : > { %5484 = vmatpush1.bf16.msra.mxu0 %v4922_v38  ;;  %v5042_v53 = vsel %vm577_vm5, %v13080_v19, %v13076_v11  ;;  %v5102_v13 = vsel %vm577_vm5, %v11302_v8, %v13079_v58 }
 0x72e   : > { %v4979_v32 = vpop.permute.xlu0 %4978  ;;  %5485 = vmatprep.subr.bf16.mxu0 %v4925_v61 }
 0x72f   : > { %5590 = vmatpush1.bf16.msra.mxu1 %v4982_v52  ;;  %v5145_v30 = vpop.permute.xlu1 %5144  ;;  %v4985_v25 = vsel %vm707_vm6, %v4979_v32, %v11114_v22  ;;  %v4984_v28 = vsel %vm707_vm6, %v13077_v9, %v4979_v32 }
 0x730   : > { %5591 = vmatprep.subr.bf16.mxu1 %v4985_v25  ;;  %v5152_v0 = vsel %vm1149_vm11, %v5145_v30, %v5147_v48 }
 0x731   : > { %5486 = vmatpush1.bf16.msra.mxu0 %v4924_v43 }
 0x732   : > { %v5195_v56 = vpop.permute.xlu0 %5194  ;;  %5487 = vmatprep.subr.bf16.mxu0 %v5043_v12 }
 0x733   : > { %5592 = vmatpush1.bf16.msra.mxu1 %v4984_v28  ;;  %v5039_v22 = vpop.permute.xlu1 %5038 }
 0x734   : > { %5593 = vmatprep.subr.bf16.mxu1 %v5103_v34  ;;  %v5045_v20 = vsel %vm577_vm5, %v5039_v22, %v11319_v46  ;;  %v5044_v27 = vsel %vm577_vm5, %v11309_v23, %v5039_v22  ;;  %v5151_v46 = vsel %vm1149_vm11, %v11343_v42, %v11363_v51  ;;  %v5153_v23 = vsel %vm1149_vm11, %v5147_v48, %v5149_v6  ;;  %v13082_v22 = vld [vmem:[#allocation13_spill] sm:$0xff] }
 0x735   : > { %5488 = vmatpush1.bf16.msra.mxu0 %v5042_v53  ;;  %v13083_v53 = vld [vmem:[#allocation15_spill] sm:$0xff] }
 0x736   : > { %v5099_v15 = vpop.permute.xlu0 %5098  ;;  %5489 = vmatprep.subr.bf16.mxu0 %v5045_v20 }
 0x737   : > { %5594 = vmatpush1.bf16.msra.mxu1 %v5102_v13  ;;  %v5197_v47 = vpop.permute.xlu1 %5196  ;;  %v5105_v57 = vsel %vm577_vm5, %v5099_v15, %v11325_v54  ;;  %v5104_v8 = vsel %vm577_vm5, %v11336_v63, %v5099_v15  ;;  %v5150_v54 = vsel %vm1149_vm11, %v11371_v7, %v11343_v42  ;;  %v7370_v42 = vld [vmem:[%s12495_s1 + $0x90] ss:$12 sps:$4 sm:$0xff]  }
 0x738   : > { %5595 = vmatprep.subr.bf16.mxu1 %v5105_v57  ;;  %v5201_v63 = vsel %vm1149_vm11, %v5195_v56, %v5197_v47 }
 0x739   : > { %5490 = vmatpush1.bf16.msra.mxu0 %v5044_v27  ;;  %v13084_v27 = vld [vmem:[#allocation16_spill] sm:$0xff] }
 0x73a   : > { %v5193_v31 = vpop.permute.xlu0 %5192  ;;  %5491 = vmatprep.subr.bf16.mxu0 %v5151_v46 }
 0x73b   : > { %5596 = vmatpush1.bf16.msra.mxu1 %v5104_v8  ;;  %v5249_v3 = vpop.permute.xlu1 %5248  ;;  %v5200_v55 = vsel %vm1149_vm11, %v5193_v31, %v5195_v56 }
 0x73c   : > { %5597 = vmatprep.subr.bf16.mxu1 %v5199_v2 }
 0x73d   : > { %5492 = vmatpush1.bf16.msra.mxu0 %v5150_v54 }
 0x73e   : > { %v5251_v62 = vpop.permute.xlu0 %5250  ;;  %5493 = vmatprep.subr.bf16.mxu0 %v5153_v23 }
 0x73f   : > { %5598 = vmatpush1.bf16.msra.mxu1 %v5198_v21  ;;  %v5247_v50 = vpop.permute.xlu1 %5246  ;;  %v5259_v33 = vsel %vm348_vm4, %v5249_v3, %v5251_v62 }
 0x740   : > { %5599 = vmatprep.subr.bf16.mxu1 %v5201_v63  ;;  %v5258_v35 = vsel %vm348_vm4, %v5247_v50, %v5249_v3 }
 0x741   : > { %5494 = vmatpush1.bf16.msra.mxu0 %v5152_v0 }
 0x742   : > { %v5309_v49 = vpop.permute.xlu0 %5308  ;;  %5516 = vmatprep.subr.bf16.mxu0 %v5259_v33 }
 0x743   : > { %5600 = vmatpush1.bf16.msra.mxu1 %v5200_v55  ;;  %v5311_v17 = vpop.permute.xlu1 %5310 }
 0x744   : > { %5496 = vmatmul.mubr.bf16.vlgmr.msra.gmra.mrb[24].mxu0 %v7370_v42  ;;  %v5319_v51 = vsel %vm348_vm4, %v5309_v49, %v5311_v17 }
 0x745   : > { %5517 = vmatpush1.bf16.msra.mxu0 %v5258_v35  ;;  %5622 = vmatprep.subr.bf16.mxu1 %v5319_v51 }
 0x746   : > { %v5307_v24 = vpop.permute.xlu0 %5306  ;;  %5602 = vmatmul.mubr.bf16.vlgmr.msra.gmra.mrb[24].mxu1 %v7370_v42  ;;  %5505 = vmatprep.mubr.bf16.mxu0 %v7373_v14 }
 0x747   : > { %v5318_v40 = vsel %vm348_vm4, %v5307_v24, %v5309_v49  ;;  %v5253_v7 = vpop.permute.xlu1 %5252  ;;  %5611 = vmatprep.mubr.bf16.mxu1 %v7373_v14 }
 0x748   : > { %5623 = vmatpush1.bf16.msra.mxu1 %v5318_v40 }
 0x74a   : > { %v5257_v44 = vpop.permute.xlu0 %5256 }
 0x74b   : > { %v5255_v36 = vpop.permute.xlu1 %5254 }
 0x74c   : > { %5506 = vmatmul.mubr.bf16.gmra.mrb[28].mxu0 %v7375_v18  ;;  %v5261_v37 = vsel %vm348_vm4, %v5255_v36, %v5257_v44  ;;  %v5260_v60 = vsel %vm348_vm4, %v5253_v7, %v5255_v36 }
 0x74d   : > { %5518 = vmatprep.subr.bf16.mxu0 %v5261_v37  ;;  %5548 = vmatprep.mubr.bf16.mxu0 %v13081_v26 }
 0x74e   : > { %v5315_v10 = vpop.permute.xlu0 %5314  ;;  %5519 = vmatpush1.bf16.msra.mxu0 %v5260_v60  ;;  %5612 = vmatmul.mubr.bf16.gmra.mrb[28].mxu1 %v7375_v18 }
 0x74f   : > { %v5317_v45 = vpop.permute.xlu1 %5316  ;;  %5654 = vmatprep.mubr.bf16.mxu1 %v13081_v26 }
 0x750   : > { %v5321_v39 = vsel %vm348_vm4, %v5315_v10, %v5317_v45 }
 0x751   : > { %5624 = vmatprep.subr.bf16.mxu1 %v5321_v39 }
 0x752   : > { %v5313_v41 = vpop.permute.xlu0 %5312 }
 0x753   : > { %v5320_v48 = vsel %vm348_vm4, %v5313_v41, %v5315_v10 }
 0x754   : > { %7134 = vmatmul.mubr.msk.bf16.vlgmr.msra.gmra.mrb[24].mxu0 %vm1466_vm12, %v7376_v16  ;;  %5625 = vmatpush1.bf16.msra.mxu1 %v5320_v48 }
 0x755   : > { %5558 = vmatprep.mubr.bf16.mxu0 %v13081_v26 }
 0x757   : > { %7136 = vmatmul.mubr.msk.bf16.vlgmr.msra.gmra.mrb[24].mxu1 %vm1466_vm12, %v7376_v16 }
 0x758   : > { %5664 = vmatprep.mubr.bf16.mxu1 %v13081_v26 }
 0x75c   : > { %7135 = vmatmul.mubr.msk.bf16.gmra.mrb[28].mxu0 %vm1466_vm12, %v7377_v1 }
 0x75f   : > { %7137 = vmatmul.mubr.msk.bf16.gmra.mrb[28].mxu1 %vm1466_vm12, %v7377_v1 }
 0x760   : > { %v5410_v6 = vpop.permute.xlu1 %5409 }
 0x763   : > { %v5415_v61 = vpop.permute.xlu0 %5414 }
 0x764   : > { %v5420_v54 = vpop.permute.xlu1 %5419 }
 0x767   : > { %v5425_v14 = vpop.permute.xlu0 %5424 }
 0x827   : > { %v5550_v5 = vpop.f32.mrb[24].mxu0 }
 0x828   : > { %v7202_v4 = vadd.f32 %v5550_v5, %v5410_v6  ;;  %v5552_v38 = vpop.f32.mrb[25].mxu0 }
 0x829   : > { %v7203_v32 = vadd.f32 %v5552_v38, %v5410_v6  ;;  %v5554_v52 = vpop.f32.mrb[26].mxu0 }
 0x82a   : > { %v11484_v30 = vmax.f32 %v7202_v4, 0.0  ;;  %v7204_v25 = vadd.f32 %v5554_v52, %v5415_v61  ;;  %v5556_v43 = vpop.f32.mrb[27].mxu0  ;;  %v5656_v11 = vpop.f32.mrb[24].mxu1 }
 0x82b   : > { %v11486_v12 = vmax.f32 %v7203_v32, 0.0  ;;  %v7205_v56 = vadd.f32 %v5556_v43, %v5415_v61  ;;  %v7210_v9 = vadd.f32 %v5656_v11, %v5410_v6  ;;  %v5658_v28 = vpop.f32.mrb[25].mxu1 }
 0x82c   : > { %v11488_v29 = vmax.f32 %v7204_v25, 0.0  ;;  %v7211_v58 = vadd.f32 %v5658_v28, %v5410_v6  ;;  %v5660_v34 = vpop.f32.mrb[26].mxu1  ;;  %v5722_v19 = vmul.f32 %v11484_v30, %v13082_v22  ;;  %v11494_v20 = vmul.f32 %v11484_v30, %v13083_v53 }
 0x82d   : > { %v11496_v13 = vmax.f32 %v7205_v56, 0.0  ;;  %v11498_v15 = vmax.f32 %v7210_v9, 0.0  ;;  %v7212_v47 = vadd.f32 %v5660_v34, %v5415_v61  ;;  %v5662_v57 = vpop.f32.mrb[27].mxu1  ;;  %v11502_v46 = vmul.f32 %v11484_v30, %v13084_v27 }
 0x82e   : > { %v11504_v31 = vmax.f32 %v7211_v58, 0.0  ;;  %v7213_v8 = vadd.f32 %v5662_v57, %v5415_v61  ;;  %v11508_v2 = vpack.c.bf16 %v11488_v29, %v11484_v30  ;;  %v5725_v3 = vmul.f32 %v11488_v29, %v13082_v22  ;;  %v13089_v58 = vld [vmem:[#allocation8_spill] sm:$0xff] }
 0x82f   : > { %v11512_v23 = vmax.f32 %v7212_v47, 0.0  ;;  %v5560_v21 = vpop.f32.mrb[28].mxu0  ;;  %v11516_v62 = vpack.c.bf16 %v11496_v13, %v11486_v12  ;;  %v5782_v63 = vmul.f32 %v11498_v15, %v13082_v22  ;;  %v11522_v50 = vmul.f32 %v11488_v29, %v13083_v53 }
 0x830   : > { %13085 = vst [vmem:[#allocation43_spill] sm:$0xff] %v11508_v2  ;;  %v11524_v0 = vmax.f32 %v7213_v8, 0.0  ;;  %v7206_v42 = vadd.f32 %v5560_v21, %v5420_v54  ;;  %v5562_v33 = vpop.f32.mrb[29].mxu0  ;;  %5855 = vrot.lane.b32.xlu1 %v11508_v2, %s7411_s30  ;;  %v5734_v55 = vpack.c.bf16 %v5725_v3, %v5722_v19  ;;  %v11530_v49 = vmul.f32 %v11498_v15, %v13083_v53  ;;  %v13090_v8 = vld [vmem:[#allocation18_spill] sm:$0xff] }
 0x831   : > { %13086 = vst [vmem:[#allocation45_spill] sm:$0xff] %v11516_v62  ;;  %v7207_v17 = vadd.f32 %v5562_v33, %v5420_v54  ;;  %v5564_v35 = vpop.f32.mrb[30].mxu0  ;;  %v11534_v51 = vpack.c.bf16 %v11512_v23, %v11498_v15  ;;  %v5785_v24 = vmul.f32 %v11512_v23, %v13082_v22  ;;  %v5950_v40 = vpack.c.bf16 %v11522_v50, %v11494_v20  ;;  %v13091_v33 = vld [vmem:[#allocation10_spill] sm:$0xff] }
 0x832   : > { %v11540_v7 = vmax.f32 %v7206_v42, 0.0  ;;  %v7208_v18 = vadd.f32 %v5564_v35, %v5425_v14  ;;  %v5566_v44 = vpop.f32.mrb[31].mxu0  ;;  %v5666_v36 = vpop.f32.mrb[28].mxu1  ;;  %v11544_v37 = vpack.c.bf16 %v11524_v0, %v11504_v31  ;;  %v6001_v60 = vmul.f32 %v11512_v23, %v13083_v53 }
 0x833   : > { %13087 = vst [vmem:[#allocation24_spill] sm:$0xff] %v11534_v51  ;;  %v11548_v10 = vmax.f32 %v7207_v17, 0.0  ;;  %v7209_v45 = vadd.f32 %v5566_v44, %v5425_v14  ;;  %v7214_v39 = vadd.f32 %v5666_v36, %v5420_v54  ;;  %v5668_v16 = vpop.f32.mrb[29].mxu1  ;;  %5903 = vrot.lane.b32.xlu0 %v11534_v51, %s7411_s30  ;;  %v5794_v41 = vpack.c.bf16 %v5785_v24, %v5782_v63 }
 0x834   : > { %13088 = vst [vmem:[#allocation32_spill] sm:$0xff] %v11544_v37  ;;  %v11552_v48 = vmax.f32 %v7208_v18, 0.0  ;;  %v7215_v1 = vadd.f32 %v5668_v16, %v5420_v54  ;;  %v5670_v6 = vpop.f32.mrb[30].mxu1  ;;  %5905 = vrot.lane.b32.xlu1 %v11544_v37, %s7411_s30  ;;  %v6010_v5 = vpack.c.bf16 %v6001_v60, %v11530_v49  ;;  %v6061_v4 = vmul.f32 %v11488_v29, %v13084_v27  ;;  %v13092_v18 = vld [vmem:[#allocation11_spill] sm:$0xff] }
 0x835   : > { %v11559_v38 = vmax.f32 %v7209_v45, 0.0  ;;  %v11561_v61 = vmax.f32 %v7214_v39, 0.0  ;;  %v7216_v32 = vadd.f32 %v5670_v6, %v5425_v14  ;;  %v5672_v52 = vpop.f32.mrb[31].mxu1  ;;  %v6118_v25 = vmul.f32 %v11498_v15, %v13084_v27 }
 0x836   : > { %v11565_v43 = vmax.f32 %v7215_v1, 0.0  ;;  %v7217_v11 = vadd.f32 %v5672_v52, %v5425_v14  ;;  %v6070_v56 = vpack.c.bf16 %v6061_v4, %v11502_v46  ;;  %v6121_v9 = vmul.f32 %v11512_v23, %v13084_v27 }
 0x837   : > { %v11570_v28 = vmax.f32 %v7216_v32, 0.0  ;;  %5857 = vrot.lane.b32.xlu0 %v11516_v62, %s7411_s30  ;;  %v6209_v34 = vmul.f32 %v13089_v58, %v11484_v30  ;;  %v6212_v19 = vmul.f32 %v13089_v58, %v11488_v29  ;;  %v11580_v20 = vmul.f32 %v13089_v58, %v11498_v15 }
 0x838   : > { %v11582_v47 = vmax.f32 %v7217_v11, 0.0  ;;  %5747 = vrot.lane.b32.xlu1 %v5734_v55, %s7413_s6  ;;  %v6130_v57 = vpack.c.bf16 %v6121_v9, %v6118_v25  ;;  %v11587_v46 = vmul.f32 %v13089_v58, %v11512_v23  ;;  %v11591_v3 = vmul.f32 %v13090_v8, %v11484_v30  ;;  %v13094_v25 = vld [vmem:[#allocation17_spill] sm:$0xff] }
 0x839   : > { %v6221_v54 = vpack.c.bf16 %v6212_v19, %v6209_v34  ;;  %v11595_v21 = vmul.f32 %v13090_v8, %v11488_v29  ;;  %v11599_v63 = vmul.f32 %v13090_v8, %v11498_v15  ;;  %v11603_v50 = vmul.f32 %v13090_v8, %v11512_v23 }
 0x83a   : > { %v6281_v42 = vpack.c.bf16 %v11587_v46, %v11580_v20  ;;  %v11609_v55 = vmul.f32 %v13091_v33, %v11504_v31  ;;  %v11613_v49 = vmul.f32 %v13091_v33, %v11524_v0  ;;  %v11617_v14 = vmul.f32 %v13091_v33, %v11486_v12  ;;  %v13095_v46 = vld [vmem:[#allocation19_spill] sm:$0xff] }
 0x83b   : > { %5807 = vrot.lane.b32.xlu0 %v5794_v41, %s7413_s6  ;;  %v6341_v17 = vpack.c.bf16 %v11595_v21, %v11591_v3  ;;  %v11626_v24 = vmul.f32 %v13091_v33, %v11496_v13  ;;  %v11630_v44 = vmul.f32 %v13092_v18, %v11504_v31  ;;  %v11637_v60 = vmul.f32 %v13092_v18, %v11524_v0 }
 0x83c   : > { %5963 = vrot.lane.b32.xlu1 %v5950_v40, %s7410_s29  ;;  %v11641_v45 = vmul.f32 %v13092_v18, %v11486_v12  ;;  %v11645_v39 = vmul.f32 %v13092_v18, %v11496_v13  ;;  %v13093_v40 = vld [vmem:[#allocation12_spill] sm:$0xff]  ;;  %v11671_v11 = vmul.f32 %v11486_v12, %v13094_v25  ;;  %v11678_v34 = vmul.f32 %v11496_v13, %v13094_v25 }
 0x83d   : > { %v11651_v41 = vmul.f32 %v13093_v40, %v11504_v31  ;;  %v11655_v1 = vmul.f32 %v13093_v40, %v11524_v0  ;;  %v11659_v6 = vmul.f32 %v13093_v40, %v11486_v12  ;;  %v11667_v52 = vmul.f32 %v13093_v40, %v11496_v13 }
 0x83e   : > { %v11682_v19 = vmul.f32 %v11504_v31, %v13094_v25  ;;  %v11686_v20 = vmul.f32 %v11524_v0, %v13094_v25  ;;  %v11693_v3 = vmul.f32 %v11486_v12, %v13095_v46  ;;  %v11697_v21 = vmul.f32 %v11496_v13, %v13095_v46 }
 0x83f   : > { %6023 = vrot.lane.b32.xlu0 %v6010_v5, %s7410_s29  ;;  %v11701_v9 = vmul.f32 %v11504_v31, %v13095_v46  ;;  %v11709_v5 = vmul.f32 %v11524_v0, %v13095_v46  ;;  %v11713_v4 = vpack.c.bf16 %v11552_v48, %v11540_v7  ;;  %v11719_v36 = vpack.c.bf16 %v11570_v28, %v11561_v61 }
 0x840   : > { %6083 = vrot.lane.b32.xlu1 %v6070_v56, %s7409_s28  ;;  %v11723_v32 = vpack.c.bf16 %v11582_v47, %v11565_v43  ;;  %v11727_v56 = vpack.c.bf16 %v11559_v38, %v11548_v10  ;;  %v11734_v16 = vmul.f32 %v11540_v7, %v13082_v22  ;;  %v11738_v26 = vmul.f32 %v11552_v48, %v13082_v22 }
 0x841   : > { %v11742_v51 = vmul.f32 %v11561_v61, %v13082_v22  ;;  %v11751_v35 = vmul.f32 %v11540_v7, %v13083_v53  ;;  %v11755_v37 = vmul.f32 %v11552_v48, %v13083_v53  ;;  %v11759_v2 = vmul.f32 %v11561_v61, %v13083_v53 }
 0x842   : > { %13096 = vst [vmem:[#allocation44_spill] sm:$0xff] %v11723_v32  ;;  %13097 = vst [vmem:[#allocation23_spill] sm:$0xff] %v11727_v56  ;;  %v11773_v59 = vmul.f32 %v11552_v48, %v13084_v27  ;;  %v11781_v62 = vmul.f32 %v11561_v61, %v13084_v27  ;;  %v11794_v56 = vmul.f32 %v13089_v58, %v11540_v7 }
 0x843   : > { %6143 = vrot.lane.b32.xlu0 %v6130_v57, %s7409_s28  ;;  %13098 = vst [vmem:[#allocation31_spill] sm:$0xff] %v11734_v16  ;;  %13099 = vst [vmem:[#allocation29_spill] sm:$0xff] %v11738_v26  ;;  %v11747_v57 = vmul.f32 %v11570_v28, %v13082_v22  ;;  %v11769_v22 = vmul.f32 %v11540_v7, %v13084_v27  ;;  %v11798_v32 = vmul.f32 %v13089_v58, %v11552_v48 }
 0x844   : > { %6233 = vrot.lane.b32.xlu1 %v6221_v54, %s7407_s26  ;;  %v11765_v54 = vmul.f32 %v11570_v28, %v13083_v53  ;;  %13101 = vst [vmem:[#allocation34_spill] sm:$0xff] %v11773_v59  ;;  %13102 = vst [vmem:[#allocation33_spill] sm:$0xff] %v11781_v62  ;;  %v11785_v53 = vmul.f32 %v11570_v28, %v13084_v27  ;;  %v11809_v26 = vmul.f32 %v13089_v58, %v11570_v28 }
 0x845   : > { %13100 = vst [vmem:[#allocation30_spill] sm:$0xff] %v11769_v22  ;;  %13104 = vst [vmem:[#allocation40_spill] sm:$0xff] %v11794_v56  ;;  %v11813_v16 = vmul.f32 %v13090_v8, %v11540_v7  ;;  %v11823_v27 = vmul.f32 %v13091_v33, %v11548_v10  ;;  %v11827_v62 = vmul.f32 %v13091_v33, %v11559_v38 }
 0x846   : > { %13103 = vst [vmem:[#allocation37_spill] sm:$0xff] %v11785_v53  ;;  %13105 = vst [vmem:[#allocation27_spill] sm:$0xff] %v11798_v32  ;;  %v11833_v53 = vmul.f32 %v13091_v33, %v11565_v43  ;;  %v11837_v22 = vmul.f32 %v13091_v33, %v11582_v47  ;;  %v11841_v56 = vmul.f32 %v13090_v8, %v11561_v61 }
 0x847   : > { %6293 = vrot.lane.b32.xlu0 %v6281_v42, %s7407_s26  ;;  %v11805_v42 = vmul.f32 %v13089_v58, %v11561_v61  ;;  %13107 = vst [vmem:[#allocation35_spill] sm:$0xff] %v11809_v26  ;;  %v13109_v32 = vpack.c.bf16 %v11603_v50, %v11599_v63  ;;  %v11853_v26 = vmul.f32 %v13090_v8, %v11570_v28 }
 0x848   : > { %6353 = vrot.lane.b32.xlu1 %v6341_v17, %s7408_s27  ;;  %v11819_v17 = vmul.f32 %v13090_v8, %v11552_v48  ;;  %13108 = vst [vmem:[#allocation42_spill] sm:$0xff] %v11841_v56  ;;  %v11857_v33 = vmul.f32 %v13092_v18, %v11548_v10  ;;  %v13111_v59 = vpack.c.bf16 %v11613_v49, %v11609_v55 }
 0x849   : > { %13106 = vst [vmem:[#allocation38_spill] sm:$0xff] %v11805_v42  ;;  %13110 = vst [vmem:[#allocation39_spill] sm:$0xff] %v11853_v26  ;;  %v11867_v50 = vmul.f32 %v13092_v18, %v11559_v38  ;;  %v11871_v8 = vmul.f32 %v13092_v18, %v11565_v43  ;;  %v11885_v55 = vmul.f32 %v13093_v40, %v11559_v38 }
 0x84a   : > { %v11889_v49 = vmul.f32 %v13093_v40, %v11565_v43  ;;  %v11897_v42 = vmul.f32 %v13093_v40, %v11582_v47  ;;  %v11901_v58 = vmul.f32 %v11548_v10, %v13094_v25  ;;  %v13116_v56 = vpack.c.bf16 %v11626_v24, %v11617_v14 }
 0x84b   : > { %6413 = vrot.lane.b32.xlu0 %v13109_v32, %s7408_s27  ;;  %v11875_v32 = vmul.f32 %v13092_v18, %v11582_v47  ;;  %v11911_v63 = vmul.f32 %v11559_v38, %v13094_v25  ;;  %v11919_v18 = vmul.f32 %v11582_v47, %v13094_v25  ;;  %v13117_v14 = vpack.c.bf16 %v11637_v60, %v11630_v44 }
 0x84c   : > { %5809 = vrot.lane.b32.xlu1 %v13111_v59, %s7413_s6  ;;  %v11881_v59 = vmul.f32 %v13093_v40, %v11548_v10  ;;  %13113 = vst [vmem:[#allocation6_spill] sm:$0xff] %v11889_v49  ;;  %13114 = vst [vmem:[#allocation7_spill] sm:$0xff] %v11897_v42  ;;  %v11915_v40 = vmul.f32 %v11565_v43, %v13094_v25  ;;  %v11933_v26 = vmul.f32 %v11559_v38, %v13095_v46 }
 0x84d   : > { %13115 = vst [vmem:[#allocation9_spill] sm:$0xff] %v11901_v58  ;;  %v11937_v25 = vmul.f32 %v11565_v43, %v13095_v46  ;;  %v11945_v60 = vmul.f32 %v11582_v47, %v13095_v46 }
 0x84e   : > { %13112 = vst [vmem:[#allocation28_spill] sm:$0xff] %v11881_v59  ;;  %v13119_v59 = vld [vmem:[#allocation21_spill] sm:$0xff] }
 0x84f   : > { %5749 = vrot.lane.b32.xlu0 %v13116_v56, %s7413_s6  ;;  %v11929_v56 = vmul.f32 %v11548_v10, %v13095_v46  ;;  %v11959_v58 = vmul.f32 %v13119_v59, %v11484_v30  ;;  %v11963_v44 = vmul.f32 %v13119_v59, %v11488_v29  ;;  %v6405_v46 = vpack.c.bf16 %v11945_v60, %v11937_v25 }
 0x850   : > { %6025 = vrot.lane.b32.xlu1 %v13117_v14, %s7410_s29  ;;  %v13118_v14 = vld [vmem:[#allocation22_spill] sm:$0xff]  ;;  %v11981_v29 = vmul.f32 %v13119_v59, %v11498_v15 }
 0x851   : > { %v11949_v24 = vmul.f32 %v11486_v12, %v13118_v14  ;;  %v6345_v49 = vpack.c.bf16 %v11933_v26, %v11929_v56  ;;  %v11955_v42 = vmul.f32 %v11496_v13, %v13118_v14  ;;  %v13120_v12 = vpack.c.bf16 %v11645_v39, %v11641_v45 }
 0x852   : > { %v11973_v13 = vmul.f32 %v11504_v31, %v13118_v14  ;;  %v11977_v30 = vmul.f32 %v11524_v0, %v13118_v14  ;;  %v13121_v45 = vpack.c.bf16 %v11655_v1, %v11651_v41  ;;  %v6557_v31 = vpack.c.bf16 %v11963_v44, %v11959_v58 }
 0x853   : > { %5965 = vrot.lane.b32.xlu0 %v13120_v12, %s7410_s29  ;;  %v6558_v39 = vpack.c.bf16 %v11955_v42, %v11949_v24  ;;  %v11993_v12 = vmul.f32 %v13119_v59, %v11512_v23  ;;  %v11997_v0 = vmul.f32 %v13119_v59, %v11540_v7  ;;  %v12003_v41 = vmul.f32 %v13119_v59, %v11552_v48 }
 0x854   : > { %6145 = vrot.lane.b32.xlu1 %v13121_v45, %s7409_s28  ;;  %v12007_v1 = vmul.f32 %v11548_v10, %v13118_v14  ;;  %v12011_v45 = vmul.f32 %v11559_v38, %v13118_v14  ;;  %v12017_v7 = vmul.f32 %v11565_v43, %v13118_v14  ;;  %v12021_v15 = vmul.f32 %v11582_v47, %v13118_v14 }
 0x855   : > { %v13122_v10 = vpack.c.bf16 %v11667_v52, %v11659_v6  ;;  %v12033_v23 = vmul.f32 %v13119_v59, %v11561_v61  ;;  %v12037_v43 = vmul.f32 %v13119_v59, %v11570_v28  ;;  %v13123_v47 = vpack.c.bf16 %v11678_v34, %v11671_v11  ;;  %v12061_v34 = vpop.permute.xlu1 %5745 }
 0x856   : > { %v13124_v61 = vpack.c.bf16 %v11686_v20, %v11682_v19  ;;  %v13125_v28 = vpack.c.bf16 %v11697_v21, %v11693_v3  ;;  %v13126_v11 = vpack.c.bf16 %v11709_v5, %v11701_v9  ;;  %v13127_v19 = vld [vmem:[#allocation44_spill] sm:$0xff]  ;;  %v12067_v20 = vpop.permute.xlu0 %5805  ;;  %v13128_v3 = vld [vmem:[#allocation23_spill] sm:$0xff]  ;;  %v13129_v9 = vld [vmem:[#allocation29_spill] sm:$0xff]  ;;  %v13171_v42 = vpack.c.bf16 %v11977_v30, %v11973_v13 }
 0x857   : > { %6085 = vrot.lane.b32.xlu0 %v13122_v10, %s7409_s28  ;;  %v13130_v5 = vld [vmem:[#allocation31_spill] sm:$0xff]  ;;  %v13132_v10 = vpack.c.bf16 %v11747_v57, %v11742_v51  ;;  %v13138_v51 = vld [vmem:[#allocation37_spill] sm:$0xff]  ;;  %v13172_v58 = vpack.c.bf16 %v11993_v12, %v11981_v29  ;;  %v13173_v44 = vpack.c.bf16 %v12003_v41, %v11997_v0  ;;  %v13174_v13 = vpack.c.bf16 %v12011_v45, %v12007_v1  ;;  %v6725_v1 = vld [vmem:[%s12498_s4] sm:$0xff] }
 0x858   : > { %6235 = vrot.lane.b32.xlu1 %v13123_v47, %s7407_s26  ;;  %v13131_v59 = vpack.c.bf16 %v13129_v9, %v13130_v5  ;;  %v13133_v47 = vpack.c.bf16 %v11755_v37, %v11751_v35  ;;  %v13136_v9 = vld [vmem:[#allocation30_spill] sm:$0xff]  ;;  %v13139_v57 = vld [vmem:[#allocation33_spill] sm:$0xff]  ;;  %v13141_v35 = vld [vmem:[#allocation27_spill] sm:$0xff]  ;;  %v13175_v29 = vpack.c.bf16 %v12021_v15, %v12017_v7 }
 0x859   : > { %v12071_v21 = vpop.permute.xlu1 %5751 }
 0x85a   : > { %v12077_v14 = vpop.permute.xlu0 %5811 }
 0x85b   : > { %6295 = vrot.lane.b32.xlu0 %v13124_v61, %s7407_s26 }
 0x85c   : > { %6355 = vrot.lane.b32.xlu1 %v13125_v28, %s7408_s27  ;;  %v13134_v28 = vpack.c.bf16 %v11765_v54, %v11759_v2  ;;  %v13144_v54 = vld [vmem:[#allocation35_spill] sm:$0xff] }
 0x85d   : > { %v12087_v61 = vpop.permute.xlu1 %5853 }
 0x85f   : > { %6415 = vrot.lane.b32.xlu0 %v13126_v11, %s7408_s27  ;;  %v13135_v11 = vld [vmem:[#allocation34_spill] sm:$0xff] }
 0x860   : > { %5861 = vrot.lane.b32.xlu1 %v11713_v4, %s7411_s30  ;;  %v13137_v5 = vpack.c.bf16 %v13135_v11, %v13136_v9  ;;  %v13147_v9 = vpack.c.bf16 %v11819_v17, %v11813_v16 }
 0x861   : > { %v12103_v37 = vpop.permute.xlu1 %5859 }
 0x863   : > { %5909 = vrot.lane.b32.xlu0 %v11719_v36, %s7411_s30 }
 0x864   : > { %5911 = vrot.lane.b32.xlu1 %v13127_v19, %s7411_s30 }
 0x867   : > { %5863 = vrot.lane.b32.xlu0 %v13128_v3, %s7411_s30 }
 0x868   : > { %5753 = vrot.lane.b32.xlu1 %v13131_v59, %s7413_s6  ;;  %v12097_v59 = vpop.permute.xlu0 %5901 }
 0x86b   : > { %5813 = vrot.lane.b32.xlu0 %v13132_v10, %s7413_s6  ;;  %v13140_v10 = vpack.c.bf16 %v13138_v51, %v13139_v57  ;;  %v13148_v51 = vpack.c.bf16 %v11827_v62, %v11823_v27  ;;  %v13151_v62 = vld [vmem:[#allocation39_spill] sm:$0xff]  ;;  %v13152_v27 = vld [vmem:[#allocation42_spill] sm:$0xff] }
 0x86c   : > { %5969 = vrot.lane.b32.xlu1 %v13133_v47, %s7410_s29  ;;  %v13142_v47 = vld [vmem:[#allocation40_spill] sm:$0xff]  ;;  %v12109_v2 = vpop.permute.xlu0 %5907  ;;  %v13153_v17 = vpack.c.bf16 %v13151_v62, %v13152_v27  ;;  %v13162_v27 = vld [vmem:[#allocation7_spill] sm:$0xff] }
 0x86d   : > { %v13143_v52 = vpack.c.bf16 %v13141_v35, %v13142_v47  ;;  %v13155_v47 = vmov 0.0|0.0  }
 0x86f   : > { %6029 = vrot.lane.b32.xlu0 %v13134_v28, %s7410_s29  ;;  %v13145_v28 = vld [vmem:[#allocation38_spill] sm:$0xff] }
 0x870   : > { %6089 = vrot.lane.b32.xlu1 %v13137_v5, %s7409_s28  ;;  %v13146_v11 = vpack.c.bf16 %v13144_v54, %v13145_v28  ;;  %v12119_v5 = vpop.permute.xlu1 %5961  ;;  %v12129_v57 = vpop.permute.xlu0 %6021  ;;  %v13156_v54 = vld [vmem:[#allocation43_spill] sm:$0xff] }
 0x873   : > { %6149 = vrot.lane.b32.xlu0 %v13140_v10, %s7409_s28  ;;  %v13150_v10 = vld [vmem:[#allocation20_spill] sm:$0xff] }
 0x874   : > { %6239 = vrot.lane.b32.xlu1 %v13143_v52, %s7407_s26  ;;  %v13149_v52 = vpack.c.bf16 %v11837_v22, %v11833_v53  ;;  %v12133_v35 = vpop.permute.xlu1 %5967  ;;  %v12137_v16 = vpop.permute.xlu0 %6027  ;;  %v13154_v22 = vld [vmem:[#allocation45_spill] sm:$0xff] }
 0x877   : > { %6299 = vrot.lane.b32.xlu0 %v13146_v11, %s7407_s26  ;;  %v13157_v11 = vpack.c.bf16 %v11867_v50, %v11857_v33  ;;  %v13160_v33 = vld [vmem:[#allocation28_spill] sm:$0xff] }
 0x878   : > { %6359 = vrot.lane.b32.xlu1 %v13147_v9, %s7408_s27  ;;  %v12145_v53 = vpop.permute.xlu1 %6081  ;;  %v12151_v28 = vpop.permute.xlu0 %6141  ;;  %v13161_v50 = vpack.c.bf16 %v11885_v55, %v13160_v33  ;;  %v13166_v33 = vld [vmem:[#allocation9_spill] sm:$0xff] }
 0x87b   : > { %5755 = vrot.lane.b32.xlu0 %v13148_v51, %s7413_s6  ;;  %v13158_v51 = vpack.c.bf16 %v11875_v32, %v11871_v8 }
 0x87c   : > { %5815 = vrot.lane.b32.xlu1 %v13149_v52, %s7413_s6  ;;  %v12157_v9 = vpop.permute.xlu1 %6087  ;;  %v12163_v52 = vpop.permute.xlu0 %6147  ;;  %s7153_s6 = sshll.u32 %s13187_s20, 4 }
 0x87d   : > { %s12481_s14 = scalar_lea.vmem %s12499_s5, %s7153_s6 }
 0x87f   : > { %6363 = vrot.lane.b32.xlu0 %v13150_v10, %s7408_s27 }
 0x880   : > { %6423 = vrot.lane.b32.xlu1 %v13150_v10, %s7408_s27  ;;  %v13159_v10 = vld [vmem:[#allocation32_spill] sm:$0xff]  ;;  %v12169_v62 = vpop.permute.xlu1 %6297  ;;  %v12179_v32 = vpop.permute.xlu0 %6237 }
 0x883   : > { %6419 = vrot.lane.b32.xlu0 %v13153_v17, %s7408_s27  ;;  %v13163_v17 = vld [vmem:[#allocation6_spill] sm:$0xff] }
 0x884   : > { %6463 = vrot.lane.b32.xlu1 %v13154_v22, %s7415_s7  ;;  %v13164_v8 = vpack.c.bf16 %v13162_v27, %v13163_v17  ;;  %v12187_v6 = vpop.permute.xlu0 %6243 }
 0x887   : > { %6465 = vrot.lane.b32.xlu0 %v13155_v47, %s7415_s7 }
 0x888   : > { %6461 = vrot.lane.b32.xlu1 %v13156_v54, %s7415_s7  ;;  %v6358_v27 = vpop.permute.xlu0 %6357 }
 0x88b   : > { %5971 = vrot.lane.b32.xlu0 %v13157_v11, %s7410_s29  ;;  %v13165_v11 = vld [vmem:[#allocation24_spill] sm:$0xff] }
 0x88c   : > { %6031 = vrot.lane.b32.xlu1 %v13158_v51, %s7410_s29  ;;  %v12183_v51 = vpop.permute.xlu1 %6303 }
 0x88f   : > { %6511 = vrot.lane.b32.xlu0 %v13159_v10, %s7415_s7 }
 0x890   : > { %6513 = vrot.lane.b32.xlu1 %v13155_v47, %s7415_s7  ;;  %v12193_v55 = vpop.permute.xlu1 %6417 }
 0x893   : > { %6091 = vrot.lane.b32.xlu0 %v13161_v50, %s7409_s28  ;;  %v13167_v50 = vpack.c.bf16 %v11911_v63, %v13166_v33  ;;  %v12228_v33 = vld [vmem:[%s12497_s3] sm:$0xff] }
 0x894   : > { %6151 = vrot.lane.b32.xlu1 %v13164_v8, %s7409_s28  ;;  %v13168_v8 = vpack.c.bf16 %v11919_v18, %v11915_v40  ;;  %13169 = vst [vmem:[#allocation14_spill] sm:$0xff] %v12228_v33  ;;  %v7139_v26 = vcombine.high %v12228_v33, %v12228_v33 }
 0x896   : > { %6776 = vmatprep.mubr.bf16.mxu0 %v7139_v26  ;;  %6858 = vmatprep.mubr.bf16.mxu1 %v7139_v26 }
 0x897   : > { %6509 = vrot.lane.b32.xlu0 %v13165_v11, %s7415_s7 }
 0x898   : > { %6469 = vrot.lane.b32.xlu1 %v13128_v3, %s7415_s7 }
 0x89b   : > { %6471 = vrot.lane.b32.xlu0 %v13155_v47, %s7415_s7 }
 0x89c   : > { %6467 = vrot.lane.b32.xlu1 %v11713_v4, %s7415_s7 }
 0x89f   : > { %6517 = vrot.lane.b32.xlu0 %v13127_v19, %s7415_s7 }
 0x8a0   : > { %6241 = vrot.lane.b32.xlu1 %v13167_v50, %s7407_s26 }
 0x8a2   : > { %v12201_v17 = vpop.permute.xlu1 %5855 }
 0x8a3   : > { %6301 = vrot.lane.b32.xlu0 %v13168_v8, %s7407_s26 }
 0x8a4   : > { %6519 = vrot.lane.b32.xlu1 %v13155_v47, %s7415_s7 }
 0x8a5   : > { %v12209_v38 = vpop.permute.xlu0 %5903 }
 0x8a6   : > { %v5906_v48 = vpop.permute.xlu1 %5905 }
 0x8a7   : > { %6515 = vrot.lane.b32.xlu0 %v11719_v36, %s7415_s7  ;;  %v12215_v63 = vsel %vm498_vm10, %v12209_v38, %v5906_v48  ;;  %v13170_v48 = vld [vmem:[#allocation25_spill] sm:$0xff] }
 0x8a8   : > { %6361 = vrot.lane.b32.xlu1 %v6345_v49, %s7408_s27 }
 0x8a9   : > { %v5858_v18 = vpop.permute.xlu0 %5857 }
 0x8aa   : > { %v5748_v40 = vpop.permute.xlu1 %5747  ;;  %v12223_v47 = vsel %vm498_vm10, %v12201_v17, %v5858_v18 }
 0x8ab   : > { %6421 = vrot.lane.b32.xlu0 %v6405_v46, %s7408_s27  ;;  %v5757_v7 = vsel %vm389_vm9, %v12061_v34, %v5748_v40 }
 0x8ac   : > { %6571 = vrot.lane.b32.xlu1 %v6558_v39, %s7406_s25 }
 0x8ad   : > { %v5808_v49 = vpop.permute.xlu0 %5807 }
 0x8ae   : > { %v12240_v56 = vpop.permute.xlu1 %5963  ;;  %v5817_v0 = vsel %vm389_vm9, %v12067_v20, %v5808_v49  ;;  %v13176_v20 = vpack.c.bf16 %v12037_v43, %v12033_v23 }
 0x8af   : > { %6573 = vrot.lane.b32.xlu0 %v13170_v48, %s7406_s25 }
 0x8b0   : > { %6569 = vrot.lane.b32.xlu1 %v6557_v31, %s7406_s25 }
 0x8b1   : > { %v12248_v25 = vpop.permute.xlu0 %6023 }
 0x8b2   : > { %v12250_v60 = vpop.permute.xlu1 %6083 }
 0x8b3   : > { %6631 = vrot.lane.b32.xlu0 %v13171_v42, %s7406_s25 }
 0x8b4   : > { %6633 = vrot.lane.b32.xlu1 %v13170_v48, %s7406_s25 }
 0x8b5   : > { %v12258_v24 = vpop.permute.xlu0 %6143 }
 0x8b6   : > { %v6234_v46 = vpop.permute.xlu1 %6233 }
 0x8b7   : > { %6629 = vrot.lane.b32.xlu0 %v13172_v58, %s7406_s25 }
 0x8b8   : > { %6575 = vrot.lane.b32.xlu1 %v13173_v44, %s7406_s25 }
 0x8b9   : > { %v6294_v39 = vpop.permute.xlu0 %6293 }
 0x8ba   : > { %v6354_v31 = vpop.permute.xlu1 %6353 }
 0x8bb   : > { %6579 = vrot.lane.b32.xlu0 %v13170_v48, %s7406_s25 }
 0x8bc   : > { %6577 = vrot.lane.b32.xlu1 %v13174_v13, %s7406_s25 }
 0x8bd   : > { %v6414_v30 = vpop.permute.xlu0 %6413 }
 0x8be   : > { %v5810_v50 = vpop.permute.xlu1 %5809 }
 0x8bf   : > { %6637 = vrot.lane.b32.xlu0 %v13175_v29, %s7406_s25  ;;  %v5818_v12 = vsel %vm389_vm9, %v5808_v49, %v5810_v50 }
 0x8c0   : > { %6639 = vrot.lane.b32.xlu1 %v13170_v48, %s7406_s25  ;;  %6826 = vmatprep.subr.bf16.mxu1 %v5818_v12 }
 0x8c1   : > { %v5750_v41 = vpop.permute.xlu0 %5749  ;;  %6827 = vmatpush1.bf16.msra.mxu1 %v5817_v0 }
 0x8c2   : > { %v12286_v45 = vpop.permute.xlu1 %6025  ;;  %v5758_v15 = vsel %vm389_vm9, %v5748_v40, %v5750_v41 }
 0x8c3   : > { %6635 = vrot.lane.b32.xlu0 %v13176_v20, %s7406_s25  ;;  %6744 = vmatprep.subr.bf16.mxu0 %v5758_v15 }
 0x8c4   : > { %6728 = vperm.xlu1 %7345, %v6725_v1   ;;  %6745 = vmatpush1.bf16.msra.mxu0 %v5757_v7 }
 0x8c5   : > { %v5966_v8 = vpop.permute.xlu0 %5965 }
 0x8c6   : > { %v12295_v18 = vpop.permute.xlu1 %6145 }
 0x8c9   : > { %v12297_v26 = vpop.permute.xlu0 %6085 }
 0x8ca   : > { %v12299_v49 = vpop.permute.xlu1 %6235 }
 0x8cb   : > { %v12303_v48 = vsel %vm707_vm6, %v6234_v46, %v12299_v49 }
 0x8cd   : > { %v12305_v34 = vpop.permute.xlu0 %6295 }
 0x8ce   : > { %v12309_v23 = vsel %vm707_vm6, %v6294_v39, %v12305_v34  ;;  %v6356_v43 = vpop.permute.xlu1 %6355 }
 0x8cf   : > { %v12312_v40 = vsel %vm577_vm5, %v6354_v31, %v6356_v43  ;;  %v12315_v42 = vsel %vm577_vm5, %v6356_v43, %v6358_v27 }
 0x8d0   : > { %13177 = vst [vmem:[#allocation4_spill] sm:$0xff] %v12312_v40 }
 0x8d1   : > { %v6416_v58 = vpop.permute.xlu0 %6415 }
 0x8d2   : > { %v12318_v44 = vsel %vm577_vm5, %v6414_v30, %v6416_v58  ;;  %v5862_v13 = vpop.permute.xlu1 %5861  ;;  %v12322_v46 = vsel %vm577_vm5, %v6416_v58, %v12193_v55 }
 0x8d3   : > { %13178 = vst [vmem:[#allocation5_spill] sm:$0xff] %v12318_v44 }
 0x8d5   : > { %v5910_v50 = vpop.permute.xlu0 %5909 }
 0x8d6   : > { %v5912_v29 = vpop.permute.xlu1 %5911 }
 0x8d9   : > { %v5864_v39 = vpop.permute.xlu0 %5863 }
 0x8da   : > { %v5754_v12 = vpop.permute.xlu1 %5753 }
 0x8db   : > { %v5759_v58 = vsel %vm389_vm9, %v12071_v21, %v5754_v12  ;;  %v5865_v21 = vsel %vm498_vm10, %v12087_v61, %v12201_v17  ;;  %v5915_v61 = vsel %vm498_vm10, %v12109_v2, %v5910_v50  ;;  %v6034_v17 = vsel %vm618_vm8, %v12248_v25, %v12286_v45 }
 0x8dc   : > { %v6033_v2 = vsel %vm618_vm8, %v12129_v57, %v12248_v25  ;;  %v6153_v25 = vsel %vm748_vm7, %v12151_v28, %v12258_v24 }
 0x8dd   : > { %v5814_v0 = vpop.permute.xlu0 %5813 }
 0x8de   : > { %v5970_v41 = vpop.permute.xlu1 %5969  ;;  %v5819_v44 = vsel %vm389_vm9, %v12077_v14, %v5814_v0  ;;  %v5868_v14 = vsel %vm498_vm10, %v5862_v13, %v5864_v39 }
 0x8df   : > { %v5975_v45 = vsel %vm618_vm8, %v12133_v35, %v5970_v41  ;;  %v6154_v35 = vsel %vm748_vm7, %v12258_v24, %v12295_v18 }
 0x8e1   : > { %v6030_v31 = vpop.permute.xlu0 %6029 }
 0x8e2   : > { %v12324_v1 = vpop.permute.xlu1 %6089 }
 0x8e3   : > { %v6095_v18 = vsel %vm748_vm7, %v12157_v9, %v12324_v1 }
 0x8e5   : > { %v12326_v27 = vpop.permute.xlu0 %6149 }
 0x8e6   : > { %v12328_v15 = vpop.permute.xlu1 %6239 }
 0x8e9   : > { %v12330_v30 = vpop.permute.xlu0 %6299 }
 0x8ea   : > { %v12332_v7 = vpop.permute.xlu1 %6359 }
 0x8eb   : > { %13179 = vst [vmem:[#allocation36_spill] sm:$0xff] %v12332_v7 }
 0x8ed   : > { %v5756_v20 = vpop.permute.xlu0 %5755 }
 0x8ee   : > { %v5816_v55 = vpop.permute.xlu1 %5815  ;;  %v5760_v43 = vsel %vm389_vm9, %v5754_v12, %v5756_v20  ;;  %v5913_v12 = vsel %vm498_vm10, %v12097_v59, %v12209_v38  ;;  %v5974_v38 = vsel %vm618_vm8, %v12240_v56, %v5966_v8 }
 0x8ef   : > { %6746 = vmatprep.subr.bf16.mxu0 %v5760_v43  ;;  %v5820_v33 = vsel %vm389_vm9, %v5814_v0, %v5816_v55  ;;  %v6035_v0 = vsel %vm618_vm8, %v12137_v16, %v6030_v31  ;;  %v6093_v16 = vsel %vm748_vm7, %v12145_v53, %v12250_v60  ;;  %v6155_v53 = vsel %vm748_vm7, %v12163_v52, %v12326_v27 }
 0x8f0   : > { %6747 = vmatpush1.bf16.msra.mxu0 %v5759_v58  ;;  %6828 = vmatprep.subr.bf16.mxu1 %v5820_v33 }
 0x8f1   : > { %v12340_v40 = vpop.permute.xlu0 %6363  ;;  %6748 = vmatprep.subr.bf16.mxu0 %v12223_v47  ;;  %6829 = vmatpush1.bf16.msra.mxu1 %v5819_v44  ;;  %v5916_v47 = vsel %vm498_vm10, %v5910_v50, %v5912_v29  ;;  %v5867_v44 = vsel %vm498_vm10, %v12103_v37, %v5862_v13  ;;  %v5973_v37 = vsel %vm618_vm8, %v12119_v5, %v12240_v56 }
 0x8f2   : > { %6830 = vmatprep.subr.bf16.mxu1 %v12215_v63  ;;  %v12344_v7 = vpop.permute.xlu1 %6423  ;;  %v6094_v5 = vsel %vm748_vm7, %v12250_v60, %v12297_v26 }
 0x8f4   : > { %6749 = vmatpush1.bf16.msra.mxu0 %v5865_v21 }
 0x8f5   : > { %v12353_v33 = vpop.permute.xlu0 %6419  ;;  %6750 = vmatprep.subr.bf16.mxu0 %v5868_v14  ;;  %6831 = vmatpush1.bf16.msra.mxu1 %v5913_v12 }
 0x8f6   : > { %6832 = vmatprep.subr.bf16.mxu1 %v5916_v47  ;;  %v12356_v63 = vpop.permute.xlu1 %6463  ;;  %v13183_v47 = vld [vmem:[#allocation14_spill] sm:$0xff] }
 0x8f8   : > { %6751 = vmatpush1.bf16.msra.mxu0 %v5867_v44  ;;  %v7138_v44 = vcombine.low %v13183_v47, %v13183_v47 }
 0x8f9   : > { %v12364_v59 = vpop.permute.xlu0 %6465  ;;  %6752 = vmatprep.subr.bf16.mxu0 %v5974_v38  ;;  %6833 = vmatpush1.bf16.msra.mxu1 %v5915_v61 }
 0x8fa   : > { %6834 = vmatprep.subr.bf16.mxu1 %v6034_v17  ;;  %v12369_v29 = vpop.permute.xlu1 %6461 }
 0x8fb   : > { %v6473_v55 = vsel %vm1149_vm11, %v12369_v29, %v12356_v63 }
 0x8fc   : > { %6753 = vmatpush1.bf16.msra.mxu0 %v5973_v37 }
 0x8fd   : > { %v5972_v8 = vpop.permute.xlu0 %5971  ;;  %6835 = vmatpush1.bf16.msra.mxu1 %v6033_v2 }
 0x8fe   : > { %v6032_v13 = vpop.permute.xlu1 %6031  ;;  %v5976_v50 = vsel %vm618_vm8, %v5970_v41, %v5972_v8  ;;  %v13184_v8 = vmov 0  }
 0x8ff   : > { %6754 = vmatprep.subr.bf16.mxu0 %v5976_v50  ;;  %v6036_v39 = vsel %vm618_vm8, %v6030_v31, %v6032_v13 }
 0x900   : > { %6755 = vmatpush1.bf16.msra.mxu0 %v5975_v45  ;;  %6836 = vmatprep.subr.bf16.mxu1 %v6036_v39 }
 0x901   : > { %v12386_v57 = vpop.permute.xlu0 %6511  ;;  %6756 = vmatprep.subr.bf16.mxu0 %v6094_v5  ;;  %6837 = vmatpush1.bf16.msra.mxu1 %v6035_v0 }
 0x902   : > { %6838 = vmatprep.subr.bf16.mxu1 %v6154_v35  ;;  %v12391_v56 = vpop.permute.xlu1 %6513 }
 0x904   : > { %6757 = vmatpush1.bf16.msra.mxu0 %v6093_v16 }
 0x905   : > { %v6092_v26 = vpop.permute.xlu0 %6091  ;;  %6839 = vmatpush1.bf16.msra.mxu1 %v6153_v25 }
 0x906   : > { %v6152_v41 = vpop.permute.xlu1 %6151  ;;  %v6096_v31 = vsel %vm748_vm7, %v12324_v1, %v6092_v26 }
 0x907   : > { %6758 = vmatprep.subr.bf16.mxu0 %v6096_v31  ;;  %v6156_v20 = vsel %vm748_vm7, %v12326_v27, %v6152_v41  ;;  %v13182_v27 = vld [vmem:[#allocation36_spill] sm:$0xff] }
 0x908   : > { %6759 = vmatpush1.bf16.msra.mxu0 %v6095_v18  ;;  %6840 = vmatprep.subr.bf16.mxu1 %v6156_v20 }
 0x909   : > { %v6510_v28 = vpop.permute.xlu0 %6509  ;;  %6760 = vmatprep.subr.bf16.mxu0 %v13154_v22  ;;  %6841 = vmatpush1.bf16.msra.mxu1 %v6155_v53  ;;  %v6246_v22 = vsel %vm707_vm6, %v12299_v49, %v12179_v32 }
 0x90a   : > { %6842 = vmatprep.subr.bf16.mxu1 %v13159_v10  ;;  %v6470_v60 = vpop.permute.xlu1 %6469  ;;  %v6521_v43 = vsel %vm1149_vm11, %v6510_v28, %v12386_v57 }
 0x90c   : > { %6761 = vmatpush1.bf16.msra.mxu0 %v13156_v54  ;;  %v6306_v54 = vsel %vm707_vm6, %v12305_v34, %v12169_v62  ;;  %v13181_v34 = vld [vmem:[#allocation5_spill] sm:$0xff] }
 0x90d   : > { %v6472_v9 = vpop.permute.xlu0 %6471  ;;  %6762 = vmatprep.subr.bf16.mxu0 %v13128_v3  ;;  %6843 = vmatpush1.bf16.msra.mxu1 %v13165_v11 }
 0x90e   : > { %6844 = vmatprep.subr.bf16.mxu1 %v13127_v19  ;;  %v6468_v24 = vpop.permute.xlu1 %6467  ;;  %v6476_v58 = vsel %vm1149_vm11, %v6470_v60, %v6472_v9 }
 0x910   : > { %6763 = vmatpush1.bf16.msra.mxu0 %v11713_v4 }
 0x911   : > { %v6518_v52 = vpop.permute.xlu0 %6517  ;;  %6764 = vmatprep.subr.bf16.mxu0 %v6246_v22  ;;  %6845 = vmatpush1.bf16.msra.mxu1 %v11719_v36 }
 0x912   : > { %6846 = vmatprep.subr.bf16.mxu1 %v6306_v54  ;;  %v6242_v3 = vpop.permute.xlu1 %6241 }
 0x913   : > { %v6248_v19 = vsel %vm707_vm6, %v6242_v3, %v12187_v6  ;;  %v6247_v36 = vsel %vm707_vm6, %v12328_v15, %v6242_v3 }
 0x914   : > { %6765 = vmatpush1.bf16.msra.mxu0 %v12303_v48  ;;  %v13180_v48 = vld [vmem:[#allocation4_spill] sm:$0xff] }
 0x915   : > { %v6302_v4 = vpop.permute.xlu0 %6301  ;;  %6766 = vmatprep.subr.bf16.mxu0 %v6248_v19  ;;  %6847 = vmatpush1.bf16.msra.mxu1 %v12309_v23 }
 0x916   : > { %v6520_v10 = vpop.permute.xlu1 %6519  ;;  %v6308_v32 = vsel %vm707_vm6, %v6302_v4, %v12183_v51  ;;  %v6307_v62 = vsel %vm707_vm6, %v12330_v30, %v6302_v4  ;;  %v6522_v30 = vsel %vm1149_vm11, %v12386_v57, %v12391_v56  ;;  %v7380_v57 = vld [vmem:[%s12497_s3 + $0x8] ss:$0 sps:$4 sm:$0xff]  }
 0x917   : > { %6848 = vmatprep.subr.bf16.mxu1 %v6308_v32  ;;  %v6524_v12 = vsel %vm1149_vm11, %v6518_v52, %v6520_v10 }
 0x918   : > { %6767 = vmatpush1.bf16.msra.mxu0 %v6247_v36 }
 0x919   : > { %v6516_v11 = vpop.permute.xlu0 %6515  ;;  %6768 = vmatprep.subr.bf16.mxu0 %v12315_v42  ;;  %6849 = vmatpush1.bf16.msra.mxu1 %v6307_v62 }
 0x91a   : > { %6850 = vmatprep.subr.bf16.mxu1 %v12322_v46  ;;  %v6362_v6 = vpop.permute.xlu1 %6361 }
 0x91b   : > { %v6368_v49 = vsel %vm577_vm5, %v6362_v6, %v12340_v40  ;;  %v6367_v42 = vsel %vm577_vm5, %v13182_v27, %v6362_v6  ;;  %v6474_v40 = vsel %vm1149_vm11, %v12356_v63, %v12364_v59  ;;  %v6523_v63 = vsel %vm1149_vm11, %v6516_v11, %v6518_v52 }
 0x91c   : > { %6769 = vmatpush1.bf16.msra.mxu0 %v13180_v48 }
 0x91d   : > { %v6422_v51 = vpop.permute.xlu0 %6421  ;;  %6770 = vmatprep.subr.bf16.mxu0 %v6368_v49  ;;  %6851 = vmatpush1.bf16.msra.mxu1 %v13181_v34  ;;  %v7416_v49 = vmov 1966171168  }
 0x91e   : > { %v6572_v23 = vpop.permute.xlu1 %6571  ;;  %v6428_v1 = vsel %vm577_vm5, %v6422_v51, %v12344_v7  ;;  %v6427_v46 = vsel %vm577_vm5, %v12353_v33, %v6422_v51  ;;  %v6475_v33 = vsel %vm1149_vm11, %v6468_v24, %v6470_v60  ;;  %v6924_v48 = vunpack.c.l.s4 %v7416_v49 }
 0x91f   : > { %6852 = vmatprep.subr.bf16.mxu1 %v6428_v1 }
 0x920   : > { %6771 = vmatpush1.bf16.msra.mxu0 %v6367_v42  ;;  %v6925_v34 = vunpack.c.0.s8 %v6924_v48 }
 0x921   : > { %v6574_v15 = vpop.permute.xlu0 %6573  ;;  %6772 = vmatprep.subr.bf16.mxu0 %v6474_v40  ;;  %6853 = vmatpush1.bf16.msra.mxu1 %v6427_v46 }
 0x922   : > { %6854 = vmatprep.subr.bf16.mxu1 %v6522_v30  ;;  %v6570_v7 = vpop.permute.xlu1 %6569  ;;  %v6582_v61 = vsel %vm348_vm4, %v6572_v23, %v6574_v15 }
 0x923   : > { %v6581_v29 = vsel %vm348_vm4, %v6570_v7, %v6572_v23  ;;  %v13185_v23 = vlaneseq }
 0x924   : > { %6773 = vmatpush1.bf16.msra.mxu0 %v6473_v55 }
 0x925   : > { %v6632_v21 = vpop.permute.xlu0 %6631  ;;  %6774 = vmatprep.subr.bf16.mxu0 %v6476_v58  ;;  %6855 = vmatpush1.bf16.msra.mxu1 %v6521_v43  ;;  %v6927_v1 = vshrl.u32 %v13185_v23, 7  ;;  %vm6940_vm13 = vcmp.lt.s32.totalorder %v13185_v23, 256 }
 0x926   : > { %6856 = vmatprep.subr.bf16.mxu1 %v6524_v12  ;;  %v6634_v14 = vpop.permute.xlu1 %6633 }
 0x927   : > { %v6642_v59 = vsel %vm348_vm4, %v6632_v21, %v6634_v14  ;;  %v6928_v42 = vsub.s32 %v6925_v34, %v6927_v1 }
 0x928   : > { %6775 = vmatpush1.bf16.msra.mxu0 %v6475_v33 }
 0x929   : > { %v6630_v38 = vpop.permute.xlu0 %6629  ;;  %6785 = vmatprep.subr.bf16.mxu0 %v6582_v61  ;;  %6857 = vmatpush1.bf16.msra.mxu1 %v6523_v63 }
 0x92a   : > { %6867 = vmatprep.subr.bf16.mxu1 %v6642_v59  ;;  %v6576_v17 = vpop.permute.xlu1 %6575  ;;  %v6641_v37 = vsel %vm348_vm4, %v6630_v38, %v6632_v21 }
 0x92b   : > { %6777 = vmatmul.mubr.bf16.vlgmr.msra.gmra.mrb[32].mxu0 %v7138_v44 }
 0x92c   : > { %6786 = vmatpush1.bf16.msra.mxu0 %v6581_v29  ;;  %6859 = vmatmul.mubr.bf16.vlgmr.msra.gmra.mrb[32].mxu1 %v7138_v44 }
 0x92d   : > { %v6580_v2 = vpop.permute.xlu0 %6579  ;;  %6868 = vmatpush1.bf16.msra.mxu1 %v6641_v37  ;;  %6817 = vmatprep.mubr.bf16.mxu0 %v13184_v8 }
 0x92e   : > { %v6578_v13 = vpop.permute.xlu1 %6577  ;;  %6899 = vmatprep.mubr.bf16.mxu1 %v13184_v8 }
 0x92f   : > { %v6583_v50 = vsel %vm348_vm4, %v6576_v17, %v6578_v13  ;;  %v6584_v45 = vsel %vm348_vm4, %v6578_v13, %v6580_v2 }
 0x930   : > { %6787 = vmatprep.subr.bf16.mxu0 %v6584_v45 }
 0x931   : > { %v6638_v39 = vpop.permute.xlu0 %6637  ;;  %6788 = vmatpush1.bf16.msra.mxu0 %v6583_v50 }
 0x932   : > { %v6640_v0 = vpop.permute.xlu1 %6639 }
 0x933   : > { %v6644_v5 = vsel %vm348_vm4, %v6638_v39, %v6640_v0 }
 0x934   : > { %6869 = vmatprep.subr.bf16.mxu1 %v6644_v5 }
 0x935   : > { %v6636_v35 = vpop.permute.xlu0 %6635 }
 0x936   : > { %v6643_v56 = vsel %vm348_vm4, %v6636_v35, %v6638_v39 }
 0x937   : > { %7141 = vmatmul.mubr.msk.bf16.vlgmr.msra.gmra.mrb[32].mxu0 %vm1466_vm12, %v7380_v57  ;;  %6870 = vmatpush1.bf16.msra.mxu1 %v6643_v56 }
 0x93a   : > { %7142 = vmatmul.mubr.msk.bf16.vlgmr.msra.gmra.mrb[32].mxu1 %vm1466_vm12, %v7380_v57 }
 0x943   : > { %v6729_v16 = vpop.permute.xlu1 %6728 }
 0xa0a   : > { %v6819_v25 = vpop.f32.mrb[32].mxu0 }
 0xa0b   : > { %v7218_v26 = vadd.f32 %v6819_v25, %v6729_v16  ;;  %v6821_v41 = vpop.f32.mrb[33].mxu0 }
 0xa0c   : > { %v7219_v31 = vadd.f32 %v6821_v41, %v6729_v16  ;;  %v6823_v18 = vpop.f32.mrb[34].mxu0 }
 0xa0d   : > { %v7143_v20 = vmul.f32 -1.442695, %v7218_v26  ;;  %6944 = vst [vmem:[%s12481_s14] sm:$0xfe] %v7218_v26  ;;  %v6824_v53 = vpop.f32.mrb[35].mxu0  ;;  %v6901_v28 = vpop.f32.mrb[32].mxu1 }
 0xa0e   : > { %v7144_v60 = vmul.f32 -1.442695, %v7219_v31  ;;  %6945 = vst [vmem:[%s12481_s14 + $0x8] sm:$0xfe] %v7219_v31  ;;  %v7220_v9 = vadd.f32 %v6901_v28, %v6729_v16  ;;  %v6903_v24 = vpop.f32.mrb[33].mxu1 }
 0xa0f   : > { %7381 = vpow2.f32 %v7143_v20  ;;  %v7221_v22 = vadd.f32 %v6903_v24, %v6729_v16  ;;  %v6905_v52 = vpop.f32.mrb[34].mxu1 }
 0xa10   : > { %7383 = vpow2.f32 %v7144_v60  ;;  %v7145_v54 = vmul.f32 -1.442695, %v7220_v9  ;;  %7148 = vst [vmem:[%s12481_s14 + $0x10] sm:$0xfe] %v7220_v9  ;;  %v6906_v3 = vpop.f32.mrb[35].mxu1 }
 0xa11   : > { %v7146_v19 = vmul.f32 -1.442695, %v7221_v22  ;;  %7149 = vst [vmem:[%s12481_s14 + $0x18] sm:$0xfe] %v7221_v22 }
 0xa12   : > { %7385 = vpow2.f32 %v7145_v54 }
 0xa13   : > { %7387 = vpow2.f32 %v7146_v19 }
 0xa19   : > { %v7382_v4 = vpop.eup %7381 }
 0xa1a   : > { %v7384_v10 = vpop.eup %7383  ;;  %v6914_v32 = vadd.f32 1.0, %v7382_v4 }
 0xa1b   : > { %v6915_v36 = vadd.f32 1.0, %v7384_v10 }
 0xa1c   : > { %v7386_v62 = vpop.eup %7385  ;;  %7389 = vrcp.f32 %v6914_v32 }
 0xa1d   : > { %v7388_v11 = vpop.eup %7387  ;;  %7391 = vrcp.f32 %v6915_v36  ;;  %v6952_v6 = vadd.f32 1.0, %v7386_v62 }
 0xa1e   : > { %v6953_v51 = vadd.f32 1.0, %v7388_v11 }
 0xa1f   : > { %7393 = vrcp.f32 %v6952_v6 }
 0xa20   : > { %7395 = vrcp.f32 %v6953_v51 }
 0xa26   : > { %v7390_v27 = vpop.eup %7389 }
 0xa27   : > { %v7392_v46 = vpop.eup %7391 }
 0xa28   : > { %v6922_v40 = vcombine.low %v7390_v27, %v7392_v46 }
 0xa29   : > { %v7394_v15 = vpop.eup %7393 }
 0xa2a   : > { %v7396_v30 = vpop.eup %7395  ;;  %v6929_v7 = vrot.slane %v6922_v40, %v6928_v42 }
 0xa2b   : > { %v6960_v55 = vcombine.low %v7394_v15, %v7396_v30 }
 0xa2c   : > { %v6936_v43 = vrot.slane %v6929_v7, %v6928_v42 }
 0xa2d   : > { %v6967_v58 = vrot.slane %v6960_v55, %v6928_v42 }
 0xa2e   : > { %6942 = vst.msk [vmem:[%s12481_s14] ss:$8 sm:$0x3] %vm6940_vm13, %v6936_v43 }
 0xa2f   : > { %v6974_v21 = vrot.slane %v6967_v58, %v6928_v42 }
 0xa31   : > { %7147 = vst.msk [vmem:[%s12481_s14 + $0x10] ss:$8 sm:$0x3] %vm6940_vm13, %v6974_v21 }
 0xa32 PF: > { %s15_s18 = sadd.s32 1, %s7403_s18  }
 0xa33   : > { %p12_p4 = scmp.ge.s32.totalorder %s15_s18, 4  }
 0xa35   :  { %14 = sbr.rel (!%p12_p4) target bundleno = 1 (0x1), region = 78 }

</bundles_post_ra>
